<compile_context>
chip_gen: v5e
topology: v5e:2x2
jax: 0.10.0
libtpu: 0.0.40
codegen_flags: <defaults>
</compile_context>

<pallas_src>
import math

import jax
import jax.numpy as jnp
from jax.experimental import pallas as pl
from jax.experimental.pallas import tpu as pltpu

# ---------------- hyperparameters (small, consistent with the module) ----------------
NUM_NODES = 8          # must be a multiple of 8 for sublane-aligned patch slices
IN_STEPS = 12
OUT_STEPS = 12
STEPS_PER_DAY = 288
INPUT_DIM = 3
OUTPUT_DIM = 1
INPUT_EMB = 24
TOD_EMB = 24
DOW_EMB = 24
ADP_EMB = 80
MODEL_DIM = INPUT_EMB + TOD_EMB + DOW_EMB + ADP_EMB   # 152
FFN_DIM = 256
NUM_HEADS = 4
NUM_LAYERS = 3
PATCH_SIZE = 6
STRIDE = 3
HIDDEN = 128
HEAD_DIM = HIDDEN // NUM_HEADS                        # 32
ATTN_SCALE = 1.0 / math.sqrt(HEAD_DIM)
COUNT_P = (IN_STEPS - PATCH_SIZE) // STRIDE + 1       # 3
BATCH = 2
LN_EPS = 1e-5
OUT_FEATS = OUT_STEPS * OUTPUT_DIM                    # 12 (padded to 128 lanes)
PATCH_FEAT = PATCH_SIZE * MODEL_DIM                   # 912 (unpadded)
PATCH_FEAT_PAD = 1024                                 # lane-dense K for patching matmul


def _layernorm(x, g, b):
    mu = jnp.mean(x, axis=-1, keepdims=True)
    var = jnp.mean((x - mu) * (x - mu), axis=-1, keepdims=True)
    return (x - mu) * jax.lax.rsqrt(var + LN_EPS) * g + b


def make_kernel(b_tile):
    R = b_tile * NUM_NODES          # rows per patch slice inside a block
    ROWS = COUNT_P * R              # total token rows per block

    # packed per-layer vector rows (vecs_ref[l]):
    #   0=bq 1=bk 2=bv 3=bo 4=b2 5=ln1_gamma 6=ln1_beta 7=ln2_gamma 8=ln2_beta
    def kernel(x_ref, wp_ref, wqkv_ref, wo_ref, w1_ref, w2_ref,
               wout_ref, whead_ref, vecs_ref, b1_ref, misc_ref, out_ref):
        x = x_ref[0]                               # (ROWS, PATCH_FEAT_PAD) bf16, patch-major
        misc = misc_ref[...]                       # (2, 128): row 0 = bp, row 1 = bout(pad)
        bp = misc[0:1, :]
        bout = misc[1:2, :]

        # patching linear: Linear(patch_size*model_dim -> hidden), K padded to 1024
        tokens = jnp.dot(x, wp_ref[...], preferred_element_type=jnp.float32) + bp

        whead = whead_ref[...]                     # (128,128) bf16 block-diag of ones

        for l in range(NUM_LAYERS):                # temporal SelfAttentionLayers (over patches)
            vl = vecs_ref[l]                       # (9, 128) f32
            resid = tokens

            # fused QKV projection (bf16 operands, f32 accumulate), 128-aligned lane slices
            qkv = jnp.dot(tokens.astype(jnp.bfloat16), wqkv_ref[l],
                          preferred_element_type=jnp.float32)
            q = (qkv[:, 0:HIDDEN] + vl[0:1, :]) * ATTN_SCALE     # scale folded into q (f32)
            k = qkv[:, HIDDEN:2 * HIDDEN] + vl[1:2, :]
            v = qkv[:, 2 * HIDDEN:3 * HIDDEN] + vl[2:3, :]

            # ---- attention scores: ONE stacked matmul against whead per layer ----
            lhs_blocks = []
            for pi in range(COUNT_P):
                qi = q[pi * R:(pi + 1) * R, :]                       # (R, 128)
                qi_rep = jnp.concatenate([qi] * COUNT_P, axis=0)     # (ROWS, 128)
                lhs_blocks.append(qi_rep * k)
            lhs = jnp.concatenate(lhs_blocks, axis=0).astype(jnp.bfloat16)  # (P*ROWS,128)
            # per-head score sums, broadcast across each head's 32 lanes
            s_all = jnp.dot(lhs, whead, preferred_element_type=jnp.float32)  # (P*ROWS,128)

            attn_rows = []
            for pi in range(COUNT_P):
                s_pi = s_all[pi * ROWS:(pi + 1) * ROWS, :]
                s = [s_pi[pj * R:(pj + 1) * R, :] for pj in range(COUNT_P)]
                m = s[0]
                for pj in range(1, COUNT_P):
                    m = jnp.maximum(m, s[pj])
                e = [jnp.exp(sj - m) for sj in s]
                den = e[0]
                for pj in range(1, COUNT_P):
                    den = den + e[pj]
                inv = pl.reciprocal(den)            # exact (EUP), off MXU critical path
                row = (e[0] * inv) * v[0:R, :]
                for pj in range(1, COUNT_P):
                    row = row + (e[pj] * inv) * v[pj * R:(pj + 1) * R, :]
                attn_rows.append(row)
            attn = jnp.concatenate(attn_rows, axis=0)                # (ROWS, 128) f32
            attn = jnp.dot(attn.astype(jnp.bfloat16), wo_ref[l],
                           preferred_element_type=jnp.float32) + vl[3:4, :]

            x1 = _layernorm(resid + attn, vl[5:6, :], vl[6:7, :])
            h1 = jnp.maximum(
                jnp.dot(x1.astype(jnp.bfloat16), w1_ref[l],
                        preferred_element_type=jnp.float32) + b1_ref[l],
                0.0)
            h2 = jnp.dot(h1.astype(jnp.bfloat16), w2_ref[l],
                         preferred_element_type=jnp.float32) + vl[4:5, :]
            tokens = _layernorm(x1 + h2, vl[7:8, :], vl[8:9, :])

        # mixed output projection: per (batch,node) row, concat patches along features.
        # Implemented as COUNT_P accumulating (R,128)x(128,128) dots against the
        # 128-row slices of wout (no lane-concat copy in VMEM).
        out = bout                                                   # (1, 128) broadcast
        for p in range(COUNT_P):
            out = out + jnp.dot(tokens[p * R:(p + 1) * R, :].astype(jnp.bfloat16),
                                wout_ref[p], preferred_element_type=jnp.float32)
        out_ref[0] = out                                             # (R, 128) lane-dense

    return kernel


def init_params(key):
    ks = jax.random.split(key, 8)

    def lin(k, fan_in, fan_out):
        kw, kb = jax.random.split(k)
        lim = 1.0 / math.sqrt(fan_in)
        w = jax.random.uniform(kw, (fan_in, fan_out), jnp.float32, -lim, lim)
        b = jax.random.uniform(kb, (fan_out,), jnp.float32, -lim, lim)
        return w, b

    p = {}
    p['w_in'], p['b_in'] = lin(ks[0], INPUT_DIM, INPUT_EMB)
    p['tod_table'] = jax.random.normal(ks[1], (STEPS_PER_DAY, TOD_EMB), jnp.float32)
    p['dow_table'] = jax.random.normal(ks[2], (7, DOW_EMB), jnp.float32)
    p['adaptive'] = jax.random.uniform(ks[3], (IN_STEPS, NUM_NODES, ADP_EMB),
                                       jnp.float32, -0.1, 0.1)

    wp, bp = lin(ks[4], PATCH_FEAT, HIDDEN)
    # pad K dim 912 -> 1024 with zeros (lane-dense patching matmul), store bf16
    p['wp'] = jnp.pad(wp, ((0, PATCH_FEAT_PAD - PATCH_FEAT), (0, 0))).astype(jnp.bfloat16)

    wqkv, wo, w1, w2, vecs, b1s = [], [], [], [], [], []
    for l in range(NUM_LAYERS):
        kl = jax.random.fold_in(ks[5], l)
        kq, kk, kv, ko, k1, k2 = jax.random.split(kl, 6)
        wq_l, bq_l = lin(kq, HIDDEN, HIDDEN)
        wk_l, bk_l = lin(kk, HIDDEN, HIDDEN)
        wv_l, bv_l = lin(kv, HIDDEN, HIDDEN)
        wo_l, bo_l = lin(ko, HIDDEN, HIDDEN)
        w1_l, b1_l = lin(k1, HIDDEN, FFN_DIM)
        w2_l, b2_l = lin(k2, FFN_DIM, HIDDEN)
        wqkv.append(jnp.concatenate([wq_l, wk_l, wv_l], axis=1))   # (128, 384)
        wo.append(wo_l)
        w1.append(w1_l)
        w2.append(w2_l)
        ones = jnp.ones((HIDDEN,), jnp.float32)
        zeros = jnp.zeros((HIDDEN,), jnp.float32)
        vecs.append(jnp.stack([bq_l, bk_l, bv_l, bo_l, b2_l,
                               ones, zeros, ones, zeros], axis=0))  # (9, 128)
        b1s.append(b1_l.reshape(1, FFN_DIM))
    p['wqkv'] = jnp.stack(wqkv).astype(jnp.bfloat16)   # (L, 128, 384)
    p['wo'] = jnp.stack(wo).astype(jnp.bfloat16)       # (L, 128, 128)
    p['w1'] = jnp.stack(w1).astype(jnp.bfloat16)       # (L, 128, 256)
    p['w2'] = jnp.stack(w2).astype(jnp.bfloat16)       # (L, 256, 128)
    p['vecs'] = jnp.stack(vecs)                        # (L, 9, 128) f32
    p['b1s'] = jnp.stack(b1s)                          # (L, 1, 256) f32

    wout, bout = lin(ks[6], COUNT_P * HIDDEN, OUT_FEATS)
    # lane-dense output projection: pad to 128 output lanes, split per patch slice
    wout_pad = jnp.pad(wout, ((0, 0), (0, HIDDEN - OUT_FEATS)))     # (384, 128)
    p['wout'] = wout_pad.reshape(COUNT_P, HIDDEN, HIDDEN).astype(jnp.bfloat16)  # (P,128,128)
    bout_pad = jnp.pad(bout, (0, HIDDEN - OUT_FEATS))
    p['misc'] = jnp.stack([bp, bout_pad], axis=0)                   # (2, 128) f32

    # block-diagonal head-sum-and-broadcast matrix (pure 0/1, exact in bf16;
    # the 1/sqrt(head_dim) scale is applied to q in f32 inside the kernel)
    lane = jnp.arange(HIDDEN)
    whead = (lane[:, None] // HEAD_DIM == lane[None, :] // HEAD_DIM)
    p['whead'] = whead.astype(jnp.bfloat16)                         # (128, 128)
    return p


def _pick_b_tile(B):
    # Fold as much batch as possible into the matmul M dimension (grid may be 1;
    # at small B the per-matmul weight push dominates, so bigger M always wins).
    # Cap ROWS around ~1024 so even v7x (32 MiB scoped / 64 MiB physical VMEM)
    # keeps ample headroom with double-buffered input slabs.
    cap = max(1, 1024 // (COUNT_P * NUM_NODES))
    best = 1
    for t in range(1, min(B, cap) + 1):
        if B % t == 0:
            best = t
    return best


def patchformer_forward(hist, params, b_tile=None):
    B = hist.shape[0]

    # ---- glue: embedding lookups, feature concat, unfold (no Pallas hot path) ----
    x_in = hist[..., :INPUT_DIM]
    x_emb = jnp.einsum('btnc,cd->btnd', x_in, params['w_in']) + params['b_in']
    tod_idx = jnp.clip((hist[..., 1] * STEPS_PER_DAY).astype(jnp.int32),
                       0, STEPS_PER_DAY - 1)
    dow_idx = jnp.clip((hist[..., 2] * 7).astype(jnp.int32), 0, 6)
    tod_emb = params['tod_table'][tod_idx]
    dow_emb = params['dow_table'][dow_idx]
    adp = jnp.broadcast_to(params['adaptive'][None], (B, IN_STEPS, NUM_NODES, ADP_EMB))
    xcat = jnp.concatenate([x_emb, tod_emb, dow_emb, adp], axis=-1)   # (B,T,N,MODEL_DIM)

    xt = jnp.transpose(xcat, (0, 2, 1, 3))                            # (B,N,T,D)
    # torch unfold(-2, patch, stride): (B,N,P,D,patch), then flatten (D, patch)
    patches = jnp.stack(
        [xt[:, :, p * STRIDE:p * STRIDE + PATCH_SIZE, :] for p in range(COUNT_P)], axis=2)
    patches = jnp.transpose(patches, (0, 1, 2, 4, 3))                 # (B,N,P,D,patch)
    xp = patches.reshape(B, NUM_NODES, COUNT_P, PATCH_FEAT)
    # zero-pad features to a lane-dense multiple of 128 (912 -> 1024)
    xp = jnp.pad(xp, ((0, 0), (0, 0), (0, 0), (0, PATCH_FEAT_PAD - PATCH_FEAT)))

    if b_tile is None:
        b_tile = _pick_b_tile(B)
    assert B % b_tile == 0
    nblk = B // b_tile
    R = b_tile * NUM_NODES
    ROWS = COUNT_P * R

    # kernel token layout per block: patch-major, then batch, then node
    xk = jnp.transpose(xp, (0, 2, 1, 3))                              # (B, P, N, C)
    xk = xk.reshape(nblk, b_tile, COUNT_P, NUM_NODES, PATCH_FEAT_PAD)
    xk = jnp.transpose(xk, (0, 2, 1, 3, 4))                           # (nblk, P, bt, N, C)
    xk = xk.reshape(nblk, ROWS, PATCH_FEAT_PAD).astype(jnp.bfloat16)  # bf16 matmul operand

    def rep(a):
        return pl.BlockSpec(a.shape, lambda g, _n=a.ndim: (0,) * _n)

    kernel_args = (xk, params['wp'], params['wqkv'], params['wo'], params['w1'],
                   params['w2'], params['wout'], params['whead'], params['vecs'],
                   params['b1s'], params['misc'])

    grid_spec = pltpu.PrefetchScalarGridSpec(
        num_scalar_prefetch=0,
        grid=(nblk,),
        in_specs=[
            pl.BlockSpec((1, ROWS, PATCH_FEAT_PAD), lambda g: (g, 0, 0)),
            rep(params['wp']), rep(params['wqkv']), rep(params['wo']),
            rep(params['w1']), rep(params['w2']), rep(params['wout']),
            rep(params['whead']), rep(params['vecs']), rep(params['b1s']),
            rep(params['misc']),
        ],
        out_specs=pl.BlockSpec((1, R, HIDDEN), lambda g: (g, 0, 0)),
    )

    # advisory cost estimate (Python ints)
    flops_patch = 2 * ROWS * PATCH_FEAT_PAD * HIDDEN
    flops_layer = (2 * ROWS * HIDDEN * 3 * HIDDEN                     # fused QKV
                   + 2 * (COUNT_P * ROWS) * HIDDEN * HIDDEN           # stacked scores
                   + 2 * ROWS * HIDDEN * HIDDEN                       # attn out proj
                   + 2 * ROWS * HIDDEN * FFN_DIM
                   + 2 * ROWS * FFN_DIM * HIDDEN)
    flops_out = COUNT_P * 2 * R * HIDDEN * HIDDEN
    flops = nblk * (flops_patch + NUM_LAYERS * flops_layer + flops_out)
    transcend = nblk * NUM_LAYERS * (COUNT_P * COUNT_P * R * HIDDEN
                                     + COUNT_P * R * HIDDEN + 2 * ROWS)
    # replicated weights (constant index_map) are DMA'd once, not nblk times
    in_bytes = int(xk.size) * 2
    param_bytes = sum(int(a.size) * int(a.dtype.itemsize) for a in kernel_args[1:])
    out_bytes = nblk * R * HIDDEN * 4
    bytes_accessed = in_bytes + param_bytes + out_bytes

    out = pl.pallas_call(
        make_kernel(b_tile),
        grid_spec=grid_spec,
        out_shape=jax.ShapeDtypeStruct((nblk, R, HIDDEN), jnp.float32),
        compiler_params=pltpu.CompilerParams(
            dimension_semantics=("parallel",),
            vmem_limit_bytes=32 * 1024 * 1024),
        cost_estimate=pl.CostEstimate(flops=flops,
                                      transcendentals=transcend,
                                      bytes_accessed=bytes_accessed),
    )(*kernel_args)

    out = out.reshape(B, NUM_NODES, HIDDEN)[..., :OUT_FEATS]          # slice lane padding
    out = out.reshape(B, NUM_NODES, OUT_STEPS, OUTPUT_DIM)
    out = jnp.transpose(out, (0, 2, 1, 3))   # (B, out_steps, num_nodes, output_dim)
    return out


if __name__ == "__main__":
    key = jax.random.PRNGKey(0)
    kp, kx, kt, kd = jax.random.split(key, 4)
    params = init_params(kp)
    val = jax.random.normal(kx, (BATCH, IN_STEPS, NUM_NODES, 1), jnp.float32)
    tod = jax.random.uniform(kt, (BATCH, IN_STEPS, NUM_NODES, 1), jnp.float32, 0.0, 0.999)
    dow = jax.random.uniform(kd, (BATCH, IN_STEPS, NUM_NODES, 1), jnp.float32, 0.0, 0.999)
    history_data = jnp.concatenate([val, tod, dow], axis=-1)   # (B, T, N, 3)

    out = patchformer_forward(history_data, params)
    jax.block_until_ready(out)
    assert out.shape == (BATCH, OUT_STEPS, NUM_NODES, OUTPUT_DIM), out.shape
    print("KERNEL_OK")
</pallas_src>

<mosaic_0001>
module attributes {stable_mosaic.version = 11 : i64} {
  func.func @kernel(%arg0: i32, %arg1: memref<1x48x1024xbf16, #tpu.memory_space<vmem>>, %arg2: memref<1024x128xbf16, #tpu.memory_space<vmem>>, %arg3: memref<3x128x384xbf16, #tpu.memory_space<vmem>>, %arg4: memref<3x128x128xbf16, #tpu.memory_space<vmem>>, %arg5: memref<3x128x256xbf16, #tpu.memory_space<vmem>>, %arg6: memref<3x256x128xbf16, #tpu.memory_space<vmem>>, %arg7: memref<3x128x128xbf16, #tpu.memory_space<vmem>>, %arg8: memref<128x128xbf16, #tpu.memory_space<vmem>>, %arg9: memref<3x9x128xf32, #tpu.memory_space<vmem>>, %arg10: memref<3x1x256xf32, #tpu.memory_space<vmem>>, %arg11: memref<2x128xf32, #tpu.memory_space<vmem>>, %arg12: memref<1x16x128xf32, #tpu.memory_space<vmem>>) attributes {dimension_semantics = [#tpu.dimension_semantics<parallel>], iteration_bounds = array<i64: 1>, scalar_prefetch = 0 : i64, scratch_operands = 0 : i64, tpu.core_type = #tpu.core_type<tc>, window_params = [{transform_indices = @transform_0, window_bounds = array<i64: 1, 48, 1024>}, {pipeline_mode = #tpu.pipeline_mode<synchronous>, transform_indices = @transform_1, window_bounds = array<i64: 1024, 128>}, {pipeline_mode = #tpu.pipeline_mode<synchronous>, transform_indices = @transform_2, window_bounds = array<i64: 3, 128, 384>}, {pipeline_mode = #tpu.pipeline_mode<synchronous>, transform_indices = @transform_3, window_bounds = array<i64: 3, 128, 128>}, {pipeline_mode = #tpu.pipeline_mode<synchronous>, transform_indices = @transform_4, window_bounds = array<i64: 3, 128, 256>}, {pipeline_mode = #tpu.pipeline_mode<synchronous>, transform_indices = @transform_5, window_bounds = array<i64: 3, 256, 128>}, {pipeline_mode = #tpu.pipeline_mode<synchronous>, transform_indices = @transform_6, window_bounds = array<i64: 3, 128, 128>}, {pipeline_mode = #tpu.pipeline_mode<synchronous>, transform_indices = @transform_7, window_bounds = array<i64: 128, 128>}, {pipeline_mode = #tpu.pipeline_mode<synchronous>, transform_indices = @transform_8, window_bounds = array<i64: 3, 9, 128>}, {pipeline_mode = #tpu.pipeline_mode<synchronous>, transform_indices = @transform_9, window_bounds = array<i64: 3, 1, 256>}, {pipeline_mode = #tpu.pipeline_mode<synchronous>, transform_indices = @transform_10, window_bounds = array<i64: 2, 128>}, {transform_indices = @transform_11, window_bounds = array<i64: 1, 16, 128>}]} {
    %c0 = arith.constant 0 : index
    %c0_0 = arith.constant 0 : index
    %c0_1 = arith.constant 0 : index
    %0 = vector.load %arg1[%c0, %c0_0, %c0_1] : memref<1x48x1024xbf16, #tpu.memory_space<vmem>>, vector<1x48x1024xbf16>
    %1 = vector.shape_cast %0 : vector<1x48x1024xbf16> to vector<48x1024xbf16>
    %c0_2 = arith.constant 0 : index
    %c0_3 = arith.constant 0 : index
    %2 = vector.load %arg11[%c0_2, %c0_3] : memref<2x128xf32, #tpu.memory_space<vmem>>, vector<2x128xf32>
    %3 = vector.extract_strided_slice %2 {offsets = [0, 0], sizes = [1, 128], strides = [1, 1]} : vector<2x128xf32> to vector<1x128xf32>
    %4 = vector.extract_strided_slice %2 {offsets = [1, 0], sizes = [1, 128], strides = [1, 1]} : vector<2x128xf32> to vector<1x128xf32>
    %c0_4 = arith.constant 0 : index
    %c0_5 = arith.constant 0 : index
    %5 = vector.load %arg2[%c0_4, %c0_5] : memref<1024x128xbf16, #tpu.memory_space<vmem>>, vector<1024x128xbf16>
    %cst = arith.constant dense<0.000000e+00> : vector<48x128xf32>
    %6 = tpu.matmul %1, %5, %cst {dimension_numbers = #tpu.dot_dimension_numbers<[1], [0], [0], [1], [0, 0, 1, 1], [], []>} : vector<48x1024xbf16>, vector<1024x128xbf16>, vector<48x128xf32> -> vector<48x128xf32>
    %7 = vector.broadcast %3 : vector<1x128xf32> to vector<48x128xf32>
    %8 = arith.addf %6, %7 : vector<48x128xf32>
    %c0_6 = arith.constant 0 : index
    %c0_7 = arith.constant 0 : index
    %9 = vector.load %arg8[%c0_6, %c0_7] : memref<128x128xbf16, #tpu.memory_space<vmem>>, vector<128x128xbf16>
    %c0_8 = arith.constant 0 : index
    %c0_9 = arith.constant 0 : index
    %c0_10 = arith.constant 0 : index
    %10 = vector.load %arg9[%c0_8, %c0_9, %c0_10] : memref<3x9x128xf32, #tpu.memory_space<vmem>>, vector<1x9x128xf32>
    %11 = vector.shape_cast %10 : vector<1x9x128xf32> to vector<9x128xf32>
    %12 = arith.truncf %8 : vector<48x128xf32> to vector<48x128xbf16>
    %c0_11 = arith.constant 0 : index
    %c0_12 = arith.constant 0 : index
    %c0_13 = arith.constant 0 : index
    %13 = vector.load %arg3[%c0_11, %c0_12, %c0_13] : memref<3x128x384xbf16, #tpu.memory_space<vmem>>, vector<1x128x384xbf16>
    %14 = vector.shape_cast %13 : vector<1x128x384xbf16> to vector<128x384xbf16>
    %cst_14 = arith.constant dense<0.000000e+00> : vector<48x384xf32>
    %15 = tpu.matmul %12, %14, %cst_14 {dimension_numbers = #tpu.dot_dimension_numbers<[1], [0], [0], [1], [0, 0, 1, 1], [], []>} : vector<48x128xbf16>, vector<128x384xbf16>, vector<48x384xf32> -> vector<48x384xf32>
    %16 = vector.extract_strided_slice %15 {offsets = [0, 0], sizes = [48, 128], strides = [1, 1]} : vector<48x384xf32> to vector<48x128xf32>
    %17 = vector.extract_strided_slice %11 {offsets = [0, 0], sizes = [1, 128], strides = [1, 1]} : vector<9x128xf32> to vector<1x128xf32>
    %18 = vector.broadcast %17 : vector<1x128xf32> to vector<48x128xf32>
    %19 = arith.addf %16, %18 : vector<48x128xf32>
    %cst_15 = arith.constant 0.176776692 : f32
    %20 = vector.broadcast %cst_15 : f32 to vector<48x128xf32>
    %21 = arith.mulf %19, %20 : vector<48x128xf32>
    %22 = vector.extract_strided_slice %15 {offsets = [0, 128], sizes = [48, 128], strides = [1, 1]} : vector<48x384xf32> to vector<48x128xf32>
    %23 = vector.extract_strided_slice %11 {offsets = [1, 0], sizes = [1, 128], strides = [1, 1]} : vector<9x128xf32> to vector<1x128xf32>
    %24 = vector.broadcast %23 : vector<1x128xf32> to vector<48x128xf32>
    %25 = arith.addf %22, %24 : vector<48x128xf32>
    %26 = vector.extract_strided_slice %15 {offsets = [0, 256], sizes = [48, 128], strides = [1, 1]} : vector<48x384xf32> to vector<48x128xf32>
    %27 = vector.extract_strided_slice %11 {offsets = [2, 0], sizes = [1, 128], strides = [1, 1]} : vector<9x128xf32> to vector<1x128xf32>
    %28 = vector.broadcast %27 : vector<1x128xf32> to vector<48x128xf32>
    %29 = arith.addf %26, %28 : vector<48x128xf32>
    %30 = vector.extract_strided_slice %21 {offsets = [0, 0], sizes = [16, 128], strides = [1, 1]} : vector<48x128xf32> to vector<16x128xf32>
    %31 = tpu.concatenate %30, %30, %30 in 0 : vector<16x128xf32>, vector<16x128xf32>, vector<16x128xf32> -> vector<48x128xf32>
    %32 = arith.mulf %31, %25 : vector<48x128xf32>
    %33 = vector.extract_strided_slice %21 {offsets = [16, 0], sizes = [16, 128], strides = [1, 1]} : vector<48x128xf32> to vector<16x128xf32>
    %34 = tpu.concatenate %33, %33, %33 in 0 : vector<16x128xf32>, vector<16x128xf32>, vector<16x128xf32> -> vector<48x128xf32>
    %35 = arith.mulf %34, %25 : vector<48x128xf32>
    %36 = vector.extract_strided_slice %21 {offsets = [32, 0], sizes = [16, 128], strides = [1, 1]} : vector<48x128xf32> to vector<16x128xf32>
    %37 = tpu.concatenate %36, %36, %36 in 0 : vector<16x128xf32>, vector<16x128xf32>, vector<16x128xf32> -> vector<48x128xf32>
    %38 = arith.mulf %37, %25 : vector<48x128xf32>
    %39 = tpu.concatenate %32, %35, %38 in 0 : vector<48x128xf32>, vector<48x128xf32>, vector<48x128xf32> -> vector<144x128xf32>
    %40 = arith.truncf %39 : vector<144x128xf32> to vector<144x128xbf16>
    %cst_16 = arith.constant dense<0.000000e+00> : vector<144x128xf32>
    %41 = tpu.matmul %40, %9, %cst_16 {dimension_numbers = #tpu.dot_dimension_numbers<[1], [0], [0], [1], [0, 0, 1, 1], [], []>} : vector<144x128xbf16>, vector<128x128xbf16>, vector<144x128xf32> -> vector<144x128xf32>
    %42 = vector.extract_strided_slice %41 {offsets = [0, 0], sizes = [48, 128], strides = [1, 1]} : vector<144x128xf32> to vector<48x128xf32>
    %43 = vector.extract_strided_slice %42 {offsets = [0, 0], sizes = [16, 128], strides = [1, 1]} : vector<48x128xf32> to vector<16x128xf32>
    %44 = vector.extract_strided_slice %42 {offsets = [16, 0], sizes = [16, 128], strides = [1, 1]} : vector<48x128xf32> to vector<16x128xf32>
    %45 = vector.extract_strided_slice %42 {offsets = [32, 0], sizes = [16, 128], strides = [1, 1]} : vector<48x128xf32> to vector<16x128xf32>
    %46 = arith.maximumf %43, %44 : vector<16x128xf32>
    %47 = arith.maximumf %46, %45 : vector<16x128xf32>
    %48 = arith.subf %43, %47 : vector<16x128xf32>
    %49 = math.exp %48 : vector<16x128xf32>
    %50 = arith.subf %44, %47 : vector<16x128xf32>
    %51 = math.exp %50 : vector<16x128xf32>
    %52 = arith.subf %45, %47 : vector<16x128xf32>
    %53 = math.exp %52 : vector<16x128xf32>
    %54 = arith.addf %49, %51 : vector<16x128xf32>
    %55 = arith.addf %54, %53 : vector<16x128xf32>
    %56 = tpu.reciprocal %55 : vector<16x128xf32> -> vector<16x128xf32>
    %57 = arith.mulf %49, %56 : vector<16x128xf32>
    %58 = vector.extract_strided_slice %29 {offsets = [0, 0], sizes = [16, 128], strides = [1, 1]} : vector<48x128xf32> to vector<16x128xf32>
    %59 = arith.mulf %57, %58 : vector<16x128xf32>
    %60 = arith.mulf %51, %56 : vector<16x128xf32>
    %61 = vector.extract_strided_slice %29 {offsets = [16, 0], sizes = [16, 128], strides = [1, 1]} : vector<48x128xf32> to vector<16x128xf32>
    %62 = arith.mulf %60, %61 : vector<16x128xf32>
    %63 = arith.addf %59, %62 : vector<16x128xf32>
    %64 = arith.mulf %53, %56 : vector<16x128xf32>
    %65 = vector.extract_strided_slice %29 {offsets = [32, 0], sizes = [16, 128], strides = [1, 1]} : vector<48x128xf32> to vector<16x128xf32>
    %66 = arith.mulf %64, %65 : vector<16x128xf32>
    %67 = arith.addf %63, %66 : vector<16x128xf32>
    %68 = vector.extract_strided_slice %41 {offsets = [48, 0], sizes = [48, 128], strides = [1, 1]} : vector<144x128xf32> to vector<48x128xf32>
    %69 = vector.extract_strided_slice %68 {offsets = [0, 0], sizes = [16, 128], strides = [1, 1]} : vector<48x128xf32> to vector<16x128xf32>
    %70 = vector.extract_strided_slice %68 {offsets = [16, 0], sizes = [16, 128], strides = [1, 1]} : vector<48x128xf32> to vector<16x128xf32>
    %71 = vector.extract_strided_slice %68 {offsets = [32, 0], sizes = [16, 128], strides = [1, 1]} : vector<48x128xf32> to vector<16x128xf32>
    %72 = arith.maximumf %69, %70 : vector<16x128xf32>
    %73 = arith.maximumf %72, %71 : vector<16x128xf32>
    %74 = arith.subf %69, %73 : vector<16x128xf32>
    %75 = math.exp %74 : vector<16x128xf32>
    %76 = arith.subf %70, %73 : vector<16x128xf32>
    %77 = math.exp %76 : vector<16x128xf32>
    %78 = arith.subf %71, %73 : vector<16x128xf32>
    %79 = math.exp %78 : vector<16x128xf32>
    %80 = arith.addf %75, %77 : vector<16x128xf32>
    %81 = arith.addf %80, %79 : vector<16x128xf32>
    %82 = tpu.reciprocal %81 : vector<16x128xf32> -> vector<16x128xf32>
    %83 = arith.mulf %75, %82 : vector<16x128xf32>
    %84 = vector.extract_strided_slice %29 {offsets = [0, 0], sizes = [16, 128], strides = [1, 1]} : vector<48x128xf32> to vector<16x128xf32>
    %85 = arith.mulf %83, %84 : vector<16x128xf32>
    %86 = arith.mulf %77, %82 : vector<16x128xf32>
    %87 = vector.extract_strided_slice %29 {offsets = [16, 0], sizes = [16, 128], strides = [1, 1]} : vector<48x128xf32> to vector<16x128xf32>
    %88 = arith.mulf %86, %87 : vector<16x128xf32>
    %89 = arith.addf %85, %88 : vector<16x128xf32>
    %90 = arith.mulf %79, %82 : vector<16x128xf32>
    %91 = vector.extract_strided_slice %29 {offsets = [32, 0], sizes = [16, 128], strides = [1, 1]} : vector<48x128xf32> to vector<16x128xf32>
    %92 = arith.mulf %90, %91 : vector<16x128xf32>
    %93 = arith.addf %89, %92 : vector<16x128xf32>
    %94 = vector.extract_strided_slice %41 {offsets = [96, 0], sizes = [48, 128], strides = [1, 1]} : vector<144x128xf32> to vector<48x128xf32>
    %95 = vector.extract_strided_slice %94 {offsets = [0, 0], sizes = [16, 128], strides = [1, 1]} : vector<48x128xf32> to vector<16x128xf32>
    %96 = vector.extract_strided_slice %94 {offsets = [16, 0], sizes = [16, 128], strides = [1, 1]} : vector<48x128xf32> to vector<16x128xf32>
    %97 = vector.extract_strided_slice %94 {offsets = [32, 0], sizes = [16, 128], strides = [1, 1]} : vector<48x128xf32> to vector<16x128xf32>
    %98 = arith.maximumf %95, %96 : vector<16x128xf32>
    %99 = arith.maximumf %98, %97 : vector<16x128xf32>
    %100 = arith.subf %95, %99 : vector<16x128xf32>
    %101 = math.exp %100 : vector<16x128xf32>
    %102 = arith.subf %96, %99 : vector<16x128xf32>
    %103 = math.exp %102 : vector<16x128xf32>
    %104 = arith.subf %97, %99 : vector<16x128xf32>
    %105 = math.exp %104 : vector<16x128xf32>
    %106 = arith.addf %101, %103 : vector<16x128xf32>
    %107 = arith.addf %106, %105 : vector<16x128xf32>
    %108 = tpu.reciprocal %107 : vector<16x128xf32> -> vector<16x128xf32>
    %109 = arith.mulf %101, %108 : vector<16x128xf32>
    %110 = vector.extract_strided_slice %29 {offsets = [0, 0], sizes = [16, 128], strides = [1, 1]} : vector<48x128xf32> to vector<16x128xf32>
    %111 = arith.mulf %109, %110 : vector<16x128xf32>
    %112 = arith.mulf %103, %108 : vector<16x128xf32>
    %113 = vector.extract_strided_slice %29 {offsets = [16, 0], sizes = [16, 128], strides = [1, 1]} : vector<48x128xf32> to vector<16x128xf32>
    %114 = arith.mulf %112, %113 : vector<16x128xf32>
    %115 = arith.addf %111, %114 : vector<16x128xf32>
    %116 = arith.mulf %105, %108 : vector<16x128xf32>
    %117 = vector.extract_strided_slice %29 {offsets = [32, 0], sizes = [16, 128], strides = [1, 1]} : vector<48x128xf32> to vector<16x128xf32>
    %118 = arith.mulf %116, %117 : vector<16x128xf32>
    %119 = arith.addf %115, %118 : vector<16x128xf32>
    %120 = tpu.concatenate %67, %93, %119 in 0 : vector<16x128xf32>, vector<16x128xf32>, vector<16x128xf32> -> vector<48x128xf32>
    %121 = arith.truncf %120 : vector<48x128xf32> to vector<48x128xbf16>
    %c0_17 = arith.constant 0 : index
    %c0_18 = arith.constant 0 : index
    %c0_19 = arith.constant 0 : index
    %122 = vector.load %arg4[%c0_17, %c0_18, %c0_19] : memref<3x128x128xbf16, #tpu.memory_space<vmem>>, vector<1x128x128xbf16>
    %123 = vector.shape_cast %122 : vector<1x128x128xbf16> to vector<128x128xbf16>
    %cst_20 = arith.constant dense<0.000000e+00> : vector<48x128xf32>
    %124 = tpu.matmul %121, %123, %cst_20 {dimension_numbers = #tpu.dot_dimension_numbers<[1], [0], [0], [1], [0, 0, 1, 1], [], []>} : vector<48x128xbf16>, vector<128x128xbf16>, vector<48x128xf32> -> vector<48x128xf32>
    %125 = vector.extract_strided_slice %11 {offsets = [3, 0], sizes = [1, 128], strides = [1, 1]} : vector<9x128xf32> to vector<1x128xf32>
    %126 = vector.broadcast %125 : vector<1x128xf32> to vector<48x128xf32>
    %127 = arith.addf %124, %126 : vector<48x128xf32>
    %128 = arith.addf %8, %127 : vector<48x128xf32>
    %129 = vector.extract_strided_slice %11 {offsets = [5, 0], sizes = [1, 128], strides = [1, 1]} : vector<9x128xf32> to vector<1x128xf32>
    %130 = vector.extract_strided_slice %11 {offsets = [6, 0], sizes = [1, 128], strides = [1, 1]} : vector<9x128xf32> to vector<1x128xf32>
    %cst_21 = arith.constant dense<0.000000e+00> : vector<48xf32>
    %131 = vector.multi_reduction <add>, %128, %cst_21 [1] : vector<48x128xf32> to vector<48xf32>
    %132 = vector.shape_cast %131 : vector<48xf32> to vector<48x1xf32>
    %cst_22 = arith.constant 1.280000e+02 : f32
    %133 = vector.broadcast %cst_22 : f32 to vector<48x1xf32>
    %134 = arith.divf %132, %133 : vector<48x1xf32>
    %135 = vector.broadcast %134 : vector<48x1xf32> to vector<48x128xf32>
    %136 = arith.subf %128, %135 : vector<48x128xf32>
    %137 = vector.broadcast %134 : vector<48x1xf32> to vector<48x128xf32>
    %138 = arith.subf %128, %137 : vector<48x128xf32>
    %139 = arith.mulf %136, %138 : vector<48x128xf32>
    %cst_23 = arith.constant dense<0.000000e+00> : vector<48xf32>
    %140 = vector.multi_reduction <add>, %139, %cst_23 [1] : vector<48x128xf32> to vector<48xf32>
    %141 = vector.shape_cast %140 : vector<48xf32> to vector<48x1xf32>
    %cst_24 = arith.constant 1.280000e+02 : f32
    %142 = vector.broadcast %cst_24 : f32 to vector<48x1xf32>
    %143 = arith.divf %141, %142 : vector<48x1xf32>
    %144 = vector.broadcast %134 : vector<48x1xf32> to vector<48x128xf32>
    %145 = arith.subf %128, %144 : vector<48x128xf32>
    %cst_25 = arith.constant 9.99999974E-6 : f32
    %146 = vector.broadcast %cst_25 : f32 to vector<48x1xf32>
    %147 = arith.addf %143, %146 : vector<48x1xf32>
    %148 = math.rsqrt %147 : vector<48x1xf32>
    %149 = vector.broadcast %148 : vector<48x1xf32> to vector<48x128xf32>
    %150 = arith.mulf %145, %149 : vector<48x128xf32>
    %151 = vector.broadcast %129 : vector<1x128xf32> to vector<48x128xf32>
    %152 = arith.mulf %150, %151 : vector<48x128xf32>
    %153 = vector.broadcast %130 : vector<1x128xf32> to vector<48x128xf32>
    %154 = arith.addf %152, %153 : vector<48x128xf32>
    %155 = arith.truncf %154 : vector<48x128xf32> to vector<48x128xbf16>
    %c0_26 = arith.constant 0 : index
    %c0_27 = arith.constant 0 : index
    %c0_28 = arith.constant 0 : index
    %156 = vector.load %arg5[%c0_26, %c0_27, %c0_28] : memref<3x128x256xbf16, #tpu.memory_space<vmem>>, vector<1x128x256xbf16>
    %157 = vector.shape_cast %156 : vector<1x128x256xbf16> to vector<128x256xbf16>
    %cst_29 = arith.constant dense<0.000000e+00> : vector<48x256xf32>
    %158 = tpu.matmul %155, %157, %cst_29 {dimension_numbers = #tpu.dot_dimension_numbers<[1], [0], [0], [1], [0, 0, 1, 1], [], []>} : vector<48x128xbf16>, vector<128x256xbf16>, vector<48x256xf32> -> vector<48x256xf32>
    %c0_30 = arith.constant 0 : index
    %c0_31 = arith.constant 0 : index
    %c0_32 = arith.constant 0 : index
    %159 = vector.load %arg10[%c0_30, %c0_31, %c0_32] : memref<3x1x256xf32, #tpu.memory_space<vmem>>, vector<1x1x256xf32>
    %160 = vector.shape_cast %159 : vector<1x1x256xf32> to vector<1x256xf32>
    %161 = vector.broadcast %160 : vector<1x256xf32> to vector<48x256xf32>
    %162 = arith.addf %158, %161 : vector<48x256xf32>
    %cst_33 = arith.constant 0.000000e+00 : f32
    %163 = vector.broadcast %cst_33 : f32 to vector<48x256xf32>
    %164 = arith.maximumf %162, %163 : vector<48x256xf32>
    %165 = arith.truncf %164 : vector<48x256xf32> to vector<48x256xbf16>
    %c0_34 = arith.constant 0 : index
    %c0_35 = arith.constant 0 : index
    %c0_36 = arith.constant 0 : index
    %166 = vector.load %arg6[%c0_34, %c0_35, %c0_36] : memref<3x256x128xbf16, #tpu.memory_space<vmem>>, vector<1x256x128xbf16>
    %167 = vector.shape_cast %166 : vector<1x256x128xbf16> to vector<256x128xbf16>
    %cst_37 = arith.constant dense<0.000000e+00> : vector<48x128xf32>
    %168 = tpu.matmul %165, %167, %cst_37 {dimension_numbers = #tpu.dot_dimension_numbers<[1], [0], [0], [1], [0, 0, 1, 1], [], []>} : vector<48x256xbf16>, vector<256x128xbf16>, vector<48x128xf32> -> vector<48x128xf32>
    %169 = vector.extract_strided_slice %11 {offsets = [4, 0], sizes = [1, 128], strides = [1, 1]} : vector<9x128xf32> to vector<1x128xf32>
    %170 = vector.broadcast %169 : vector<1x128xf32> to vector<48x128xf32>
    %171 = arith.addf %168, %170 : vector<48x128xf32>
    %172 = arith.addf %154, %171 : vector<48x128xf32>
    %173 = vector.extract_strided_slice %11 {offsets = [7, 0], sizes = [1, 128], strides = [1, 1]} : vector<9x128xf32> to vector<1x128xf32>
    %174 = vector.extract_strided_slice %11 {offsets = [8, 0], sizes = [1, 128], strides = [1, 1]} : vector<9x128xf32> to vector<1x128xf32>
    %cst_38 = arith.constant dense<0.000000e+00> : vector<48xf32>
    %175 = vector.multi_reduction <add>, %172, %cst_38 [1] : vector<48x128xf32> to vector<48xf32>
    %176 = vector.shape_cast %175 : vector<48xf32> to vector<48x1xf32>
    %cst_39 = arith.constant 1.280000e+02 : f32
    %177 = vector.broadcast %cst_39 : f32 to vector<48x1xf32>
    %178 = arith.divf %176, %177 : vector<48x1xf32>
    %179 = vector.broadcast %178 : vector<48x1xf32> to vector<48x128xf32>
    %180 = arith.subf %172, %179 : vector<48x128xf32>
    %181 = vector.broadcast %178 : vector<48x1xf32> to vector<48x128xf32>
    %182 = arith.subf %172, %181 : vector<48x128xf32>
    %183 = arith.mulf %180, %182 : vector<48x128xf32>
    %cst_40 = arith.constant dense<0.000000e+00> : vector<48xf32>
    %184 = vector.multi_reduction <add>, %183, %cst_40 [1] : vector<48x128xf32> to vector<48xf32>
    %185 = vector.shape_cast %184 : vector<48xf32> to vector<48x1xf32>
    %cst_41 = arith.constant 1.280000e+02 : f32
    %186 = vector.broadcast %cst_41 : f32 to vector<48x1xf32>
    %187 = arith.divf %185, %186 : vector<48x1xf32>
    %188 = vector.broadcast %178 : vector<48x1xf32> to vector<48x128xf32>
    %189 = arith.subf %172, %188 : vector<48x128xf32>
    %cst_42 = arith.constant 9.99999974E-6 : f32
    %190 = vector.broadcast %cst_42 : f32 to vector<48x1xf32>
    %191 = arith.addf %187, %190 : vector<48x1xf32>
    %192 = math.rsqrt %191 : vector<48x1xf32>
    %193 = vector.broadcast %192 : vector<48x1xf32> to vector<48x128xf32>
    %194 = arith.mulf %189, %193 : vector<48x128xf32>
    %195 = vector.broadcast %173 : vector<1x128xf32> to vector<48x128xf32>
    %196 = arith.mulf %194, %195 : vector<48x128xf32>
    %197 = vector.broadcast %174 : vector<1x128xf32> to vector<48x128xf32>
    %198 = arith.addf %196, %197 : vector<48x128xf32>
    %c1 = arith.constant 1 : index
    %c0_43 = arith.constant 0 : index
    %c0_44 = arith.constant 0 : index
    %199 = vector.load %arg9[%c1, %c0_43, %c0_44] : memref<3x9x128xf32, #tpu.memory_space<vmem>>, vector<1x9x128xf32>
    %200 = vector.shape_cast %199 : vector<1x9x128xf32> to vector<9x128xf32>
    %201 = arith.truncf %198 : vector<48x128xf32> to vector<48x128xbf16>
    %c1_45 = arith.constant 1 : index
    %c0_46 = arith.constant 0 : index
    %c0_47 = arith.constant 0 : index
    %202 = vector.load %arg3[%c1_45, %c0_46, %c0_47] : memref<3x128x384xbf16, #tpu.memory_space<vmem>>, vector<1x128x384xbf16>
    %203 = vector.shape_cast %202 : vector<1x128x384xbf16> to vector<128x384xbf16>
    %cst_48 = arith.constant dense<0.000000e+00> : vector<48x384xf32>
    %204 = tpu.matmul %201, %203, %cst_48 {dimension_numbers = #tpu.dot_dimension_numbers<[1], [0], [0], [1], [0, 0, 1, 1], [], []>} : vector<48x128xbf16>, vector<128x384xbf16>, vector<48x384xf32> -> vector<48x384xf32>
    %205 = vector.extract_strided_slice %204 {offsets = [0, 0], sizes = [48, 128], strides = [1, 1]} : vector<48x384xf32> to vector<48x128xf32>
    %206 = vector.extract_strided_slice %200 {offsets = [0, 0], sizes = [1, 128], strides = [1, 1]} : vector<9x128xf32> to vector<1x128xf32>
    %207 = vector.broadcast %206 : vector<1x128xf32> to vector<48x128xf32>
    %208 = arith.addf %205, %207 : vector<48x128xf32>
    %cst_49 = arith.constant 0.176776692 : f32
    %209 = vector.broadcast %cst_49 : f32 to vector<48x128xf32>
    %210 = arith.mulf %208, %209 : vector<48x128xf32>
    %211 = vector.extract_strided_slice %204 {offsets = [0, 128], sizes = [48, 128], strides = [1, 1]} : vector<48x384xf32> to vector<48x128xf32>
    %212 = vector.extract_strided_slice %200 {offsets = [1, 0], sizes = [1, 128], strides = [1, 1]} : vector<9x128xf32> to vector<1x128xf32>
    %213 = vector.broadcast %212 : vector<1x128xf32> to vector<48x128xf32>
    %214 = arith.addf %211, %213 : vector<48x128xf32>
    %215 = vector.extract_strided_slice %204 {offsets = [0, 256], sizes = [48, 128], strides = [1, 1]} : vector<48x384xf32> to vector<48x128xf32>
    %216 = vector.extract_strided_slice %200 {offsets = [2, 0], sizes = [1, 128], strides = [1, 1]} : vector<9x128xf32> to vector<1x128xf32>
    %217 = vector.broadcast %216 : vector<1x128xf32> to vector<48x128xf32>
    %218 = arith.addf %215, %217 : vector<48x128xf32>
    %219 = vector.extract_strided_slice %210 {offsets = [0, 0], sizes = [16, 128], strides = [1, 1]} : vector<48x128xf32> to vector<16x128xf32>
    %220 = tpu.concatenate %219, %219, %219 in 0 : vector<16x128xf32>, vector<16x128xf32>, vector<16x128xf32> -> vector<48x128xf32>
    %221 = arith.mulf %220, %214 : vector<48x128xf32>
    %222 = vector.extract_strided_slice %210 {offsets = [16, 0], sizes = [16, 128], strides = [1, 1]} : vector<48x128xf32> to vector<16x128xf32>
    %223 = tpu.concatenate %222, %222, %222 in 0 : vector<16x128xf32>, vector<16x128xf32>, vector<16x128xf32> -> vector<48x128xf32>
    %224 = arith.mulf %223, %214 : vector<48x128xf32>
    %225 = vector.extract_strided_slice %210 {offsets = [32, 0], sizes = [16, 128], strides = [1, 1]} : vector<48x128xf32> to vector<16x128xf32>
    %226 = tpu.concatenate %225, %225, %225 in 0 : vector<16x128xf32>, vector<16x128xf32>, vector<16x128xf32> -> vector<48x128xf32>
    %227 = arith.mulf %226, %214 : vector<48x128xf32>
    %228 = tpu.concatenate %221, %224, %227 in 0 : vector<48x128xf32>, vector<48x128xf32>, vector<48x128xf32> -> vector<144x128xf32>
    %229 = arith.truncf %228 : vector<144x128xf32> to vector<144x128xbf16>
    %cst_50 = arith.constant dense<0.000000e+00> : vector<144x128xf32>
    %230 = tpu.matmul %229, %9, %cst_50 {dimension_numbers = #tpu.dot_dimension_numbers<[1], [0], [0], [1], [0, 0, 1, 1], [], []>} : vector<144x128xbf16>, vector<128x128xbf16>, vector<144x128xf32> -> vector<144x128xf32>
    %231 = vector.extract_strided_slice %230 {offsets = [0, 0], sizes = [48, 128], strides = [1, 1]} : vector<144x128xf32> to vector<48x128xf32>
    %232 = vector.extract_strided_slice %231 {offsets = [0, 0], sizes = [16, 128], strides = [1, 1]} : vector<48x128xf32> to vector<16x128xf32>
    %233 = vector.extract_strided_slice %231 {offsets = [16, 0], sizes = [16, 128], strides = [1, 1]} : vector<48x128xf32> to vector<16x128xf32>
    %234 = vector.extract_strided_slice %231 {offsets = [32, 0], sizes = [16, 128], strides = [1, 1]} : vector<48x128xf32> to vector<16x128xf32>
    %235 = arith.maximumf %232, %233 : vector<16x128xf32>
    %236 = arith.maximumf %235, %234 : vector<16x128xf32>
    %237 = arith.subf %232, %236 : vector<16x128xf32>
    %238 = math.exp %237 : vector<16x128xf32>
    %239 = arith.subf %233, %236 : vector<16x128xf32>
    %240 = math.exp %239 : vector<16x128xf32>
    %241 = arith.subf %234, %236 : vector<16x128xf32>
    %242 = math.exp %241 : vector<16x128xf32>
    %243 = arith.addf %238, %240 : vector<16x128xf32>
    %244 = arith.addf %243, %242 : vector<16x128xf32>
    %245 = tpu.reciprocal %244 : vector<16x128xf32> -> vector<16x128xf32>
    %246 = arith.mulf %238, %245 : vector<16x128xf32>
    %247 = vector.extract_strided_slice %218 {offsets = [0, 0], sizes = [16, 128], strides = [1, 1]} : vector<48x128xf32> to vector<16x128xf32>
    %248 = arith.mulf %246, %247 : vector<16x128xf32>
    %249 = arith.mulf %240, %245 : vector<16x128xf32>
    %250 = vector.extract_strided_slice %218 {offsets = [16, 0], sizes = [16, 128], strides = [1, 1]} : vector<48x128xf32> to vector<16x128xf32>
    %251 = arith.mulf %249, %250 : vector<16x128xf32>
    %252 = arith.addf %248, %251 : vector<16x128xf32>
    %253 = arith.mulf %242, %245 : vector<16x128xf32>
    %254 = vector.extract_strided_slice %218 {offsets = [32, 0], sizes = [16, 128], strides = [1, 1]} : vector<48x128xf32> to vector<16x128xf32>
    %255 = arith.mulf %253, %254 : vector<16x128xf32>
    %256 = arith.addf %252, %255 : vector<16x128xf32>
    %257 = vector.extract_strided_slice %230 {offsets = [48, 0], sizes = [48, 128], strides = [1, 1]} : vector<144x128xf32> to vector<48x128xf32>
    %258 = vector.extract_strided_slice %257 {offsets = [0, 0], sizes = [16, 128], strides = [1, 1]} : vector<48x128xf32> to vector<16x128xf32>
    %259 = vector.extract_strided_slice %257 {offsets = [16, 0], sizes = [16, 128], strides = [1, 1]} : vector<48x128xf32> to vector<16x128xf32>
    %260 = vector.extract_strided_slice %257 {offsets = [32, 0], sizes = [16, 128], strides = [1, 1]} : vector<48x128xf32> to vector<16x128xf32>
    %261 = arith.maximumf %258, %259 : vector<16x128xf32>
    %262 = arith.maximumf %261, %260 : vector<16x128xf32>
    %263 = arith.subf %258, %262 : vector<16x128xf32>
    %264 = math.exp %263 : vector<16x128xf32>
    %265 = arith.subf %259, %262 : vector<16x128xf32>
    %266 = math.exp %265 : vector<16x128xf32>
    %267 = arith.subf %260, %262 : vector<16x128xf32>
    %268 = math.exp %267 : vector<16x128xf32>
    %269 = arith.addf %264, %266 : vector<16x128xf32>
    %270 = arith.addf %269, %268 : vector<16x128xf32>
    %271 = tpu.reciprocal %270 : vector<16x128xf32> -> vector<16x128xf32>
    %272 = arith.mulf %264, %271 : vector<16x128xf32>
    %273 = vector.extract_strided_slice %218 {offsets = [0, 0], sizes = [16, 128], strides = [1, 1]} : vector<48x128xf32> to vector<16x128xf32>
    %274 = arith.mulf %272, %273 : vector<16x128xf32>
    %275 = arith.mulf %266, %271 : vector<16x128xf32>
    %276 = vector.extract_strided_slice %218 {offsets = [16, 0], sizes = [16, 128], strides = [1, 1]} : vector<48x128xf32> to vector<16x128xf32>
    %277 = arith.mulf %275, %276 : vector<16x128xf32>
    %278 = arith.addf %274, %277 : vector<16x128xf32>
    %279 = arith.mulf %268, %271 : vector<16x128xf32>
    %280 = vector.extract_strided_slice %218 {offsets = [32, 0], sizes = [16, 128], strides = [1, 1]} : vector<48x128xf32> to vector<16x128xf32>
    %281 = arith.mulf %279, %280 : vector<16x128xf32>
    %282 = arith.addf %278, %281 : vector<16x128xf32>
    %283 = vector.extract_strided_slice %230 {offsets = [96, 0], sizes = [48, 128], strides = [1, 1]} : vector<144x128xf32> to vector<48x128xf32>
    %284 = vector.extract_strided_slice %283 {offsets = [0, 0], sizes = [16, 128], strides = [1, 1]} : vector<48x128xf32> to vector<16x128xf32>
    %285 = vector.extract_strided_slice %283 {offsets = [16, 0], sizes = [16, 128], strides = [1, 1]} : vector<48x128xf32> to vector<16x128xf32>
    %286 = vector.extract_strided_slice %283 {offsets = [32, 0], sizes = [16, 128], strides = [1, 1]} : vector<48x128xf32> to vector<16x128xf32>
    %287 = arith.maximumf %284, %285 : vector<16x128xf32>
    %288 = arith.maximumf %287, %286 : vector<16x128xf32>
    %289 = arith.subf %284, %288 : vector<16x128xf32>
    %290 = math.exp %289 : vector<16x128xf32>
    %291 = arith.subf %285, %288 : vector<16x128xf32>
    %292 = math.exp %291 : vector<16x128xf32>
    %293 = arith.subf %286, %288 : vector<16x128xf32>
    %294 = math.exp %293 : vector<16x128xf32>
    %295 = arith.addf %290, %292 : vector<16x128xf32>
    %296 = arith.addf %295, %294 : vector<16x128xf32>
    %297 = tpu.reciprocal %296 : vector<16x128xf32> -> vector<16x128xf32>
    %298 = arith.mulf %290, %297 : vector<16x128xf32>
    %299 = vector.extract_strided_slice %218 {offsets = [0, 0], sizes = [16, 128], strides = [1, 1]} : vector<48x128xf32> to vector<16x128xf32>
    %300 = arith.mulf %298, %299 : vector<16x128xf32>
    %301 = arith.mulf %292, %297 : vector<16x128xf32>
    %302 = vector.extract_strided_slice %218 {offsets = [16, 0], sizes = [16, 128], strides = [1, 1]} : vector<48x128xf32> to vector<16x128xf32>
    %303 = arith.mulf %301, %302 : vector<16x128xf32>
    %304 = arith.addf %300, %303 : vector<16x128xf32>
    %305 = arith.mulf %294, %297 : vector<16x128xf32>
    %306 = vector.extract_strided_slice %218 {offsets = [32, 0], sizes = [16, 128], strides = [1, 1]} : vector<48x128xf32> to vector<16x128xf32>
    %307 = arith.mulf %305, %306 : vector<16x128xf32>
    %308 = arith.addf %304, %307 : vector<16x128xf32>
    %309 = tpu.concatenate %256, %282, %308 in 0 : vector<16x128xf32>, vector<16x128xf32>, vector<16x128xf32> -> vector<48x128xf32>
    %310 = arith.truncf %309 : vector<48x128xf32> to vector<48x128xbf16>
    %c1_51 = arith.constant 1 : index
    %c0_52 = arith.constant 0 : index
    %c0_53 = arith.constant 0 : index
    %311 = vector.load %arg4[%c1_51, %c0_52, %c0_53] : memref<3x128x128xbf16, #tpu.memory_space<vmem>>, vector<1x128x128xbf16>
    %312 = vector.shape_cast %311 : vector<1x128x128xbf16> to vector<128x128xbf16>
    %cst_54 = arith.constant dense<0.000000e+00> : vector<48x128xf32>
    %313 = tpu.matmul %310, %312, %cst_54 {dimension_numbers = #tpu.dot_dimension_numbers<[1], [0], [0], [1], [0, 0, 1, 1], [], []>} : vector<48x128xbf16>, vector<128x128xbf16>, vector<48x128xf32> -> vector<48x128xf32>
    %314 = vector.extract_strided_slice %200 {offsets = [3, 0], sizes = [1, 128], strides = [1, 1]} : vector<9x128xf32> to vector<1x128xf32>
    %315 = vector.broadcast %314 : vector<1x128xf32> to vector<48x128xf32>
    %316 = arith.addf %313, %315 : vector<48x128xf32>
    %317 = arith.addf %198, %316 : vector<48x128xf32>
    %318 = vector.extract_strided_slice %200 {offsets = [5, 0], sizes = [1, 128], strides = [1, 1]} : vector<9x128xf32> to vector<1x128xf32>
    %319 = vector.extract_strided_slice %200 {offsets = [6, 0], sizes = [1, 128], strides = [1, 1]} : vector<9x128xf32> to vector<1x128xf32>
    %cst_55 = arith.constant dense<0.000000e+00> : vector<48xf32>
    %320 = vector.multi_reduction <add>, %317, %cst_55 [1] : vector<48x128xf32> to vector<48xf32>
    %321 = vector.shape_cast %320 : vector<48xf32> to vector<48x1xf32>
    %cst_56 = arith.constant 1.280000e+02 : f32
    %322 = vector.broadcast %cst_56 : f32 to vector<48x1xf32>
    %323 = arith.divf %321, %322 : vector<48x1xf32>
    %324 = vector.broadcast %323 : vector<48x1xf32> to vector<48x128xf32>
    %325 = arith.subf %317, %324 : vector<48x128xf32>
    %326 = vector.broadcast %323 : vector<48x1xf32> to vector<48x128xf32>
    %327 = arith.subf %317, %326 : vector<48x128xf32>
    %328 = arith.mulf %325, %327 : vector<48x128xf32>
    %cst_57 = arith.constant dense<0.000000e+00> : vector<48xf32>
    %329 = vector.multi_reduction <add>, %328, %cst_57 [1] : vector<48x128xf32> to vector<48xf32>
    %330 = vector.shape_cast %329 : vector<48xf32> to vector<48x1xf32>
    %cst_58 = arith.constant 1.280000e+02 : f32
    %331 = vector.broadcast %cst_58 : f32 to vector<48x1xf32>
    %332 = arith.divf %330, %331 : vector<48x1xf32>
    %333 = vector.broadcast %323 : vector<48x1xf32> to vector<48x128xf32>
    %334 = arith.subf %317, %333 : vector<48x128xf32>
    %cst_59 = arith.constant 9.99999974E-6 : f32
    %335 = vector.broadcast %cst_59 : f32 to vector<48x1xf32>
    %336 = arith.addf %332, %335 : vector<48x1xf32>
    %337 = math.rsqrt %336 : vector<48x1xf32>
    %338 = vector.broadcast %337 : vector<48x1xf32> to vector<48x128xf32>
    %339 = arith.mulf %334, %338 : vector<48x128xf32>
    %340 = vector.broadcast %318 : vector<1x128xf32> to vector<48x128xf32>
    %341 = arith.mulf %339, %340 : vector<48x128xf32>
    %342 = vector.broadcast %319 : vector<1x128xf32> to vector<48x128xf32>
    %343 = arith.addf %341, %342 : vector<48x128xf32>
    %344 = arith.truncf %343 : vector<48x128xf32> to vector<48x128xbf16>
    %c1_60 = arith.constant 1 : index
    %c0_61 = arith.constant 0 : index
    %c0_62 = arith.constant 0 : index
    %345 = vector.load %arg5[%c1_60, %c0_61, %c0_62] : memref<3x128x256xbf16, #tpu.memory_space<vmem>>, vector<1x128x256xbf16>
    %346 = vector.shape_cast %345 : vector<1x128x256xbf16> to vector<128x256xbf16>
    %cst_63 = arith.constant dense<0.000000e+00> : vector<48x256xf32>
    %347 = tpu.matmul %344, %346, %cst_63 {dimension_numbers = #tpu.dot_dimension_numbers<[1], [0], [0], [1], [0, 0, 1, 1], [], []>} : vector<48x128xbf16>, vector<128x256xbf16>, vector<48x256xf32> -> vector<48x256xf32>
    %c1_64 = arith.constant 1 : index
    %c0_65 = arith.constant 0 : index
    %c0_66 = arith.constant 0 : index
    %348 = vector.load %arg10[%c1_64, %c0_65, %c0_66] : memref<3x1x256xf32, #tpu.memory_space<vmem>>, vector<1x1x256xf32>
    %349 = vector.shape_cast %348 : vector<1x1x256xf32> to vector<1x256xf32>
    %350 = vector.broadcast %349 : vector<1x256xf32> to vector<48x256xf32>
    %351 = arith.addf %347, %350 : vector<48x256xf32>
    %cst_67 = arith.constant 0.000000e+00 : f32
    %352 = vector.broadcast %cst_67 : f32 to vector<48x256xf32>
    %353 = arith.maximumf %351, %352 : vector<48x256xf32>
    %354 = arith.truncf %353 : vector<48x256xf32> to vector<48x256xbf16>
    %c1_68 = arith.constant 1 : index
    %c0_69 = arith.constant 0 : index
    %c0_70 = arith.constant 0 : index
    %355 = vector.load %arg6[%c1_68, %c0_69, %c0_70] : memref<3x256x128xbf16, #tpu.memory_space<vmem>>, vector<1x256x128xbf16>
    %356 = vector.shape_cast %355 : vector<1x256x128xbf16> to vector<256x128xbf16>
    %cst_71 = arith.constant dense<0.000000e+00> : vector<48x128xf32>
    %357 = tpu.matmul %354, %356, %cst_71 {dimension_numbers = #tpu.dot_dimension_numbers<[1], [0], [0], [1], [0, 0, 1, 1], [], []>} : vector<48x256xbf16>, vector<256x128xbf16>, vector<48x128xf32> -> vector<48x128xf32>
    %358 = vector.extract_strided_slice %200 {offsets = [4, 0], sizes = [1, 128], strides = [1, 1]} : vector<9x128xf32> to vector<1x128xf32>
    %359 = vector.broadcast %358 : vector<1x128xf32> to vector<48x128xf32>
    %360 = arith.addf %357, %359 : vector<48x128xf32>
    %361 = arith.addf %343, %360 : vector<48x128xf32>
    %362 = vector.extract_strided_slice %200 {offsets = [7, 0], sizes = [1, 128], strides = [1, 1]} : vector<9x128xf32> to vector<1x128xf32>
    %363 = vector.extract_strided_slice %200 {offsets = [8, 0], sizes = [1, 128], strides = [1, 1]} : vector<9x128xf32> to vector<1x128xf32>
    %cst_72 = arith.constant dense<0.000000e+00> : vector<48xf32>
    %364 = vector.multi_reduction <add>, %361, %cst_72 [1] : vector<48x128xf32> to vector<48xf32>
    %365 = vector.shape_cast %364 : vector<48xf32> to vector<48x1xf32>
    %cst_73 = arith.constant 1.280000e+02 : f32
    %366 = vector.broadcast %cst_73 : f32 to vector<48x1xf32>
    %367 = arith.divf %365, %366 : vector<48x1xf32>
    %368 = vector.broadcast %367 : vector<48x1xf32> to vector<48x128xf32>
    %369 = arith.subf %361, %368 : vector<48x128xf32>
    %370 = vector.broadcast %367 : vector<48x1xf32> to vector<48x128xf32>
    %371 = arith.subf %361, %370 : vector<48x128xf32>
    %372 = arith.mulf %369, %371 : vector<48x128xf32>
    %cst_74 = arith.constant dense<0.000000e+00> : vector<48xf32>
    %373 = vector.multi_reduction <add>, %372, %cst_74 [1] : vector<48x128xf32> to vector<48xf32>
    %374 = vector.shape_cast %373 : vector<48xf32> to vector<48x1xf32>
    %cst_75 = arith.constant 1.280000e+02 : f32
    %375 = vector.broadcast %cst_75 : f32 to vector<48x1xf32>
    %376 = arith.divf %374, %375 : vector<48x1xf32>
    %377 = vector.broadcast %367 : vector<48x1xf32> to vector<48x128xf32>
    %378 = arith.subf %361, %377 : vector<48x128xf32>
    %cst_76 = arith.constant 9.99999974E-6 : f32
    %379 = vector.broadcast %cst_76 : f32 to vector<48x1xf32>
    %380 = arith.addf %376, %379 : vector<48x1xf32>
    %381 = math.rsqrt %380 : vector<48x1xf32>
    %382 = vector.broadcast %381 : vector<48x1xf32> to vector<48x128xf32>
    %383 = arith.mulf %378, %382 : vector<48x128xf32>
    %384 = vector.broadcast %362 : vector<1x128xf32> to vector<48x128xf32>
    %385 = arith.mulf %383, %384 : vector<48x128xf32>
    %386 = vector.broadcast %363 : vector<1x128xf32> to vector<48x128xf32>
    %387 = arith.addf %385, %386 : vector<48x128xf32>
    %c2 = arith.constant 2 : index
    %c0_77 = arith.constant 0 : index
    %c0_78 = arith.constant 0 : index
    %388 = vector.load %arg9[%c2, %c0_77, %c0_78] : memref<3x9x128xf32, #tpu.memory_space<vmem>>, vector<1x9x128xf32>
    %389 = vector.shape_cast %388 : vector<1x9x128xf32> to vector<9x128xf32>
    %390 = arith.truncf %387 : vector<48x128xf32> to vector<48x128xbf16>
    %c2_79 = arith.constant 2 : index
    %c0_80 = arith.constant 0 : index
    %c0_81 = arith.constant 0 : index
    %391 = vector.load %arg3[%c2_79, %c0_80, %c0_81] : memref<3x128x384xbf16, #tpu.memory_space<vmem>>, vector<1x128x384xbf16>
    %392 = vector.shape_cast %391 : vector<1x128x384xbf16> to vector<128x384xbf16>
    %cst_82 = arith.constant dense<0.000000e+00> : vector<48x384xf32>
    %393 = tpu.matmul %390, %392, %cst_82 {dimension_numbers = #tpu.dot_dimension_numbers<[1], [0], [0], [1], [0, 0, 1, 1], [], []>} : vector<48x128xbf16>, vector<128x384xbf16>, vector<48x384xf32> -> vector<48x384xf32>
    %394 = vector.extract_strided_slice %393 {offsets = [0, 0], sizes = [48, 128], strides = [1, 1]} : vector<48x384xf32> to vector<48x128xf32>
    %395 = vector.extract_strided_slice %389 {offsets = [0, 0], sizes = [1, 128], strides = [1, 1]} : vector<9x128xf32> to vector<1x128xf32>
    %396 = vector.broadcast %395 : vector<1x128xf32> to vector<48x128xf32>
    %397 = arith.addf %394, %396 : vector<48x128xf32>
    %cst_83 = arith.constant 0.176776692 : f32
    %398 = vector.broadcast %cst_83 : f32 to vector<48x128xf32>
    %399 = arith.mulf %397, %398 : vector<48x128xf32>
    %400 = vector.extract_strided_slice %393 {offsets = [0, 128], sizes = [48, 128], strides = [1, 1]} : vector<48x384xf32> to vector<48x128xf32>
    %401 = vector.extract_strided_slice %389 {offsets = [1, 0], sizes = [1, 128], strides = [1, 1]} : vector<9x128xf32> to vector<1x128xf32>
    %402 = vector.broadcast %401 : vector<1x128xf32> to vector<48x128xf32>
    %403 = arith.addf %400, %402 : vector<48x128xf32>
    %404 = vector.extract_strided_slice %393 {offsets = [0, 256], sizes = [48, 128], strides = [1, 1]} : vector<48x384xf32> to vector<48x128xf32>
    %405 = vector.extract_strided_slice %389 {offsets = [2, 0], sizes = [1, 128], strides = [1, 1]} : vector<9x128xf32> to vector<1x128xf32>
    %406 = vector.broadcast %405 : vector<1x128xf32> to vector<48x128xf32>
    %407 = arith.addf %404, %406 : vector<48x128xf32>
    %408 = vector.extract_strided_slice %399 {offsets = [0, 0], sizes = [16, 128], strides = [1, 1]} : vector<48x128xf32> to vector<16x128xf32>
    %409 = tpu.concatenate %408, %408, %408 in 0 : vector<16x128xf32>, vector<16x128xf32>, vector<16x128xf32> -> vector<48x128xf32>
    %410 = arith.mulf %409, %403 : vector<48x128xf32>
    %411 = vector.extract_strided_slice %399 {offsets = [16, 0], sizes = [16, 128], strides = [1, 1]} : vector<48x128xf32> to vector<16x128xf32>
    %412 = tpu.concatenate %411, %411, %411 in 0 : vector<16x128xf32>, vector<16x128xf32>, vector<16x128xf32> -> vector<48x128xf32>
    %413 = arith.mulf %412, %403 : vector<48x128xf32>
    %414 = vector.extract_strided_slice %399 {offsets = [32, 0], sizes = [16, 128], strides = [1, 1]} : vector<48x128xf32> to vector<16x128xf32>
    %415 = tpu.concatenate %414, %414, %414 in 0 : vector<16x128xf32>, vector<16x128xf32>, vector<16x128xf32> -> vector<48x128xf32>
    %416 = arith.mulf %415, %403 : vector<48x128xf32>
    %417 = tpu.concatenate %410, %413, %416 in 0 : vector<48x128xf32>, vector<48x128xf32>, vector<48x128xf32> -> vector<144x128xf32>
    %418 = arith.truncf %417 : vector<144x128xf32> to vector<144x128xbf16>
    %cst_84 = arith.constant dense<0.000000e+00> : vector<144x128xf32>
    %419 = tpu.matmul %418, %9, %cst_84 {dimension_numbers = #tpu.dot_dimension_numbers<[1], [0], [0], [1], [0, 0, 1, 1], [], []>} : vector<144x128xbf16>, vector<128x128xbf16>, vector<144x128xf32> -> vector<144x128xf32>
    %420 = vector.extract_strided_slice %419 {offsets = [0, 0], sizes = [48, 128], strides = [1, 1]} : vector<144x128xf32> to vector<48x128xf32>
    %421 = vector.extract_strided_slice %420 {offsets = [0, 0], sizes = [16, 128], strides = [1, 1]} : vector<48x128xf32> to vector<16x128xf32>
    %422 = vector.extract_strided_slice %420 {offsets = [16, 0], sizes = [16, 128], strides = [1, 1]} : vector<48x128xf32> to vector<16x128xf32>
    %423 = vector.extract_strided_slice %420 {offsets = [32, 0], sizes = [16, 128], strides = [1, 1]} : vector<48x128xf32> to vector<16x128xf32>
    %424 = arith.maximumf %421, %422 : vector<16x128xf32>
    %425 = arith.maximumf %424, %423 : vector<16x128xf32>
    %426 = arith.subf %421, %425 : vector<16x128xf32>
    %427 = math.exp %426 : vector<16x128xf32>
    %428 = arith.subf %422, %425 : vector<16x128xf32>
    %429 = math.exp %428 : vector<16x128xf32>
    %430 = arith.subf %423, %425 : vector<16x128xf32>
    %431 = math.exp %430 : vector<16x128xf32>
    %432 = arith.addf %427, %429 : vector<16x128xf32>
    %433 = arith.addf %432, %431 : vector<16x128xf32>
    %434 = tpu.reciprocal %433 : vector<16x128xf32> -> vector<16x128xf32>
    %435 = arith.mulf %427, %434 : vector<16x128xf32>
    %436 = vector.extract_strided_slice %407 {offsets = [0, 0], sizes = [16, 128], strides = [1, 1]} : vector<48x128xf32> to vector<16x128xf32>
    %437 = arith.mulf %435, %436 : vector<16x128xf32>
    %438 = arith.mulf %429, %434 : vector<16x128xf32>
    %439 = vector.extract_strided_slice %407 {offsets = [16, 0], sizes = [16, 128], strides = [1, 1]} : vector<48x128xf32> to vector<16x128xf32>
    %440 = arith.mulf %438, %439 : vector<16x128xf32>
    %441 = arith.addf %437, %440 : vector<16x128xf32>
    %442 = arith.mulf %431, %434 : vector<16x128xf32>
    %443 = vector.extract_strided_slice %407 {offsets = [32, 0], sizes = [16, 128], strides = [1, 1]} : vector<48x128xf32> to vector<16x128xf32>
    %444 = arith.mulf %442, %443 : vector<16x128xf32>
    %445 = arith.addf %441, %444 : vector<16x128xf32>
    %446 = vector.extract_strided_slice %419 {offsets = [48, 0], sizes = [48, 128], strides = [1, 1]} : vector<144x128xf32> to vector<48x128xf32>
    %447 = vector.extract_strided_slice %446 {offsets = [0, 0], sizes = [16, 128], strides = [1, 1]} : vector<48x128xf32> to vector<16x128xf32>
    %448 = vector.extract_strided_slice %446 {offsets = [16, 0], sizes = [16, 128], strides = [1, 1]} : vector<48x128xf32> to vector<16x128xf32>
    %449 = vector.extract_strided_slice %446 {offsets = [32, 0], sizes = [16, 128], strides = [1, 1]} : vector<48x128xf32> to vector<16x128xf32>
    %450 = arith.maximumf %447, %448 : vector<16x128xf32>
    %451 = arith.maximumf %450, %449 : vector<16x128xf32>
    %452 = arith.subf %447, %451 : vector<16x128xf32>
    %453 = math.exp %452 : vector<16x128xf32>
    %454 = arith.subf %448, %451 : vector<16x128xf32>
    %455 = math.exp %454 : vector<16x128xf32>
    %456 = arith.subf %449, %451 : vector<16x128xf32>
    %457 = math.exp %456 : vector<16x128xf32>
    %458 = arith.addf %453, %455 : vector<16x128xf32>
    %459 = arith.addf %458, %457 : vector<16x128xf32>
    %460 = tpu.reciprocal %459 : vector<16x128xf32> -> vector<16x128xf32>
    %461 = arith.mulf %453, %460 : vector<16x128xf32>
    %462 = vector.extract_strided_slice %407 {offsets = [0, 0], sizes = [16, 128], strides = [1, 1]} : vector<48x128xf32> to vector<16x128xf32>
    %463 = arith.mulf %461, %462 : vector<16x128xf32>
    %464 = arith.mulf %455, %460 : vector<16x128xf32>
    %465 = vector.extract_strided_slice %407 {offsets = [16, 0], sizes = [16, 128], strides = [1, 1]} : vector<48x128xf32> to vector<16x128xf32>
    %466 = arith.mulf %464, %465 : vector<16x128xf32>
    %467 = arith.addf %463, %466 : vector<16x128xf32>
    %468 = arith.mulf %457, %460 : vector<16x128xf32>
    %469 = vector.extract_strided_slice %407 {offsets = [32, 0], sizes = [16, 128], strides = [1, 1]} : vector<48x128xf32> to vector<16x128xf32>
    %470 = arith.mulf %468, %469 : vector<16x128xf32>
    %471 = arith.addf %467, %470 : vector<16x128xf32>
    %472 = vector.extract_strided_slice %419 {offsets = [96, 0], sizes = [48, 128], strides = [1, 1]} : vector<144x128xf32> to vector<48x128xf32>
    %473 = vector.extract_strided_slice %472 {offsets = [0, 0], sizes = [16, 128], strides = [1, 1]} : vector<48x128xf32> to vector<16x128xf32>
    %474 = vector.extract_strided_slice %472 {offsets = [16, 0], sizes = [16, 128], strides = [1, 1]} : vector<48x128xf32> to vector<16x128xf32>
    %475 = vector.extract_strided_slice %472 {offsets = [32, 0], sizes = [16, 128], strides = [1, 1]} : vector<48x128xf32> to vector<16x128xf32>
    %476 = arith.maximumf %473, %474 : vector<16x128xf32>
    %477 = arith.maximumf %476, %475 : vector<16x128xf32>
    %478 = arith.subf %473, %477 : vector<16x128xf32>
    %479 = math.exp %478 : vector<16x128xf32>
    %480 = arith.subf %474, %477 : vector<16x128xf32>
    %481 = math.exp %480 : vector<16x128xf32>
    %482 = arith.subf %475, %477 : vector<16x128xf32>
    %483 = math.exp %482 : vector<16x128xf32>
    %484 = arith.addf %479, %481 : vector<16x128xf32>
    %485 = arith.addf %484, %483 : vector<16x128xf32>
    %486 = tpu.reciprocal %485 : vector<16x128xf32> -> vector<16x128xf32>
    %487 = arith.mulf %479, %486 : vector<16x128xf32>
    %488 = vector.extract_strided_slice %407 {offsets = [0, 0], sizes = [16, 128], strides = [1, 1]} : vector<48x128xf32> to vector<16x128xf32>
    %489 = arith.mulf %487, %488 : vector<16x128xf32>
    %490 = arith.mulf %481, %486 : vector<16x128xf32>
    %491 = vector.extract_strided_slice %407 {offsets = [16, 0], sizes = [16, 128], strides = [1, 1]} : vector<48x128xf32> to vector<16x128xf32>
    %492 = arith.mulf %490, %491 : vector<16x128xf32>
    %493 = arith.addf %489, %492 : vector<16x128xf32>
    %494 = arith.mulf %483, %486 : vector<16x128xf32>
    %495 = vector.extract_strided_slice %407 {offsets = [32, 0], sizes = [16, 128], strides = [1, 1]} : vector<48x128xf32> to vector<16x128xf32>
    %496 = arith.mulf %494, %495 : vector<16x128xf32>
    %497 = arith.addf %493, %496 : vector<16x128xf32>
    %498 = tpu.concatenate %445, %471, %497 in 0 : vector<16x128xf32>, vector<16x128xf32>, vector<16x128xf32> -> vector<48x128xf32>
    %499 = arith.truncf %498 : vector<48x128xf32> to vector<48x128xbf16>
    %c2_85 = arith.constant 2 : index
    %c0_86 = arith.constant 0 : index
    %c0_87 = arith.constant 0 : index
    %500 = vector.load %arg4[%c2_85, %c0_86, %c0_87] : memref<3x128x128xbf16, #tpu.memory_space<vmem>>, vector<1x128x128xbf16>
    %501 = vector.shape_cast %500 : vector<1x128x128xbf16> to vector<128x128xbf16>
    %cst_88 = arith.constant dense<0.000000e+00> : vector<48x128xf32>
    %502 = tpu.matmul %499, %501, %cst_88 {dimension_numbers = #tpu.dot_dimension_numbers<[1], [0], [0], [1], [0, 0, 1, 1], [], []>} : vector<48x128xbf16>, vector<128x128xbf16>, vector<48x128xf32> -> vector<48x128xf32>
    %503 = vector.extract_strided_slice %389 {offsets = [3, 0], sizes = [1, 128], strides = [1, 1]} : vector<9x128xf32> to vector<1x128xf32>
    %504 = vector.broadcast %503 : vector<1x128xf32> to vector<48x128xf32>
    %505 = arith.addf %502, %504 : vector<48x128xf32>
    %506 = arith.addf %387, %505 : vector<48x128xf32>
    %507 = vector.extract_strided_slice %389 {offsets = [5, 0], sizes = [1, 128], strides = [1, 1]} : vector<9x128xf32> to vector<1x128xf32>
    %508 = vector.extract_strided_slice %389 {offsets = [6, 0], sizes = [1, 128], strides = [1, 1]} : vector<9x128xf32> to vector<1x128xf32>
    %cst_89 = arith.constant dense<0.000000e+00> : vector<48xf32>
    %509 = vector.multi_reduction <add>, %506, %cst_89 [1] : vector<48x128xf32> to vector<48xf32>
    %510 = vector.shape_cast %509 : vector<48xf32> to vector<48x1xf32>
    %cst_90 = arith.constant 1.280000e+02 : f32
    %511 = vector.broadcast %cst_90 : f32 to vector<48x1xf32>
    %512 = arith.divf %510, %511 : vector<48x1xf32>
    %513 = vector.broadcast %512 : vector<48x1xf32> to vector<48x128xf32>
    %514 = arith.subf %506, %513 : vector<48x128xf32>
    %515 = vector.broadcast %512 : vector<48x1xf32> to vector<48x128xf32>
    %516 = arith.subf %506, %515 : vector<48x128xf32>
    %517 = arith.mulf %514, %516 : vector<48x128xf32>
    %cst_91 = arith.constant dense<0.000000e+00> : vector<48xf32>
    %518 = vector.multi_reduction <add>, %517, %cst_91 [1] : vector<48x128xf32> to vector<48xf32>
    %519 = vector.shape_cast %518 : vector<48xf32> to vector<48x1xf32>
    %cst_92 = arith.constant 1.280000e+02 : f32
    %520 = vector.broadcast %cst_92 : f32 to vector<48x1xf32>
    %521 = arith.divf %519, %520 : vector<48x1xf32>
    %522 = vector.broadcast %512 : vector<48x1xf32> to vector<48x128xf32>
    %523 = arith.subf %506, %522 : vector<48x128xf32>
    %cst_93 = arith.constant 9.99999974E-6 : f32
    %524 = vector.broadcast %cst_93 : f32 to vector<48x1xf32>
    %525 = arith.addf %521, %524 : vector<48x1xf32>
    %526 = math.rsqrt %525 : vector<48x1xf32>
    %527 = vector.broadcast %526 : vector<48x1xf32> to vector<48x128xf32>
    %528 = arith.mulf %523, %527 : vector<48x128xf32>
    %529 = vector.broadcast %507 : vector<1x128xf32> to vector<48x128xf32>
    %530 = arith.mulf %528, %529 : vector<48x128xf32>
    %531 = vector.broadcast %508 : vector<1x128xf32> to vector<48x128xf32>
    %532 = arith.addf %530, %531 : vector<48x128xf32>
    %533 = arith.truncf %532 : vector<48x128xf32> to vector<48x128xbf16>
    %c2_94 = arith.constant 2 : index
    %c0_95 = arith.constant 0 : index
    %c0_96 = arith.constant 0 : index
    %534 = vector.load %arg5[%c2_94, %c0_95, %c0_96] : memref<3x128x256xbf16, #tpu.memory_space<vmem>>, vector<1x128x256xbf16>
    %535 = vector.shape_cast %534 : vector<1x128x256xbf16> to vector<128x256xbf16>
    %cst_97 = arith.constant dense<0.000000e+00> : vector<48x256xf32>
    %536 = tpu.matmul %533, %535, %cst_97 {dimension_numbers = #tpu.dot_dimension_numbers<[1], [0], [0], [1], [0, 0, 1, 1], [], []>} : vector<48x128xbf16>, vector<128x256xbf16>, vector<48x256xf32> -> vector<48x256xf32>
    %c2_98 = arith.constant 2 : index
    %c0_99 = arith.constant 0 : index
    %c0_100 = arith.constant 0 : index
    %537 = vector.load %arg10[%c2_98, %c0_99, %c0_100] : memref<3x1x256xf32, #tpu.memory_space<vmem>>, vector<1x1x256xf32>
    %538 = vector.shape_cast %537 : vector<1x1x256xf32> to vector<1x256xf32>
    %539 = vector.broadcast %538 : vector<1x256xf32> to vector<48x256xf32>
    %540 = arith.addf %536, %539 : vector<48x256xf32>
    %cst_101 = arith.constant 0.000000e+00 : f32
    %541 = vector.broadcast %cst_101 : f32 to vector<48x256xf32>
    %542 = arith.maximumf %540, %541 : vector<48x256xf32>
    %543 = arith.truncf %542 : vector<48x256xf32> to vector<48x256xbf16>
    %c2_102 = arith.constant 2 : index
    %c0_103 = arith.constant 0 : index
    %c0_104 = arith.constant 0 : index
    %544 = vector.load %arg6[%c2_102, %c0_103, %c0_104] : memref<3x256x128xbf16, #tpu.memory_space<vmem>>, vector<1x256x128xbf16>
    %545 = vector.shape_cast %544 : vector<1x256x128xbf16> to vector<256x128xbf16>
    %cst_105 = arith.constant dense<0.000000e+00> : vector<48x128xf32>
    %546 = tpu.matmul %543, %545, %cst_105 {dimension_numbers = #tpu.dot_dimension_numbers<[1], [0], [0], [1], [0, 0, 1, 1], [], []>} : vector<48x256xbf16>, vector<256x128xbf16>, vector<48x128xf32> -> vector<48x128xf32>
    %547 = vector.extract_strided_slice %389 {offsets = [4, 0], sizes = [1, 128], strides = [1, 1]} : vector<9x128xf32> to vector<1x128xf32>
    %548 = vector.broadcast %547 : vector<1x128xf32> to vector<48x128xf32>
    %549 = arith.addf %546, %548 : vector<48x128xf32>
    %550 = arith.addf %532, %549 : vector<48x128xf32>
    %551 = vector.extract_strided_slice %389 {offsets = [7, 0], sizes = [1, 128], strides = [1, 1]} : vector<9x128xf32> to vector<1x128xf32>
    %552 = vector.extract_strided_slice %389 {offsets = [8, 0], sizes = [1, 128], strides = [1, 1]} : vector<9x128xf32> to vector<1x128xf32>
    %cst_106 = arith.constant dense<0.000000e+00> : vector<48xf32>
    %553 = vector.multi_reduction <add>, %550, %cst_106 [1] : vector<48x128xf32> to vector<48xf32>
    %554 = vector.shape_cast %553 : vector<48xf32> to vector<48x1xf32>
    %cst_107 = arith.constant 1.280000e+02 : f32
    %555 = vector.broadcast %cst_107 : f32 to vector<48x1xf32>
    %556 = arith.divf %554, %555 : vector<48x1xf32>
    %557 = vector.broadcast %556 : vector<48x1xf32> to vector<48x128xf32>
    %558 = arith.subf %550, %557 : vector<48x128xf32>
    %559 = vector.broadcast %556 : vector<48x1xf32> to vector<48x128xf32>
    %560 = arith.subf %550, %559 : vector<48x128xf32>
    %561 = arith.mulf %558, %560 : vector<48x128xf32>
    %cst_108 = arith.constant dense<0.000000e+00> : vector<48xf32>
    %562 = vector.multi_reduction <add>, %561, %cst_108 [1] : vector<48x128xf32> to vector<48xf32>
    %563 = vector.shape_cast %562 : vector<48xf32> to vector<48x1xf32>
    %cst_109 = arith.constant 1.280000e+02 : f32
    %564 = vector.broadcast %cst_109 : f32 to vector<48x1xf32>
    %565 = arith.divf %563, %564 : vector<48x1xf32>
    %566 = vector.broadcast %556 : vector<48x1xf32> to vector<48x128xf32>
    %567 = arith.subf %550, %566 : vector<48x128xf32>
    %cst_110 = arith.constant 9.99999974E-6 : f32
    %568 = vector.broadcast %cst_110 : f32 to vector<48x1xf32>
    %569 = arith.addf %565, %568 : vector<48x1xf32>
    %570 = math.rsqrt %569 : vector<48x1xf32>
    %571 = vector.broadcast %570 : vector<48x1xf32> to vector<48x128xf32>
    %572 = arith.mulf %567, %571 : vector<48x128xf32>
    %573 = vector.broadcast %551 : vector<1x128xf32> to vector<48x128xf32>
    %574 = arith.mulf %572, %573 : vector<48x128xf32>
    %575 = vector.broadcast %552 : vector<1x128xf32> to vector<48x128xf32>
    %576 = arith.addf %574, %575 : vector<48x128xf32>
    %577 = vector.extract_strided_slice %576 {offsets = [0, 0], sizes = [16, 128], strides = [1, 1]} : vector<48x128xf32> to vector<16x128xf32>
    %578 = arith.truncf %577 : vector<16x128xf32> to vector<16x128xbf16>
    %c0_111 = arith.constant 0 : index
    %c0_112 = arith.constant 0 : index
    %c0_113 = arith.constant 0 : index
    %579 = vector.load %arg7[%c0_111, %c0_112, %c0_113] : memref<3x128x128xbf16, #tpu.memory_space<vmem>>, vector<1x128x128xbf16>
    %580 = vector.shape_cast %579 : vector<1x128x128xbf16> to vector<128x128xbf16>
    %cst_114 = arith.constant dense<0.000000e+00> : vector<16x128xf32>
    %581 = tpu.matmul %578, %580, %cst_114 {dimension_numbers = #tpu.dot_dimension_numbers<[1], [0], [0], [1], [0, 0, 1, 1], [], []>} : vector<16x128xbf16>, vector<128x128xbf16>, vector<16x128xf32> -> vector<16x128xf32>
    %582 = vector.broadcast %4 : vector<1x128xf32> to vector<16x128xf32>
    %583 = arith.addf %582, %581 : vector<16x128xf32>
    %584 = vector.extract_strided_slice %576 {offsets = [16, 0], sizes = [16, 128], strides = [1, 1]} : vector<48x128xf32> to vector<16x128xf32>
    %585 = arith.truncf %584 : vector<16x128xf32> to vector<16x128xbf16>
    %c1_115 = arith.constant 1 : index
    %c0_116 = arith.constant 0 : index
    %c0_117 = arith.constant 0 : index
    %586 = vector.load %arg7[%c1_115, %c0_116, %c0_117] : memref<3x128x128xbf16, #tpu.memory_space<vmem>>, vector<1x128x128xbf16>
    %587 = vector.shape_cast %586 : vector<1x128x128xbf16> to vector<128x128xbf16>
    %cst_118 = arith.constant dense<0.000000e+00> : vector<16x128xf32>
    %588 = tpu.matmul %585, %587, %cst_118 {dimension_numbers = #tpu.dot_dimension_numbers<[1], [0], [0], [1], [0, 0, 1, 1], [], []>} : vector<16x128xbf16>, vector<128x128xbf16>, vector<16x128xf32> -> vector<16x128xf32>
    %589 = arith.addf %583, %588 : vector<16x128xf32>
    %590 = vector.extract_strided_slice %576 {offsets = [32, 0], sizes = [16, 128], strides = [1, 1]} : vector<48x128xf32> to vector<16x128xf32>
    %591 = arith.truncf %590 : vector<16x128xf32> to vector<16x128xbf16>
    %c2_119 = arith.constant 2 : index
    %c0_120 = arith.constant 0 : index
    %c0_121 = arith.constant 0 : index
    %592 = vector.load %arg7[%c2_119, %c0_120, %c0_121] : memref<3x128x128xbf16, #tpu.memory_space<vmem>>, vector<1x128x128xbf16>
    %593 = vector.shape_cast %592 : vector<1x128x128xbf16> to vector<128x128xbf16>
    %cst_122 = arith.constant dense<0.000000e+00> : vector<16x128xf32>
    %594 = tpu.matmul %591, %593, %cst_122 {dimension_numbers = #tpu.dot_dimension_numbers<[1], [0], [0], [1], [0, 0, 1, 1], [], []>} : vector<16x128xbf16>, vector<128x128xbf16>, vector<16x128xf32> -> vector<16x128xf32>
    %595 = arith.addf %589, %594 : vector<16x128xf32>
    %c0_123 = arith.constant 0 : index
    %c0_124 = arith.constant 0 : index
    %c0_125 = arith.constant 0 : index
    %596 = vector.load %arg12[%c0_123, %c0_124, %c0_125] : memref<1x16x128xf32, #tpu.memory_space<vmem>>, vector<1x16x128xf32>
    %597 = vector.shape_cast %596 : vector<1x16x128xf32> to vector<16x128xf32>
    %598 = vector.shape_cast %595 : vector<16x128xf32> to vector<1x16x128xf32>
    tpu.vector_store %arg12[%c0_123, %c0_124, %c0_125], %598 {strides = array<i32>} : memref<1x16x128xf32, #tpu.memory_space<vmem>>, vector<1x16x128xf32>,
    return
  }
  func.func @transform_0(%arg0: i32) -> (i32, i32, i32) {
    %c0_i32 = arith.constant 0 : i32
    %c0_i32_0 = arith.constant 0 : i32
    %c0_i32_1 = arith.constant 0 : i32
    return %arg0, %c0_i32, %c0_i32_0 : i32, i32, i32
  }
  func.func @transform_1(%arg0: i32) -> (i32, i32) {
    %c0_i32 = arith.constant 0 : i32
    %c0_i32_0 = arith.constant 0 : i32
    %c0_i32_1 = arith.constant 0 : i32
    return %c0_i32, %c0_i32_0 : i32, i32
  }
  func.func @transform_2(%arg0: i32) -> (i32, i32, i32) {
    %c0_i32 = arith.constant 0 : i32
    %c0_i32_0 = arith.constant 0 : i32
    %c0_i32_1 = arith.constant 0 : i32
    %c0_i32_2 = arith.constant 0 : i32
    return %c0_i32, %c0_i32_0, %c0_i32_1 : i32, i32, i32
  }
  func.func @transform_3(%arg0: i32) -> (i32, i32, i32) {
    %c0_i32 = arith.constant 0 : i32
    %c0_i32_0 = arith.constant 0 : i32
    %c0_i32_1 = arith.constant 0 : i32
    %c0_i32_2 = arith.constant 0 : i32
    return %c0_i32, %c0_i32_0, %c0_i32_1 : i32, i32, i32
  }
  func.func @transform_4(%arg0: i32) -> (i32, i32, i32) {
    %c0_i32 = arith.constant 0 : i32
    %c0_i32_0 = arith.constant 0 : i32
    %c0_i32_1 = arith.constant 0 : i32
    %c0_i32_2 = arith.constant 0 : i32
    return %c0_i32, %c0_i32_0, %c0_i32_1 : i32, i32, i32
  }
  func.func @transform_5(%arg0: i32) -> (i32, i32, i32) {
    %c0_i32 = arith.constant 0 : i32
    %c0_i32_0 = arith.constant 0 : i32
    %c0_i32_1 = arith.constant 0 : i32
    %c0_i32_2 = arith.constant 0 : i32
    return %c0_i32, %c0_i32_0, %c0_i32_1 : i32, i32, i32
  }
  func.func @transform_6(%arg0: i32) -> (i32, i32, i32) {
    %c0_i32 = arith.constant 0 : i32
    %c0_i32_0 = arith.constant 0 : i32
    %c0_i32_1 = arith.constant 0 : i32
    %c0_i32_2 = arith.constant 0 : i32
    return %c0_i32, %c0_i32_0, %c0_i32_1 : i32, i32, i32
  }
  func.func @transform_7(%arg0: i32) -> (i32, i32) {
    %c0_i32 = arith.constant 0 : i32
    %c0_i32_0 = arith.constant 0 : i32
    %c0_i32_1 = arith.constant 0 : i32
    return %c0_i32, %c0_i32_0 : i32, i32
  }
  func.func @transform_8(%arg0: i32) -> (i32, i32, i32) {
    %c0_i32 = arith.constant 0 : i32
    %c0_i32_0 = arith.constant 0 : i32
    %c0_i32_1 = arith.constant 0 : i32
    %c0_i32_2 = arith.constant 0 : i32
    return %c0_i32, %c0_i32_0, %c0_i32_1 : i32, i32, i32
  }
  func.func @transform_9(%arg0: i32) -> (i32, i32, i32) {
    %c0_i32 = arith.constant 0 : i32
    %c0_i32_0 = arith.constant 0 : i32
    %c0_i32_1 = arith.constant 0 : i32
    %c0_i32_2 = arith.constant 0 : i32
    return %c0_i32, %c0_i32_0, %c0_i32_1 : i32, i32, i32
  }
  func.func @transform_10(%arg0: i32) -> (i32, i32) {
    %c0_i32 = arith.constant 0 : i32
    %c0_i32_0 = arith.constant 0 : i32
    %c0_i32_1 = arith.constant 0 : i32
    return %c0_i32, %c0_i32_0 : i32, i32
  }
  func.func @transform_11(%arg0: i32) -> (i32, i32, i32) {
    %c0_i32 = arith.constant 0 : i32
    %c0_i32_0 = arith.constant 0 : i32
    %c0_i32_1 = arith.constant 0 : i32
    return %arg0, %c0_i32, %c0_i32_0 : i32, i32, i32
  }
}

</mosaic_0001>

<bundles_post_ra>
// kernel: tpu_custom_call.1
= control target key start
LH: loop header
LB: loop body
LE: loop exit
PB: predicated region body
PF: predicated region fallthrough
CT: control target
= control target key end

     0   :  { %16 = vsyncpa [#allocation3], 0  ;;  %s8184_s0 = inlined_call_operand.hbm [shape: bf16[1,48,1024], index: 0, kind: input, shape index: {}]   ;;  %s8185_s1 = inlined_call_operand.hbm [shape: bf16[1024,128], index: 1, kind: input, shape index: {}]   ;;  %s8186_s2 = inlined_call_operand.hbm [shape: bf16[3,128,384], index: 2, kind: input, shape index: {}]   ;;  %s8187_s3 = inlined_call_operand.hbm [shape: bf16[3,128,128], index: 3, kind: input, shape index: {}]   ;;  %s8188_s4 = inlined_call_operand.hbm [shape: bf16[3,128,256], index: 4, kind: input, shape index: {}]   ;;  %s8189_s5 = inlined_call_operand.hbm [shape: bf16[3,256,128], index: 5, kind: input, shape index: {}]   ;;  %s8190_s6 = inlined_call_operand.hbm [shape: bf16[3,128,128], index: 6, kind: input, shape index: {}]   ;;  %s8191_s7 = inlined_call_operand.vmem [shape: bf16[128,128], index: 7, kind: input, shape index: {}]   ;;  %s8192_s8 = inlined_call_operand.vmem [shape: f32[3,9,128], index: 8, kind: input, shape index: {}]   ;;  %s8193_s9 = inlined_call_operand.vmem [shape: f32[3,1,256], index: 9, kind: input, shape index: {}]   ;;  %s8194_s10 = inlined_call_operand.vmem [shape: f32[2,128], index: 10, kind: input, shape index: {}]   ;;  %s8195_s11 = inlined_call_operand.hbm [shape: f32[1,16,128], index: 11, kind: output, shape index: {}]  }
   0x1   :  { %17 = vsyncpa [#allocation6], 0 }
   0x2   :  { %18 = vsyncpa [#allocation9], 0 }
   0x3   :  { %19 = vsyncpa [#allocation12], 0  ;;  %s38_s19 = sshll.u32 %s8185_s1, 4  ;;  %s39_s19 = int_to_ptr.hbm [resolvable:$true] %s38_s19 }
   0x4   :  { %20 = vsyncpa [#allocation4], 0  ;;  %s7202_s20 = smov [#allocation5]   ;;  %s64_s24 = sshll.u32 %s8187_s3, 4  ;;  %s65_s24 = int_to_ptr.hbm [resolvable:$true] %s64_s24 }
   0x5   :  { %s40_s21 = sshll.u32 %s7202_s20, 4  ;;  %s7203_s25 = smov 64   ;;  %s41_s21 = int_to_ptr.vmem [resolvable:$true] %s40_s21 }
   0x6   :  { %s7204_s26 = smov 4   ;;  %s7205_s27 = smov [#allocation8]  }
   0x7   :  { %46 = dma.hbm_to_vmem [thread:$0]  %s39_s19, 8192, %s41_s21, [#allocation6], %s7203_s25, %s7203_s25, %s7204_s26  }
   0x8   :  { %s66_s28 = sshll.u32 %s7205_s27, 4  ;;  %s90_s30 = sshll.u32 %s8189_s5, 4  ;;  %s67_s28 = int_to_ptr.vmem [resolvable:$true] %s66_s28  ;;  %s91_s30 = int_to_ptr.hbm [resolvable:$true] %s90_s30 }
   0x9   :  { %72 = dma.hbm_to_vmem [thread:$0]  %s65_s24, 3072, %s67_s28, [#allocation9], %s7203_s25, %s7203_s25, %s7204_s26  }
   0xa   :  { %s25_s13 = sshll.u32 %s8184_s0, 4  ;;  %s7206_s14 = smov [#allocation11]   ;;  %s26_s13 = int_to_ptr.hbm [resolvable:$true] %s25_s13 }
   0xb   :  { %s92_s15 = sshll.u32 %s7206_s14, 4  ;;  %s7207_s16 = smov [#allocation2]   ;;  %s93_s15 = int_to_ptr.vmem [resolvable:$true] %s92_s15 }
   0xc   :  { %98 = dma.hbm_to_vmem [thread:$0]  %s91_s30, 6144, %s93_s15, [#allocation12], %s7203_s25, %s7203_s25, %s7204_s26  }
   0xd   :  { %s27_s5 = sshll.u32 %s7207_s16, 4  ;;  %s7208_s17 = smov 512   ;;  %s28_s5 = int_to_ptr.vmem [resolvable:$true] %s27_s5 }
   0xe   :  { %s7209_s18 = smov 32   ;;  %s51_s21 = sshll.u32 %s8186_s2, 4  ;;  %s52_s21 = int_to_ptr.hbm [resolvable:$true] %s51_s21 }
   0xf   :  { %33 = dma.hbm_to_vmem [thread:$0]  %s26_s13, 3072, %s28_s5, [#allocation3], %s7208_s17, %s7208_s17, %s7209_s18  }
  0x10   :  { %s7210_s0 = smov [#allocation7]   ;;  %s77_s27 = sshll.u32 %s8188_s4, 4  ;;  %s78_s27 = int_to_ptr.hbm [resolvable:$true] %s77_s27 }
  0x11   :  { %s53_s22 = sshll.u32 %s7210_s0, 4  ;;  %s7211_s28 = smov 192   ;;  %s54_s22 = int_to_ptr.vmem [resolvable:$true] %s53_s22 }
  0x12   :  { %s7212_s29 = smov 12   ;;  %s7213_s1 = smov [#allocation10]  }
  0x13   :  { %59 = dma.hbm_to_vmem [thread:$0]  %s52_s21, 9216, %s54_s22, [#allocation6], %s7211_s28, %s7211_s28, %s7212_s29  }
  0x14   :  { %s79_s30 = sshll.u32 %s7213_s1, 4  ;;  %s7214_s3 = smov 128   ;;  %s80_s30 = int_to_ptr.vmem [resolvable:$true] %s79_s30 }
  0x15   :  { %s7215_s12 = smov 8   ;;  %s103_s14 = sshll.u32 %s8190_s6, 4  ;;  %s104_s14 = int_to_ptr.hbm [resolvable:$true] %s103_s14 }
  0x16   :  { %85 = dma.hbm_to_vmem [thread:$0]  %s78_s27, 6144, %s80_s30, [#allocation9], %s7214_s3, %s7214_s3, %s7215_s12  }
  0x17   :  { %s7216_s15 = smov [#allocation13]  }
  0x18   :  { %s105_s4 = sshll.u32 %s7216_s15, 4  ;;  %s106_s4 = int_to_ptr.vmem [resolvable:$true] %s105_s4 }
  0x19   :  { %111 = dma.hbm_to_vmem [thread:$0]  %s104_s14, 3072, %s106_s4, [#allocation12], %s7203_s25, %s7203_s25, %s7204_s26  }
  0x1a   :  { %7192 = dma.done.wait [#allocation3], 3072  }
  0x1b   :  { %7193 = vsyncadd [#allocation3], 4294964224 }
  0x1c   :  { %7194 = dma.done.wait [#allocation6], 17408  }
  0x1d   :  { %7195 = vsyncadd [#allocation6], 4294949888 }
  0x1e   :  { %7196 = dma.done.wait [#allocation9], 9216  }
  0x1f   :  { %7197 = vsyncadd [#allocation9], 4294958080 }
  0x20   :  { %7198 = dma.done.wait [#allocation12], 9216  }
  0x21   :  { %7199 = vsyncadd [#allocation12], 4294958080  ;;  %v6461_v0 = vld [vmem:[#allocation5 + $0x38] sm:$0xff]  ;;  %v6460_v4 = vld [vmem:[#allocation5 + $0x30] sm:$0xff]  ;;  %s7218_s25 = smov [#allocation14]   ;;  %s5160_s17 = sshll.u32 %s8195_s11, 4  ;;  %s5161_s17 = int_to_ptr.hbm [resolvable:$true] %s5160_s17 }
  0x22   :  { %v6469_v1 = vld [vmem:[#allocation5 + $0x78] sm:$0xff]  ;;  %806 = vmatpush.bf16.msra.mxu0 %v6461_v0  ;;  %v6468_v5 = vld [vmem:[#allocation5 + $0x70] sm:$0xff]  ;;  %v6459_v8 = vld [vmem:[#allocation5 + $0x28] sm:$0xff]  ;;  %s5158_s26 = sshll.u32 %s7218_s25, 4  ;;  %s5159_s26 = int_to_ptr.vmem [resolvable:$true] %s5158_s26 }
  0x23   :  { %v6477_v2 = vld [vmem:[#allocation5 + $0xb8] sm:$0xff]  ;;  %830 = vmatpush.bf16.msra.mxu1 %v6469_v1  ;;  %v6476_v6 = vld [vmem:[#allocation5 + $0xb0] sm:$0xff]  ;;  %v6467_v9 = vld [vmem:[#allocation5 + $0x68] sm:$0xff] }
  0x24   :  { %v6485_v3 = vld [vmem:[#allocation5 + $0xf8] sm:$0xff]  ;;  %854 = vmatpush.bf16.msra.mxu2 %v6477_v2  ;;  %v6484_v7 = vld [vmem:[#allocation5 + $0xf0] sm:$0xff]  ;;  %v6475_v10 = vld [vmem:[#allocation5 + $0xa8] sm:$0xff] }
  0x25   :  { %878 = vmatpush.bf16.msra.mxu3 %v6485_v3  ;;  %v6483_v11 = vld [vmem:[#allocation5 + $0xe8] sm:$0xff]  ;;  %v6458_v12 = vld [vmem:[#allocation5 + $0x20] sm:$0xff]  ;;  %v6457_v16 = vld [vmem:[#allocation5 + $0x18] sm:$0xff] }
  0x26   :  { %807 = vmatpush.bf16.msra.mxu0 %v6460_v4  ;;  %v6466_v13 = vld [vmem:[#allocation5 + $0x60] sm:$0xff]  ;;  %v6465_v17 = vld [vmem:[#allocation5 + $0x58] sm:$0xff]  ;;  %v6456_v20 = vld [vmem:[#allocation5 + $0x10] sm:$0xff] }
  0x27   :  { %831 = vmatpush.bf16.msra.mxu1 %v6468_v5  ;;  %v6474_v14 = vld [vmem:[#allocation5 + $0xa0] sm:$0xff]  ;;  %v6473_v18 = vld [vmem:[#allocation5 + $0x98] sm:$0xff]  ;;  %v6464_v21 = vld [vmem:[#allocation5 + $0x50] sm:$0xff] }
  0x28   :  { %855 = vmatpush.bf16.msra.mxu2 %v6476_v6  ;;  %v6482_v15 = vld [vmem:[#allocation5 + $0xe0] sm:$0xff]  ;;  %v6481_v19 = vld [vmem:[#allocation5 + $0xd8] sm:$0xff]  ;;  %v6472_v22 = vld [vmem:[#allocation5 + $0x90] sm:$0xff] }
  0x29   :  { %879 = vmatpush.bf16.msra.mxu3 %v6484_v7  ;;  %v6480_v23 = vld [vmem:[#allocation5 + $0xd0] sm:$0xff]  ;;  %v6455_v24 = vld [vmem:[#allocation5 + $0x8] sm:$0xff]  ;;  %v6454_v28 = vld [vmem:[#allocation5] sm:$0xff] }
  0x2a   :  { %808 = vmatpush.bf16.msra.mxu0 %v6459_v8  ;;  %v6463_v25 = vld [vmem:[#allocation5 + $0x48] sm:$0xff]  ;;  %v6462_v29 = vld [vmem:[#allocation5 + $0x40] sm:$0xff]  ;;  %v6509_v40 = vld [vmem:[#allocation5 + $0x1b8] sm:$0xff] }
  0x2b   :  { %832 = vmatpush.bf16.msra.mxu1 %v6467_v9  ;;  %v6471_v26 = vld [vmem:[#allocation5 + $0x88] sm:$0xff]  ;;  %v6470_v30 = vld [vmem:[#allocation5 + $0x80] sm:$0xff]  ;;  %v6493_v41 = vld [vmem:[#allocation5 + $0x138] sm:$0xff] }
  0x2c   :  { %856 = vmatpush.bf16.msra.mxu2 %v6475_v10  ;;  %v6479_v27 = vld [vmem:[#allocation5 + $0xc8] sm:$0xff]  ;;  %v6478_v31 = vld [vmem:[#allocation5 + $0xc0] sm:$0xff]  ;;  %v6517_v46 = vld [vmem:[#allocation5 + $0x1f8] sm:$0xff] }
  0x2d   :  { %880 = vmatpush.bf16.msra.mxu3 %v6483_v11  ;;  %v5178_v32 = vld [vmem:[#allocation2] sm:$0xf]  ;;  %v6430_v34 = vld [vmem:[#allocation2 + $0x4] sm:$0xf]  ;;  %v5186_v36 = vld [vmem:[#allocation2 + $0x8] sm:$0xf] }
  0x2e   :  { %809 = vmatpush.bf16.msra.mxu0 %v6458_v12  ;;  %v6434_v33 = vld [vmem:[#allocation2 + $0x1c] sm:$0xf0]  ;;  %v5180_v35 = vld [vmem:[#allocation2 + $0x20] sm:$0xf0]  ;;  %v6435_v37 = vld [vmem:[#allocation2 + $0x24] sm:$0xf0] }
  0x2f   :  { %833 = vmatpush.bf16.msra.mxu1 %v6466_v13  ;;  %v6431_v38 = vld [vmem:[#allocation2 + $0xc] sm:$0xf]  ;;  %v5179_v42 = vor.u32 %v6434_v33, %v5178_v32  ;;  %v5183_v43 = vor.u32 %v6430_v34, %v5180_v35  ;;  %v5187_v44 = vor.u32 %v6435_v37, %v5186_v36  ;;  %v6501_v47 = vld [vmem:[#allocation5 + $0x178] sm:$0xff]  ;;  %v6508_v48 = vld [vmem:[#allocation5 + $0x1b0] sm:$0xff] }
  0x30   :  { %857 = vmatpush.bf16.msra.mxu2 %v6474_v14  ;;  %v5188_v39 = vld [vmem:[#allocation2 + $0x28] sm:$0xf0]  ;;  %v6492_v49 = vld [vmem:[#allocation5 + $0x130] sm:$0xff]  ;;  %v5210_v56 = vld [vmem:[#allocation2 + $0x40] sm:$0xf] }
  0x31   :  { %881 = vmatpush.bf16.msra.mxu3 %v6482_v15  ;;  %v5191_v45 = vor.u32 %v6431_v38, %v5188_v39  ;;  %v6516_v50 = vld [vmem:[#allocation5 + $0x1f0] sm:$0xff]  ;;  %v6507_v52 = vld [vmem:[#allocation5 + $0x1a8] sm:$0xff]  ;;  %v6506_v57 = vld [vmem:[#allocation5 + $0x1a0] sm:$0xff] }
  0x32   :  { %810 = vmatpush.bf16.msra.mxu0 %v6457_v16  ;;  %v6500_v51 = vld [vmem:[#allocation5 + $0x170] sm:$0xff]  ;;  %v6491_v53 = vld [vmem:[#allocation5 + $0x128] sm:$0xff]  ;;  %v6490_v58 = vld [vmem:[#allocation5 + $0x120] sm:$0xff] }
  0x33   :  { %834 = vmatpush.bf16.msra.mxu1 %v6465_v17  ;;  %v6515_v54 = vld [vmem:[#allocation5 + $0x1e8] sm:$0xff]  ;;  %v6442_v59 = vld [vmem:[#allocation2 + $0x5c] sm:$0xf0]  ;;  %v6438_v60 = vld [vmem:[#allocation2 + $0x44] sm:$0xf] }
  0x34   :  { %858 = vmatpush.bf16.msra.mxu2 %v6473_v18  ;;  %v6499_v55 = vld [vmem:[#allocation5 + $0x168] sm:$0xff]  ;;  %v5212_v61 = vld [vmem:[#allocation2 + $0x60] sm:$0xf0]  ;;  %v6505_v4 = vld [vmem:[#allocation5 + $0x198] sm:$0xff]  ;;  %v5211_v6 = vor.u32 %v6442_v59, %v5210_v56 }
  0x35   :  { %882 = vmatpush.bf16.msra.mxu3 %v6481_v19  ;;  %v5218_v62 = vld [vmem:[#allocation2 + $0x48] sm:$0xf]  ;;  %v6439_v0 = vld [vmem:[#allocation2 + $0x4c] sm:$0xf]  ;;  %v6514_v2 = vld [vmem:[#allocation5 + $0x1e0] sm:$0xff]  ;;  %v5215_v7 = vor.u32 %v6438_v60, %v5212_v61 }
  0x36   :  { %811 = vmatpush.bf16.msra.mxu0 %v6456_v20  ;;  %v6443_v63 = vld [vmem:[#allocation2 + $0x64] sm:$0xf0]  ;;  %v5220_v1 = vld [vmem:[#allocation2 + $0x68] sm:$0xf0]  ;;  %v6498_v3 = vld [vmem:[#allocation5 + $0x160] sm:$0xff] }
  0x37   :  { %835 = vmatpush.bf16.msra.mxu1 %v6464_v21  ;;  %v6489_v5 = vld [vmem:[#allocation5 + $0x118] sm:$0xff]  ;;  %v5219_v8 = vor.u32 %v6443_v63, %v5218_v62  ;;  %v5223_v9 = vor.u32 %v6439_v0, %v5220_v1  ;;  %v6504_v12 = vld [vmem:[#allocation5 + $0x190] sm:$0xff]  ;;  %v6503_v16 = vld [vmem:[#allocation5 + $0x188] sm:$0xff] }
  0x38   :  { %859 = vmatpush.bf16.msra.mxu2 %v6472_v22  ;;  %v6513_v10 = vld [vmem:[#allocation5 + $0x1d8] sm:$0xff]  ;;  %v6488_v13 = vld [vmem:[#allocation5 + $0x110] sm:$0xff]  ;;  %v6487_v17 = vld [vmem:[#allocation5 + $0x108] sm:$0xff] }
  0x39   :  { %883 = vmatpush.bf16.msra.mxu3 %v6480_v23  ;;  %v6497_v11 = vld [vmem:[#allocation5 + $0x158] sm:$0xff]  ;;  %v6512_v14 = vld [vmem:[#allocation5 + $0x1d0] sm:$0xff]  ;;  %v6511_v18 = vld [vmem:[#allocation5 + $0x1c8] sm:$0xff] }
  0x3a   :  { %812 = vmatpush.bf16.msra.mxu0 %v6455_v24  ;;  %v6496_v15 = vld [vmem:[#allocation5 + $0x150] sm:$0xff]  ;;  %v6495_v19 = vld [vmem:[#allocation5 + $0x148] sm:$0xff]  ;;  %v5242_v20 = vld [vmem:[#allocation2 + $0x80] sm:$0xf] }
  0x3b   :  { %836 = vmatpush.bf16.msra.mxu1 %v6463_v25  ;;  %v6502_v21 = vld [vmem:[#allocation5 + $0x180] sm:$0xff]  ;;  %v5194_v36 = vld [vmem:[#allocation2 + $0x10] sm:$0xf]  ;;  %v6432_v38 = vld [vmem:[#allocation2 + $0x14] sm:$0xf] }
  0x3c   :  { %860 = vmatpush.bf16.msra.mxu2 %v6471_v26  ;;  %v6486_v22 = vld [vmem:[#allocation5 + $0x100] sm:$0xff]  ;;  %v5250_v26 = vld [vmem:[#allocation2 + $0x88] sm:$0xf]  ;;  %v6436_v37 = vld [vmem:[#allocation2 + $0x2c] sm:$0xf0] }
  0x3d   :  { %884 = vmatpush.bf16.msra.mxu3 %v6479_v27  ;;  %v6450_v23 = vld [vmem:[#allocation2 + $0x9c] sm:$0xf0]  ;;  %v6446_v24 = vld [vmem:[#allocation2 + $0x84] sm:$0xf]  ;;  %v6451_v27 = vld [vmem:[#allocation2 + $0xa4] sm:$0xf0] }
  0x3e   :  { %813 = vmatpush.bf16.msra.mxu0 %v6454_v28  ;;  %v5244_v25 = vld [vmem:[#allocation2 + $0xa0] sm:$0xf0]  ;;  %v6447_v28 = vld [vmem:[#allocation2 + $0x8c] sm:$0xf]  ;;  %v5243_v32 = vor.u32 %v6450_v23, %v5242_v20  ;;  %v5251_v34 = vor.u32 %v6451_v27, %v5250_v26  ;;  %v5196_v39 = vld [vmem:[#allocation2 + $0x30] sm:$0xf0] }
  0x3f   :  { %837 = vmatpush.bf16.msra.mxu1 %v6462_v29  ;;  %v5252_v29 = vld [vmem:[#allocation2 + $0xa8] sm:$0xf0]  ;;  %v5247_v33 = vor.u32 %v6446_v24, %v5244_v25  ;;  %v5258_v60 = vld [vmem:[#allocation2 + $0x90] sm:$0xf]  ;;  %v6448_v62 = vld [vmem:[#allocation2 + $0x94] sm:$0xf] }
  0x40   :  { %861 = vmatpush.bf16.msra.mxu2 %v6470_v30  ;;  %v6510_v30 = vld [vmem:[#allocation5 + $0x1c0] sm:$0xff]  ;;  %v5255_v35 = vor.u32 %v6447_v28, %v5252_v29  ;;  %v6452_v61 = vld [vmem:[#allocation2 + $0xac] sm:$0xf0]  ;;  %v5260_v63 = vld [vmem:[#allocation2 + $0xb0] sm:$0xf0] }
  0x41   :  { %885 = vmatpush.bf16.msra.mxu3 %v6478_v31  ;;  %814 = vmatmul.bf16.vlgmr.msra.gmra.mxu0 %v5179_v42  ;;  %v6494_v31 = vld [vmem:[#allocation5 + $0x140] sm:$0xff]  ;;  %v6433_v42 = vld [vmem:[#allocation2 + $0x1c] sm:$0xf]  ;;  %v5266_v0 = vld [vmem:[#allocation2 + $0x98] sm:$0xf] }
  0x42   :  { %902 = vmatpush.bf16.msrb.mxu0 %v6493_v41  ;;  %838 = vmatmul.bf16.vlgmr.msra.gmra.mxu1 %v5183_v43  ;;  %v6437_v41 = vld [vmem:[#allocation2 + $0x34] sm:$0xf0]  ;;  %v5204_v43 = vld [vmem:[#allocation2 + $0x38] sm:$0xf0]  ;;  %v6542_v23 = vld [vmem:[#allocation7 + $0x80] sm:$0xf0] }
  0x43   :  { %862 = vmatmul.bf16.vlgmr.msra.gmra.mxu2 %v5187_v44  ;;  %926 = vmatpush.bf16.msrb.mxu1 %v6501_v47  ;;  %v5195_v44 = vor.u32 %v6436_v37, %v5194_v36  ;;  %v5207_v47 = vor.u32 %v6433_v42, %v5204_v43  ;;  %v6453_v1 = vld [vmem:[#allocation2 + $0xb4] sm:$0xf0]  ;;  %v6541_v24 = vld [vmem:[#allocation7 + $0x7c] sm:$0xf]  ;;  %v5592_v26 = vld [vmem:[#allocation7 + $0x84] sm:$0xf0] }
  0x44   :  { %950 = vmatpush.bf16.msrb.mxu2 %v6509_v40  ;;  %886 = vmatmul.bf16.vlgmr.msra.gmra.mxu3 %v5191_v45  ;;  %v5202_v40 = vld [vmem:[#allocation2 + $0x18] sm:$0xf]  ;;  %v5199_v45 = vor.u32 %v6432_v38, %v5196_v39  ;;  %v5622_v27 = vld [vmem:[#allocation7 + $0xb0] sm:$0xf]  ;;  %v6549_v28 = vld [vmem:[#allocation7 + $0xb8] sm:$0xf0]  ;;  %v5595_v29 = vor.u32 %v6541_v24, %v5592_v26 }
  0x45   :  { %974 = vmatpush.bf16.msrb.mxu3 %v6517_v46  ;;  %v5203_v46 = vor.u32 %v6437_v41, %v5202_v40  ;;  %v6546_v36 = vld [vmem:[#allocation7 + $0xa0] sm:$0xf0]  ;;  %v5578_v38 = vld [vmem:[#allocation7 + $0x60] sm:$0xf]  ;;  %v6539_v39 = vld [vmem:[#allocation7 + $0x68] sm:$0xf0] }
  0x46   :  { %903 = vmatpush.bf16.msrb.mxu0 %v6492_v49  ;;  %v6444_v49 = vld [vmem:[#allocation2 + $0x6c] sm:$0xf0]  ;;  %v5579_v40 = vor.u32 %v6539_v39, %v5578_v38  ;;  %v6538_v41 = vld [vmem:[#allocation7 + $0x64] sm:$0xf]  ;;  %v5566_v43 = vld [vmem:[#allocation7 + $0x48] sm:$0xf] }
  0x47   :  { %927 = vmatpush.bf16.msrb.mxu1 %v6500_v51  ;;  %v5228_v51 = vld [vmem:[#allocation2 + $0x70] sm:$0xf0]  ;;  %v5580_v42 = vld [vmem:[#allocation7 + $0x6c] sm:$0xf0] }
  0x48   :  { %951 = vmatpush.bf16.msrb.mxu2 %v6508_v48  ;;  %v5226_v48 = vld [vmem:[#allocation2 + $0x50] sm:$0xf] }
  0x49   :  { %975 = vmatpush.bf16.msrb.mxu3 %v6516_v50  ;;  %v6440_v50 = vld [vmem:[#allocation2 + $0x54] sm:$0xf]  ;;  %v5227_v56 = vor.u32 %v6444_v49, %v5226_v48 }
  0x4a   :  { %904 = vmatpush.bf16.msrb.mxu0 %v6491_v53  ;;  %v6445_v53 = vld [vmem:[#allocation2 + $0x74] sm:$0xf0] }
  0x4b   :  { %928 = vmatpush.bf16.msrb.mxu1 %v6499_v55  ;;  %v5236_v55 = vld [vmem:[#allocation2 + $0x78] sm:$0xf0] }
  0x4c   :  { %952 = vmatpush.bf16.msrb.mxu2 %v6507_v52  ;;  %v5234_v52 = vld [vmem:[#allocation2 + $0x58] sm:$0xf] }
  0x4d   :  { %976 = vmatpush.bf16.msrb.mxu3 %v6515_v54  ;;  %v6441_v54 = vld [vmem:[#allocation2 + $0x5c] sm:$0xf] }
  0x4e   :  { %905 = vmatpush.bf16.msrb.mxu0 %v6490_v58  ;;  %v5235_v58 = vor.u32 %v6445_v53, %v5234_v52  ;;  %v5239_v59 = vor.u32 %v6441_v54, %v5236_v55  ;;  %v5586_v54 = vld [vmem:[#allocation7 + $0x68] sm:$0xf]  ;;  %v6540_v55 = vld [vmem:[#allocation7 + $0x70] sm:$0xf0] }
  0x4f   :  { %929 = vmatpush.bf16.msrb.mxu1 %v6498_v3  ;;  %v5268_v3 = vld [vmem:[#allocation2 + $0xb8] sm:$0xf0] }
  0x50   :  { %953 = vmatpush.bf16.msrb.mxu2 %v6506_v57  ;;  %v5231_v57 = vor.u32 %v6440_v50, %v5228_v51 }
  0x51   :  { %977 = vmatpush.bf16.msrb.mxu3 %v6514_v2  ;;  %819 = vmatmul.bf16.gmra.mxu0 %v5211_v6  ;;  %v6449_v2 = vld [vmem:[#allocation2 + $0x9c] sm:$0xf]  ;;  %v5267_v6 = vor.u32 %v6453_v1, %v5266_v0  ;;  %v5556_v0 = vld [vmem:[#allocation7 + $0x3c] sm:$0xf0]  ;;  %v5574_v1 = vld [vmem:[#allocation7 + $0x50] sm:$0xf] }
  0x52   :  { %906 = vmatpush.bf16.msrb.mxu0 %v6489_v5  ;;  %843 = vmatmul.bf16.gmra.mxu1 %v5215_v7  ;;  %v5263_v5 = vor.u32 %v6448_v62, %v5260_v63  ;;  %v5271_v7 = vor.u32 %v6449_v2, %v5268_v3  ;;  %v6532_v62 = vld [vmem:[#allocation7 + $0x34] sm:$0xf]  ;;  %v6537_v2 = vld [vmem:[#allocation7 + $0x58] sm:$0xf0] }
  0x53   :  { %867 = vmatmul.bf16.gmra.mxu2 %v5219_v8  ;;  %930 = vmatpush.bf16.msrb.mxu1 %v6497_v11  ;;  %v5614_v8 = vld [vmem:[#allocation7 + $0xa8] sm:$0xf]  ;;  %v6547_v11 = vld [vmem:[#allocation7 + $0xac] sm:$0xf]  ;;  %v5559_v3 = vor.u32 %v6532_v62, %v5556_v0 }
  0x54   :  { %954 = vmatpush.bf16.msrb.mxu2 %v6505_v4  ;;  %891 = vmatmul.bf16.gmra.mxu3 %v5223_v9  ;;  %v5259_v4 = vor.u32 %v6452_v61, %v5258_v60  ;;  %v6548_v9 = vld [vmem:[#allocation7 + $0xb0] sm:$0xf0]  ;;  %v5554_v60 = vld [vmem:[#allocation7 + $0x30] sm:$0xf]  ;;  %v6533_v61 = vld [vmem:[#allocation7 + $0x38] sm:$0xf0] }
  0x55   :  { %978 = vmatpush.bf16.msrb.mxu3 %v6513_v10  ;;  %v5615_v10 = vor.u32 %v6548_v9, %v5614_v8  ;;  %v5555_v63 = vor.u32 %v6533_v61, %v5554_v60  ;;  %v5562_v9 = vld [vmem:[#allocation7 + $0x38] sm:$0xf] }
  0x56   :  { %907 = vmatpush.bf16.msrb.mxu0 %v6488_v13 }
  0x57   :  { %931 = vmatpush.bf16.msrb.mxu1 %v6496_v15  ;;  %v6545_v15 = vld [vmem:[#allocation7 + $0x98] sm:$0xf0] }
  0x58   :  { %955 = vmatpush.bf16.msrb.mxu2 %v6504_v12  ;;  %v5616_v12 = vld [vmem:[#allocation7 + $0xb4] sm:$0xf0] }
  0x59   :  { %979 = vmatpush.bf16.msrb.mxu3 %v6512_v14  ;;  %v5619_v13 = vor.u32 %v6547_v11, %v5616_v12  ;;  %v5602_v14 = vld [vmem:[#allocation7 + $0x90] sm:$0xf]  ;;  %v5542_v12 = vld [vmem:[#allocation7 + $0x18] sm:$0xf] }
  0x5a   :  { %908 = vmatpush.bf16.msrb.mxu0 %v6487_v17  ;;  %v5603_v17 = vor.u32 %v6545_v15, %v5602_v14  ;;  %v6529_v14 = vld [vmem:[#allocation7 + $0x1c] sm:$0xf] }
  0x5b   :  { %932 = vmatpush.bf16.msrb.mxu1 %v6495_v19 }
  0x5c   :  { %956 = vmatpush.bf16.msrb.mxu2 %v6503_v16  ;;  %v6544_v16 = vld [vmem:[#allocation7 + $0x94] sm:$0xf] }
  0x5d   :  { %980 = vmatpush.bf16.msrb.mxu3 %v6511_v18  ;;  %v5604_v18 = vld [vmem:[#allocation7 + $0x9c] sm:$0xf0] }
  0x5e   :  { %909 = vmatpush.bf16.msrb.mxu0 %v6486_v22  ;;  %v5607_v19 = vor.u32 %v6544_v16, %v5604_v18  ;;  %v5590_v22 = vld [vmem:[#allocation7 + $0x78] sm:$0xf]  ;;  %v5544_v16 = vld [vmem:[#allocation7 + $0x24] sm:$0xf0]  ;;  %v6531_v18 = vld [vmem:[#allocation7 + $0x28] sm:$0xf0] }
  0x5f   :  { %933 = vmatpush.bf16.msrb.mxu1 %v6494_v31  ;;  %v5591_v25 = vor.u32 %v6542_v23, %v5590_v22 }
  0x60   :  { %957 = vmatpush.bf16.msrb.mxu2 %v6502_v21 }
  0x61   :  { %981 = vmatpush.bf16.msrb.mxu3 %v6510_v30  ;;  %824 = vmatmul.bf16.gmra.mxu0 %v5243_v32  ;;  %v5623_v30 = vor.u32 %v6549_v28, %v5622_v27  ;;  %v5530_v27 = vld [vmem:[#allocation7] sm:$0xf]  ;;  %v6527_v28 = vld [vmem:[#allocation7 + $0x8] sm:$0xf0] }
  0x62   :  { %848 = vmatmul.bf16.gmra.mxu1 %v5247_v33  ;;  %1179 = vmatpush.bf16.msra.mxu0 %v5615_v10  ;;  %v6534_v10 = vld [vmem:[#allocation7 + $0x40] sm:$0xf0] }
  0x63   :  { %872 = vmatmul.bf16.gmra.mxu2 %v5251_v34  ;;  %1203 = vmatpush.bf16.msra.mxu1 %v5619_v13  ;;  %v5563_v11 = vor.u32 %v6534_v10, %v5562_v9  ;;  %v6530_v13 = vld [vmem:[#allocation7 + $0x20] sm:$0xf0] }
  0x64   :  { %896 = vmatmul.bf16.gmra.mxu3 %v5255_v35  ;;  %1227 = vmatpush.bf16.msra.mxu2 %v5623_v30  ;;  %v5610_v35 = vld [vmem:[#allocation7 + $0x98] sm:$0xf]  ;;  %v5543_v15 = vor.u32 %v6530_v13, %v5542_v12  ;;  %v5531_v30 = vor.u32 %v6527_v28, %v5530_v27  ;;  %v6523_v28 = vld [vmem:[%s8191_s7 + $0x28] sm:$0xff] }
  0x65   :  { %v5611_v37 = vor.u32 %v6546_v36, %v5610_v35  ;;  %v5532_v35 = vld [vmem:[#allocation7 + $0xc] sm:$0xf0]  ;;  %v5538_v36 = vld [vmem:[#allocation7 + $0x8] sm:$0xf] }
  0x66   :  { %1180 = vmatpush.bf16.msra.mxu0 %v5603_v17  ;;  %v5550_v17 = vld [vmem:[#allocation7 + $0x20] sm:$0xf] }
  0x67   :  { %1204 = vmatpush.bf16.msra.mxu1 %v5607_v19  ;;  %v5547_v19 = vor.u32 %v6529_v14, %v5544_v16  ;;  %v5551_v22 = vor.u32 %v6531_v18, %v5550_v17 }
  0x68   :  { %1228 = vmatpush.bf16.msra.mxu2 %v5611_v37  ;;  %v6528_v37 = vld [vmem:[#allocation7 + $0x10] sm:$0xf0] }
  0x69   :  { %v5539_v39 = vor.u32 %v6528_v37, %v5538_v36 }
  0x6a   :  { %1181 = vmatpush.bf16.msra.mxu0 %v5591_v25 }
  0x6b   :  { %1205 = vmatpush.bf16.msra.mxu1 %v5595_v29  ;;  %v6526_v29 = vld [vmem:[#allocation7 + $0x4] sm:$0xf] }
  0x6c   :  { %v5535_v38 = vor.u32 %v6526_v29, %v5532_v35 }
  0x6e   :  { %1182 = vmatpush.bf16.msra.mxu0 %v5579_v40  ;;  %v172_v40 = vld [vmem:[%s8194_s10] sm:$0x3] }
  0x71   :  { %910 = vmatmul.bf16.vlgmr.msrb.gmra.mxu0 %v5195_v44  ;;  %v5583_v44 = vor.u32 %v6538_v41, %v5580_v42  ;;  %v301_v41 = vperm.slane %v172_v40, 0 }
  0x72   :  { %934 = vmatmul.bf16.vlgmr.msrb.gmra.mxu1 %v5199_v45  ;;  %v6536_v45 = vld [vmem:[#allocation7 + $0x50] sm:$0xf0] }
  0x73   :  { %958 = vmatmul.bf16.vlgmr.msrb.gmra.mxu2 %v5203_v46  ;;  %v5598_v46 = vld [vmem:[#allocation7 + $0x80] sm:$0xf]  ;;  %v5567_v48 = vor.u32 %v6536_v45, %v5566_v43  ;;  %1206 = vmatpush.bf16.msra.mxu1 %v5583_v44 }
  0x74   :  { %982 = vmatmul.bf16.vlgmr.msrb.gmra.mxu3 %v5207_v47  ;;  %v6543_v47 = vld [vmem:[#allocation7 + $0x88] sm:$0xf0] }
  0x75   :  { %v5599_v49 = vor.u32 %v6543_v47, %v5598_v46  ;;  %1183 = vmatpush.bf16.msra.mxu0 %v5567_v48 }
  0x77   :  { %1229 = vmatpush.bf16.msra.mxu2 %v5599_v49 }
  0x79   :  { %1184 = vmatpush.bf16.msra.mxu0 %v5555_v63 }
  0x7d   :  { %1185 = vmatpush.bf16.msra.mxu0 %v5543_v15 }
  0x81   :  { %915 = vmatmul.bf16.gmra.mxu0 %v5227_v56  ;;  %v5587_v56 = vor.u32 %v6540_v55, %v5586_v54 }
  0x82   :  { %939 = vmatmul.bf16.gmra.mxu1 %v5231_v57  ;;  %v6535_v57 = vld [vmem:[#allocation7 + $0x4c] sm:$0xf]  ;;  %1186 = vmatpush.bf16.msra.mxu0 %v5531_v30 }
  0x83   :  { %963 = vmatmul.bf16.gmra.mxu2 %v5235_v58  ;;  %v5568_v58 = vld [vmem:[#allocation7 + $0x54] sm:$0xf0] }
  0x84   :  { %987 = vmatmul.bf16.gmra.mxu3 %v5239_v59  ;;  %v5571_v59 = vor.u32 %v6535_v57, %v5568_v58  ;;  %1230 = vmatpush.bf16.msra.mxu2 %v5587_v56 }
  0x86   :  { %1207 = vmatpush.bf16.msra.mxu1 %v5571_v59 }
  0x8a   :  { %1208 = vmatpush.bf16.msra.mxu1 %v5559_v3 }
  0x8e   :  { %1209 = vmatpush.bf16.msra.mxu1 %v5547_v19 }
  0x91   :  { %920 = vmatmul.bf16.gmra.mxu0 %v5259_v4  ;;  %v5575_v4 = vor.u32 %v6537_v2, %v5574_v1 }
  0x92   :  { %944 = vmatmul.bf16.gmra.mxu1 %v5263_v5 }
  0x93   :  { %968 = vmatmul.bf16.gmra.mxu2 %v5267_v6  ;;  %1210 = vmatpush.bf16.msra.mxu1 %v5535_v38 }
  0x94   :  { %992 = vmatmul.bf16.gmra.mxu3 %v5271_v7  ;;  %1231 = vmatpush.bf16.msra.mxu2 %v5575_v4 }
  0x98   :  { %1232 = vmatpush.bf16.msra.mxu2 %v5563_v11 }
  0x9c   :  { %1233 = vmatpush.bf16.msra.mxu2 %v5551_v22  ;;  %v6524_v22 = vld [vmem:[%s8191_s7 + $0x30] sm:$0xff] }
  0xa0   :  { %1234 = vmatpush.bf16.msra.mxu2 %v5539_v39 }
  0xbe   :  { %v7315_v20 = vpop.f32.mrf.mxu0 }
  0xbf   :  { %v7317_v21 = vpop.f32.mrf.mxu1  ;;  %v816_v46 = vadd.f32 %v7315_v20, %v301_v41 }
  0xc1   :  { %v840_v47 = vadd.f32 %v7317_v21, %v816_v46 }
  0xc6   :  { %v7319_v31 = vpop.f32.mrf.mxu2  ;;  %v7323_v33 = vpop.f32.mrf.mxu0 }
  0xc7   :  { %v7321_v32 = vpop.f32.mrf.mxu3  ;;  %v7325_v34 = vpop.f32.mrf.mxu1  ;;  %v818_v48 = vadd.f32 %v7323_v33, %v301_v41  ;;  %v864_v57 = vadd.f32 %v7319_v31, %v840_v47 }
  0xc9   :  { %v842_v58 = vadd.f32 %v7325_v34, %v818_v48  ;;  %v888_v60 = vadd.f32 %v7321_v32, %v864_v57 }
  0xce   :  { %v7327_v50 = vpop.f32.mrf.mxu2  ;;  %v7331_v52 = vpop.f32.mrf.mxu0 }
  0xcf   :  { %v7329_v51 = vpop.f32.mrf.mxu3  ;;  %v7333_v53 = vpop.f32.mrf.mxu1  ;;  %v866_v59 = vadd.f32 %v7327_v50, %v842_v58  ;;  %v821_v0 = vadd.f32 %v7331_v52, %v301_v41 }
  0xd1   :  { %v890_v21 = vadd.f32 %v7329_v51, %v866_v59  ;;  %v845_v3 = vadd.f32 %v7333_v53, %v821_v0 }
  0xd6   :  { %v7335_v5 = vpop.f32.mrf.mxu2  ;;  %v822_v7 = vpop.f32.mrf.mxu0 }
  0xd7   :  { %v7337_v6 = vpop.f32.mrf.mxu3  ;;  %v7339_v8 = vpop.f32.mrf.mxu1  ;;  %v823_v31 = vadd.f32 %v822_v7, %v301_v41  ;;  %v869_v12 = vadd.f32 %v7335_v5, %v845_v3  ;;  %v6525_v5 = vld [vmem:[%s8191_s7 + $0x38] sm:$0xff]  ;;  %v6518_v3 = vld [vmem:[%s8191_s7] sm:$0xff] }
  0xd8   :  { %1353 = vmatpush.bf16.msra.mxu3 %v6525_v5 }
  0xd9   :  { %v847_v51 = vadd.f32 %v7339_v8, %v823_v31  ;;  %v893_v7 = vadd.f32 %v7337_v6, %v869_v12  ;;  %v7426_v31 = vld [vmem:[%s8192_s8] sm:$0xff] }
  0xdc   :  { %1354 = vmatpush.bf16.msra.mxu3 %v6524_v22 }
  0xde   :  { %v870_v23 = vpop.f32.mrf.mxu2  ;;  %v7343_v25 = vpop.f32.mrf.mxu0 }
  0xdf   :  { %v7341_v24 = vpop.f32.mrf.mxu3  ;;  %v7345_v26 = vpop.f32.mrf.mxu1  ;;  %v871_v52 = vadd.f32 %v870_v23, %v847_v51  ;;  %v826_v6 = vadd.f32 %v7343_v25, %v301_v41  ;;  %v6522_v25 = vld [vmem:[%s8191_s7 + $0x20] sm:$0xff] }
  0xe0   :  { %1355 = vmatpush.bf16.msra.mxu3 %v6523_v28 }
  0xe1   :  { %v895_v8 = vadd.f32 %v7341_v24, %v871_v52  ;;  %v850_v29 = vadd.f32 %v7345_v26, %v826_v6 }
  0xe4   :  { %1356 = vmatpush.bf16.msra.mxu3 %v6522_v25 }
  0xe6   :  { %v7350_v42 = vpop.f32.mrf.mxu2  ;;  %v827_v44 = vpop.f32.mrf.mxu0 }
  0xe7   :  { %v7352_v43 = vpop.f32.mrf.mxu3  ;;  %v7354_v45 = vpop.f32.mrf.mxu1  ;;  %v828_v24 = vadd.f32 %v827_v44, %v301_v41  ;;  %v874_v40 = vadd.f32 %v7350_v42, %v850_v29 }
  0xe9   :  { %v852_v46 = vadd.f32 %v7354_v45, %v828_v24 }
  0xee   :  { %v7359_v49 = vpop.f32.mrf.mxu2  ;;  %v911_v55 = vpop.f32.mrf.mxu0 }
  0xef   :  { %v7361_v54 = vpop.f32.mrf.mxu3  ;;  %v935_v56 = vpop.f32.mrf.mxu1  ;;  %v912_v62 = vadd.f32 %v911_v55, %v888_v60  ;;  %v876_v41 = vadd.f32 %v7359_v49, %v852_v46  ;;  %v6521_v55 = vld [vmem:[%s8191_s7 + $0x18] sm:$0xff]  ;;  %v6520_v49 = vld [vmem:[%s8191_s7 + $0x10] sm:$0xff] }
  0xf0   :  { %1357 = vmatpush.bf16.msra.mxu3 %v6521_v55 }
  0xf1   :  { %v936_v2 = vadd.f32 %v935_v56, %v912_v62  ;;  %v898_v56 = vadd.f32 %v7352_v43, %v874_v40  ;;  %v900_v57 = vadd.f32 %v7361_v54, %v876_v41 }
  0xf4   :  { %1358 = vmatpush.bf16.msra.mxu3 %v6520_v49 }
  0xf6   :  { %v959_v61 = vpop.f32.mrf.mxu2  ;;  %v913_v33 = vpop.f32.mrf.mxu0 }
  0xf7   :  { %v983_v20 = vpop.f32.mrf.mxu3  ;;  %v937_v63 = vpop.f32.mrf.mxu1  ;;  %v914_v1 = vadd.f32 %v913_v33, %v890_v21  ;;  %v960_v4 = vadd.f32 %v959_v61, %v936_v2  ;;  %v6519_v2 = vld [vmem:[%s8191_s7 + $0x8] sm:$0xff] }
  0xf8   :  { %1359 = vmatpush.bf16.msra.mxu3 %v6519_v2 }
  0xf9   :  { %v938_v34 = vadd.f32 %v937_v63, %v914_v1  ;;  %v7372_v13 = vadd.f32 %v983_v20, %v960_v4 }
  0xfc   :  { %1360 = vmatpush.bf16.msra.mxu3 %v6518_v3 }
  0xfe   :  { %v961_v9 = vpop.f32.mrf.mxu2  ;;  %v916_v32 = vpop.f32.mrf.mxu0 }
  0xff   :  { %v985_v50 = vpop.f32.mrf.mxu3  ;;  %v962_v10 = vadd.f32 %v961_v9, %v938_v34  ;;  %v940_v11 = vpop.f32.mrf.mxu1  ;;  %v917_v17 = vadd.f32 %v916_v32, %v893_v7  ;;  %v1251_v9 = vperm.slane %v7426_v31, 0 }
 0x101   :  { %v7374_v14 = vadd.f32 %v985_v50, %v962_v10  ;;  %v941_v27 = vadd.f32 %v940_v11, %v917_v17  ;;  %v1264_v10 = vperm.slane %v7426_v31, 1 }
 0x103   :  { %v1016_v53 = vpack.c.bf16 %v7374_v14, %v7372_v13 }
 0x105   :  { %1187 = vmatmul.bf16.vlgmr.msra.gmra.mxu0 %v1016_v53  ;;  %1211 = vmatmul.bf16.vlgmr.msra.gmra.mxu1 %v1016_v53 }
 0x106   :  { %1235 = vmatmul.bf16.vlgmr.msra.gmra.mxu2 %v1016_v53  ;;  %v964_v15 = vpop.f32.mrf.mxu2  ;;  %v918_v18 = vpop.f32.mrf.mxu0 }
 0x107   :  { %v988_v16 = vpop.f32.mrf.mxu3  ;;  %v942_v19 = vpop.f32.mrf.mxu1  ;;  %v919_v23 = vadd.f32 %v918_v18, %v895_v8  ;;  %v965_v30 = vadd.f32 %v964_v15, %v941_v27 }
 0x109   :  { %v943_v35 = vadd.f32 %v942_v19, %v919_v23  ;;  %v7396_v47 = vadd.f32 %v988_v16, %v965_v30 }
 0x10e   :  { %v966_v36 = vpop.f32.mrf.mxu2  ;;  %v921_v39 = vpop.f32.mrf.mxu0 }
 0x10f   :  { %v990_v37 = vpop.f32.mrf.mxu3  ;;  %v967_v38 = vadd.f32 %v966_v36, %v943_v35  ;;  %v945_v26 = vpop.f32.mrf.mxu1  ;;  %v922_v58 = vadd.f32 %v921_v39, %v898_v56 }
 0x111   :  { %v7398_v48 = vadd.f32 %v990_v37, %v967_v38  ;;  %v946_v61 = vadd.f32 %v945_v26, %v922_v58 }
 0x113   :  { %v1017_v44 = vpack.c.bf16 %v7398_v48, %v7396_v47 }
 0x115   :  { %1192 = vmatmul.bf16.gmra.mxu0 %v1017_v44  ;;  %1216 = vmatmul.bf16.gmra.mxu1 %v1017_v44 }
 0x116   :  { %1240 = vmatmul.bf16.gmra.mxu2 %v1017_v44  ;;  %v969_v42 = vpop.f32.mrf.mxu2  ;;  %v923_v59 = vpop.f32.mrf.mxu0 }
 0x117   :  { %v993_v45 = vpop.f32.mrf.mxu3  ;;  %v924_v60 = vadd.f32 %v923_v59, %v900_v57  ;;  %v947_v20 = vpop.f32.mrf.mxu1  ;;  %v970_v21 = vadd.f32 %v969_v42, %v946_v61 }
 0x119   :  { %v948_v43 = vadd.f32 %v947_v20, %v924_v60  ;;  %v7411_v0 = vadd.f32 %v993_v45, %v970_v21 }
 0x11e   :  { %v971_v62 = vpop.f32.mrf.mxu2 }
 0x11f   :  { %v972_v33 = vadd.f32 %v971_v62, %v948_v43  ;;  %v995_v63 = vpop.f32.mrf.mxu3 }
 0x121   :  { %v7413_v1 = vadd.f32 %v995_v63, %v972_v33 }
 0x123   :  { %v1018_v54 = vpack.c.bf16 %v7413_v1, %v7411_v0 }
 0x125   :  { %1197 = vmatmul.bf16.gmra.mxu0 %v1018_v54  ;;  %1221 = vmatmul.bf16.gmra.mxu1 %v1018_v54 }
 0x126   :  { %1245 = vmatmul.bf16.gmra.mxu2 %v1018_v54 }
 0x182   :  { %v1188_v4 = vpop.f32.mrf.mxu0  ;;  %v1212_v34 = vpop.f32.mrf.mxu1 }
 0x183   :  { %v1252_v50 = vadd.f32 %v1251_v9, %v1188_v4  ;;  %v1265_v52 = vadd.f32 %v1264_v10, %v1212_v34 }
 0x185   :  { %v1258_v12 = vmul.f32 0.17677669, %v1252_v50 }
 0x187   :  { %v1278_v15 = vmul.f32 %v1265_v52, %v1258_v12 }
 0x18a   :  { %v1190_v32 = vpop.f32.mrf.mxu0  ;;  %v1214_v11 = vpop.f32.mrf.mxu1 }
 0x18b   :  { %v1253_v51 = vadd.f32 %v1251_v9, %v1190_v32  ;;  %v1266_v7 = vadd.f32 %v1264_v10, %v1214_v11  ;;  %v6557_v32 = vld [vmem:[#allocation8 + $0x38] sm:$0xff] }
 0x18c   :  { %1685 = vmatpush.bf16.msrb.mxu0 %v6557_v32  ;;  %v1271_v32 = vperm.slane %v7426_v31, 2 }
 0x18d   :  { %v1259_v53 = vmul.f32 0.17677669, %v1253_v51  ;;  %v6556_v51 = vld [vmem:[#allocation8 + $0x30] sm:$0xff] }
 0x18f   :  { %v1279_v16 = vmul.f32 %v1266_v7, %v1259_v53 }
 0x190   :  { %1686 = vmatpush.bf16.msrb.mxu0 %v6556_v51 }
 0x191   :  { %v1296_v5 = vpack.c.bf16 %v1279_v16, %v1278_v15  ;;  %v6554_v16 = vld [vmem:[#allocation8 + $0x20] sm:$0xff] }
 0x192   :  { %v1193_v8 = vpop.f32.mrf.mxu0  ;;  %v1217_v17 = vpop.f32.mrf.mxu1 }
 0x193   :  { %1361 = vmatmul.bf16.vlgmr.msra.gmra.mxu3 %v1296_v5  ;;  %v1267_v22 = vadd.f32 %v1264_v10, %v1217_v17  ;;  %v1254_v61 = vadd.f32 %v1251_v9, %v1193_v8 }
 0x195   :  { %v1280_v27 = vmul.f32 %v1267_v22, %v1258_v12  ;;  %v1260_v21 = vmul.f32 0.17677669, %v1254_v61 }
 0x197   :  { %v1284_v62 = vmul.f32 %v1265_v52, %v1260_v21  ;;  %v1286_v54 = vmul.f32 %v1267_v22, %v1260_v21 }
 0x19a   :  { %v1195_v18 = vpop.f32.mrf.mxu0  ;;  %v1219_v19 = vpop.f32.mrf.mxu1 }
 0x19b   :  { %v1268_v6 = vadd.f32 %v1264_v10, %v1219_v19  ;;  %v1255_v60 = vadd.f32 %v1251_v9, %v1195_v18 }
 0x19d   :  { %v1281_v23 = vmul.f32 %v1268_v6, %v1259_v53  ;;  %v1261_v20 = vmul.f32 0.17677669, %v1255_v60 }
 0x19f   :  { %v1297_v28 = vpack.c.bf16 %v1281_v23, %v1280_v27  ;;  %v1285_v43 = vmul.f32 %v1266_v7, %v1261_v20  ;;  %v1287_v63 = vmul.f32 %v1268_v6, %v1261_v20  ;;  %v6553_v23 = vld [vmem:[#allocation8 + $0x18] sm:$0xff] }
 0x1a1   :  { %v1299_v33 = vpack.c.bf16 %v1285_v43, %v1284_v62  ;;  %v1300_v2 = vpack.c.bf16 %v1287_v63, %v1286_v54 }
 0x1a2   :  { %v1198_v29 = vpop.f32.mrf.mxu0  ;;  %v1222_v24 = vpop.f32.mrf.mxu1 }
 0x1a3   :  { %v1256_v30 = vadd.f32 %v1251_v9, %v1198_v29  ;;  %1366 = vmatmul.bf16.gmra.mxu3 %v1297_v28  ;;  %v1269_v36 = vadd.f32 %v1264_v10, %v1222_v24  ;;  %v6552_v24 = vld [vmem:[#allocation8 + $0x10] sm:$0xff] }
 0x1a5   :  { %v1262_v35 = vmul.f32 0.17677669, %v1256_v30  ;;  %v1282_v55 = vmul.f32 %v1269_v36, %v1258_v12  ;;  %v1288_v4 = vmul.f32 %v1269_v36, %v1260_v21  ;;  %v7430_v12 = vpop.f32.mrf.mxu2 }
 0x1a7   :  { %v1290_v37 = vmul.f32 %v1265_v52, %v1262_v35  ;;  %v1292_v38 = vmul.f32 %v1267_v22, %v1262_v35  ;;  %v1294_v39 = vmul.f32 %v1269_v36, %v1262_v35  ;;  %v6555_v52 = vld [vmem:[#allocation8 + $0x28] sm:$0xff] }
 0x1a8   :  { %1687 = vmatpush.bf16.msrb.mxu0 %v6555_v52 }
 0x1aa   :  { %v1200_v25 = vpop.f32.mrf.mxu0  ;;  %v1224_v40 = vpop.f32.mrf.mxu1 }
 0x1ab   :  { %v1257_v46 = vadd.f32 %v1251_v9, %v1200_v25  ;;  %v1270_v26 = vadd.f32 %v1264_v10, %v1224_v40 }
 0x1ac   :  { %1688 = vmatpush.bf16.msrb.mxu0 %v6554_v16  ;;  %v7440_v16 = vadd.f32 %v1271_v32, %v7430_v12 }
 0x1ad   :  { %v1263_v41 = vmul.f32 0.17677669, %v1257_v46  ;;  %v1283_v44 = vmul.f32 %v1270_v26, %v1259_v53  ;;  %v1289_v3 = vmul.f32 %v1270_v26, %v1261_v20  ;;  %v7432_v5 = vpop.f32.mrf.mxu2 }
 0x1af   :  { %v1291_v56 = vmul.f32 %v1266_v7, %v1263_v41  ;;  %v1293_v42 = vmul.f32 %v1268_v6, %v1263_v41  ;;  %v1295_v45 = vmul.f32 %v1270_v26, %v1263_v41  ;;  %v1298_v57 = vpack.c.bf16 %v1283_v44, %v1282_v55 }
 0x1b0   :  { %v1301_v34 = vpack.c.bf16 %v1289_v3, %v1288_v4  ;;  %1689 = vmatpush.bf16.msrb.mxu0 %v6553_v23 }
 0x1b1   :  { %v1302_v58 = vpack.c.bf16 %v1291_v56, %v1290_v37  ;;  %v1303_v59 = vpack.c.bf16 %v1293_v42, %v1292_v38  ;;  %v1304_v49 = vpack.c.bf16 %v1295_v45, %v1294_v39  ;;  %v6551_v37 = vld [vmem:[#allocation8 + $0x8] sm:$0xff]  ;;  %v6550_v42 = vld [vmem:[#allocation8] sm:$0xff] }
 0x1b3   :  { %1371 = vmatmul.bf16.gmra.mxu3 %v1298_v57 }
 0x1b4   :  { %1690 = vmatpush.bf16.msrb.mxu0 %v6552_v24 }
 0x1b5   :  { %v1241_v39 = vpop.f32.mrf.mxu2 }
 0x1b8   :  { %1691 = vmatpush.bf16.msrb.mxu0 %v6551_v37 }
 0x1bc   :  { %1692 = vmatpush.bf16.msrb.mxu0 %v6550_v42 }
 0x1c3   :  { %1376 = vmatmul.bf16.gmra.mxu3 %v1299_v33 }
 0x1d3   :  { %1381 = vmatmul.bf16.gmra.mxu3 %v1300_v2 }
 0x1e3   :  { %1386 = vmatmul.bf16.gmra.mxu3 %v1301_v34 }
 0x1f3   :  { %1391 = vmatmul.bf16.gmra.mxu3 %v1302_v58  ;;  %v1243_v58 = vpop.f32.mrf.mxu2 }
 0x1fb   :  { %v1246_v4 = vpop.f32.mrf.mxu2 }
 0x1fc   :  { %v7451_v37 = vadd.f32 %v1271_v32, %v1246_v4 }
 0x203   :  { %1396 = vmatmul.bf16.gmra.mxu3 %v1303_v59  ;;  %v1248_v12 = vpop.f32.mrf.mxu2 }
 0x213   :  { %1401 = vmatmul.bf16.gmra.mxu3 %v1304_v49 }
 0x216   :  { %v1362_v50 = vpop.f32.mrf.mxu3 }
 0x21e   :  { %v1364_v10 = vpop.f32.mrf.mxu3 }
 0x226   :  { %v1367_v9 = vpop.f32.mrf.mxu3 }
 0x227   :  { %v1407_v53 = vmax.f32 %v1362_v50, %v1367_v9 }
 0x22e   :  { %v1369_v11 = vpop.f32.mrf.mxu3 }
 0x22f   :  { %v1408_v27 = vmax.f32 %v1364_v10, %v1369_v11 }
 0x236   :  { %v1372_v7 = vpop.f32.mrf.mxu3 }
 0x237   :  { %v1409_v15 = vmax.f32 %v1407_v53, %v1372_v7 }
 0x239   :  { %v1411_v8 = vsub.f32 %v1362_v50, %v1409_v15  ;;  %v1417_v17 = vsub.f32 %v1367_v9, %v1409_v15  ;;  %v1423_v18 = vsub.f32 %v1372_v7, %v1409_v15 }
 0x23b   :  { %v1413_v19 = vmul.f32 1.442695, %v1411_v8  ;;  %v1419_v22 = vmul.f32 1.442695, %v1417_v17  ;;  %v1425_v6 = vmul.f32 1.442695, %v1423_v18  ;;  %v7442_v8 = vadd.f32 %v1271_v32, %v1241_v39 }
 0x23d   :  { %6762 = vpow2.f32 %v1413_v19 }
 0x23e   :  { %6764 = vpow2.f32 %v1419_v22  ;;  %v1374_v28 = vpop.f32.mrf.mxu3 }
 0x23f   :  { %v1410_v29 = vmax.f32 %v1408_v27, %v1374_v28  ;;  %6766 = vpow2.f32 %v1425_v6  ;;  %v7447_v27 = vadd.f32 %v1271_v32, %v7432_v5 }
 0x241   :  { %v1412_v30 = vsub.f32 %v1364_v10, %v1410_v29  ;;  %v1418_v35 = vsub.f32 %v1369_v11, %v1410_v29  ;;  %v1424_v36 = vsub.f32 %v1374_v28, %v1410_v29  ;;  %v7449_v28 = vadd.f32 %v1271_v32, %v1243_v58 }
 0x243   :  { %v6763_v38 = vpop.eup %6762  ;;  %v1415_v25 = vmul.f32 1.442695, %v1412_v30  ;;  %v1421_v40 = vmul.f32 1.442695, %v1418_v35  ;;  %v1427_v26 = vmul.f32 1.442695, %v1424_v36 }
 0x244   :  { %v6765_v46 = vpop.eup %6764 }
 0x245   :  { %v1429_v41 = vadd.f32 %v6765_v46, %v6763_v38  ;;  %6768 = vpow2.f32 %v1415_v25  ;;  %v6767_v44 = vpop.eup %6766 }
 0x246   :  { %6770 = vpow2.f32 %v1421_v40  ;;  %v7434_v55 = vpop.f32.mrf.mxu3 }
 0x247   :  { %v1431_v56 = vadd.f32 %v6767_v44, %v1429_v41  ;;  %6772 = vpow2.f32 %v1427_v26 }
 0x249   :  { %6774 = vrcp.f32 %v1431_v56  ;;  %v1444_v62 = vand.u32 2147483648, %v1431_v56  ;;  %v1442_v63 = vand.u32 2147483647, %v1431_v56  ;;  %vm1438_vm1 = vweird.f32 %v1431_v56 }
 0x24b   :  { %v6769_v45 = vpop.eup %6768  ;;  %v1445_v34 = vor.u32 1.1754944e-38, %v1444_v62  ;;  %vm1443_vm3 = vcmp.eq.f32.partialorder %v1442_v63, 8.507059e+37 }
 0x24c   :  { %v6771_v57 = vpop.eup %6770 }
 0x24d   :  { %v1430_v59 = vadd.f32 %v6771_v57, %v6769_v45  ;;  %v6773_v49 = vpop.eup %6772 }
 0x24e   :  { %v7436_v60 = vpop.f32.mrf.mxu3 }
 0x24f   :  { %v6775_v61 = vpop.eup %6774  ;;  %v1432_v20 = vadd.f32 %v6773_v49, %v1430_v59 }
 0x250   :  { %v1434_v21 = vmul.f32 %v6775_v61, %v1431_v56  ;;  %vm1439_vm0 = vweird.f32 %v6775_v61 }
 0x251   :  { %6776 = vrcp.f32 %v1432_v20  ;;  %vm1440_vm2 = vmor %vm1438_vm1, %vm1439_vm0  ;;  %v1456_v51 = vand.u32 2147483647, %v1432_v20  ;;  %v1458_v52 = vand.u32 2147483648, %v1432_v20  ;;  %vm1452_vm5 = vweird.f32 %v1432_v20 }
 0x252   :  { %v1435_v43 = vsub.f32 1.0, %v1434_v21 }
 0x253   :  { %v1459_v19 = vor.u32 1.1754944e-38, %v1458_v52  ;;  %vm1457_vm7 = vcmp.eq.f32.partialorder %v1456_v51, 8.507059e+37 }
 0x254   :  { %v1436_v33 = vmul.f32 %v6775_v61, %v1435_v43 }
 0x256   :  { %v1437_v54 = vadd.f32 %v6775_v61, %v1436_v33  ;;  %v1382_v2 = vpop.f32.mrf.mxu3 }
 0x257   :  { %v6777_v3 = vpop.eup %6776  ;;  %v1477_v5 = vmax.f32 %v7434_v55, %v1382_v2 }
 0x258   :  { %v1441_v50 = vsel %vm1440_vm2, %v6775_v61, %v1437_v54  ;;  %v1448_v10 = vmul.f32 %v6777_v3, %v1432_v20  ;;  %vm1453_vm4 = vweird.f32 %v6777_v3 }
 0x259   :  { %v1446_v9 = vsel %vm1443_vm3, %v1445_v34, %v1441_v50  ;;  %vm1454_vm6 = vmor %vm1452_vm5, %vm1453_vm4 }
 0x25a   :  { %v1449_v11 = vsub.f32 1.0, %v1448_v10  ;;  %v1461_v53 = vmul.f32 %v6763_v38, %v1446_v9  ;;  %v1465_v7 = vmul.f32 %v6765_v46, %v1446_v9  ;;  %v1471_v24 = vmul.f32 %v6767_v44, %v1446_v9 }
 0x25b   :  { %v7453_v38 = vadd.f32 %v1271_v32, %v1248_v12 }
 0x25c   :  { %v1450_v15 = vmul.f32 %v6777_v3, %v1449_v11  ;;  %v1463_v6 = vmul.f32 %v1461_v53, %v7440_v16  ;;  %v1467_v23 = vmul.f32 %v1465_v7, %v7442_v8  ;;  %v1473_v41 = vmul.f32 %v1471_v24, %v7451_v37 }
 0x25e   :  { %v1451_v17 = vadd.f32 %v6777_v3, %v1450_v15  ;;  %v1384_v18 = vpop.f32.mrf.mxu3  ;;  %v1469_v40 = vadd.f32 %v1467_v23, %v1463_v6 }
 0x25f   :  { %v1478_v43 = vmax.f32 %v7436_v60, %v1384_v18 }
 0x260   :  { %v1455_v22 = vsel %vm1454_vm6, %v6777_v3, %v1451_v17  ;;  %v1475_v42 = vadd.f32 %v1473_v41, %v1469_v40 }
 0x261   :  { %v1460_v29 = vsel %vm1457_vm7, %v1459_v19, %v1455_v22 }
 0x262   :  { %v1472_v30 = vmul.f32 %v6773_v49, %v1460_v29  ;;  %v1462_v35 = vmul.f32 %v6769_v45, %v1460_v29  ;;  %v1466_v36 = vmul.f32 %v6771_v57, %v1460_v29 }
 0x264   :  { %v1464_v39 = vmul.f32 %v1462_v35, %v7447_v27  ;;  %v1468_v25 = vmul.f32 %v1466_v36, %v7449_v28  ;;  %v1474_v44 = vmul.f32 %v1472_v30, %v7453_v38 }
 0x266   :  { %v1387_v46 = vpop.f32.mrf.mxu3  ;;  %v1470_v26 = vadd.f32 %v1468_v25, %v1464_v39 }
 0x267   :  { %v1479_v56 = vmax.f32 %v1477_v5, %v1387_v46 }
 0x268   :  { %v1476_v45 = vadd.f32 %v1474_v44, %v1470_v26 }
 0x269   :  { %v1481_v57 = vsub.f32 %v7434_v55, %v1479_v56  ;;  %v1487_v58 = vsub.f32 %v1382_v2, %v1479_v56  ;;  %v1493_v59 = vsub.f32 %v1387_v46, %v1479_v56 }
 0x26a   :  { %v1617_v49 = vpack.c.bf16 %v1476_v45, %v1475_v42 }
 0x26b   :  { %v1483_v61 = vmul.f32 1.442695, %v1481_v57  ;;  %v1489_v20 = vmul.f32 1.442695, %v1487_v58  ;;  %v1495_v21 = vmul.f32 1.442695, %v1493_v59 }
 0x26c   :  { %1693 = vmatmul.bf16.vlgmr.msrb.gmra.mxu0 %v1617_v49 }
 0x26d   :  { %6778 = vpow2.f32 %v1483_v61 }
 0x26e   :  { %6780 = vpow2.f32 %v1489_v20  ;;  %v1389_v62 = vpop.f32.mrf.mxu3 }
 0x26f   :  { %v1480_v33 = vmax.f32 %v1478_v43, %v1389_v62  ;;  %6782 = vpow2.f32 %v1495_v21 }
 0x271   :  { %v1482_v63 = vsub.f32 %v7436_v60, %v1480_v33  ;;  %v1488_v54 = vsub.f32 %v1384_v18, %v1480_v33  ;;  %v1494_v3 = vsub.f32 %v1389_v62, %v1480_v33 }
 0x273   :  { %v6779_v4 = vpop.eup %6778  ;;  %v1485_v55 = vmul.f32 1.442695, %v1482_v63  ;;  %v1491_v2 = vmul.f32 1.442695, %v1488_v54  ;;  %v1497_v50 = vmul.f32 1.442695, %v1494_v3 }
 0x274   :  { %v6781_v34 = vpop.eup %6780 }
 0x275   :  { %v1499_v10 = vadd.f32 %v6781_v34, %v6779_v4  ;;  %6784 = vpow2.f32 %v1485_v55  ;;  %v6783_v9 = vpop.eup %6782 }
 0x276   :  { %6786 = vpow2.f32 %v1491_v2  ;;  %v7463_v32 = vpop.f32.mrf.mxu3 }
 0x277   :  { %v1501_v11 = vadd.f32 %v6783_v9, %v1499_v10  ;;  %6788 = vpow2.f32 %v1497_v50 }
 0x279   :  { %6790 = vrcp.f32 %v1501_v11  ;;  %v1514_v22 = vand.u32 2147483648, %v1501_v11  ;;  %v1512_v23 = vand.u32 2147483647, %v1501_v11  ;;  %vm1508_vm9 = vweird.f32 %v1501_v11 }
 0x27b   :  { %v6785_v51 = vpop.eup %6784  ;;  %v1515_v30 = vor.u32 1.1754944e-38, %v1514_v22  ;;  %vm1513_vm11 = vcmp.eq.f32.partialorder %v1512_v23, 8.507059e+37 }
 0x27c   :  { %v6787_v52 = vpop.eup %6786 }
 0x27d   :  { %v1500_v53 = vadd.f32 %v6787_v52, %v6785_v51  ;;  %v6789_v60 = vpop.eup %6788 }
 0x27e   :  { %v7465_v7 = vpop.f32.mrf.mxu3 }
 0x27f   :  { %v6791_v15 = vpop.eup %6790  ;;  %v1502_v17 = vadd.f32 %v6789_v60, %v1500_v53 }
 0x280   :  { %v1504_v18 = vmul.f32 %v6791_v15, %v1501_v11  ;;  %vm1509_vm8 = vweird.f32 %v6791_v15 }
 0x281   :  { %6792 = vrcp.f32 %v1502_v17  ;;  %vm1510_vm10 = vmor %vm1508_vm9, %vm1509_vm8  ;;  %v1526_v40 = vand.u32 2147483647, %v1502_v17  ;;  %v1528_v5 = vand.u32 2147483648, %v1502_v17  ;;  %vm1522_vm13 = vweird.f32 %v1502_v17 }
 0x282   :  { %v1505_v19 = vsub.f32 1.0, %v1504_v18 }
 0x283   :  { %v1529_v42 = vor.u32 1.1754944e-38, %v1528_v5  ;;  %vm1527_vm15 = vcmp.eq.f32.partialorder %v1526_v40, 8.507059e+37 }
 0x284   :  { %v1506_v6 = vmul.f32 %v6791_v15, %v1505_v19 }
 0x286   :  { %v1397_v12 = vpop.f32.mrf.mxu3  ;;  %v1507_v29 = vadd.f32 %v6791_v15, %v1506_v6 }
 0x287   :  { %v6793_v24 = vpop.eup %6792  ;;  %v1547_v63 = vmax.f32 %v7463_v32, %v1397_v12 }
 0x288   :  { %v1511_v35 = vsel %vm1510_vm10, %v6791_v15, %v1507_v29  ;;  %v1518_v36 = vmul.f32 %v6793_v24, %v1502_v17  ;;  %vm1523_vm12 = vweird.f32 %v6793_v24 }
 0x289   :  { %v1516_v39 = vsel %vm1513_vm11, %v1515_v30, %v1511_v35  ;;  %vm1524_vm14 = vmor %vm1522_vm13, %vm1523_vm12 }
 0x28a   :  { %v1519_v25 = vsub.f32 1.0, %v1518_v36  ;;  %v1531_v26 = vmul.f32 %v6779_v4, %v1516_v39  ;;  %v1535_v41 = vmul.f32 %v6781_v34, %v1516_v39  ;;  %v1541_v20 = vmul.f32 %v6783_v9, %v1516_v39 }
 0x28c   :  { %v1520_v46 = vmul.f32 %v6793_v24, %v1519_v25  ;;  %v1533_v57 = vmul.f32 %v1531_v26, %v7440_v16  ;;  %v1537_v58 = vmul.f32 %v1535_v41, %v7442_v8  ;;  %v1543_v4 = vmul.f32 %v1541_v20, %v7451_v37 }
 0x28e   :  { %v1399_v44 = vpop.f32.mrf.mxu3  ;;  %v1521_v56 = vadd.f32 %v6793_v24, %v1520_v46  ;;  %v1539_v33 = vadd.f32 %v1537_v58, %v1533_v57 }
 0x28f   :  { %v1548_v15 = vmax.f32 %v7465_v7, %v1399_v44 }
 0x290   :  { %v1525_v45 = vsel %vm1524_vm14, %v6793_v24, %v1521_v56  ;;  %v1545_v34 = vadd.f32 %v1543_v4, %v1539_v33 }
 0x291   :  { %v1530_v59 = vsel %vm1527_vm15, %v1529_v42, %v1525_v45 }
 0x292   :  { %v1532_v49 = vmul.f32 %v6785_v51, %v1530_v59  ;;  %v1536_v61 = vmul.f32 %v6787_v52, %v1530_v59  ;;  %v1542_v21 = vmul.f32 %v6789_v60, %v1530_v59 }
 0x294   :  { %v1534_v43 = vmul.f32 %v1532_v49, %v7447_v27  ;;  %v1538_v62 = vmul.f32 %v1536_v61, %v7449_v28  ;;  %v1544_v55 = vmul.f32 %v1542_v21, %v7453_v38 }
 0x296   :  { %v1402_v54 = vpop.f32.mrf.mxu3  ;;  %v1540_v3 = vadd.f32 %v1538_v62, %v1534_v43 }
 0x297   :  { %v1549_v2 = vmax.f32 %v1547_v63, %v1402_v54 }
 0x298   :  { %v1546_v50 = vadd.f32 %v1544_v55, %v1540_v3 }
 0x299   :  { %v1551_v10 = vsub.f32 %v7463_v32, %v1549_v2  ;;  %v1557_v9 = vsub.f32 %v1397_v12, %v1549_v2  ;;  %v1563_v11 = vsub.f32 %v1402_v54, %v1549_v2 }
 0x29a   :  { %v1618_v51 = vpack.c.bf16 %v1546_v50, %v1545_v34 }
 0x29b   :  { %v1553_v52 = vmul.f32 1.442695, %v1551_v10  ;;  %v1559_v53 = vmul.f32 1.442695, %v1557_v9  ;;  %v1565_v60 = vmul.f32 1.442695, %v1563_v11 }
 0x29c   :  { %1698 = vmatmul.bf16.gmra.mxu0 %v1618_v51 }
 0x29d   :  { %6794 = vpow2.f32 %v1553_v52 }
 0x29e   :  { %6796 = vpow2.f32 %v1559_v53  ;;  %v1404_v17 = vpop.f32.mrf.mxu3 }
 0x29f   :  { %v1550_v18 = vmax.f32 %v1548_v15, %v1404_v17  ;;  %6798 = vpow2.f32 %v1565_v60 }
 0x2a1   :  { %v1552_v19 = vsub.f32 %v7465_v7, %v1550_v18  ;;  %v1558_v22 = vsub.f32 %v1399_v44, %v1550_v18  ;;  %v1564_v6 = vsub.f32 %v1404_v17, %v1550_v18 }
 0x2a3   :  { %v6795_v23 = vpop.eup %6794  ;;  %v1555_v32 = vmul.f32 1.442695, %v1552_v19  ;;  %v1561_v12 = vmul.f32 1.442695, %v1558_v22  ;;  %v1567_v24 = vmul.f32 1.442695, %v1564_v6 }
 0x2a4   :  { %v6797_v29 = vpop.eup %6796 }
 0x2a5   :  { %v1569_v30 = vadd.f32 %v6797_v29, %v6795_v23  ;;  %6800 = vpow2.f32 %v1555_v32  ;;  %v6799_v35 = vpop.eup %6798 }
 0x2a6   :  { %6802 = vpow2.f32 %v1561_v12 }
 0x2a7   :  { %v1571_v36 = vadd.f32 %v6799_v35, %v1569_v30  ;;  %6804 = vpow2.f32 %v1567_v24 }
 0x2a9   :  { %6806 = vrcp.f32 %v1571_v36  ;;  %v1584_v44 = vand.u32 2147483648, %v1571_v36  ;;  %v1582_v42 = vand.u32 2147483647, %v1571_v36  ;;  %vm1578_vm1 = vweird.f32 %v1571_v36 }
 0x2ab   :  { %v6801_v39 = vpop.eup %6800  ;;  %v1585_v58 = vor.u32 1.1754944e-38, %v1584_v44  ;;  %vm1583_vm3 = vcmp.eq.f32.partialorder %v1582_v42, 8.507059e+37 }
 0x2ac   :  { %v6803_v25 = vpop.eup %6802 }
 0x2ad   :  { %v1570_v40 = vadd.f32 %v6803_v25, %v6801_v39  ;;  %v6805_v5 = vpop.eup %6804 }
 0x2af   :  { %v6807_v46 = vpop.eup %6806  ;;  %v1572_v7 = vadd.f32 %v6805_v5, %v1570_v40 }
 0x2b0   :  { %v1574_v26 = vmul.f32 %v6807_v46, %v1571_v36  ;;  %vm1579_vm0 = vweird.f32 %v6807_v46 }
 0x2b1   :  { %6808 = vrcp.f32 %v1572_v7  ;;  %vm1580_vm2 = vmor %vm1578_vm1, %vm1579_vm0  ;;  %v1596_v21 = vand.u32 2147483647, %v1572_v7  ;;  %v1598_v43 = vand.u32 2147483648, %v1572_v7  ;;  %vm1592_vm5 = vweird.f32 %v1572_v7 }
 0x2b2   :  { %v1575_v41 = vsub.f32 1.0, %v1574_v26 }
 0x2b3   :  { %v1599_v3 = vor.u32 1.1754944e-38, %v1598_v43  ;;  %vm1597_vm7 = vcmp.eq.f32.partialorder %v1596_v21, 8.507059e+37 }
 0x2b4   :  { %v1576_v56 = vmul.f32 %v6807_v46, %v1575_v41 }
 0x2b6   :  { %v1577_v45 = vadd.f32 %v6807_v46, %v1576_v56 }
 0x2b7   :  { %v6809_v57 = vpop.eup %6808 }
 0x2b8   :  { %v1581_v59 = vsel %vm1580_vm2, %v6807_v46, %v1577_v45  ;;  %v1588_v49 = vmul.f32 %v6809_v57, %v1572_v7  ;;  %vm1593_vm4 = vweird.f32 %v6809_v57 }
 0x2b9   :  { %v1586_v61 = vsel %vm1583_vm3, %v1585_v58, %v1581_v59  ;;  %vm1594_vm6 = vmor %vm1592_vm5, %vm1593_vm4 }
 0x2ba   :  { %v1589_v20 = vsub.f32 1.0, %v1588_v49  ;;  %v1601_v33 = vmul.f32 %v6795_v23, %v1586_v61  ;;  %v1605_v63 = vmul.f32 %v6797_v29, %v1586_v61  ;;  %v1611_v9 = vmul.f32 %v6799_v35, %v1586_v61 }
 0x2bb   :  { %v7217_v35 = vmov 128.0  }
 0x2bc   :  { %v1590_v62 = vmul.f32 %v6809_v57, %v1589_v20  ;;  %v1603_v55 = vmul.f32 %v1601_v33, %v7440_v16  ;;  %v1607_v2 = vmul.f32 %v1605_v63, %v7442_v8  ;;  %v1613_v15 = vmul.f32 %v1611_v9, %v7451_v37  ;;  %v5746_v63 = vld [vmem:[#allocation10 + $0x70] sm:$0xf]  ;;  %v6571_v9 = vld [vmem:[#allocation10 + $0x64] sm:$0xf0] }
 0x2bd   :  { %v1636_v8 = vperm.slane %v7426_v31, 3  ;;  %6810 = vrcp.f32 %v7217_v35  ;;  %v6564_v35 = vld [vmem:[#allocation10 + $0x34] sm:$0xf] }
 0x2be   :  { %v1591_v54 = vadd.f32 %v6809_v57, %v1590_v62  ;;  %v1609_v53 = vadd.f32 %v1607_v2, %v1603_v55  ;;  %v5748_v2 = vld [vmem:[#allocation10 + $0x78] sm:$0xf0] }
 0x2c0   :  { %v1595_v4 = vsel %vm1594_vm6, %v6809_v57, %v1591_v54  ;;  %v1615_v18 = vadd.f32 %v1613_v15, %v1609_v53  ;;  %v6573_v54 = vld [vmem:[#allocation10 + $0x74] sm:$0xf0]  ;;  %v5740_v53 = vld [vmem:[#allocation10 + $0x68] sm:$0xf0] }
 0x2c1   :  { %v1600_v34 = vsel %vm1597_vm7, %v1599_v3, %v1595_v4  ;;  %v6572_v3 = vld [vmem:[#allocation10 + $0x74] sm:$0xf]  ;;  %v5747_v55 = vor.u32 %v6573_v54, %v5746_v63 }
 0x2c2   :  { %v1602_v50 = vmul.f32 %v6801_v39, %v1600_v34  ;;  %v1606_v10 = vmul.f32 %v6803_v25, %v1600_v34  ;;  %v1612_v11 = vmul.f32 %v6805_v5, %v1600_v34  ;;  %v5751_v34 = vor.u32 %v6572_v3, %v5748_v2 }
 0x2c3   :  { %v6811_v39 = vpop.eup %6810  ;;  %1961 = vmatpush.bf16.msrb.mxu1 %v5747_v55 }
 0x2c4   :  { %v1604_v51 = vmul.f32 %v1602_v50, %v7447_v27  ;;  %v1608_v52 = vmul.f32 %v1606_v10, %v7449_v28  ;;  %v1614_v17 = vmul.f32 %v1612_v11, %v7453_v38  ;;  %vm1732_vm8 = vweird.f32 %v6811_v39  ;;  %1985 = vmatpush.bf16.msrb.mxu2 %v5751_v34  ;;  %v5738_v10 = vld [vmem:[#allocation10 + $0x60] sm:$0xf]  ;;  %v6570_v11 = vld [vmem:[#allocation10 + $0x64] sm:$0xf] }
 0x2c6   :  { %v1610_v60 = vadd.f32 %v1608_v52, %v1604_v51  ;;  %v5739_v52 = vor.u32 %v6571_v9, %v5738_v10 }
 0x2c8   :  { %v1616_v19 = vadd.f32 %v1614_v17, %v1610_v60  ;;  %v5743_v60 = vor.u32 %v6570_v11, %v5740_v53  ;;  %1962 = vmatpush.bf16.msrb.mxu1 %v5739_v52  ;;  %v5730_v17 = vld [vmem:[#allocation10 + $0x50] sm:$0xf] }
 0x2ca   :  { %v1619_v16 = vpack.c.bf16 %v1616_v19, %v1615_v18  ;;  %1986 = vmatpush.bf16.msrb.mxu2 %v5743_v60  ;;  %v6569_v18 = vld [vmem:[#allocation10 + $0x54] sm:$0xf0]  ;;  %v6568_v19 = vld [vmem:[#allocation10 + $0x54] sm:$0xf] }
 0x2cc   :  { %1703 = vmatmul.bf16.gmra.mxu0 %v1619_v16 }
 0x2e9   :  { %v1694_v22 = vpop.f32.mrf.mxu0 }
 0x2ea   :  { %v1695_v6 = vadd.f32 %v1694_v22, %v1636_v8  ;;  %v5732_v22 = vld [vmem:[#allocation10 + $0x58] sm:$0xf0] }
 0x2ec   :  { %v1709_v23 = vadd.f32 %v1695_v6, %v7372_v13  ;;  %v5735_v6 = vor.u32 %v6568_v19, %v5732_v22 }
 0x2ee   :  { %1715 = vadd.xlane.f32.xlu0 %v1709_v23  ;;  %1987 = vmatpush.bf16.msrb.mxu2 %v5735_v6  ;;  %v7533_v6 = vld [vmem:[%s8192_s8] sm:$0xff] }
 0x2f1   :  { %v1696_v27 = vpop.f32.mrf.mxu0 }
 0x2f2   :  { %v1697_v32 = vadd.f32 %v1696_v27, %v1636_v8  ;;  %v5722_v27 = vld [vmem:[#allocation10 + $0x40] sm:$0xf] }
 0x2f4   :  { %v1710_v28 = vadd.f32 %v1697_v32, %v7374_v14  ;;  %v1728_v14 = vmul.f32 128.0, %v6811_v39  ;;  %v6567_v32 = vld [vmem:[#allocation10 + $0x44] sm:$0xf0] }
 0x2f6   :  { %1717 = vadd.xlane.f32.xlu0 %v1710_v28  ;;  %v1729_v46 = vsub.f32 1.0, %v1728_v14  ;;  %v6563_v14 = vld [vmem:[#allocation10 + $0x24] sm:$0xf0] }
 0x2f8   :  { %v1730_v7 = vmul.f32 %v6811_v39, %v1729_v46  ;;  %v5708_v46 = vld [vmem:[#allocation10 + $0x28] sm:$0xf0] }
 0x2fa   :  { %v1731_v26 = vadd.f32 %v6811_v39, %v1730_v7  ;;  %v5698_v7 = vld [vmem:[#allocation10 + $0x10] sm:$0xf] }
 0x319   :  { %v1699_v12 = vpop.f32.mrf.mxu0 }
 0x31a   :  { %v1700_v37 = vadd.f32 %v1699_v12, %v1636_v8 }
 0x31c   :  { %v1711_v38 = vadd.f32 %v1700_v37, %v7396_v47  ;;  %v5723_v37 = vor.u32 %v6567_v32, %v5722_v27  ;;  %v7536_v27 = vperm.slane %v7533_v6, 6 }
 0x31e   :  { %1719 = vadd.xlane.f32.xlu1 %v1711_v38 }
 0x321   :  { %v1701_v29 = vpop.f32.mrf.mxu0 }
 0x322   :  { %v1702_v24 = vadd.f32 %v1701_v29, %v1636_v8 }
 0x324   :  { %v1712_v30 = vadd.f32 %v1702_v24, %v7398_v48  ;;  %v7490_v48 = vsel %vm1732_vm8, %v6811_v39, %v1731_v26  ;;  %v5714_v24 = vld [vmem:[#allocation10 + $0x30] sm:$0xf]  ;;  %v6561_v26 = vld [vmem:[#allocation10 + $0x14] sm:$0xf0] }
 0x326   :  { %1721 = vadd.xlane.f32.xlu1 %v1712_v30 }
 0x349   :  { %v1704_v36 = vpop.f32.mrf.mxu0 }
 0x34a   :  { %v1705_v13 = vadd.f32 %v1704_v36, %v1636_v8 }
 0x34c   :  { %v1713_v25 = vadd.f32 %v1705_v13, %v7411_v0  ;;  %v5716_v13 = vld [vmem:[#allocation10 + $0x38] sm:$0xf0] }
 0x34d   :  { %v5719_v39 = vor.u32 %v6564_v35, %v5716_v13 }
 0x34e   :  { %1723 = vadd.xlane.f32.xlu2 %v1713_v25 }
 0x351   :  { %v1706_v40 = vpop.f32.mrf.mxu0 }
 0x352   :  { %v1707_v5 = vadd.f32 %v1706_v40, %v1636_v8  ;;  %v5731_v8 = vor.u32 %v6569_v18, %v5730_v17  ;;  %v6562_v40 = vld [vmem:[#allocation10 + $0x24] sm:$0xf]  ;;  %v7526_v18 = vperm.slane %v7426_v31, 5 }
 0x354   :  { %v1714_v47 = vadd.f32 %v1707_v5, %v7413_v1  ;;  %1963 = vmatpush.bf16.msrb.mxu1 %v5731_v8 }
 0x356   :  { %1725 = vadd.xlane.f32.xlu2 %v1714_v47 }
 0x358   :  { %1964 = vmatpush.bf16.msrb.mxu1 %v5723_v37 }
 0x361   :  { %v1716_v41 = vpop.xlane.xlu0 %1715 }
 0x362   :  { %v1734_v44 = vmul.f32 %v7490_v48, %v1716_v41  ;;  %v6560_v41 = vld [vmem:[#allocation10 + $0x14] sm:$0xf] }
 0x364   :  { %v7493_v56 = vsub.f32 %v1709_v23, %v1734_v44  ;;  %v5699_v44 = vor.u32 %v6561_v26, %v5698_v7 }
 0x366   :  { %v1746_v0 = vmul.f32 %v7493_v56, %v7493_v56 }
 0x368   :  { %1752 = vadd.xlane.f32.xlu0 %v1746_v0  ;;  %v5700_v0 = vld [vmem:[#allocation10 + $0x18] sm:$0xf0] }
 0x369   :  { %v1718_v42 = vpop.xlane.xlu0 %1717 }
 0x36a   :  { %v1735_v45 = vmul.f32 %v7490_v48, %v1718_v42  ;;  %v5690_v42 = vld [vmem:[#allocation10] sm:$0xf] }
 0x36c   :  { %v7498_v57 = vsub.f32 %v1710_v28, %v1735_v45  ;;  %v6566_v28 = vld [vmem:[#allocation10 + $0x44] sm:$0xf]  ;;  %v6559_v45 = vld [vmem:[#allocation10 + $0x4] sm:$0xf0] }
 0x36e   :  { %v1747_v1 = vmul.f32 %v7498_v57, %v7498_v57 }
 0x370   :  { %1754 = vadd.xlane.f32.xlu1 %v1747_v1 }
 0x391   :  { %v1720_v58 = vpop.xlane.xlu1 %1719 }
 0x392   :  { %v1736_v59 = vmul.f32 %v7490_v48, %v1720_v58  ;;  %v5703_v58 = vor.u32 %v6560_v41, %v5700_v0 }
 0x394   :  { %v7503_v49 = vsub.f32 %v1711_v38, %v1736_v59  ;;  %v5724_v38 = vld [vmem:[#allocation10 + $0x48] sm:$0xf0]  ;;  %v6558_v59 = vld [vmem:[#allocation10 + $0x4] sm:$0xf] }
 0x395   :  { %v5727_v29 = vor.u32 %v6566_v28, %v5724_v38 }
 0x396   :  { %v1748_v61 = vmul.f32 %v7503_v49, %v7503_v49 }
 0x397   :  { %1988 = vmatpush.bf16.msrb.mxu2 %v5727_v29 }
 0x398   :  { %1756 = vadd.xlane.f32.xlu2 %v1748_v61  ;;  %v5692_v61 = vld [vmem:[#allocation10 + $0x8] sm:$0xf0] }
 0x399   :  { %v1722_v20 = vpop.xlane.xlu1 %1721 }
 0x39a   :  { %v1737_v21 = vmul.f32 %v7490_v48, %v1722_v20 }
 0x39b   :  { %1989 = vmatpush.bf16.msrb.mxu2 %v5719_v39 }
 0x39c   :  { %v7508_v43 = vsub.f32 %v1712_v30, %v1737_v21  ;;  %v6565_v30 = vld [vmem:[#allocation10 + $0x34] sm:$0xf0]  ;;  %v5691_v21 = vor.u32 %v6559_v45, %v5690_v42 }
 0x39d   :  { %v5715_v36 = vor.u32 %v6565_v30, %v5714_v24 }
 0x39e   :  { %v1749_v62 = vmul.f32 %v7508_v43, %v7508_v43 }
 0x39f   :  { %1965 = vmatpush.bf16.msrb.mxu1 %v5715_v36 }
 0x3a0   :  { %1758 = vadd.xlane.f32.xlu0 %v1749_v62  ;;  %v5695_v62 = vor.u32 %v6558_v59, %v5692_v61 }
 0x3c1   :  { %v1724_v33 = vpop.xlane.xlu2 %1723 }
 0x3c2   :  { %v1738_v4 = vmul.f32 %v7490_v48, %v1724_v33 }
 0x3c4   :  { %v7513_v50 = vsub.f32 %v1713_v25, %v1738_v4  ;;  %v5706_v25 = vld [vmem:[#allocation10 + $0x20] sm:$0xf] }
 0x3c5   :  { %v5707_v5 = vor.u32 %v6563_v14, %v5706_v25 }
 0x3c6   :  { %v1750_v51 = vmul.f32 %v7513_v50, %v7513_v50 }
 0x3c7   :  { %1966 = vmatpush.bf16.msrb.mxu1 %v5707_v5 }
 0x3c8   :  { %1760 = vadd.xlane.f32.xlu1 %v1750_v51 }
 0x3c9   :  { %v1726_v15 = vpop.xlane.xlu2 %1725 }
 0x3ca   :  { %v1739_v16 = vmul.f32 %v7490_v48, %v1726_v15 }
 0x3cb   :  { %1967 = vmatpush.bf16.msrb.mxu1 %v5699_v44 }
 0x3cc   :  { %v7518_v23 = vsub.f32 %v1714_v47, %v1739_v16  ;;  %v5711_v47 = vor.u32 %v6562_v40, %v5708_v46 }
 0x3ce   :  { %v1751_v12 = vmul.f32 %v7518_v23, %v7518_v23  ;;  %1990 = vmatpush.bf16.msrb.mxu2 %v5711_v47 }
 0x3cf   :  { %1968 = vmatpush.bf16.msrb.mxu1 %v5691_v21  ;;  %v6589_v21 = vld [vmem:[#allocation11 + $0x78] sm:$0xff] }
 0x3d0   :  { %1762 = vadd.xlane.f32.xlu2 %v1751_v12 }
 0x3d2   :  { %1991 = vmatpush.bf16.msrb.mxu2 %v5703_v58 }
 0x3d3   :  { %2180 = vmatpush.bf16.msra.mxu1 %v6589_v21 }
 0x3d6   :  { %1992 = vmatpush.bf16.msrb.mxu2 %v5695_v62 }
 0x3db   :  { %v1753_v1 = vpop.xlane.xlu0 %1752 }
 0x3dc   :  { %v1764_v20 = vmul.f32 %v1753_v1, %v7490_v48 }
 0x3de   :  { %v1770_v33 = vadd.f32 1e-05, %v1764_v20 }
 0x3e0   :  { %6812 = vrsqrt.f32 %v1770_v33  ;;  %vm1782_vm10 = vweird.f32 %v1770_v33 }
 0x3e3   :  { %v1755_v63 = vpop.xlane.xlu1 %1754 }
 0x3e4   :  { %v1765_v54 = vmul.f32 %v1755_v63, %v7490_v48  ;;  %v6580_v63 = vld [vmem:[#allocation11 + $0x30] sm:$0xff] }
 0x3e6   :  { %v6813_v3 = vpop.eup %6812  ;;  %v1771_v4 = vadd.f32 1e-05, %v1765_v54  ;;  %v6588_v54 = vld [vmem:[#allocation11 + $0x70] sm:$0xff] }
 0x3e7   :  { %v1777_v55 = vmul.f32 %v6813_v3, %v1770_v33  ;;  %vm1783_vm9 = vweird.f32 %v6813_v3  ;;  %2181 = vmatpush.bf16.msra.mxu1 %v6588_v54 }
 0x3e8   :  { %6814 = vrsqrt.f32 %v1771_v4  ;;  %vm1784_vm11 = vmor %vm1782_vm10, %vm1783_vm9  ;;  %vm1792_vm13 = vweird.f32 %v1771_v4 }
 0x3e9   :  { %v1778_v2 = vmul.f32 %v6813_v3, %v1777_v55 }
 0x3eb   :  { %v1779_v34 = vmul.f32 0.5, %v1778_v2  ;;  %v6579_v2 = vld [vmem:[#allocation11 + $0x28] sm:$0xff] }
 0x3ed   :  { %v1780_v10 = vsub.f32 1.5, %v1779_v34  ;;  %v6587_v34 = vld [vmem:[#allocation11 + $0x68] sm:$0xff] }
 0x3ee   :  { %v6815_v9 = vpop.eup %6814  ;;  %2182 = vmatpush.bf16.msra.mxu1 %v6587_v34 }
 0x3ef   :  { %v1781_v11 = vmul.f32 %v6813_v3, %v1780_v10  ;;  %v1787_v51 = vmul.f32 %v6815_v9, %v1771_v4  ;;  %vm1793_vm12 = vweird.f32 %v6815_v9 }
 0x3f0   :  { %vm1794_vm14 = vmor %vm1792_vm13, %vm1793_vm12 }
 0x3f1   :  { %v1788_v52 = vmul.f32 %v6815_v9, %v1787_v51  ;;  %v1785_v53 = vsel %vm1784_vm11, %v6813_v3, %v1781_v11  ;;  %v6578_v11 = vld [vmem:[#allocation11 + $0x20] sm:$0xff] }
 0x3f2   :  { %v1836_v17 = vmul.f32 %v1785_v53, %v7493_v56 }
 0x3f3   :  { %v1789_v60 = vmul.f32 0.5, %v1788_v52 }
 0x3f4   :  { %v1843_v22 = vmul.f32 %v7526_v18, %v1836_v17 }
 0x3f5   :  { %v1790_v15 = vsub.f32 1.5, %v1789_v60 }
 0x3f6   :  { %v7540_v31 = vadd.f32 %v7536_v27, %v1843_v22 }
 0x3f7   :  { %v1791_v19 = vmul.f32 %v6815_v9, %v1790_v15 }
 0x3f9   :  { %v1795_v16 = vsel %vm1794_vm14, %v6815_v9, %v1791_v19 }
 0x3fa   :  { %v1837_v8 = vmul.f32 %v1795_v16, %v7498_v57 }
 0x3fc   :  { %v1844_v56 = vmul.f32 %v7526_v18, %v1837_v8 }
 0x3fe   :  { %v7543_v32 = vadd.f32 %v7536_v27, %v1844_v56 }
 0x400   :  { %v1856_v57 = vpack.c.bf16 %v7543_v32, %v7540_v31 }
 0x402   :  { %1969 = vmatmul.bf16.vlgmr.msrb.gmra.mxu1 %v1856_v57  ;;  %1993 = vmatmul.bf16.vlgmr.msrb.gmra.mxu2 %v1856_v57 }
 0x40b   :  { %v1757_v28 = vpop.xlane.xlu2 %1756 }
 0x40c   :  { %v1766_v12 = vmul.f32 %v1757_v28, %v7490_v48 }
 0x40e   :  { %v1772_v37 = vadd.f32 1e-05, %v1766_v12 }
 0x410   :  { %6816 = vrsqrt.f32 %v1772_v37  ;;  %vm1802_vm0 = vweird.f32 %v1772_v37 }
 0x413   :  { %v1759_v38 = vpop.xlane.xlu0 %1758 }
 0x414   :  { %v1767_v29 = vmul.f32 %v1759_v38, %v7490_v48 }
 0x416   :  { %v6817_v24 = vpop.eup %6816  ;;  %v1773_v30 = vadd.f32 1e-05, %v1767_v29  ;;  %v6577_v29 = vld [vmem:[#allocation11 + $0x18] sm:$0xff] }
 0x417   :  { %v1797_v35 = vmul.f32 %v6817_v24, %v1772_v37  ;;  %vm1803_vm15 = vweird.f32 %v6817_v24 }
 0x418   :  { %6818 = vrsqrt.f32 %v1773_v30  ;;  %vm1804_vm1 = vmor %vm1802_vm0, %vm1803_vm15  ;;  %vm1812_vm3 = vweird.f32 %v1773_v30 }
 0x419   :  { %v1798_v36 = vmul.f32 %v6817_v24, %v1797_v35  ;;  %v6575_v35 = vld [vmem:[#allocation11 + $0x8] sm:$0xff] }
 0x41b   :  { %v1799_v13 = vmul.f32 0.5, %v1798_v36  ;;  %v6574_v36 = vld [vmem:[#allocation11] sm:$0xff] }
 0x41d   :  { %v1800_v39 = vsub.f32 1.5, %v1799_v13  ;;  %v6582_v13 = vld [vmem:[#allocation11 + $0x40] sm:$0xff] }
 0x41e   :  { %v6819_v25 = vpop.eup %6818 }
 0x41f   :  { %v1801_v14 = vmul.f32 %v6817_v24, %v1800_v39  ;;  %v1807_v40 = vmul.f32 %v6819_v25, %v1773_v30  ;;  %vm1813_vm2 = vweird.f32 %v6819_v25  ;;  %v6576_v30 = vld [vmem:[#allocation11 + $0x10] sm:$0xff]  ;;  %v1875_v39 = vld [vmem:[%s8193_s9] sm:$0x3] }
 0x420   :  { %vm1814_vm4 = vmor %vm1812_vm3, %vm1813_vm2 }
 0x421   :  { %v1808_v5 = vmul.f32 %v6819_v25, %v1807_v40  ;;  %v1805_v47 = vsel %vm1804_vm1, %v6817_v24, %v1801_v14  ;;  %v6586_v24 = vld [vmem:[#allocation11 + $0x60] sm:$0xff]  ;;  %v1877_v14 = vperm.slane %v1875_v39, 0 }
 0x422   :  { %v1838_v26 = vmul.f32 %v1805_v47, %v7503_v49  ;;  %2183 = vmatpush.bf16.msra.mxu1 %v6586_v24  ;;  %v1878_v47 = vperm.slane %v1875_v39, 1 }
 0x423   :  { %v1809_v46 = vmul.f32 0.5, %v1808_v5 }
 0x424   :  { %v1845_v42 = vmul.f32 %v7526_v18, %v1838_v26 }
 0x425   :  { %v1810_v7 = vsub.f32 1.5, %v1809_v46 }
 0x426   :  { %v7554_v1 = vadd.f32 %v7536_v27, %v1845_v42 }
 0x427   :  { %v1811_v41 = vmul.f32 %v6819_v25, %v1810_v7 }
 0x429   :  { %v1815_v44 = vsel %vm1814_vm4, %v6819_v25, %v1811_v41 }
 0x42a   :  { %v1839_v0 = vmul.f32 %v1815_v44, %v7508_v43  ;;  %v6581_v43 = vld [vmem:[#allocation11 + $0x38] sm:$0xff] }
 0x42b   :  { %2156 = vmatpush.bf16.msra.mxu0 %v6581_v43 }
 0x42c   :  { %v1846_v45 = vmul.f32 %v7526_v18, %v1839_v0 }
 0x42e   :  { %v7557_v58 = vadd.f32 %v7536_v27, %v1846_v45 }
 0x42f   :  { %2157 = vmatpush.bf16.msra.mxu0 %v6580_v63 }
 0x430   :  { %v1857_v59 = vpack.c.bf16 %v7557_v58, %v7554_v1 }
 0x432   :  { %1974 = vmatmul.bf16.gmra.mxu1 %v1857_v59  ;;  %1998 = vmatmul.bf16.gmra.mxu2 %v1857_v59 }
 0x433   :  { %2158 = vmatpush.bf16.msra.mxu0 %v6579_v2 }
 0x437   :  { %2159 = vmatpush.bf16.msra.mxu0 %v6578_v11 }
 0x43b   :  { %v1761_v49 = vpop.xlane.xlu1 %1760  ;;  %2160 = vmatpush.bf16.msra.mxu0 %v6577_v29  ;;  %v2059_v29 = vperm.slane %v7533_v6, 4 }
 0x43c   :  { %v1768_v61 = vmul.f32 %v1761_v49, %v7490_v48 }
 0x43e   :  { %v1774_v20 = vadd.f32 1e-05, %v1768_v61 }
 0x43f   :  { %2161 = vmatpush.bf16.msra.mxu0 %v6576_v30 }
 0x440   :  { %6820 = vrsqrt.f32 %v1774_v20  ;;  %vm1822_vm6 = vweird.f32 %v1774_v20 }
 0x443   :  { %v1763_v62 = vpop.xlane.xlu2 %1762  ;;  %2162 = vmatpush.bf16.msra.mxu0 %v6575_v35 }
 0x444   :  { %v1769_v33 = vmul.f32 %v1763_v62, %v7490_v48 }
 0x446   :  { %v6821_v3 = vpop.eup %6820  ;;  %v1775_v4 = vadd.f32 1e-05, %v1769_v33 }
 0x447   :  { %v1817_v55 = vmul.f32 %v6821_v3, %v1774_v20  ;;  %vm1823_vm5 = vweird.f32 %v6821_v3  ;;  %2163 = vmatpush.bf16.msra.mxu0 %v6574_v36 }
 0x448   :  { %6822 = vrsqrt.f32 %v1775_v4  ;;  %vm1824_vm7 = vmor %vm1822_vm6, %vm1823_vm5  ;;  %vm1832_vm9 = vweird.f32 %v1775_v4 }
 0x449   :  { %v1818_v10 = vmul.f32 %v6821_v3, %v1817_v55 }
 0x44b   :  { %v1819_v9 = vmul.f32 0.5, %v1818_v10 }
 0x44d   :  { %v1820_v51 = vsub.f32 1.5, %v1819_v9 }
 0x44e   :  { %v6823_v52 = vpop.eup %6822 }
 0x44f   :  { %v1821_v53 = vmul.f32 %v6821_v3, %v1820_v51  ;;  %v1827_v60 = vmul.f32 %v6823_v52, %v1775_v4  ;;  %vm1833_vm8 = vweird.f32 %v6823_v52 }
 0x450   :  { %vm1834_vm10 = vmor %vm1832_vm9, %vm1833_vm8 }
 0x451   :  { %v1828_v15 = vmul.f32 %v6823_v52, %v1827_v60  ;;  %v1825_v19 = vsel %vm1824_vm7, %v6821_v3, %v1821_v53 }
 0x452   :  { %v1840_v8 = vmul.f32 %v1825_v19, %v7513_v50 }
 0x453   :  { %v1829_v17 = vmul.f32 0.5, %v1828_v15 }
 0x454   :  { %v1847_v28 = vmul.f32 %v7526_v18, %v1840_v8 }
 0x455   :  { %v1830_v16 = vsub.f32 1.5, %v1829_v17 }
 0x456   :  { %v7568_v37 = vadd.f32 %v7536_v27, %v1847_v28 }
 0x457   :  { %v1831_v22 = vmul.f32 %v6823_v52, %v1830_v16 }
 0x459   :  { %v1835_v56 = vsel %vm1834_vm10, %v6823_v52, %v1831_v22 }
 0x45a   :  { %v1841_v57 = vmul.f32 %v1835_v56, %v7518_v23  ;;  %v6585_v23 = vld [vmem:[#allocation11 + $0x58] sm:$0xff] }
 0x45b   :  { %2184 = vmatpush.bf16.msra.mxu1 %v6585_v23 }
 0x45c   :  { %v1848_v12 = vmul.f32 %v7526_v18, %v1841_v57  ;;  %v6584_v18 = vld [vmem:[#allocation11 + $0x50] sm:$0xff] }
 0x45e   :  { %v7571_v38 = vadd.f32 %v7536_v27, %v1848_v12  ;;  %v6583_v27 = vld [vmem:[#allocation11 + $0x48] sm:$0xff] }
 0x45f   :  { %2185 = vmatpush.bf16.msra.mxu1 %v6584_v18 }
 0x460   :  { %v1858_v50 = vpack.c.bf16 %v7571_v38, %v7568_v37 }
 0x462   :  { %1979 = vmatmul.bf16.gmra.mxu1 %v1858_v50  ;;  %2003 = vmatmul.bf16.gmra.mxu2 %v1858_v50 }
 0x463   :  { %2186 = vmatpush.bf16.msra.mxu1 %v6583_v27 }
 0x467   :  { %2187 = vmatpush.bf16.msra.mxu1 %v6582_v13 }
 0x47f   :  { %v1970_v25 = vpop.f32.mrf.mxu1 }
 0x480   :  { %v1971_v5 = vadd.f32 %v1970_v25, %v1877_v14 }
 0x482   :  { %v2009_v26 = vmax.f32 %v1971_v5, 0.0 }
 0x485   :  { %v1994_v40 = vpop.f32.mrf.mxu2 }
 0x486   :  { %v1995_v44 = vadd.f32 %v1994_v40, %v1878_v47 }
 0x487   :  { %v1972_v46 = vpop.f32.mrf.mxu1 }
 0x488   :  { %v1973_v7 = vadd.f32 %v1972_v46, %v1877_v14  ;;  %v2010_v59 = vmax.f32 %v1995_v44, 0.0 }
 0x48a   :  { %v2011_v41 = vmax.f32 %v1973_v7, 0.0 }
 0x48c   :  { %v2021_v0 = vpack.c.bf16 %v2011_v41, %v2009_v26 }
 0x48d   :  { %v1996_v42 = vpop.f32.mrf.mxu2 }
 0x48e   :  { %v1997_v45 = vadd.f32 %v1996_v42, %v1878_v47  ;;  %2164 = vmatmul.bf16.vlgmr.msra.gmra.mxu0 %v2021_v0 }
 0x490   :  { %v2012_v49 = vmax.f32 %v1997_v45, 0.0 }
 0x492   :  { %v2022_v61 = vpack.c.bf16 %v2012_v49, %v2010_v59 }
 0x494   :  { %2188 = vmatmul.bf16.vlgmr.msra.gmra.mxu1 %v2022_v61 }
 0x4af   :  { %v1975_v20 = vpop.f32.mrf.mxu1 }
 0x4b0   :  { %v1976_v21 = vadd.f32 %v1975_v20, %v1877_v14 }
 0x4b2   :  { %v2013_v63 = vmax.f32 %v1976_v21, 0.0 }
 0x4b5   :  { %v1999_v43 = vpop.f32.mrf.mxu2 }
 0x4b6   :  { %v2000_v3 = vadd.f32 %v1999_v43, %v1878_v47 }
 0x4b7   :  { %v1977_v62 = vpop.f32.mrf.mxu1 }
 0x4b8   :  { %v1978_v33 = vadd.f32 %v1977_v62, %v1877_v14  ;;  %v2014_v34 = vmax.f32 %v2000_v3, 0.0 }
 0x4ba   :  { %v2015_v54 = vmax.f32 %v1978_v33, 0.0 }
 0x4bc   :  { %v2023_v4 = vpack.c.bf16 %v2015_v54, %v2013_v63 }
 0x4bd   :  { %v2001_v55 = vpop.f32.mrf.mxu2 }
 0x4be   :  { %v2002_v2 = vadd.f32 %v2001_v55, %v1878_v47  ;;  %2169 = vmatmul.bf16.gmra.mxu0 %v2023_v4 }
 0x4c0   :  { %v2016_v10 = vmax.f32 %v2002_v2, 0.0 }
 0x4c2   :  { %v2024_v9 = vpack.c.bf16 %v2016_v10, %v2014_v34 }
 0x4c4   :  { %2193 = vmatmul.bf16.gmra.mxu1 %v2024_v9 }
 0x4df   :  { %v1980_v11 = vpop.f32.mrf.mxu1 }
 0x4e0   :  { %v1981_v52 = vadd.f32 %v1980_v11, %v1877_v14  ;;  %v5904_v11 = vld [vmem:[#allocation7 + $0x168] sm:$0xf] }
 0x4e2   :  { %v2017_v15 = vmax.f32 %v1981_v52, 0.0  ;;  %v6611_v52 = vld [vmem:[#allocation7 + $0x16c] sm:$0xf] }
 0x4e5   :  { %v2004_v51 = vpop.f32.mrf.mxu2 }
 0x4e6   :  { %v2005_v19 = vadd.f32 %v2004_v51, %v1878_v47  ;;  %v6612_v51 = vld [vmem:[#allocation7 + $0x170] sm:$0xf0] }
 0x4e7   :  { %v1982_v53 = vpop.f32.mrf.mxu1 }
 0x4e8   :  { %v1983_v60 = vadd.f32 %v1982_v53, %v1877_v14  ;;  %v2018_v56 = vmax.f32 %v2005_v19, 0.0  ;;  %v6613_v19 = vld [vmem:[#allocation7 + $0x178] sm:$0xf0] }
 0x4ea   :  { %v2019_v17 = vmax.f32 %v1983_v60, 0.0  ;;  %v5905_v60 = vor.u32 %v6612_v51, %v5904_v11  ;;  %v6598_v11 = vld [vmem:[#allocation7 + $0x100] sm:$0xf0] }
 0x4ec   :  { %v2025_v16 = vpack.c.bf16 %v2019_v17, %v2017_v15  ;;  %v5906_v15 = vld [vmem:[#allocation7 + $0x174] sm:$0xf0]  ;;  %v5912_v17 = vld [vmem:[#allocation7 + $0x170] sm:$0xf]  ;;  %2511 = vmatpush.bf16.msra.mxu2 %v5905_v60  ;;  %v6594_v60 = vld [vmem:[#allocation7 + $0xe0] sm:$0xf0] }
 0x4ed   :  { %v2006_v8 = vpop.f32.mrf.mxu2 }
 0x4ee   :  { %v2007_v22 = vadd.f32 %v2006_v8, %v1878_v47  ;;  %2174 = vmatmul.bf16.gmra.mxu0 %v2025_v16  ;;  %v5909_v16 = vor.u32 %v6611_v52, %v5906_v15  ;;  %v5913_v8 = vor.u32 %v6613_v19, %v5912_v17  ;;  %v6593_v15 = vld [vmem:[#allocation7 + $0xdc] sm:$0xf]  ;;  %v5834_v19 = vld [vmem:[#allocation7 + $0xe4] sm:$0xf0] }
 0x4f0   :  { %v2020_v57 = vmax.f32 %v2007_v22, 0.0  ;;  %2535 = vmatpush.bf16.msrb.mxu0 %v5909_v16  ;;  %2559 = vmatpush.bf16.msrb.mxu1 %v5913_v8  ;;  %v5840_v16 = vld [vmem:[#allocation7 + $0xe0] sm:$0xf]  ;;  %v6595_v8 = vld [vmem:[#allocation7 + $0xe8] sm:$0xf0] }
 0x4f2   :  { %v2026_v28 = vpack.c.bf16 %v2020_v57, %v2018_v56  ;;  %v5892_v56 = vld [vmem:[#allocation7 + $0x150] sm:$0xf]  ;;  %v6609_v57 = vld [vmem:[#allocation7 + $0x158] sm:$0xf0] }
 0x4f4   :  { %2198 = vmatmul.bf16.gmra.mxu1 %v2026_v28  ;;  %v6608_v28 = vld [vmem:[#allocation7 + $0x154] sm:$0xf] }
 0x50b   :  { %v2165_v12 = vpop.f32.mrf.mxu0 }
 0x50c   :  { %v2166_v50 = vadd.f32 %v2165_v12, %v2059_v29 }
 0x511   :  { %v2189_v24 = vpop.f32.mrf.mxu1 }
 0x512   :  { %v2190_v30 = vadd.f32 %v2189_v24, %v2166_v50  ;;  %v5894_v50 = vld [vmem:[#allocation7 + $0x15c] sm:$0xf0]  ;;  %v5900_v24 = vld [vmem:[#allocation7 + $0x158] sm:$0xf] }
 0x513   :  { %v2167_v35 = vpop.f32.mrf.mxu0 }
 0x514   :  { %v2204_v23 = vadd.f32 %v2190_v30, %v7540_v31  ;;  %v2168_v18 = vadd.f32 %v2167_v35, %v2059_v29  ;;  %v6610_v30 = vld [vmem:[#allocation7 + $0x160] sm:$0xf0] }
 0x515   :  { %v5901_v35 = vor.u32 %v6610_v30, %v5900_v24  ;;  %v6590_v24 = vld [vmem:[#allocation7 + $0xc4] sm:$0xf] }
 0x516   :  { %2210 = vadd.xlane.f32.xlu0 %v2204_v23 }
 0x517   :  { %2560 = vmatpush.bf16.msrb.mxu1 %v5901_v35  ;;  %v5822_v35 = vld [vmem:[#allocation7 + $0xcc] sm:$0xf0] }
 0x519   :  { %v2191_v36 = vpop.f32.mrf.mxu1 }
 0x51a   :  { %v2192_v27 = vadd.f32 %v2191_v36, %v2168_v18  ;;  %v5880_v36 = vld [vmem:[#allocation7 + $0x138] sm:$0xf] }
 0x51c   :  { %v2205_v13 = vadd.f32 %v2192_v27, %v7543_v32  ;;  %v6606_v27 = vld [vmem:[#allocation7 + $0x140] sm:$0xf0] }
 0x51e   :  { %2212 = vadd.xlane.f32.xlu1 %v2205_v13 }
 0x53b   :  { %v2170_v39 = vpop.f32.mrf.mxu0 }
 0x53c   :  { %v2171_v25 = vadd.f32 %v2170_v39, %v2059_v29 }
 0x541   :  { %v2194_v14 = vpop.f32.mrf.mxu1 }
 0x542   :  { %v2195_v40 = vadd.f32 %v2194_v14, %v2171_v25  ;;  %v5881_v25 = vor.u32 %v6606_v27, %v5880_v36  ;;  %v5882_v14 = vld [vmem:[#allocation7 + $0x144] sm:$0xf0]  ;;  %v5825_v36 = vor.u32 %v6590_v24, %v5822_v35  ;;  %v6592_v27 = vld [vmem:[#allocation7 + $0xd0] sm:$0xf0] }
 0x543   :  { %v2172_v46 = vpop.f32.mrf.mxu0 }
 0x544   :  { %v2206_v5 = vadd.f32 %v2195_v40, %v7554_v1  ;;  %v2173_v47 = vadd.f32 %v2172_v46, %v2059_v29  ;;  %v5888_v40 = vld [vmem:[#allocation7 + $0x140] sm:$0xf] }
 0x546   :  { %2214 = vadd.xlane.f32.xlu2 %v2206_v5 }
 0x549   :  { %v2196_v7 = vpop.f32.mrf.mxu1 }
 0x54a   :  { %v2197_v26 = vadd.f32 %v2196_v7, %v2173_v47 }
 0x54c   :  { %v2207_v31 = vadd.f32 %v2197_v26, %v7557_v58  ;;  %v5868_v26 = vld [vmem:[#allocation7 + $0x120] sm:$0xf] }
 0x54e   :  { %2216 = vadd.xlane.f32.xlu0 %v2207_v31 }
 0x56b   :  { %v2175_v41 = vpop.f32.mrf.mxu0 }
 0x56c   :  { %v2176_v44 = vadd.f32 %v2175_v41, %v2059_v29  ;;  %v6602_v41 = vld [vmem:[#allocation7 + $0x124] sm:$0xf] }
 0x571   :  { %v2199_v0 = vpop.f32.mrf.mxu1 }
 0x572   :  { %v2200_v42 = vadd.f32 %v2199_v0, %v2176_v44 }
 0x573   :  { %v2177_v45 = vpop.f32.mrf.mxu0 }
 0x574   :  { %v2208_v32 = vadd.f32 %v2200_v42, %v7568_v37  ;;  %v2178_v59 = vadd.f32 %v2177_v45, %v2059_v29  ;;  %v5893_v29 = vor.u32 %v6609_v57, %v5892_v56  ;;  %v5870_v42 = vld [vmem:[#allocation7 + $0x12c] sm:$0xf0]  ;;  %v6604_v45 = vld [vmem:[#allocation7 + $0x130] sm:$0xf0]  ;;  %v5837_v57 = vor.u32 %v6593_v15, %v5834_v19 }
 0x576   :  { %2218 = vadd.xlane.f32.xlu1 %v2208_v32  ;;  %2512 = vmatpush.bf16.msra.mxu2 %v5893_v29  ;;  %v5820_v29 = vld [vmem:[#allocation7 + $0xc0] sm:$0xf] }
 0x579   :  { %v2201_v49 = vpop.f32.mrf.mxu1 }
 0x57a   :  { %v2202_v61 = vadd.f32 %v2201_v49, %v2178_v59  ;;  %2513 = vmatpush.bf16.msra.mxu2 %v5881_v25  ;;  %v5873_v59 = vor.u32 %v6602_v41, %v5870_v42 }
 0x57c   :  { %v2209_v1 = vadd.f32 %v2202_v61, %v7571_v38  ;;  %v5856_v61 = vld [vmem:[#allocation7 + $0x108] sm:$0xf] }
 0x57e   :  { %2220 = vadd.xlane.f32.xlu2 %v2209_v1 }
 0x589   :  { %v2211_v20 = vpop.xlane.xlu0 %2210 }
 0x58a   :  { %v2222_v43 = vmul.f32 %v2211_v20, %v7490_v48  ;;  %v6599_v20 = vld [vmem:[#allocation7 + $0x10c] sm:$0xf] }
 0x58c   :  { %v7586_v21 = vsub.f32 %v2204_v23, %v2222_v43  ;;  %v5897_v23 = vor.u32 %v6608_v28, %v5894_v50  ;;  %v5841_v28 = vor.u32 %v6595_v8, %v5840_v16  ;;  %v6591_v50 = vld [vmem:[#allocation7 + $0xc8] sm:$0xf0] }
 0x58e   :  { %v2234_v58 = vmul.f32 %v7586_v21, %v7586_v21  ;;  %2536 = vmatpush.bf16.msrb.mxu0 %v5897_v23  ;;  %v5821_v23 = vor.u32 %v6591_v50, %v5820_v29 }
 0x590   :  { %2240 = vadd.xlane.f32.xlu0 %v2234_v58  ;;  %v5858_v58 = vld [vmem:[#allocation7 + $0x114] sm:$0xf0] }
 0x591   :  { %v2213_v62 = vpop.xlane.xlu1 %2212 }
 0x592   :  { %v2223_v37 = vmul.f32 %v2213_v62, %v7490_v48  ;;  %v5864_v62 = vld [vmem:[#allocation7 + $0x110] sm:$0xf] }
 0x594   :  { %v7591_v33 = vsub.f32 %v2205_v13, %v2223_v37  ;;  %v6605_v13 = vld [vmem:[#allocation7 + $0x13c] sm:$0xf] }
 0x595   :  { %v5885_v46 = vor.u32 %v6605_v13, %v5882_v14  ;;  %v6601_v37 = vld [vmem:[#allocation7 + $0x118] sm:$0xf0] }
 0x596   :  { %v2235_v63 = vmul.f32 %v7591_v33, %v7591_v33 }
 0x597   :  { %2537 = vmatpush.bf16.msrb.mxu0 %v5885_v46 }
 0x598   :  { %2242 = vadd.xlane.f32.xlu1 %v2235_v63  ;;  %v5861_v63 = vor.u32 %v6599_v20, %v5858_v58  ;;  %v7636_v58 = vperm.slane %v7533_v6, 7 }
 0x59b   :  { %2538 = vmatpush.bf16.msrb.mxu0 %v5873_v59 }
 0x59f   :  { %2539 = vmatpush.bf16.msrb.mxu0 %v5861_v63 }
 0x5b9   :  { %v2215_v38 = vpop.xlane.xlu2 %2214 }
 0x5ba   :  { %v2224_v54 = vmul.f32 %v2215_v38, %v7490_v48  ;;  %v5865_v38 = vor.u32 %v6601_v37, %v5864_v62 }
 0x5bc   :  { %v7596_v3 = vsub.f32 %v2206_v5, %v2224_v54  ;;  %v6607_v5 = vld [vmem:[#allocation7 + $0x148] sm:$0xf0]  ;;  %v5844_v54 = vld [vmem:[#allocation7 + $0xf0] sm:$0xf] }
 0x5bd   :  { %v5889_v47 = vor.u32 %v6607_v5, %v5888_v40  ;;  %v6982_v40 = vld [vmem:[%s8191_s7 + $0x30] sm:$0xff] }
 0x5be   :  { %v2236_v4 = vmul.f32 %v7596_v3, %v7596_v3 }
 0x5bf   :  { %2561 = vmatpush.bf16.msrb.mxu1 %v5889_v47 }
 0x5c0   :  { %2244 = vadd.xlane.f32.xlu2 %v2236_v4  ;;  %v6597_v4 = vld [vmem:[#allocation7 + $0xf8] sm:$0xf0] }
 0x5c1   :  { %v2217_v55 = vpop.xlane.xlu0 %2216 }
 0x5c2   :  { %v2225_v2 = vmul.f32 %v2217_v55, %v7490_v48  ;;  %v6596_v55 = vld [vmem:[#allocation7 + $0xf4] sm:$0xf] }
 0x5c4   :  { %v7601_v34 = vsub.f32 %v2207_v31, %v2225_v2  ;;  %v6603_v31 = vld [vmem:[#allocation7 + $0x128] sm:$0xf0]  ;;  %v5845_v2 = vor.u32 %v6597_v4, %v5844_v54  ;;  %v7645_v54 = vld [vmem:[%s8192_s8 + $0x8] ss:$0 sm:$0xff] }
 0x5c5   :  { %v5869_v0 = vor.u32 %v6603_v31, %v5868_v26  ;;  %v6983_v31 = vld [vmem:[%s8191_s7 + $0x28] sm:$0xff] }
 0x5c6   :  { %v2237_v10 = vmul.f32 %v7601_v34, %v7601_v34 }
 0x5c7   :  { %2514 = vmatpush.bf16.msra.mxu2 %v5869_v0  ;;  %v6984_v0 = vld [vmem:[%s8191_s7 + $0x20] sm:$0xff] }
 0x5c8   :  { %2246 = vadd.xlane.f32.xlu0 %v2237_v10  ;;  %v5846_v10 = vld [vmem:[#allocation7 + $0xfc] sm:$0xf0] }
 0x5c9   :  { %v5849_v51 = vor.u32 %v6596_v55, %v5846_v10  ;;  %v6988_v55 = vld [vmem:[%s8191_s7] sm:$0xff] }
 0x5cb   :  { %2540 = vmatpush.bf16.msrb.mxu0 %v5849_v51 }
 0x5cf   :  { %2541 = vmatpush.bf16.msrb.mxu0 %v5837_v57 }
 0x5d3   :  { %2542 = vmatpush.bf16.msrb.mxu0 %v5825_v36 }
 0x5e9   :  { %v2219_v9 = vpop.xlane.xlu1 %2218 }
 0x5ea   :  { %v2226_v53 = vmul.f32 %v2219_v9, %v7490_v48  ;;  %v5852_v9 = vld [vmem:[#allocation7 + $0xf8] sm:$0xf] }
 0x5eb   :  { %v5853_v52 = vor.u32 %v6598_v11, %v5852_v9 }
 0x5ec   :  { %v7606_v22 = vsub.f32 %v2208_v32, %v2226_v53  ;;  %v5876_v32 = vld [vmem:[#allocation7 + $0x128] sm:$0xf]  ;;  %v5832_v53 = vld [vmem:[#allocation7 + $0xd8] sm:$0xf] }
 0x5ed   :  { %v5877_v49 = vor.u32 %v6604_v45, %v5876_v32  ;;  %v5833_v17 = vor.u32 %v6594_v60, %v5832_v53 }
 0x5ee   :  { %v2238_v12 = vmul.f32 %v7606_v22, %v7606_v22 }
 0x5ef   :  { %2562 = vmatpush.bf16.msrb.mxu1 %v5877_v49  ;;  %v6985_v49 = vld [vmem:[%s8191_s7 + $0x18] sm:$0xff] }
 0x5f0   :  { %2248 = vadd.xlane.f32.xlu1 %v2238_v12 }
 0x5f1   :  { %v2221_v18 = vpop.xlane.xlu2 %2220 }
 0x5f2   :  { %v2227_v39 = vmul.f32 %v2221_v18, %v7490_v48  ;;  %v5828_v18 = vld [vmem:[#allocation7 + $0xc8] sm:$0xf] }
 0x5f3   :  { %2563 = vmatpush.bf16.msrb.mxu1 %v5865_v38  ;;  %v5829_v13 = vor.u32 %v6592_v27, %v5828_v18  ;;  %v6987_v38 = vld [vmem:[%s8191_s7 + $0x8] sm:$0xff] }
 0x5f4   :  { %v7611_v7 = vsub.f32 %v2209_v1, %v2227_v39  ;;  %v6600_v1 = vld [vmem:[#allocation7 + $0x110] sm:$0xf0]  ;;  %v6981_v39 = vld [vmem:[%s8191_s7 + $0x38] sm:$0xff] }
 0x5f5   :  { %v5857_v43 = vor.u32 %v6600_v1, %v5856_v61 }
 0x5f6   :  { %v2239_v44 = vmul.f32 %v7611_v7, %v7611_v7 }
 0x5f7   :  { %2515 = vmatpush.bf16.msra.mxu2 %v5857_v43  ;;  %2564 = vmatpush.bf16.msrb.mxu1 %v5853_v52  ;;  %v6986_v43 = vld [vmem:[%s8191_s7 + $0x10] sm:$0xff] }
 0x5f8   :  { %2250 = vadd.xlane.f32.xlu2 %v2239_v44 }
 0x5fb   :  { %2516 = vmatpush.bf16.msra.mxu2 %v5845_v2  ;;  %2565 = vmatpush.bf16.msrb.mxu1 %v5841_v28 }
 0x5ff   :  { %2517 = vmatpush.bf16.msra.mxu2 %v5833_v17  ;;  %2566 = vmatpush.bf16.msrb.mxu1 %v5829_v13 }
 0x603   :  { %v2241_v56 = vpop.xlane.xlu0 %2240  ;;  %2518 = vmatpush.bf16.msra.mxu2 %v5821_v23 }
 0x604   :  { %v2252_v12 = vmul.f32 %v2241_v56, %v7490_v48 }
 0x606   :  { %v2258_v30 = vadd.f32 1e-05, %v2252_v12 }
 0x607   :  { %2637 = vmatpush.bf16.msrb.mxu2 %v6981_v39 }
 0x608   :  { %6824 = vrsqrt.f32 %v2258_v30  ;;  %vm2270_vm12 = vweird.f32 %v2258_v30 }
 0x60b   :  { %v2243_v25 = vpop.xlane.xlu1 %2242  ;;  %2638 = vmatpush.bf16.msrb.mxu2 %v6982_v40 }
 0x60c   :  { %v2253_v14 = vmul.f32 %v2243_v25, %v7490_v48 }
 0x60e   :  { %v6825_v5 = vpop.eup %6824  ;;  %v2259_v46 = vadd.f32 1e-05, %v2253_v14 }
 0x60f   :  { %v2265_v47 = vmul.f32 %v6825_v5, %v2258_v30  ;;  %2639 = vmatpush.bf16.msrb.mxu2 %v6983_v31  ;;  %vm2271_vm11 = vweird.f32 %v6825_v5 }
 0x610   :  { %6826 = vrsqrt.f32 %v2259_v46  ;;  %vm2272_vm13 = vmor %vm2270_vm12, %vm2271_vm11  ;;  %vm2280_vm15 = vweird.f32 %v2259_v46 }
 0x611   :  { %v2266_v26 = vmul.f32 %v6825_v5, %v2265_v47 }
 0x613   :  { %v2267_v41 = vmul.f32 0.5, %v2266_v26  ;;  %2640 = vmatpush.bf16.msrb.mxu2 %v6984_v0 }
 0x615   :  { %v2268_v44 = vsub.f32 1.5, %v2267_v41 }
 0x616   :  { %v6827_v42 = vpop.eup %6826 }
 0x617   :  { %v2269_v32 = vmul.f32 %v6825_v5, %v2268_v44  ;;  %v2275_v45 = vmul.f32 %v6827_v42, %v2259_v46  ;;  %2641 = vmatpush.bf16.msrb.mxu2 %v6985_v49  ;;  %vm2281_vm14 = vweird.f32 %v6827_v42 }
 0x618   :  { %vm2282_vm0 = vmor %vm2280_vm15, %vm2281_vm14 }
 0x619   :  { %v2276_v59 = vmul.f32 %v6827_v42, %v2275_v45  ;;  %v2273_v61 = vsel %vm2272_vm13, %v6825_v5, %v2269_v32 }
 0x61a   :  { %v2324_v62 = vmul.f32 %v2273_v61, %v7586_v21 }
 0x61b   :  { %v2277_v1 = vmul.f32 0.5, %v2276_v59  ;;  %2642 = vmatpush.bf16.msrb.mxu2 %v6986_v43 }
 0x61c   :  { %v2331_v4 = vmul.f32 %v7636_v58, %v2324_v62 }
 0x61d   :  { %v2278_v20 = vsub.f32 1.5, %v2277_v1 }
 0x61e   :  { %v7654_v2 = vadd.f32 %v7645_v54, %v2331_v4 }
 0x61f   :  { %v2279_v37 = vmul.f32 %v6827_v42, %v2278_v20  ;;  %2643 = vmatpush.bf16.msrb.mxu2 %v6987_v38 }
 0x621   :  { %v2283_v63 = vsel %vm2282_vm0, %v6827_v42, %v2279_v37 }
 0x622   :  { %v2325_v6 = vmul.f32 %v2283_v63, %v7591_v33 }
 0x623   :  { %2644 = vmatpush.bf16.msrb.mxu2 %v6988_v55 }
 0x624   :  { %v2332_v21 = vmul.f32 %v7636_v58, %v2325_v6 }
 0x626   :  { %v7657_v10 = vadd.f32 %v7645_v54, %v2332_v21 }
 0x628   :  { %v2347_v9 = vpack.c.bf16 %v7657_v10, %v7654_v2 }
 0x62a   :  { %2519 = vmatmul.bf16.vlgmr.msra.gmra.mxu2 %v2347_v9  ;;  %2543 = vmatmul.bf16.vlgmr.msrb.gmra.mxu0 %v2347_v9 }
 0x62b   :  { %2567 = vmatmul.bf16.vlgmr.msrb.gmra.mxu1 %v2347_v9 }
 0x633   :  { %v2245_v33 = vpop.xlane.xlu2 %2244 }
 0x634   :  { %v2254_v11 = vmul.f32 %v2245_v33, %v7490_v48 }
 0x636   :  { %v2260_v51 = vadd.f32 1e-05, %v2254_v11 }
 0x638   :  { %6828 = vrsqrt.f32 %v2260_v51  ;;  %vm2290_vm2 = vweird.f32 %v2260_v51 }
 0x63b   :  { %v2247_v52 = vpop.xlane.xlu0 %2246 }
 0x63c   :  { %v2255_v53 = vmul.f32 %v2247_v52, %v7490_v48 }
 0x63e   :  { %v6829_v60 = vpop.eup %6828  ;;  %v2261_v15 = vadd.f32 1e-05, %v2255_v53 }
 0x63f   :  { %v2285_v17 = vmul.f32 %v6829_v60, %v2260_v51  ;;  %vm2291_vm1 = vweird.f32 %v6829_v60 }
 0x640   :  { %6830 = vrsqrt.f32 %v2261_v15  ;;  %vm2292_vm3 = vmor %vm2290_vm2, %vm2291_vm1  ;;  %vm2300_vm5 = vweird.f32 %v2261_v15 }
 0x641   :  { %v2286_v19 = vmul.f32 %v6829_v60, %v2285_v17 }
 0x643   :  { %v2287_v16 = vmul.f32 0.5, %v2286_v19 }
 0x645   :  { %v2288_v8 = vsub.f32 1.5, %v2287_v16 }
 0x646   :  { %v6831_v56 = vpop.eup %6830 }
 0x647   :  { %v2289_v57 = vmul.f32 %v6829_v60, %v2288_v8  ;;  %v2295_v28 = vmul.f32 %v6831_v56, %v2261_v15  ;;  %vm2301_vm4 = vweird.f32 %v6831_v56 }
 0x648   :  { %vm2302_vm6 = vmor %vm2300_vm5, %vm2301_vm4 }
 0x649   :  { %v2296_v12 = vmul.f32 %v6831_v56, %v2295_v28  ;;  %v2293_v29 = vsel %vm2292_vm3, %v6829_v60, %v2289_v57 }
 0x64a   :  { %v2326_v30 = vmul.f32 %v2293_v29, %v7596_v3 }
 0x64b   :  { %v2297_v50 = vmul.f32 0.5, %v2296_v12 }
 0x64c   :  { %v2333_v36 = vmul.f32 %v7636_v58, %v2326_v30 }
 0x64d   :  { %v2298_v24 = vsub.f32 1.5, %v2297_v50 }
 0x64e   :  { %v7668_v13 = vadd.f32 %v7645_v54, %v2333_v36 }
 0x64f   :  { %v2299_v23 = vmul.f32 %v6831_v56, %v2298_v24 }
 0x651   :  { %v2303_v35 = vsel %vm2302_vm6, %v6831_v56, %v2299_v23 }
 0x652   :  { %v2327_v18 = vmul.f32 %v2303_v35, %v7601_v34 }
 0x654   :  { %v2334_v27 = vmul.f32 %v7636_v58, %v2327_v18 }
 0x656   :  { %v7671_v39 = vadd.f32 %v7645_v54, %v2334_v27 }
 0x658   :  { %v2348_v25 = vpack.c.bf16 %v7671_v39, %v7668_v13 }
 0x65a   :  { %2524 = vmatmul.bf16.gmra.mxu2 %v2348_v25  ;;  %2548 = vmatmul.bf16.gmra.mxu0 %v2348_v25 }
 0x65b   :  { %2572 = vmatmul.bf16.gmra.mxu1 %v2348_v25 }
 0x663   :  { %v2249_v3 = vpop.xlane.xlu1 %2248 }
 0x664   :  { %v2256_v14 = vmul.f32 %v2249_v3, %v7490_v48 }
 0x666   :  { %v2262_v34 = vadd.f32 1e-05, %v2256_v14 }
 0x668   :  { %6832 = vrsqrt.f32 %v2262_v34  ;;  %vm2310_vm8 = vweird.f32 %v2262_v34 }
 0x66b   :  { %v2251_v40 = vpop.xlane.xlu2 %2250 }
 0x66c   :  { %v2257_v5 = vmul.f32 %v2251_v40, %v7490_v48 }
 0x66e   :  { %v6833_v46 = vpop.eup %6832  ;;  %v2263_v47 = vadd.f32 1e-05, %v2257_v5 }
 0x66f   :  { %v2305_v26 = vmul.f32 %v6833_v46, %v2262_v34  ;;  %vm2311_vm7 = vweird.f32 %v6833_v46 }
 0x670   :  { %6834 = vrsqrt.f32 %v2263_v47  ;;  %vm2312_vm9 = vmor %vm2310_vm8, %vm2311_vm7  ;;  %vm2320_vm11 = vweird.f32 %v2263_v47 }
 0x671   :  { %v2306_v31 = vmul.f32 %v6833_v46, %v2305_v26 }
 0x673   :  { %v2307_v41 = vmul.f32 0.5, %v2306_v31 }
 0x675   :  { %v2308_v44 = vsub.f32 1.5, %v2307_v41 }
 0x676   :  { %v6835_v0 = vpop.eup %6834 }
 0x677   :  { %v2309_v42 = vmul.f32 %v6833_v46, %v2308_v44  ;;  %v2315_v32 = vmul.f32 %v6835_v0, %v2263_v47  ;;  %vm2321_vm10 = vweird.f32 %v6835_v0 }
 0x678   :  { %vm2322_vm12 = vmor %vm2320_vm11, %vm2321_vm10 }
 0x679   :  { %v2316_v45 = vmul.f32 %v6835_v0, %v2315_v32  ;;  %v2313_v59 = vsel %vm2312_vm9, %v6833_v46, %v2309_v42 }
 0x67a   :  { %v2328_v1 = vmul.f32 %v2313_v59, %v7606_v22 }
 0x67b   :  { %v2317_v49 = vmul.f32 0.5, %v2316_v45 }
 0x67c   :  { %v2335_v37 = vmul.f32 %v7636_v58, %v2328_v1 }
 0x67d   :  { %v2318_v61 = vsub.f32 1.5, %v2317_v49 }
 0x67e   :  { %v7682_v38 = vadd.f32 %v7645_v54, %v2335_v37 }
 0x67f   :  { %v2319_v20 = vmul.f32 %v6835_v0, %v2318_v61 }
 0x681   :  { %v2323_v43 = vsel %vm2322_vm12, %v6835_v0, %v2319_v20 }
 0x682   :  { %v2329_v62 = vmul.f32 %v2323_v43, %v7611_v7  ;;  %v7692_v7 = vld [vmem:[%s8192_s8 + $0x10] sm:$0xff] }
 0x683   :  { %v2596_v9 = vperm.slane %v7692_v7, 1 }
 0x684   :  { %v2336_v63 = vmul.f32 %v7636_v58, %v2329_v62  ;;  %v2583_v58 = vperm.slane %v7692_v7, 0 }
 0x686   :  { %v7685_v4 = vadd.f32 %v7645_v54, %v2336_v63 }
 0x688   :  { %v2349_v6 = vpack.c.bf16 %v7685_v4, %v7682_v38 }
 0x68a   :  { %2529 = vmatmul.bf16.gmra.mxu2 %v2349_v6  ;;  %2553 = vmatmul.bf16.gmra.mxu0 %v2349_v6 }
 0x68b   :  { %2577 = vmatmul.bf16.gmra.mxu1 %v2349_v6 }
 0x6a7   :  { %v2544_v22 = vpop.f32.mrf.mxu0 }
 0x6a8   :  { %v2597_v52 = vadd.f32 %v2596_v9, %v2544_v22 }
 0x6ad   :  { %v2520_v21 = vpop.f32.mrf.mxu2 }
 0x6ae   :  { %v2584_v55 = vadd.f32 %v2583_v58, %v2520_v21 }
 0x6af   :  { %v2546_v54 = vpop.f32.mrf.mxu0 }
 0x6b0   :  { %v2590_v11 = vmul.f32 0.17677669, %v2584_v55  ;;  %v2598_v53 = vadd.f32 %v2596_v9, %v2546_v54  ;;  %v6621_v55 = vld [vmem:[#allocation8 + $0x78] sm:$0xff] }
 0x6b1   :  { %2970 = vmatpush.bf16.msrb.mxu3 %v6621_v55 }
 0x6b2   :  { %v2610_v15 = vmul.f32 %v2597_v52, %v2590_v11 }
 0x6b5   :  { %v2522_v33 = vpop.f32.mrf.mxu2 }
 0x6b6   :  { %v2585_v51 = vadd.f32 %v2583_v58, %v2522_v33 }
 0x6b8   :  { %v2591_v60 = vmul.f32 0.17677669, %v2585_v51 }
 0x6ba   :  { %v2611_v17 = vmul.f32 %v2598_v53, %v2591_v60 }
 0x6bc   :  { %v2628_v19 = vpack.c.bf16 %v2611_v17, %v2610_v15  ;;  %v6619_v15 = vld [vmem:[#allocation8 + $0x68] sm:$0xff] }
 0x6be   :  { %2645 = vmatmul.bf16.vlgmr.msrb.gmra.mxu2 %v2628_v19 }
 0x6d7   :  { %v2549_v16 = vpop.f32.mrf.mxu0 }
 0x6d8   :  { %v2599_v56 = vadd.f32 %v2596_v9, %v2549_v16 }
 0x6da   :  { %v2612_v12 = vmul.f32 %v2599_v56, %v2590_v11 }
 0x6dd   :  { %v2525_v8 = vpop.f32.mrf.mxu2 }
 0x6de   :  { %v2586_v29 = vadd.f32 %v2583_v58, %v2525_v8 }
 0x6df   :  { %v2551_v57 = vpop.f32.mrf.mxu0 }
 0x6e0   :  { %v2600_v28 = vadd.f32 %v2596_v9, %v2551_v57  ;;  %v2592_v23 = vmul.f32 0.17677669, %v2586_v29  ;;  %v6617_v29 = vld [vmem:[#allocation8 + $0x58] sm:$0xff] }
 0x6e2   :  { %v2613_v50 = vmul.f32 %v2600_v28, %v2591_v60  ;;  %v2618_v36 = vmul.f32 %v2599_v56, %v2592_v23  ;;  %v2616_v43 = vmul.f32 %v2597_v52, %v2592_v23 }
 0x6e4   :  { %v2629_v24 = vpack.c.bf16 %v2613_v50, %v2612_v12 }
 0x6e5   :  { %v2527_v30 = vpop.f32.mrf.mxu2 }
 0x6e6   :  { %v2587_v35 = vadd.f32 %v2583_v58, %v2527_v30  ;;  %2650 = vmatmul.bf16.gmra.mxu2 %v2629_v24 }
 0x6e8   :  { %v2593_v18 = vmul.f32 0.17677669, %v2587_v35  ;;  %v6616_v35 = vld [vmem:[#allocation8 + $0x50] sm:$0xff] }
 0x6ea   :  { %v2619_v27 = vmul.f32 %v2600_v28, %v2593_v18  ;;  %v2617_v20 = vmul.f32 %v2598_v53, %v2593_v18 }
 0x6ec   :  { %v2632_v25 = vpack.c.bf16 %v2619_v27, %v2618_v36  ;;  %v2631_v62 = vpack.c.bf16 %v2617_v20, %v2616_v43 }
 0x707   :  { %v2554_v3 = vpop.f32.mrf.mxu0 }
 0x708   :  { %v2601_v34 = vadd.f32 %v2596_v9, %v2554_v3 }
 0x70a   :  { %v2614_v46 = vmul.f32 %v2601_v34, %v2590_v11  ;;  %v2620_v63 = vmul.f32 %v2601_v34, %v2592_v23 }
 0x70d   :  { %v2530_v14 = vpop.f32.mrf.mxu2 }
 0x70e   :  { %v2588_v47 = vadd.f32 %v2583_v58, %v2530_v14 }
 0x70f   :  { %v2556_v40 = vpop.f32.mrf.mxu0 }
 0x710   :  { %v2602_v5 = vadd.f32 %v2596_v9, %v2556_v40  ;;  %v2594_v44 = vmul.f32 0.17677669, %v2588_v47  ;;  %v6620_v9 = vld [vmem:[#allocation8 + $0x70] sm:$0xff] }
 0x711   :  { %2971 = vmatpush.bf16.msrb.mxu3 %v6620_v9 }
 0x712   :  { %v2615_v26 = vmul.f32 %v2602_v5, %v2591_v60  ;;  %v2624_v32 = vmul.f32 %v2599_v56, %v2594_v44  ;;  %v2626_v45 = vmul.f32 %v2601_v34, %v2594_v44  ;;  %v2621_v37 = vmul.f32 %v2602_v5, %v2593_v18  ;;  %v7696_v60 = vpop.f32.mrf.mxu1 }
 0x713   :  { %v2622_v21 = vmul.f32 %v2597_v52, %v2594_v44  ;;  %v6618_v52 = vld [vmem:[#allocation8 + $0x60] sm:$0xff] }
 0x714   :  { %v2630_v31 = vpack.c.bf16 %v2615_v26, %v2614_v46  ;;  %v2633_v6 = vpack.c.bf16 %v2621_v37, %v2620_v63  ;;  %v6614_v44 = vld [vmem:[#allocation8 + $0x40] sm:$0xff] }
 0x715   :  { %v2532_v41 = vpop.f32.mrf.mxu2  ;;  %2972 = vmatpush.bf16.msrb.mxu3 %v6619_v15 }
 0x716   :  { %v2589_v0 = vadd.f32 %v2583_v58, %v2532_v41  ;;  %2655 = vmatmul.bf16.gmra.mxu2 %v2630_v31 }
 0x718   :  { %v2595_v42 = vmul.f32 0.17677669, %v2589_v0 }
 0x719   :  { %2973 = vmatpush.bf16.msrb.mxu3 %v6618_v52 }
 0x71a   :  { %v2625_v59 = vmul.f32 %v2600_v28, %v2595_v42  ;;  %v2627_v49 = vmul.f32 %v2602_v5, %v2595_v42  ;;  %v2623_v22 = vmul.f32 %v2598_v53, %v2595_v42  ;;  %v7698_v50 = vpop.f32.mrf.mxu1  ;;  %v6615_v5 = vld [vmem:[#allocation8 + $0x48] sm:$0xff] }
 0x71c   :  { %v2635_v61 = vpack.c.bf16 %v2625_v59, %v2624_v32  ;;  %v2636_v1 = vpack.c.bf16 %v2627_v49, %v2626_v45  ;;  %v2634_v58 = vpack.c.bf16 %v2623_v22, %v2622_v21 }
 0x71d   :  { %2974 = vmatpush.bf16.msrb.mxu3 %v6617_v29 }
 0x721   :  { %2975 = vmatpush.bf16.msrb.mxu3 %v6616_v35 }
 0x722   :  { %v2573_v46 = vpop.f32.mrf.mxu1 }
 0x725   :  { %2976 = vmatpush.bf16.msrb.mxu3 %v6615_v5 }
 0x726   :  { %2660 = vmatmul.bf16.gmra.mxu2 %v2631_v62 }
 0x729   :  { %2977 = vmatpush.bf16.msrb.mxu3 %v6614_v44 }
 0x736   :  { %2665 = vmatmul.bf16.gmra.mxu2 %v2632_v25 }
 0x741   :  { %v2646_v54 = vpop.f32.mrf.mxu2 }
 0x746   :  { %2670 = vmatmul.bf16.gmra.mxu2 %v2633_v6 }
 0x749   :  { %v2648_v33 = vpop.f32.mrf.mxu2 }
 0x756   :  { %2675 = vmatmul.bf16.gmra.mxu2 %v2634_v58 }
 0x766   :  { %2680 = vmatmul.bf16.gmra.mxu2 %v2635_v61  ;;  %v2575_v61 = vpop.f32.mrf.mxu1 }
 0x769   :  { %v2651_v11 = vpop.f32.mrf.mxu2 }
 0x76a   :  { %v2691_v17 = vmax.f32 %v2646_v54, %v2651_v11 }
 0x76e   :  { %v2578_v58 = vpop.f32.mrf.mxu1 }
 0x771   :  { %v2653_v51 = vpop.f32.mrf.mxu2 }
 0x772   :  { %v2692_v24 = vmax.f32 %v2648_v33, %v2653_v51 }
 0x776   :  { %2685 = vmatmul.bf16.gmra.mxu2 %v2636_v1 }
 0x799   :  { %v2656_v19 = vpop.f32.mrf.mxu2 }
 0x79a   :  { %v2693_v53 = vmax.f32 %v2691_v17, %v2656_v19 }
 0x79c   :  { %v2695_v16 = vsub.f32 %v2646_v54, %v2693_v53  ;;  %v2701_v8 = vsub.f32 %v2651_v11, %v2693_v53  ;;  %v2707_v56 = vsub.f32 %v2656_v19, %v2693_v53  ;;  %v2603_v11 = vperm.slane %v7692_v7, 2 }
 0x79e   :  { %v2697_v57 = vmul.f32 1.442695, %v2695_v16  ;;  %v2703_v28 = vmul.f32 1.442695, %v2701_v8  ;;  %v2709_v12 = vmul.f32 1.442695, %v2707_v56  ;;  %v7706_v16 = vadd.f32 %v2603_v11, %v7696_v60  ;;  %v2580_v60 = vpop.f32.mrf.mxu1 }
 0x79f   :  { %v7708_v8 = vadd.f32 %v2603_v11, %v2573_v46 }
 0x7a0   :  { %6836 = vpow2.f32 %v2697_v57 }
 0x7a1   :  { %6838 = vpow2.f32 %v2703_v28  ;;  %v2658_v30 = vpop.f32.mrf.mxu2 }
 0x7a2   :  { %v2694_v23 = vmax.f32 %v2692_v24, %v2658_v30  ;;  %6840 = vpow2.f32 %v2709_v12 }
 0x7a4   :  { %v2696_v18 = vsub.f32 %v2648_v33, %v2694_v23  ;;  %v2702_v36 = vsub.f32 %v2653_v51, %v2694_v23  ;;  %v2708_v27 = vsub.f32 %v2658_v30, %v2694_v23  ;;  %v7713_v30 = vadd.f32 %v2603_v11, %v7698_v50 }
 0x7a5   :  { %v7715_v23 = vadd.f32 %v2603_v11, %v2575_v61 }
 0x7a6   :  { %v6837_v25 = vpop.eup %6836  ;;  %v2699_v3 = vmul.f32 1.442695, %v2696_v18  ;;  %v2705_v14 = vmul.f32 1.442695, %v2702_v36  ;;  %v2711_v40 = vmul.f32 1.442695, %v2708_v27 }
 0x7a7   :  { %v6839_v34 = vpop.eup %6838 }
 0x7a8   :  { %v2713_v47 = vadd.f32 %v6839_v34, %v6837_v25  ;;  %6842 = vpow2.f32 %v2699_v3  ;;  %v6841_v26 = vpop.eup %6840  ;;  %v7717_v3 = vadd.f32 %v2603_v11, %v2578_v58 }
 0x7a9   :  { %6844 = vpow2.f32 %v2705_v14  ;;  %v7700_v31 = vpop.f32.mrf.mxu2  ;;  %v7719_v14 = vadd.f32 %v2603_v11, %v2580_v60 }
 0x7aa   :  { %v2715_v41 = vadd.f32 %v6841_v26, %v2713_v47  ;;  %6846 = vpow2.f32 %v2711_v40 }
 0x7ac   :  { %6848 = vrcp.f32 %v2715_v41  ;;  %v2728_v62 = vand.u32 2147483648, %v2715_v41  ;;  %v2726_v63 = vand.u32 2147483647, %v2715_v41  ;;  %vm2722_vm14 = vweird.f32 %v2715_v41 }
 0x7ae   :  { %v6843_v0 = vpop.eup %6842  ;;  %v2729_v55 = vor.u32 1.1754944e-38, %v2728_v62  ;;  %vm2727_vm0 = vcmp.eq.f32.partialorder %v2726_v63, 8.507059e+37 }
 0x7af   :  { %v6845_v42 = vpop.eup %6844 }
 0x7b0   :  { %v2714_v32 = vadd.f32 %v6845_v42, %v6843_v0  ;;  %v6847_v45 = vpop.eup %6846 }
 0x7b1   :  { %v7702_v59 = vpop.f32.mrf.mxu2 }
 0x7b2   :  { %v6849_v49 = vpop.eup %6848  ;;  %v2716_v1 = vadd.f32 %v6847_v45, %v2714_v32 }
 0x7b3   :  { %v2718_v20 = vmul.f32 %v6849_v49, %v2715_v41  ;;  %vm2723_vm13 = vweird.f32 %v6849_v49 }
 0x7b4   :  { %6850 = vrcp.f32 %v2716_v1  ;;  %vm2724_vm15 = vmor %vm2722_vm14, %vm2723_vm13  ;;  %v2740_v15 = vand.u32 2147483647, %v2716_v1  ;;  %v2742_v17 = vand.u32 2147483648, %v2716_v1  ;;  %vm2736_vm2 = vweird.f32 %v2716_v1 }
 0x7b5   :  { %v2719_v43 = vsub.f32 1.0, %v2718_v20 }
 0x7b6   :  { %v2743_v28 = vor.u32 1.1754944e-38, %v2742_v17  ;;  %vm2741_vm4 = vcmp.eq.f32.partialorder %v2740_v15, 8.507059e+37 }
 0x7b7   :  { %v2720_v37 = vmul.f32 %v6849_v49, %v2719_v43 }
 0x7b9   :  { %v2721_v6 = vadd.f32 %v6849_v49, %v2720_v37  ;;  %v2666_v22 = vpop.f32.mrf.mxu2 }
 0x7ba   :  { %v6851_v21 = vpop.eup %6850  ;;  %v2761_v50 = vmax.f32 %v7700_v31, %v2666_v22 }
 0x7bb   :  { %v2725_v9 = vsel %vm2724_vm15, %v6849_v49, %v2721_v6  ;;  %v2732_v54 = vmul.f32 %v6851_v21, %v2716_v1  ;;  %vm2737_vm1 = vweird.f32 %v6851_v21 }
 0x7bc   :  { %v2730_v33 = vsel %vm2727_vm0, %v2729_v55, %v2725_v9  ;;  %vm2738_vm3 = vmor %vm2736_vm2, %vm2737_vm1 }
 0x7bd   :  { %v2733_v51 = vsub.f32 1.0, %v2732_v54  ;;  %v2745_v19 = vmul.f32 %v6837_v25, %v2730_v33  ;;  %v2749_v53 = vmul.f32 %v6839_v34, %v2730_v33  ;;  %v2755_v18 = vmul.f32 %v6841_v26, %v2730_v33 }
 0x7bf   :  { %v2734_v52 = vmul.f32 %v6851_v21, %v2733_v51  ;;  %v2747_v12 = vmul.f32 %v2745_v19, %v7706_v16  ;;  %v2751_v29 = vmul.f32 %v2749_v53, %v7708_v8  ;;  %v2757_v46 = vmul.f32 %v2755_v18, %v7717_v3 }
 0x7c1   :  { %v2735_v56 = vadd.f32 %v6851_v21, %v2734_v52  ;;  %v2668_v57 = vpop.f32.mrf.mxu2  ;;  %v2753_v34 = vadd.f32 %v2751_v29, %v2747_v12 }
 0x7c2   :  { %v2762_v62 = vmax.f32 %v7702_v59, %v2668_v57 }
 0x7c3   :  { %v2739_v24 = vsel %vm2738_vm3, %v6851_v21, %v2735_v56 }
 0x7c4   :  { %v2744_v35 = vsel %vm2741_vm4, %v2743_v28, %v2739_v24 }
 0x7c5   :  { %v2746_v36 = vmul.f32 %v6843_v0, %v2744_v35  ;;  %v2750_v27 = vmul.f32 %v6845_v42, %v2744_v35  ;;  %v2756_v25 = vmul.f32 %v6847_v45, %v2744_v35  ;;  %v2759_v0 = vadd.f32 %v2757_v46, %v2753_v34 }
 0x7c7   :  { %v2748_v40 = vmul.f32 %v2746_v36, %v7713_v30  ;;  %v2752_v5 = vmul.f32 %v2750_v27, %v7715_v23  ;;  %v2758_v47 = vmul.f32 %v2756_v25, %v7719_v14 }
 0x7c9   :  { %v2671_v41 = vpop.f32.mrf.mxu2  ;;  %v2754_v26 = vadd.f32 %v2752_v5, %v2748_v40 }
 0x7ca   :  { %v2763_v44 = vmax.f32 %v2761_v50, %v2671_v41 }
 0x7cb   :  { %v2760_v42 = vadd.f32 %v2758_v47, %v2754_v26 }
 0x7cc   :  { %v2765_v32 = vsub.f32 %v7700_v31, %v2763_v44  ;;  %v2771_v45 = vsub.f32 %v2666_v22, %v2763_v44  ;;  %v2777_v49 = vsub.f32 %v2671_v41, %v2763_v44 }
 0x7cd   :  { %v2901_v61 = vpack.c.bf16 %v2760_v42, %v2759_v0 }
 0x7ce   :  { %v2767_v1 = vmul.f32 1.442695, %v2765_v32  ;;  %v2773_v20 = vmul.f32 1.442695, %v2771_v45  ;;  %v2779_v43 = vmul.f32 1.442695, %v2777_v49 }
 0x7cf   :  { %2978 = vmatmul.bf16.vlgmr.msrb.gmra.mxu3 %v2901_v61 }
 0x7d0   :  { %6852 = vpow2.f32 %v2767_v1 }
 0x7d1   :  { %6854 = vpow2.f32 %v2773_v20  ;;  %v2673_v37 = vpop.f32.mrf.mxu2 }
 0x7d2   :  { %v2764_v63 = vmax.f32 %v2762_v62, %v2673_v37  ;;  %6856 = vpow2.f32 %v2779_v43 }
 0x7d4   :  { %v2766_v6 = vsub.f32 %v7702_v59, %v2764_v63  ;;  %v2772_v21 = vsub.f32 %v2668_v57, %v2764_v63  ;;  %v2778_v58 = vsub.f32 %v2673_v37, %v2764_v63 }
 0x7d6   :  { %v6853_v55 = vpop.eup %6852  ;;  %v2769_v31 = vmul.f32 1.442695, %v2766_v6  ;;  %v2775_v22 = vmul.f32 1.442695, %v2772_v21  ;;  %v2781_v54 = vmul.f32 1.442695, %v2778_v58 }
 0x7d7   :  { %v6855_v9 = vpop.eup %6854 }
 0x7d8   :  { %v2783_v33 = vadd.f32 %v6855_v9, %v6853_v55  ;;  %6858 = vpow2.f32 %v2769_v31  ;;  %v6857_v11 = vpop.eup %6856 }
 0x7d9   :  { %6860 = vpow2.f32 %v2775_v22  ;;  %v7729_v51 = vpop.f32.mrf.mxu2 }
 0x7da   :  { %v2785_v15 = vadd.f32 %v6857_v11, %v2783_v33  ;;  %6862 = vpow2.f32 %v2781_v54 }
 0x7dc   :  { %6864 = vrcp.f32 %v2785_v15  ;;  %v2798_v29 = vand.u32 2147483648, %v2785_v15  ;;  %v2796_v60 = vand.u32 2147483647, %v2785_v15  ;;  %vm2792_vm6 = vweird.f32 %v2785_v15 }
 0x7de   :  { %v6859_v17 = vpop.eup %6858  ;;  %v2799_v27 = vor.u32 1.1754944e-38, %v2798_v29  ;;  %vm2797_vm8 = vcmp.eq.f32.partialorder %v2796_v60, 8.507059e+37 }
 0x7df   :  { %v6861_v19 = vpop.eup %6860 }
 0x7e0   :  { %v2784_v53 = vadd.f32 %v6861_v19, %v6859_v17  ;;  %v6863_v59 = vpop.eup %6862 }
 0x7e1   :  { %v7731_v52 = vpop.f32.mrf.mxu2 }
 0x7e2   :  { %v6865_v56 = vpop.eup %6864  ;;  %v2786_v57 = vadd.f32 %v6863_v59, %v2784_v53 }
 0x7e3   :  { %v2788_v28 = vmul.f32 %v6865_v56, %v2785_v15  ;;  %vm2793_vm5 = vweird.f32 %v6865_v56 }
 0x7e4   :  { %6866 = vrcp.f32 %v2786_v57  ;;  %vm2794_vm7 = vmor %vm2792_vm6, %vm2793_vm5  ;;  %v2810_v50 = vand.u32 2147483647, %v2786_v57  ;;  %v2812_v46 = vand.u32 2147483648, %v2786_v57  ;;  %vm2806_vm10 = vweird.f32 %v2786_v57 }
 0x7e5   :  { %v2789_v12 = vsub.f32 1.0, %v2788_v28 }
 0x7e6   :  { %v2813_v42 = vor.u32 1.1754944e-38, %v2812_v46  ;;  %vm2811_vm12 = vcmp.eq.f32.partialorder %v2810_v50, 8.507059e+37 }
 0x7e7   :  { %v2790_v24 = vmul.f32 %v6865_v56, %v2789_v12 }
 0x7e9   :  { %v2791_v35 = vadd.f32 %v6865_v56, %v2790_v24  ;;  %v2681_v18 = vpop.f32.mrf.mxu2 }
 0x7ea   :  { %v6867_v36 = vpop.eup %6866  ;;  %v2831_v21 = vmax.f32 %v7729_v51, %v2681_v18 }
 0x7eb   :  { %v2795_v25 = vsel %vm2794_vm7, %v6865_v56, %v2791_v35  ;;  %v2802_v34 = vmul.f32 %v6867_v36, %v2786_v57  ;;  %vm2807_vm9 = vweird.f32 %v6867_v36 }
 0x7ec   :  { %v2800_v40 = vsel %vm2797_vm8, %v2799_v27, %v2795_v25  ;;  %vm2808_vm11 = vmor %vm2806_vm10, %vm2807_vm9 }
 0x7ed   :  { %v2803_v5 = vsub.f32 1.0, %v2802_v34  ;;  %v2815_v41 = vmul.f32 %v6853_v55, %v2800_v40  ;;  %v2819_v26 = vmul.f32 %v6855_v9, %v2800_v40  ;;  %v2825_v1 = vmul.f32 %v6857_v11, %v2800_v40 }
 0x7ef   :  { %v2804_v47 = vmul.f32 %v6867_v36, %v2803_v5  ;;  %v2817_v45 = vmul.f32 %v2815_v41, %v7706_v16  ;;  %v2821_v49 = vmul.f32 %v2819_v26, %v7708_v8  ;;  %v2827_v31 = vmul.f32 %v2825_v1, %v7717_v3 }
 0x7f1   :  { %v2805_v44 = vadd.f32 %v6867_v36, %v2804_v47  ;;  %v2683_v0 = vpop.f32.mrf.mxu2  ;;  %v2823_v6 = vadd.f32 %v2821_v49, %v2817_v45 }
 0x7f2   :  { %v2832_v57 = vmax.f32 %v7731_v52, %v2683_v0 }
 0x7f3   :  { %v2809_v32 = vsel %vm2808_vm11, %v6867_v36, %v2805_v44  ;;  %v2829_v54 = vadd.f32 %v2827_v31, %v2823_v6 }
 0x7f4   :  { %v2814_v61 = vsel %vm2811_vm12, %v2813_v42, %v2809_v32 }
 0x7f5   :  { %v2826_v20 = vmul.f32 %v6863_v59, %v2814_v61  ;;  %v2816_v43 = vmul.f32 %v6859_v17, %v2814_v61  ;;  %v2820_v62 = vmul.f32 %v6861_v19, %v2814_v61 }
 0x7f7   :  { %v2818_v37 = vmul.f32 %v2816_v43, %v7713_v30  ;;  %v2822_v63 = vmul.f32 %v2820_v62, %v7715_v23  ;;  %v2828_v22 = vmul.f32 %v2826_v20, %v7719_v14 }
 0x7f9   :  { %v2686_v58 = vpop.f32.mrf.mxu2  ;;  %v2824_v55 = vadd.f32 %v2822_v63, %v2818_v37 }
 0x7fa   :  { %v2833_v9 = vmax.f32 %v2831_v21, %v2686_v58 }
 0x7fb   :  { %v2830_v33 = vadd.f32 %v2828_v22, %v2824_v55 }
 0x7fc   :  { %v2835_v11 = vsub.f32 %v7729_v51, %v2833_v9  ;;  %v2841_v15 = vsub.f32 %v2681_v18, %v2833_v9  ;;  %v2847_v17 = vsub.f32 %v2686_v58, %v2833_v9 }
 0x7fd   :  { %v2902_v19 = vpack.c.bf16 %v2830_v33, %v2829_v54 }
 0x7fe   :  { %v2837_v53 = vmul.f32 1.442695, %v2835_v11  ;;  %v2843_v59 = vmul.f32 1.442695, %v2841_v15  ;;  %v2849_v56 = vmul.f32 1.442695, %v2847_v17 }
 0x7ff   :  { %2983 = vmatmul.bf16.gmra.mxu3 %v2902_v19 }
 0x800   :  { %6868 = vpow2.f32 %v2837_v53 }
 0x801   :  { %6870 = vpow2.f32 %v2843_v59  ;;  %v2688_v28 = vpop.f32.mrf.mxu2 }
 0x802   :  { %v2834_v12 = vmax.f32 %v2832_v57, %v2688_v28  ;;  %6872 = vpow2.f32 %v2849_v56 }
 0x804   :  { %v2836_v29 = vsub.f32 %v7731_v52, %v2834_v12  ;;  %v2842_v24 = vsub.f32 %v2683_v0, %v2834_v12  ;;  %v2848_v60 = vsub.f32 %v2688_v28, %v2834_v12 }
 0x806   :  { %v6869_v35 = vpop.eup %6868  ;;  %v2839_v51 = vmul.f32 1.442695, %v2836_v29  ;;  %v2845_v18 = vmul.f32 1.442695, %v2842_v24  ;;  %v2851_v27 = vmul.f32 1.442695, %v2848_v60 }
 0x807   :  { %v6871_v36 = vpop.eup %6870 }
 0x808   :  { %v2853_v25 = vadd.f32 %v6871_v36, %v6869_v35  ;;  %6874 = vpow2.f32 %v2839_v51  ;;  %v6873_v34 = vpop.eup %6872 }
 0x809   :  { %6876 = vpow2.f32 %v2845_v18 }
 0x80a   :  { %v2855_v40 = vadd.f32 %v6873_v34, %v2853_v25  ;;  %6878 = vpow2.f32 %v2851_v27 }
 0x80c   :  { %6880 = vrcp.f32 %v2855_v40  ;;  %v2868_v0 = vand.u32 2147483648, %v2855_v40  ;;  %v2866_v32 = vand.u32 2147483647, %v2855_v40  ;;  %vm2862_vm14 = vweird.f32 %v2855_v40 }
 0x80e   :  { %v6875_v5 = vpop.eup %6874  ;;  %v2869_v61 = vor.u32 1.1754944e-38, %v2868_v0  ;;  %vm2867_vm0 = vcmp.eq.f32.partialorder %v2866_v32, 8.507059e+37 }
 0x80f   :  { %v6877_v50 = vpop.eup %6876 }
 0x810   :  { %v2854_v46 = vadd.f32 %v6877_v50, %v6875_v5  ;;  %v6879_v47 = vpop.eup %6878 }
 0x812   :  { %v6881_v41 = vpop.eup %6880  ;;  %v2856_v52 = vadd.f32 %v6879_v47, %v2854_v46 }
 0x813   :  { %v2858_v26 = vmul.f32 %v6881_v41, %v2855_v40  ;;  %vm2863_vm13 = vweird.f32 %v6881_v41 }
 0x814   :  { %6882 = vrcp.f32 %v2856_v52  ;;  %vm2864_vm15 = vmor %vm2862_vm14, %vm2863_vm13  ;;  %v2880_v37 = vand.u32 2147483647, %v2856_v52  ;;  %v2882_v63 = vand.u32 2147483648, %v2856_v52  ;;  %vm2876_vm2 = vweird.f32 %v2856_v52 }
 0x815   :  { %v2859_v44 = vsub.f32 1.0, %v2858_v26 }
 0x816   :  { %v2883_v31 = vor.u32 1.1754944e-38, %v2882_v63  ;;  %vm2881_vm4 = vcmp.eq.f32.partialorder %v2880_v37, 8.507059e+37  ;;  %v6636_v37 = vld [vmem:[#allocation10 + $0xf4] sm:$0xf] }
 0x817   :  { %v2860_v42 = vmul.f32 %v6881_v41, %v2859_v44 }
 0x819   :  { %v2861_v45 = vadd.f32 %v6881_v41, %v2860_v42 }
 0x81a   :  { %v6883_v49 = vpop.eup %6882 }
 0x81b   :  { %v2865_v1 = vsel %vm2864_vm15, %v6881_v41, %v2861_v45  ;;  %v2872_v20 = vmul.f32 %v6883_v49, %v2856_v52  ;;  %vm2877_vm1 = vweird.f32 %v6883_v49 }
 0x81c   :  { %v2870_v43 = vsel %vm2867_vm0, %v2869_v61, %v2865_v1  ;;  %vm2878_vm3 = vmor %vm2876_vm2, %vm2877_vm1 }
 0x81d   :  { %v2873_v62 = vsub.f32 1.0, %v2872_v20  ;;  %v2885_v21 = vmul.f32 %v6869_v35, %v2870_v43  ;;  %v2889_v58 = vmul.f32 %v6871_v36, %v2870_v43  ;;  %v2895_v11 = vmul.f32 %v6873_v34, %v2870_v43  ;;  %v6005_v43 = vld [vmem:[#allocation10 + $0xf0] sm:$0xf] }
 0x81f   :  { %v2874_v6 = vmul.f32 %v6883_v49, %v2873_v62  ;;  %v2887_v9 = vmul.f32 %v2885_v21, %v7706_v16  ;;  %v2891_v54 = vmul.f32 %v2889_v58, %v7708_v8  ;;  %v2897_v28 = vmul.f32 %v2895_v11, %v7717_v3  ;;  %v6637_v62 = vld [vmem:[#allocation10 + $0xf4] sm:$0xf0]  ;;  %v6007_v21 = vld [vmem:[#allocation10 + $0xf8] sm:$0xf0]  ;;  %v5999_v11 = vld [vmem:[#allocation10 + $0xe8] sm:$0xf0] }
 0x820   :  { %v2921_v8 = vperm.slane %v7692_v7, 3  ;;  %v6010_v58 = vor.u32 %v6636_v37, %v6007_v21 }
 0x821   :  { %v2875_v55 = vadd.f32 %v6883_v49, %v2874_v6  ;;  %v2893_v56 = vadd.f32 %v2891_v54, %v2887_v9  ;;  %v6006_v6 = vor.u32 %v6637_v62, %v6005_v43  ;;  %v6634_v9 = vld [vmem:[#allocation10 + $0xe4] sm:$0xf] }
 0x822   :  { %3265 = vmatpush.bf16.msra.mxu1 %v6010_v58 }
 0x823   :  { %v2879_v22 = vsel %vm2878_vm3, %v6883_v49, %v2875_v55  ;;  %v2899_v29 = vadd.f32 %v2897_v28, %v2893_v56  ;;  %3241 = vmatpush.bf16.msra.mxu0 %v6006_v6  ;;  %v5991_v28 = vld [vmem:[#allocation10 + $0xd8] sm:$0xf0] }
 0x824   :  { %v2884_v33 = vsel %vm2881_vm4, %v2883_v31, %v2879_v22  ;;  %v5997_v31 = vld [vmem:[#allocation10 + $0xe0] sm:$0xf]  ;;  %v6635_v22 = vld [vmem:[#allocation10 + $0xe4] sm:$0xf0] }
 0x825   :  { %v2896_v15 = vmul.f32 %v6879_v47, %v2884_v33  ;;  %v2886_v17 = vmul.f32 %v6875_v5, %v2884_v33  ;;  %v2890_v19 = vmul.f32 %v6877_v50, %v2884_v33  ;;  %v5998_v33 = vor.u32 %v6635_v22, %v5997_v31 }
 0x827   :  { %v2888_v53 = vmul.f32 %v2886_v17, %v7713_v30  ;;  %v2892_v59 = vmul.f32 %v2890_v19, %v7715_v23  ;;  %v2898_v12 = vmul.f32 %v2896_v15, %v7719_v14  ;;  %v6002_v15 = vor.u32 %v6634_v9, %v5999_v11  ;;  %3242 = vmatpush.bf16.msra.mxu0 %v5998_v33  ;;  %v5989_v19 = vld [vmem:[#allocation10 + $0xd0] sm:$0xf] }
 0x829   :  { %v2894_v57 = vadd.f32 %v2892_v59, %v2888_v53  ;;  %3266 = vmatpush.bf16.msra.mxu1 %v6002_v15  ;;  %v6633_v53 = vld [vmem:[#allocation10 + $0xd4] sm:$0xf0]  ;;  %v6632_v59 = vld [vmem:[#allocation10 + $0xd4] sm:$0xf] }
 0x82b   :  { %v2900_v24 = vadd.f32 %v2898_v12, %v2894_v57  ;;  %v5990_v57 = vor.u32 %v6633_v53, %v5989_v19  ;;  %v5994_v12 = vor.u32 %v6632_v59, %v5991_v28  ;;  %v7789_v19 = vperm.slane %v7692_v7, 5 }
 0x82d   :  { %v2903_v16 = vpack.c.bf16 %v2900_v24, %v2899_v29  ;;  %3243 = vmatpush.bf16.msra.mxu0 %v5990_v57  ;;  %3267 = vmatpush.bf16.msra.mxu1 %v5994_v12  ;;  %v5981_v24 = vld [vmem:[#allocation10 + $0xc0] sm:$0xf]  ;;  %v7793_v57 = vperm.slane %v7692_v7, 6 }
 0x82f   :  { %2988 = vmatmul.bf16.gmra.mxu3 %v2903_v16  ;;  %v6631_v16 = vld [vmem:[#allocation10 + $0xc4] sm:$0xf0] }
 0x852   :  { %v2979_v60 = vpop.f32.mrf.mxu3 }
 0x853   :  { %v2980_v35 = vadd.f32 %v2979_v60, %v2921_v8 }
 0x855   :  { %v2994_v51 = vadd.f32 %v2980_v35, %v7654_v2  ;;  %v5982_v35 = vor.u32 %v6631_v16, %v5981_v24 }
 0x857   :  { %3000 = vadd.xlane.f32.xlu0 %v2994_v51  ;;  %3244 = vmatpush.bf16.msra.mxu0 %v5982_v35 }
 0x85a   :  { %v2981_v30 = vpop.f32.mrf.mxu3 }
 0x85b   :  { %v2982_v18 = vadd.f32 %v2981_v30, %v2921_v8 }
 0x85d   :  { %v2995_v23 = vadd.f32 %v2982_v18, %v7657_v10  ;;  %v5973_v18 = vld [vmem:[#allocation10 + $0xb0] sm:$0xf] }
 0x85f   :  { %3002 = vadd.xlane.f32.xlu1 %v2995_v23 }
 0x882   :  { %v2984_v36 = vpop.f32.mrf.mxu3 }
 0x883   :  { %v2985_v3 = vadd.f32 %v2984_v36, %v2921_v8  ;;  %v6628_v36 = vld [vmem:[#allocation10 + $0xb4] sm:$0xf] }
 0x885   :  { %v2996_v14 = vadd.f32 %v2985_v3, %v7668_v13 }
 0x887   :  { %3004 = vadd.xlane.f32.xlu2 %v2996_v14 }
 0x88a   :  { %v2986_v27 = vpop.f32.mrf.mxu3 }
 0x88b   :  { %v2987_v25 = vadd.f32 %v2986_v27, %v2921_v8 }
 0x88d   :  { %v2997_v34 = vadd.f32 %v2987_v25, %v7671_v39  ;;  %v5965_v25 = vld [vmem:[#allocation10 + $0xa0] sm:$0xf] }
 0x88f   :  { %3006 = vadd.xlane.f32.xlu0 %v2997_v34 }
 0x8b2   :  { %v2989_v40 = vpop.f32.mrf.mxu3 }
 0x8b3   :  { %v2990_v5 = vadd.f32 %v2989_v40, %v2921_v8  ;;  %v6626_v40 = vld [vmem:[#allocation10 + $0xa4] sm:$0xf] }
 0x8b5   :  { %v2998_v2 = vadd.f32 %v2990_v5, %v7682_v38 }
 0x8b7   :  { %3008 = vadd.xlane.f32.xlu1 %v2998_v2 }
 0x8ba   :  { %v2991_v50 = vpop.f32.mrf.mxu3 }
 0x8bb   :  { %v2992_v46 = vadd.f32 %v2991_v50, %v2921_v8  ;;  %v6630_v8 = vld [vmem:[#allocation10 + $0xc4] sm:$0xf] }
 0x8bd   :  { %v2999_v10 = vadd.f32 %v2992_v46, %v7685_v4  ;;  %v5957_v46 = vld [vmem:[#allocation10 + $0x90] sm:$0xf] }
 0x8bf   :  { %3010 = vadd.xlane.f32.xlu2 %v2999_v10 }
 0x8ca   :  { %v3001_v47 = vpop.xlane.xlu0 %3000 }
 0x8cb   :  { %v3012_v41 = vmul.f32 %v3001_v47, %v7490_v48  ;;  %v6624_v47 = vld [vmem:[#allocation10 + $0x94] sm:$0xf] }
 0x8cd   :  { %v7757_v13 = vsub.f32 %v2994_v51, %v3012_v41  ;;  %v5983_v51 = vld [vmem:[#allocation10 + $0xc8] sm:$0xf0] }
 0x8ce   :  { %v5986_v30 = vor.u32 %v6630_v8, %v5983_v51 }
 0x8cf   :  { %v3024_v52 = vmul.f32 %v7757_v13, %v7757_v13 }
 0x8d0   :  { %3268 = vmatpush.bf16.msra.mxu1 %v5986_v30 }
 0x8d1   :  { %3030 = vadd.xlane.f32.xlu0 %v3024_v52  ;;  %v5959_v52 = vld [vmem:[#allocation10 + $0x98] sm:$0xf0] }
 0x8d2   :  { %v3003_v39 = vpop.xlane.xlu1 %3002 }
 0x8d3   :  { %v3013_v26 = vmul.f32 %v3003_v39, %v7490_v48 }
 0x8d5   :  { %v7762_v44 = vsub.f32 %v2995_v23, %v3013_v26  ;;  %v6629_v23 = vld [vmem:[#allocation10 + $0xb4] sm:$0xf0]  ;;  %v5962_v26 = vor.u32 %v6624_v47, %v5959_v52 }
 0x8d6   :  { %v5974_v3 = vor.u32 %v6629_v23, %v5973_v18 }
 0x8d7   :  { %v3025_v38 = vmul.f32 %v7762_v44, %v7762_v44 }
 0x8d8   :  { %3245 = vmatpush.bf16.msra.mxu0 %v5974_v3 }
 0x8d9   :  { %3032 = vadd.xlane.f32.xlu1 %v3025_v38 }
 0x8fa   :  { %v3005_v4 = vpop.xlane.xlu2 %3004 }
 0x8fb   :  { %v3014_v0 = vmul.f32 %v3005_v4, %v7490_v48  ;;  %v5949_v4 = vld [vmem:[#allocation10 + $0x80] sm:$0xf] }
 0x8fd   :  { %v7767_v42 = vsub.f32 %v2996_v14, %v3014_v0  ;;  %v5975_v14 = vld [vmem:[#allocation10 + $0xb8] sm:$0xf0]  ;;  %v6623_v0 = vld [vmem:[#allocation10 + $0x84] sm:$0xf0] }
 0x8fe   :  { %v5978_v27 = vor.u32 %v6628_v36, %v5975_v14 }
 0x8ff   :  { %v3026_v32 = vmul.f32 %v7767_v42, %v7767_v42 }
 0x900   :  { %3269 = vmatpush.bf16.msra.mxu1 %v5978_v27 }
 0x901   :  { %3034 = vadd.xlane.f32.xlu2 %v3026_v32  ;;  %v6622_v32 = vld [vmem:[#allocation10 + $0x84] sm:$0xf] }
 0x902   :  { %v3007_v45 = vpop.xlane.xlu0 %3006 }
 0x903   :  { %v3015_v49 = vmul.f32 %v3007_v45, %v7490_v48 }
 0x905   :  { %v7772_v61 = vsub.f32 %v2997_v34, %v3015_v49  ;;  %v6627_v34 = vld [vmem:[#allocation10 + $0xa4] sm:$0xf0]  ;;  %v5950_v49 = vor.u32 %v6623_v0, %v5949_v4 }
 0x906   :  { %v5966_v5 = vor.u32 %v6627_v34, %v5965_v25 }
 0x907   :  { %v3027_v1 = vmul.f32 %v7772_v61, %v7772_v61 }
 0x908   :  { %3246 = vmatpush.bf16.msra.mxu0 %v5966_v5 }
 0x909   :  { %3036 = vadd.xlane.f32.xlu0 %v3027_v1  ;;  %v5951_v1 = vld [vmem:[#allocation10 + $0x88] sm:$0xf0] }
 0x92a   :  { %v3009_v20 = vpop.xlane.xlu1 %3008 }
 0x92b   :  { %v3016_v63 = vmul.f32 %v3009_v20, %v7490_v48  ;;  %v5954_v20 = vor.u32 %v6622_v32, %v5951_v1 }
 0x92d   :  { %v7777_v55 = vsub.f32 %v2998_v2, %v3016_v63  ;;  %v5967_v2 = vld [vmem:[#allocation10 + $0xa8] sm:$0xf0] }
 0x92e   :  { %v5970_v50 = vor.u32 %v6626_v40, %v5967_v2 }
 0x92f   :  { %v3028_v54 = vmul.f32 %v7777_v55, %v7777_v55 }
 0x930   :  { %3270 = vmatpush.bf16.msra.mxu1 %v5970_v50 }
 0x931   :  { %3038 = vadd.xlane.f32.xlu1 %v3028_v54 }
 0x932   :  { %v3011_v17 = vpop.xlane.xlu2 %3010 }
 0x933   :  { %v3017_v56 = vmul.f32 %v3011_v17, %v7490_v48 }
 0x934   :  { %3271 = vmatpush.bf16.msra.mxu1 %v5962_v26 }
 0x935   :  { %v7782_v29 = vsub.f32 %v2999_v10, %v3017_v56  ;;  %v6625_v10 = vld [vmem:[#allocation10 + $0x94] sm:$0xf0] }
 0x936   :  { %v5958_v41 = vor.u32 %v6625_v10, %v5957_v46 }
 0x937   :  { %v3029_v60 = vmul.f32 %v7782_v29, %v7782_v29 }
 0x938   :  { %3247 = vmatpush.bf16.msra.mxu0 %v5958_v41  ;;  %3272 = vmatpush.bf16.msra.mxu1 %v5954_v20  ;;  %v6644_v20 = vld [vmem:[#allocation11 + $0xb0] sm:$0xff] }
 0x939   :  { %3040 = vadd.xlane.f32.xlu2 %v3029_v60 }
 0x93c   :  { %3248 = vmatpush.bf16.msra.mxu0 %v5950_v49 }
 0x944   :  { %v3031_v39 = vpop.xlane.xlu0 %3030 }
 0x945   :  { %v3042_v38 = vmul.f32 %v3031_v39, %v7490_v48 }
 0x947   :  { %v3048_v45 = vadd.f32 1e-05, %v3042_v38 }
 0x949   :  { %6884 = vrsqrt.f32 %v3048_v45  ;;  %vm3060_vm6 = vweird.f32 %v3048_v45 }
 0x94c   :  { %v3033_v43 = vpop.xlane.xlu1 %3032 }
 0x94d   :  { %v3043_v62 = vmul.f32 %v3033_v43, %v7490_v48  ;;  %v6652_v43 = vld [vmem:[#allocation11 + $0xf0] sm:$0xff] }
 0x94f   :  { %v6885_v37 = vpop.eup %6884  ;;  %v3049_v63 = vadd.f32 1e-05, %v3043_v62 }
 0x950   :  { %v3055_v6 = vmul.f32 %v6885_v37, %v3048_v45  ;;  %vm3061_vm5 = vweird.f32 %v6885_v37  ;;  %v6653_v45 = vld [vmem:[#allocation11 + $0xf8] sm:$0xff] }
 0x951   :  { %6886 = vrsqrt.f32 %v3049_v63  ;;  %vm3062_vm7 = vmor %vm3060_vm6, %vm3061_vm5  ;;  %vm3070_vm9 = vweird.f32 %v3049_v63  ;;  %3461 = vmatpush.bf16.msrb.mxu0 %v6653_v45 }
 0x952   :  { %v3056_v21 = vmul.f32 %v6885_v37, %v3055_v6  ;;  %v6643_v6 = vld [vmem:[#allocation11 + $0xa8] sm:$0xff] }
 0x954   :  { %v3057_v58 = vmul.f32 0.5, %v3056_v21  ;;  %v6651_v21 = vld [vmem:[#allocation11 + $0xe8] sm:$0xff] }
 0x955   :  { %3462 = vmatpush.bf16.msrb.mxu0 %v6652_v43 }
 0x956   :  { %v3058_v31 = vsub.f32 1.5, %v3057_v58 }
 0x957   :  { %v6887_v22 = vpop.eup %6886 }
 0x958   :  { %v3059_v9 = vmul.f32 %v6885_v37, %v3058_v31  ;;  %v3065_v54 = vmul.f32 %v6887_v22, %v3049_v63  ;;  %vm3071_vm8 = vweird.f32 %v6887_v22 }
 0x959   :  { %vm3072_vm10 = vmor %vm3070_vm9, %vm3071_vm8  ;;  %3463 = vmatpush.bf16.msrb.mxu0 %v6651_v21 }
 0x95a   :  { %v3066_v33 = vmul.f32 %v6887_v22, %v3065_v54  ;;  %v3063_v11 = vsel %vm3062_vm7, %v6885_v37, %v3059_v9  ;;  %v6650_v9 = vld [vmem:[#allocation11 + $0xe0] sm:$0xff] }
 0x95b   :  { %v3114_v53 = vmul.f32 %v3063_v11, %v7757_v13 }
 0x95c   :  { %v3067_v15 = vmul.f32 0.5, %v3066_v33 }
 0x95d   :  { %v3121_v28 = vmul.f32 %v7789_v19, %v3114_v53  ;;  %3464 = vmatpush.bf16.msrb.mxu0 %v6650_v9 }
 0x95e   :  { %v3068_v17 = vsub.f32 1.5, %v3067_v15 }
 0x95f   :  { %v7799_v16 = vadd.f32 %v7793_v57, %v3121_v28 }
 0x960   :  { %v3069_v59 = vmul.f32 %v6887_v22, %v3068_v17 }
 0x962   :  { %v3073_v56 = vsel %vm3072_vm10, %v6887_v22, %v3069_v59  ;;  %v6642_v22 = vld [vmem:[#allocation11 + $0xa0] sm:$0xff] }
 0x963   :  { %v3115_v12 = vmul.f32 %v3073_v56, %v7762_v44 }
 0x965   :  { %v3122_v24 = vmul.f32 %v7789_v19, %v3115_v12 }
 0x967   :  { %v7802_v8 = vadd.f32 %v7793_v57, %v3122_v24 }
 0x969   :  { %v3134_v13 = vpack.c.bf16 %v7802_v8, %v7799_v16 }
 0x96b   :  { %3249 = vmatmul.bf16.vlgmr.msra.gmra.mxu0 %v3134_v13  ;;  %3273 = vmatmul.bf16.vlgmr.msra.gmra.mxu1 %v3134_v13 }
 0x974   :  { %v3035_v60 = vpop.xlane.xlu2 %3034 }
 0x975   :  { %v3044_v7 = vmul.f32 %v3035_v60, %v7490_v48 }
 0x977   :  { %v3050_v35 = vadd.f32 1e-05, %v3044_v7 }
 0x979   :  { %6888 = vrsqrt.f32 %v3050_v35  ;;  %vm3080_vm12 = vweird.f32 %v3050_v35 }
 0x97c   :  { %v3037_v51 = vpop.xlane.xlu0 %3036 }
 0x97d   :  { %v3045_v44 = vmul.f32 %v3037_v51, %v7490_v48 }
 0x97f   :  { %v6889_v30 = vpop.eup %6888  ;;  %v3051_v18 = vadd.f32 1e-05, %v3045_v44  ;;  %v6641_v44 = vld [vmem:[#allocation11 + $0x98] sm:$0xff] }
 0x980   :  { %v3075_v23 = vmul.f32 %v6889_v30, %v3050_v35  ;;  %vm3081_vm11 = vweird.f32 %v6889_v30 }
 0x981   :  { %6890 = vrsqrt.f32 %v3051_v18  ;;  %vm3082_vm13 = vmor %vm3080_vm12, %vm3081_vm11  ;;  %vm3090_vm15 = vweird.f32 %v3051_v18 }
 0x982   :  { %v3076_v36 = vmul.f32 %v6889_v30, %v3075_v23  ;;  %v6647_v23 = vld [vmem:[#allocation11 + $0xc8] sm:$0xff] }
 0x984   :  { %v3077_v3 = vmul.f32 0.5, %v3076_v36  ;;  %v6638_v36 = vld [vmem:[#allocation11 + $0x80] sm:$0xff] }
 0x986   :  { %v3078_v14 = vsub.f32 1.5, %v3077_v3  ;;  %v5946_v3 = vld [vmem:[%s8193_s9 + $0x2] sm:$0x3] }
 0x987   :  { %v6891_v27 = vpop.eup %6890 }
 0x988   :  { %v3079_v25 = vmul.f32 %v6889_v30, %v3078_v14  ;;  %v3085_v34 = vmul.f32 %v6891_v27, %v3051_v18  ;;  %vm3091_vm14 = vweird.f32 %v6891_v27  ;;  %v6648_v18 = vld [vmem:[#allocation11 + $0xd0] sm:$0xff] }
 0x989   :  { %vm3092_vm0 = vmor %vm3090_vm15, %vm3091_vm14 }
 0x98a   :  { %v3086_v40 = vmul.f32 %v6891_v27, %v3085_v34  ;;  %v3083_v5 = vsel %vm3082_vm13, %v6889_v30, %v3079_v25  ;;  %v6649_v30 = vld [vmem:[#allocation11 + $0xd8] sm:$0xff]  ;;  %v3157_v25 = vperm.slane %v5946_v3, 0  ;;  %v3158_v34 = vperm.slane %v5946_v3, 1 }
 0x98b   :  { %v3116_v46 = vmul.f32 %v3083_v5, %v7767_v42  ;;  %3465 = vmatpush.bf16.msrb.mxu0 %v6649_v30 }
 0x98c   :  { %v3087_v2 = vmul.f32 0.5, %v3086_v40 }
 0x98d   :  { %v3123_v52 = vmul.f32 %v7789_v19, %v3116_v46 }
 0x98e   :  { %v3088_v50 = vsub.f32 1.5, %v3087_v2 }
 0x98f   :  { %v7813_v26 = vadd.f32 %v7793_v57, %v3123_v52  ;;  %3466 = vmatpush.bf16.msrb.mxu0 %v6648_v18 }
 0x990   :  { %v3089_v10 = vmul.f32 %v6891_v27, %v3088_v50 }
 0x992   :  { %v3093_v47 = vsel %vm3092_vm0, %v6891_v27, %v3089_v10 }
 0x993   :  { %v3117_v41 = vmul.f32 %v3093_v47, %v7772_v61  ;;  %v6645_v61 = vld [vmem:[#allocation11 + $0xb8] sm:$0xff]  ;;  %3467 = vmatpush.bf16.msrb.mxu0 %v6647_v23 }
 0x994   :  { %3437 = vmatpush.bf16.msra.mxu3 %v6645_v61 }
 0x995   :  { %v3124_v39 = vmul.f32 %v7789_v19, %v3117_v41 }
 0x997   :  { %v7816_v38 = vadd.f32 %v7793_v57, %v3124_v39 }
 0x998   :  { %3438 = vmatpush.bf16.msra.mxu3 %v6644_v20 }
 0x999   :  { %v3135_v4 = vpack.c.bf16 %v7816_v38, %v7813_v26 }
 0x99b   :  { %3254 = vmatmul.bf16.gmra.mxu0 %v3135_v4  ;;  %3278 = vmatmul.bf16.gmra.mxu1 %v3135_v4 }
 0x99c   :  { %3439 = vmatpush.bf16.msra.mxu3 %v6643_v6 }
 0x9a0   :  { %3440 = vmatpush.bf16.msra.mxu3 %v6642_v22 }
 0x9a4   :  { %v3039_v42 = vpop.xlane.xlu1 %3038  ;;  %3441 = vmatpush.bf16.msra.mxu3 %v6641_v44 }
 0x9a5   :  { %v3046_v0 = vmul.f32 %v3039_v42, %v7490_v48 }
 0x9a7   :  { %v3052_v32 = vadd.f32 1e-05, %v3046_v0 }
 0x9a9   :  { %6892 = vrsqrt.f32 %v3052_v32  ;;  %vm3100_vm2 = vweird.f32 %v3052_v32 }
 0x9ac   :  { %v3041_v49 = vpop.xlane.xlu2 %3040 }
 0x9ad   :  { %v3047_v1 = vmul.f32 %v3041_v49, %v7490_v48 }
 0x9af   :  { %v6893_v62 = vpop.eup %6892  ;;  %v3053_v37 = vadd.f32 1e-05, %v3047_v1 }
 0x9b0   :  { %v3095_v63 = vmul.f32 %v6893_v62, %v3052_v32  ;;  %vm3101_vm1 = vweird.f32 %v6893_v62 }
 0x9b1   :  { %6894 = vrsqrt.f32 %v3053_v37  ;;  %vm3102_vm3 = vmor %vm3100_vm2, %vm3101_vm1  ;;  %vm3110_vm5 = vweird.f32 %v3053_v37 }
 0x9b2   :  { %v3096_v58 = vmul.f32 %v6893_v62, %v3095_v63 }
 0x9b4   :  { %v3097_v31 = vmul.f32 0.5, %v3096_v58 }
 0x9b6   :  { %v3098_v54 = vsub.f32 1.5, %v3097_v31 }
 0x9b7   :  { %v6895_v33 = vpop.eup %6894 }
 0x9b8   :  { %v3099_v11 = vmul.f32 %v6893_v62, %v3098_v54  ;;  %v3105_v15 = vmul.f32 %v6895_v33, %v3053_v37  ;;  %vm3111_vm4 = vweird.f32 %v6895_v33 }
 0x9b9   :  { %vm3112_vm6 = vmor %vm3110_vm5, %vm3111_vm4 }
 0x9ba   :  { %v3106_v17 = vmul.f32 %v6895_v33, %v3105_v15  ;;  %v3103_v53 = vsel %vm3102_vm3, %v6893_v62, %v3099_v11 }
 0x9bb   :  { %v3118_v28 = vmul.f32 %v3103_v53, %v7777_v55 }
 0x9bc   :  { %v3107_v59 = vmul.f32 0.5, %v3106_v17 }
 0x9bd   :  { %v3125_v60 = vmul.f32 %v7789_v19, %v3118_v28 }
 0x9be   :  { %v3108_v56 = vsub.f32 1.5, %v3107_v59 }
 0x9bf   :  { %v7827_v35 = vadd.f32 %v7793_v57, %v3125_v60 }
 0x9c0   :  { %v3109_v12 = vmul.f32 %v6895_v33, %v3108_v56 }
 0x9c2   :  { %v3113_v24 = vsel %vm3112_vm6, %v6895_v33, %v3109_v12 }
 0x9c3   :  { %v3119_v13 = vmul.f32 %v3113_v24, %v7782_v29  ;;  %v6640_v29 = vld [vmem:[#allocation11 + $0x90] sm:$0xff] }
 0x9c4   :  { %3442 = vmatpush.bf16.msra.mxu3 %v6640_v29 }
 0x9c5   :  { %v3126_v7 = vmul.f32 %v7789_v19, %v3119_v13  ;;  %v6639_v19 = vld [vmem:[#allocation11 + $0x88] sm:$0xff]  ;;  %v7840_v13 = vld [vmem:[%s8192_s8 + $0x10] sm:$0xff] }
 0x9c6   :  { %v3340_v60 = vperm.slane %v7840_v13, 4 }
 0x9c7   :  { %v7830_v51 = vadd.f32 %v7793_v57, %v3126_v7  ;;  %v6646_v57 = vld [vmem:[#allocation11 + $0xc0] sm:$0xff] }
 0x9c8   :  { %3443 = vmatpush.bf16.msra.mxu3 %v6639_v19  ;;  %3468 = vmatpush.bf16.msrb.mxu0 %v6646_v57 }
 0x9c9   :  { %v3136_v55 = vpack.c.bf16 %v7830_v51, %v7827_v35 }
 0x9cb   :  { %3259 = vmatmul.bf16.gmra.mxu0 %v3136_v55  ;;  %3283 = vmatmul.bf16.gmra.mxu1 %v3136_v55 }
 0x9cc   :  { %3444 = vmatpush.bf16.msra.mxu3 %v6638_v36 }
 0x9e8   :  { %v3250_v14 = vpop.f32.mrf.mxu0  ;;  %v3274_v27 = vpop.f32.mrf.mxu1 }
 0x9e9   :  { %v3251_v40 = vadd.f32 %v3250_v14, %v3157_v25  ;;  %v3275_v5 = vadd.f32 %v3274_v27, %v3158_v34 }
 0x9eb   :  { %v3289_v47 = vmax.f32 %v3251_v40, 0.0  ;;  %v3290_v41 = vmax.f32 %v3275_v5, 0.0 }
 0x9f0   :  { %v3252_v2 = vpop.f32.mrf.mxu0  ;;  %v3276_v50 = vpop.f32.mrf.mxu1 }
 0x9f1   :  { %v3253_v46 = vadd.f32 %v3252_v2, %v3157_v25  ;;  %v3277_v10 = vadd.f32 %v3276_v50, %v3158_v34 }
 0x9f3   :  { %v3291_v52 = vmax.f32 %v3253_v46, 0.0  ;;  %v3292_v39 = vmax.f32 %v3277_v10, 0.0 }
 0x9f5   :  { %v3301_v4 = vpack.c.bf16 %v3291_v52, %v3289_v47  ;;  %v3302_v42 = vpack.c.bf16 %v3292_v39, %v3290_v41 }
 0x9f7   :  { %3445 = vmatmul.bf16.vlgmr.msra.gmra.mxu3 %v3301_v4  ;;  %3469 = vmatmul.bf16.vlgmr.msrb.gmra.mxu0 %v3302_v42 }
 0xa18   :  { %v3255_v0 = vpop.f32.mrf.mxu0  ;;  %v3279_v32 = vpop.f32.mrf.mxu1 }
 0xa19   :  { %v3256_v61 = vadd.f32 %v3255_v0, %v3157_v25  ;;  %v3280_v45 = vadd.f32 %v3279_v32, %v3158_v34 }
 0xa1b   :  { %v3293_v62 = vmax.f32 %v3256_v61, 0.0  ;;  %v3294_v37 = vmax.f32 %v3280_v45, 0.0 }
 0xa20   :  { %v3257_v49 = vpop.f32.mrf.mxu0  ;;  %v3281_v1 = vpop.f32.mrf.mxu1 }
 0xa21   :  { %v3258_v20 = vadd.f32 %v3257_v49, %v3157_v25  ;;  %v3282_v43 = vadd.f32 %v3281_v1, %v3158_v34 }
 0xa23   :  { %v3295_v63 = vmax.f32 %v3258_v20, 0.0  ;;  %v3296_v6 = vmax.f32 %v3282_v43, 0.0 }
 0xa25   :  { %v3303_v21 = vpack.c.bf16 %v3295_v63, %v3293_v62  ;;  %v3304_v58 = vpack.c.bf16 %v3296_v6, %v3294_v37 }
 0xa27   :  { %3450 = vmatmul.bf16.gmra.mxu3 %v3303_v21  ;;  %3474 = vmatmul.bf16.gmra.mxu0 %v3304_v58 }
 0xa48   :  { %v3260_v31 = vpop.f32.mrf.mxu0  ;;  %v3284_v22 = vpop.f32.mrf.mxu1 }
 0xa49   :  { %v3261_v9 = vadd.f32 %v3260_v31, %v3157_v25  ;;  %v3285_v54 = vadd.f32 %v3284_v22, %v3158_v34  ;;  %v6163_v31 = vld [vmem:[#allocation7 + $0x228] sm:$0xf]  ;;  %v6676_v22 = vld [vmem:[#allocation7 + $0x230] sm:$0xf0] }
 0xa4b   :  { %v3297_v53 = vmax.f32 %v3261_v9, 0.0  ;;  %v3298_v59 = vmax.f32 %v3285_v54, 0.0  ;;  %v6675_v9 = vld [vmem:[#allocation7 + $0x22c] sm:$0xf] }
 0xa50   :  { %v3262_v33 = vpop.f32.mrf.mxu0  ;;  %v3286_v11 = vpop.f32.mrf.mxu1 }
 0xa51   :  { %v3263_v15 = vadd.f32 %v3262_v33, %v3157_v25  ;;  %v3287_v17 = vadd.f32 %v3286_v11, %v3158_v34  ;;  %v6164_v33 = vor.u32 %v6676_v22, %v6163_v31  ;;  %v6165_v11 = vld [vmem:[#allocation7 + $0x234] sm:$0xf0]  ;;  %v6662_v31 = vld [vmem:[#allocation7 + $0x1c0] sm:$0xf0] }
 0xa53   :  { %v3299_v56 = vmax.f32 %v3263_v15, 0.0  ;;  %v3300_v28 = vmax.f32 %v3287_v17, 0.0  ;;  %v6171_v15 = vld [vmem:[#allocation7 + $0x230] sm:$0xf]  ;;  %v6677_v17 = vld [vmem:[#allocation7 + $0x238] sm:$0xf0]  ;;  %3792 = vmatpush.bf16.msrb.mxu1 %v6164_v33 }
 0xa54   :  { %v6658_v33 = vld [vmem:[#allocation7 + $0x1a0] sm:$0xf0] }
 0xa55   :  { %v3305_v12 = vpack.c.bf16 %v3299_v56, %v3297_v53  ;;  %v3306_v24 = vpack.c.bf16 %v3300_v28, %v3298_v59  ;;  %v6168_v53 = vor.u32 %v6675_v9, %v6165_v11  ;;  %v6172_v59 = vor.u32 %v6677_v17, %v6171_v15  ;;  %v6151_v28 = vld [vmem:[#allocation7 + $0x210] sm:$0xf]  ;;  %v6657_v11 = vld [vmem:[#allocation7 + $0x19c] sm:$0xf]  ;;  %v6093_v17 = vld [vmem:[#allocation7 + $0x1a4] sm:$0xf0] }
 0xa57   :  { %3455 = vmatmul.bf16.gmra.mxu3 %v3305_v12  ;;  %3479 = vmatmul.bf16.gmra.mxu0 %v3306_v24  ;;  %v6673_v12 = vld [vmem:[#allocation7 + $0x218] sm:$0xf0]  ;;  %v6672_v24 = vld [vmem:[#allocation7 + $0x214] sm:$0xf] }
 0xa58   :  { %3816 = vmatpush.bf16.msrb.mxu3 %v6168_v53  ;;  %3840 = vmatpush.bf16.msra.mxu0 %v6172_v59  ;;  %v6099_v53 = vld [vmem:[#allocation7 + $0x1a0] sm:$0xf]  ;;  %v6659_v59 = vld [vmem:[#allocation7 + $0x1a8] sm:$0xf0] }
 0xa74   :  { %v3470_v7 = vpop.f32.mrf.mxu0 }
 0xa7a   :  { %v3446_v44 = vpop.f32.mrf.mxu3 }
 0xa7b   :  { %v3447_v30 = vadd.f32 %v3446_v44, %v3340_v60  ;;  %v6153_v44 = vld [vmem:[#allocation7 + $0x21c] sm:$0xf0] }
 0xa7c   :  { %v3472_v23 = vpop.f32.mrf.mxu0 }
 0xa7d   :  { %v3471_v55 = vadd.f32 %v3470_v7, %v3447_v30  ;;  %v6152_v7 = vor.u32 %v6673_v12, %v6151_v28  ;;  %v6159_v30 = vld [vmem:[#allocation7 + $0x218] sm:$0xf]  ;;  %v6096_v12 = vor.u32 %v6657_v11, %v6093_v17 }
 0xa7f   :  { %v3485_v29 = vadd.f32 %v3471_v55, %v7799_v16  ;;  %v6674_v55 = vld [vmem:[#allocation7 + $0x220] sm:$0xf0]  ;;  %3793 = vmatpush.bf16.msrb.mxu1 %v6152_v7  ;;  %v6079_v7 = vld [vmem:[#allocation7 + $0x180] sm:$0xf] }
 0xa81   :  { %3491 = vadd.xlane.f32.xlu0 %v3485_v29 }
 0xa82   :  { %v3448_v18 = vpop.f32.mrf.mxu3 }
 0xa83   :  { %v3449_v19 = vadd.f32 %v3448_v18, %v3340_v60  ;;  %v6160_v18 = vor.u32 %v6674_v55, %v6159_v30  ;;  %v6654_v30 = vld [vmem:[#allocation7 + $0x184] sm:$0xf] }
 0xa85   :  { %v3473_v36 = vadd.f32 %v3472_v23, %v3449_v19  ;;  %3841 = vmatpush.bf16.msra.mxu0 %v6160_v18  ;;  %v6139_v23 = vld [vmem:[#allocation7 + $0x1f8] sm:$0xf]  ;;  %v6081_v18 = vld [vmem:[#allocation7 + $0x18c] sm:$0xf0] }
 0xa87   :  { %v3486_v57 = vadd.f32 %v3473_v36, %v7802_v8  ;;  %v6670_v36 = vld [vmem:[#allocation7 + $0x200] sm:$0xf0] }
 0xa89   :  { %3493 = vadd.xlane.f32.xlu1 %v3486_v57 }
 0xaa4   :  { %v3475_v3 = vpop.f32.mrf.mxu0 }
 0xaaa   :  { %v3451_v14 = vpop.f32.mrf.mxu3 }
 0xaab   :  { %v3452_v27 = vadd.f32 %v3451_v14, %v3340_v60  ;;  %v6140_v14 = vor.u32 %v6670_v36, %v6139_v23  ;;  %v6084_v23 = vor.u32 %v6654_v30, %v6081_v18  ;;  %v6656_v36 = vld [vmem:[#allocation7 + $0x190] sm:$0xf0] }
 0xaac   :  { %v3477_v2 = vpop.f32.mrf.mxu0 }
 0xaad   :  { %v3476_v25 = vadd.f32 %v3475_v3, %v3452_v27  ;;  %v6141_v27 = vld [vmem:[#allocation7 + $0x204] sm:$0xf0]  ;;  %3794 = vmatpush.bf16.msrb.mxu1 %v6140_v14 }
 0xaaf   :  { %v3487_v34 = vadd.f32 %v3476_v25, %v7813_v26  ;;  %v6147_v25 = vld [vmem:[#allocation7 + $0x200] sm:$0xf] }
 0xab1   :  { %3495 = vadd.xlane.f32.xlu2 %v3487_v34 }
 0xab2   :  { %v3453_v40 = vpop.f32.mrf.mxu3 }
 0xab3   :  { %v3454_v5 = vadd.f32 %v3453_v40, %v3340_v60 }
 0xab5   :  { %v3478_v50 = vadd.f32 %v3477_v2, %v3454_v5 }
 0xab7   :  { %v3488_v16 = vadd.f32 %v3478_v50, %v7816_v38  ;;  %v6127_v50 = vld [vmem:[#allocation7 + $0x1e0] sm:$0xf] }
 0xab9   :  { %3497 = vadd.xlane.f32.xlu0 %v3488_v16 }
 0xad4   :  { %v3480_v46 = vpop.f32.mrf.mxu0 }
 0xada   :  { %v3456_v10 = vpop.f32.mrf.mxu3 }
 0xadb   :  { %v3457_v47 = vadd.f32 %v3456_v10, %v3340_v60 }
 0xadc   :  { %v3482_v4 = vpop.f32.mrf.mxu0 }
 0xadd   :  { %v3481_v41 = vadd.f32 %v3480_v46, %v3457_v47  ;;  %v6666_v46 = vld [vmem:[#allocation7 + $0x1e4] sm:$0xf] }
 0xadf   :  { %v3489_v8 = vadd.f32 %v3481_v41, %v7827_v35  ;;  %v6129_v41 = vld [vmem:[#allocation7 + $0x1ec] sm:$0xf0] }
 0xae1   :  { %3499 = vadd.xlane.f32.xlu1 %v3489_v8 }
 0xae2   :  { %v3458_v52 = vpop.f32.mrf.mxu3 }
 0xae3   :  { %v3459_v39 = vadd.f32 %v3458_v52, %v3340_v60  ;;  %v6668_v52 = vld [vmem:[#allocation7 + $0x1f0] sm:$0xf0] }
 0xae5   :  { %v3483_v42 = vadd.f32 %v3482_v4, %v3459_v39  ;;  %v6132_v39 = vor.u32 %v6666_v46, %v6129_v41 }
 0xae7   :  { %v3490_v26 = vadd.f32 %v3483_v42, %v7830_v51  ;;  %v6115_v42 = vld [vmem:[#allocation7 + $0x1c8] sm:$0xf] }
 0xae9   :  { %3501 = vadd.xlane.f32.xlu2 %v3490_v26 }
 0xaf4   :  { %v3492_v0 = vpop.xlane.xlu0 %3491 }
 0xaf5   :  { %v3503_v32 = vmul.f32 %v3492_v0, %v7490_v48  ;;  %v6663_v0 = vld [vmem:[#allocation7 + $0x1cc] sm:$0xf] }
 0xaf7   :  { %v7850_v61 = vsub.f32 %v3485_v29, %v3503_v32  ;;  %v6156_v29 = vor.u32 %v6672_v24, %v6153_v44  ;;  %v6100_v24 = vor.u32 %v6659_v59, %v6099_v53  ;;  %v6655_v44 = vld [vmem:[#allocation7 + $0x188] sm:$0xf0] }
 0xaf9   :  { %v3515_v38 = vmul.f32 %v7850_v61, %v7850_v61  ;;  %3817 = vmatpush.bf16.msrb.mxu3 %v6156_v29  ;;  %v6080_v29 = vor.u32 %v6655_v44, %v6079_v7 }
 0xafb   :  { %3521 = vadd.xlane.f32.xlu0 %v3515_v38  ;;  %v6117_v38 = vld [vmem:[#allocation7 + $0x1d4] sm:$0xf0] }
 0xafc   :  { %v3494_v45 = vpop.xlane.xlu1 %3493 }
 0xafd   :  { %v3504_v35 = vmul.f32 %v3494_v45, %v7490_v48  ;;  %v6123_v45 = vld [vmem:[#allocation7 + $0x1d0] sm:$0xf] }
 0xaff   :  { %v7855_v49 = vsub.f32 %v3486_v57, %v3504_v35  ;;  %v6669_v57 = vld [vmem:[#allocation7 + $0x1fc] sm:$0xf] }
 0xb00   :  { %v6144_v40 = vor.u32 %v6669_v57, %v6141_v27  ;;  %v6665_v35 = vld [vmem:[#allocation7 + $0x1d8] sm:$0xf0] }
 0xb01   :  { %v3516_v1 = vmul.f32 %v7855_v49, %v7855_v49 }
 0xb02   :  { %3818 = vmatpush.bf16.msrb.mxu3 %v6144_v40 }
 0xb03   :  { %3523 = vadd.xlane.f32.xlu1 %v3516_v1  ;;  %v6120_v1 = vor.u32 %v6663_v0, %v6117_v38  ;;  %v7900_v38 = vperm.slane %v7840_v13, 7 }
 0xb06   :  { %3819 = vmatpush.bf16.msrb.mxu3 %v6132_v39 }
 0xb0a   :  { %3820 = vmatpush.bf16.msrb.mxu3 %v6120_v1 }
 0xb24   :  { %v3496_v51 = vpop.xlane.xlu2 %3495 }
 0xb25   :  { %v3505_v20 = vmul.f32 %v3496_v51, %v7490_v48  ;;  %v6124_v51 = vor.u32 %v6665_v35, %v6123_v45 }
 0xb27   :  { %v7860_v43 = vsub.f32 %v3487_v34, %v3505_v20  ;;  %v6671_v34 = vld [vmem:[#allocation7 + $0x208] sm:$0xf0]  ;;  %v6103_v20 = vld [vmem:[#allocation7 + $0x1b0] sm:$0xf] }
 0xb28   :  { %v6148_v5 = vor.u32 %v6671_v34, %v6147_v25  ;;  %v6991_v25 = vld [vmem:[%s8191_s7 + $0x30] sm:$0xff] }
 0xb29   :  { %v3517_v62 = vmul.f32 %v7860_v43, %v7860_v43 }
 0xb2a   :  { %3842 = vmatpush.bf16.msra.mxu0 %v6148_v5 }
 0xb2b   :  { %3525 = vadd.xlane.f32.xlu2 %v3517_v62  ;;  %v6661_v62 = vld [vmem:[#allocation7 + $0x1b8] sm:$0xf0] }
 0xb2c   :  { %v3498_v37 = vpop.xlane.xlu0 %3497 }
 0xb2d   :  { %v3506_v63 = vmul.f32 %v3498_v37, %v7490_v48  ;;  %v6660_v37 = vld [vmem:[#allocation7 + $0x1b4] sm:$0xf] }
 0xb2f   :  { %v7865_v6 = vsub.f32 %v3488_v16, %v3506_v63  ;;  %v6667_v16 = vld [vmem:[#allocation7 + $0x1e8] sm:$0xf0]  ;;  %v6104_v63 = vor.u32 %v6661_v62, %v6103_v20  ;;  %v7909_v20 = vld [vmem:[%s8192_s8 + $0x18] ss:$0 sm:$0xff] }
 0xb30   :  { %v6128_v47 = vor.u32 %v6667_v16, %v6127_v50  ;;  %v6992_v16 = vld [vmem:[%s8191_s7 + $0x28] sm:$0xff] }
 0xb31   :  { %v3518_v21 = vmul.f32 %v7865_v6, %v7865_v6 }
 0xb32   :  { %3795 = vmatpush.bf16.msrb.mxu1 %v6128_v47  ;;  %v6993_v47 = vld [vmem:[%s8191_s7 + $0x20] sm:$0xff] }
 0xb33   :  { %3527 = vadd.xlane.f32.xlu0 %v3518_v21  ;;  %v6105_v21 = vld [vmem:[#allocation7 + $0x1bc] sm:$0xf0] }
 0xb34   :  { %v6108_v22 = vor.u32 %v6660_v37, %v6105_v21  ;;  %v6997_v37 = vld [vmem:[%s8191_s7] sm:$0xff] }
 0xb36   :  { %3821 = vmatpush.bf16.msrb.mxu3 %v6108_v22 }
 0xb3a   :  { %3822 = vmatpush.bf16.msrb.mxu3 %v6096_v12 }
 0xb3e   :  { %3823 = vmatpush.bf16.msrb.mxu3 %v6084_v23 }
 0xb54   :  { %v3500_v58 = vpop.xlane.xlu1 %3499 }
 0xb55   :  { %v3507_v54 = vmul.f32 %v3500_v58, %v7490_v48  ;;  %v6111_v58 = vld [vmem:[#allocation7 + $0x1b8] sm:$0xf] }
 0xb56   :  { %v6112_v9 = vor.u32 %v6662_v31, %v6111_v58 }
 0xb57   :  { %v7870_v56 = vsub.f32 %v3489_v8, %v3507_v54  ;;  %v6135_v8 = vld [vmem:[#allocation7 + $0x1e8] sm:$0xf]  ;;  %v6091_v54 = vld [vmem:[#allocation7 + $0x198] sm:$0xf] }
 0xb58   :  { %v6136_v4 = vor.u32 %v6668_v52, %v6135_v8  ;;  %v6092_v15 = vor.u32 %v6658_v33, %v6091_v54 }
 0xb59   :  { %v3519_v60 = vmul.f32 %v7870_v56, %v7870_v56 }
 0xb5a   :  { %3843 = vmatpush.bf16.msra.mxu0 %v6136_v4  ;;  %v6994_v4 = vld [vmem:[%s8191_s7 + $0x18] sm:$0xff] }
 0xb5b   :  { %3529 = vadd.xlane.f32.xlu1 %v3519_v60 }
 0xb5c   :  { %v3502_v19 = vpop.xlane.xlu2 %3501 }
 0xb5d   :  { %v3508_v3 = vmul.f32 %v3502_v19, %v7490_v48  ;;  %v6087_v19 = vld [vmem:[#allocation7 + $0x188] sm:$0xf] }
 0xb5e   :  { %3844 = vmatpush.bf16.msra.mxu0 %v6124_v51  ;;  %v6088_v57 = vor.u32 %v6656_v36, %v6087_v19  ;;  %v6996_v51 = vld [vmem:[%s8191_s7 + $0x8] sm:$0xff] }
 0xb5f   :  { %v7875_v2 = vsub.f32 %v3490_v26, %v3508_v3  ;;  %v6664_v26 = vld [vmem:[#allocation7 + $0x1d0] sm:$0xf0]  ;;  %v6990_v3 = vld [vmem:[%s8191_s7 + $0x38] sm:$0xff] }
 0xb60   :  { %v6116_v32 = vor.u32 %v6664_v26, %v6115_v42 }
 0xb61   :  { %v3520_v10 = vmul.f32 %v7875_v2, %v7875_v2 }
 0xb62   :  { %3796 = vmatpush.bf16.msrb.mxu1 %v6116_v32  ;;  %3845 = vmatpush.bf16.msra.mxu0 %v6112_v9  ;;  %v6995_v32 = vld [vmem:[%s8191_s7 + $0x10] sm:$0xff] }
 0xb63   :  { %3531 = vadd.xlane.f32.xlu2 %v3520_v10 }
 0xb66   :  { %3797 = vmatpush.bf16.msrb.mxu1 %v6104_v63  ;;  %3846 = vmatpush.bf16.msra.mxu0 %v6100_v24 }
 0xb6a   :  { %3798 = vmatpush.bf16.msrb.mxu1 %v6092_v15  ;;  %3847 = vmatpush.bf16.msra.mxu0 %v6088_v57 }
 0xb6e   :  { %v3522_v28 = vpop.xlane.xlu0 %3521  ;;  %3799 = vmatpush.bf16.msrb.mxu1 %v6080_v29 }
 0xb6f   :  { %v3533_v60 = vmul.f32 %v3522_v28, %v7490_v48 }
 0xb71   :  { %v3539_v55 = vadd.f32 1e-05, %v3533_v60 }
 0xb72   :  { %3918 = vmatpush.bf16.msra.mxu1 %v6990_v3 }
 0xb73   :  { %6896 = vrsqrt.f32 %v3539_v55  ;;  %vm3551_vm8 = vweird.f32 %v3539_v55 }
 0xb76   :  { %v3524_v14 = vpop.xlane.xlu1 %3523  ;;  %3919 = vmatpush.bf16.msra.mxu1 %v6991_v25 }
 0xb77   :  { %v3534_v27 = vmul.f32 %v3524_v14, %v7490_v48 }
 0xb79   :  { %v6897_v34 = vpop.eup %6896  ;;  %v3540_v40 = vadd.f32 1e-05, %v3534_v27 }
 0xb7a   :  { %v3546_v5 = vmul.f32 %v6897_v34, %v3539_v55  ;;  %3920 = vmatpush.bf16.msra.mxu1 %v6992_v16  ;;  %vm3552_vm7 = vweird.f32 %v6897_v34 }
 0xb7b   :  { %6898 = vrsqrt.f32 %v3540_v40  ;;  %vm3553_vm9 = vmor %vm3551_vm8, %vm3552_vm7  ;;  %vm3561_vm11 = vweird.f32 %v3540_v40 }
 0xb7c   :  { %v3547_v50 = vmul.f32 %v6897_v34, %v3546_v5 }
 0xb7e   :  { %v3548_v46 = vmul.f32 0.5, %v3547_v50  ;;  %3921 = vmatpush.bf16.msra.mxu1 %v6993_v47 }
 0xb80   :  { %v3549_v10 = vsub.f32 1.5, %v3548_v46 }
 0xb81   :  { %v6899_v41 = vpop.eup %6898 }
 0xb82   :  { %v3550_v8 = vmul.f32 %v6897_v34, %v3549_v10  ;;  %v3556_v52 = vmul.f32 %v6899_v41, %v3540_v40  ;;  %3922 = vmatpush.bf16.msra.mxu1 %v6994_v4  ;;  %vm3562_vm10 = vweird.f32 %v6899_v41 }
 0xb83   :  { %vm3563_vm12 = vmor %vm3561_vm11, %vm3562_vm10 }
 0xb84   :  { %v3557_v39 = vmul.f32 %v6899_v41, %v3556_v52  ;;  %v3554_v42 = vsel %vm3553_vm9, %v6897_v34, %v3550_v8 }
 0xb85   :  { %v3605_v45 = vmul.f32 %v3554_v42, %v7850_v61 }
 0xb86   :  { %v3558_v26 = vmul.f32 0.5, %v3557_v39  ;;  %3923 = vmatpush.bf16.msra.mxu1 %v6995_v32 }
 0xb87   :  { %v3612_v62 = vmul.f32 %v7900_v38, %v3605_v45 }
 0xb88   :  { %v3559_v0 = vsub.f32 1.5, %v3558_v26 }
 0xb89   :  { %v7918_v63 = vadd.f32 %v7909_v20, %v3612_v62 }
 0xb8a   :  { %v3560_v35 = vmul.f32 %v6899_v41, %v3559_v0  ;;  %3924 = vmatpush.bf16.msra.mxu1 %v6996_v51 }
 0xb8c   :  { %v3564_v1 = vsel %vm3563_vm12, %v6899_v41, %v3560_v35 }
 0xb8d   :  { %v3606_v13 = vmul.f32 %v3564_v1, %v7855_v49 }
 0xb8e   :  { %3925 = vmatpush.bf16.msra.mxu1 %v6997_v37 }
 0xb8f   :  { %v3613_v61 = vmul.f32 %v7900_v38, %v3606_v13 }
 0xb91   :  { %v7921_v21 = vadd.f32 %v7909_v20, %v3613_v61 }
 0xb93   :  { %v3628_v58 = vpack.c.bf16 %v7921_v21, %v7918_v63 }
 0xb95   :  { %3800 = vmatmul.bf16.vlgmr.msrb.gmra.mxu1 %v3628_v58  ;;  %3824 = vmatmul.bf16.vlgmr.msrb.gmra.mxu3 %v3628_v58 }
 0xb96   :  { %3848 = vmatmul.bf16.vlgmr.msra.gmra.mxu0 %v3628_v58 }
 0xb9e   :  { %v3526_v49 = vpop.xlane.xlu2 %3525 }
 0xb9f   :  { %v3535_v31 = vmul.f32 %v3526_v49, %v7490_v48 }
 0xba1   :  { %v3541_v22 = vadd.f32 1e-05, %v3535_v31 }
 0xba3   :  { %6900 = vrsqrt.f32 %v3541_v22  ;;  %vm3571_vm14 = vweird.f32 %v3541_v22 }
 0xba6   :  { %v3528_v9 = vpop.xlane.xlu0 %3527 }
 0xba7   :  { %v3536_v54 = vmul.f32 %v3528_v9, %v7490_v48 }
 0xba9   :  { %v6901_v33 = vpop.eup %6900  ;;  %v3542_v11 = vadd.f32 1e-05, %v3536_v54 }
 0xbaa   :  { %v3566_v15 = vmul.f32 %v6901_v33, %v3541_v22  ;;  %vm3572_vm13 = vweird.f32 %v6901_v33 }
 0xbab   :  { %6902 = vrsqrt.f32 %v3542_v11  ;;  %vm3573_vm15 = vmor %vm3571_vm14, %vm3572_vm13  ;;  %vm3581_vm1 = vweird.f32 %v3542_v11 }
 0xbac   :  { %v3567_v17 = vmul.f32 %v6901_v33, %v3566_v15 }
 0xbae   :  { %v3568_v53 = vmul.f32 0.5, %v3567_v17 }
 0xbb0   :  { %v3569_v59 = vsub.f32 1.5, %v3568_v53 }
 0xbb1   :  { %v6903_v28 = vpop.eup %6902 }
 0xbb2   :  { %v3570_v12 = vmul.f32 %v6901_v33, %v3569_v59  ;;  %v3576_v24 = vmul.f32 %v6903_v28, %v3542_v11  ;;  %vm3582_vm0 = vweird.f32 %v6903_v28 }
 0xbb3   :  { %vm3583_vm2 = vmor %vm3581_vm1, %vm3582_vm0 }
 0xbb4   :  { %v3577_v60 = vmul.f32 %v6903_v28, %v3576_v24  ;;  %v3574_v7 = vsel %vm3573_vm15, %v6901_v33, %v3570_v12 }
 0xbb5   :  { %v3607_v55 = vmul.f32 %v3574_v7, %v7860_v43 }
 0xbb6   :  { %v3578_v44 = vmul.f32 0.5, %v3577_v60 }
 0xbb7   :  { %v3614_v23 = vmul.f32 %v7900_v38, %v3607_v55 }
 0xbb8   :  { %v3579_v30 = vsub.f32 1.5, %v3578_v44 }
 0xbb9   :  { %v7932_v57 = vadd.f32 %v7909_v20, %v3614_v23 }
 0xbba   :  { %v3580_v29 = vmul.f32 %v6903_v28, %v3579_v30 }
 0xbbc   :  { %v3584_v18 = vsel %vm3583_vm2, %v6903_v28, %v3580_v29 }
 0xbbd   :  { %v3608_v19 = vmul.f32 %v3584_v18, %v7865_v6 }
 0xbbf   :  { %v3615_v36 = vmul.f32 %v7900_v38, %v3608_v19 }
 0xbc1   :  { %v7935_v3 = vadd.f32 %v7909_v20, %v3615_v36 }
 0xbc3   :  { %v3629_v14 = vpack.c.bf16 %v7935_v3, %v7932_v57 }
 0xbc5   :  { %3805 = vmatmul.bf16.gmra.mxu1 %v3629_v14  ;;  %3829 = vmatmul.bf16.gmra.mxu3 %v3629_v14 }
 0xbc6   :  { %3853 = vmatmul.bf16.gmra.mxu0 %v3629_v14 }
 0xbce   :  { %v3530_v43 = vpop.xlane.xlu1 %3529 }
 0xbcf   :  { %v3537_v27 = vmul.f32 %v3530_v43, %v7490_v48 }
 0xbd1   :  { %v3543_v6 = vadd.f32 1e-05, %v3537_v27 }
 0xbd3   :  { %6904 = vrsqrt.f32 %v3543_v6  ;;  %vm3591_vm4 = vweird.f32 %v3543_v6 }
 0xbd6   :  { %v3532_v25 = vpop.xlane.xlu2 %3531 }
 0xbd7   :  { %v3538_v34 = vmul.f32 %v3532_v25, %v7490_v48 }
 0xbd9   :  { %v6905_v40 = vpop.eup %6904  ;;  %v3544_v5 = vadd.f32 1e-05, %v3538_v34 }
 0xbda   :  { %v3586_v50 = vmul.f32 %v6905_v40, %v3543_v6  ;;  %vm3592_vm3 = vweird.f32 %v6905_v40 }
 0xbdb   :  { %6906 = vrsqrt.f32 %v3544_v5  ;;  %vm3593_vm5 = vmor %vm3591_vm4, %vm3592_vm3  ;;  %vm3601_vm7 = vweird.f32 %v3544_v5 }
 0xbdc   :  { %v3587_v16 = vmul.f32 %v6905_v40, %v3586_v50 }
 0xbde   :  { %v3588_v46 = vmul.f32 0.5, %v3587_v16 }
 0xbe0   :  { %v3589_v10 = vsub.f32 1.5, %v3588_v46 }
 0xbe1   :  { %v6907_v47 = vpop.eup %6906 }
 0xbe2   :  { %v3590_v41 = vmul.f32 %v6905_v40, %v3589_v10  ;;  %v3596_v8 = vmul.f32 %v6907_v47, %v3544_v5  ;;  %vm3602_vm6 = vweird.f32 %v6907_v47 }
 0xbe3   :  { %vm3603_vm8 = vmor %vm3601_vm7, %vm3602_vm6 }
 0xbe4   :  { %v3597_v52 = vmul.f32 %v6907_v47, %v3596_v8  ;;  %v3594_v39 = vsel %vm3593_vm5, %v6905_v40, %v3590_v41 }
 0xbe5   :  { %v3609_v26 = vmul.f32 %v3594_v39, %v7870_v56 }
 0xbe6   :  { %v3598_v4 = vmul.f32 0.5, %v3597_v52 }
 0xbe7   :  { %v3616_v35 = vmul.f32 %v7900_v38, %v3609_v26 }
 0xbe8   :  { %v3599_v42 = vsub.f32 1.5, %v3598_v4 }
 0xbe9   :  { %v7946_v51 = vadd.f32 %v7909_v20, %v3616_v35 }
 0xbea   :  { %v3600_v0 = vmul.f32 %v6907_v47, %v3599_v42 }
 0xbec   :  { %v3604_v32 = vsel %vm3603_vm8, %v6907_v47, %v3600_v0 }
 0xbed   :  { %v3610_v45 = vmul.f32 %v3604_v32, %v7875_v2  ;;  %v7956_v2 = vld [vmem:[%s8192_s8 + $0x20] sm:$0xff] }
 0xbee   :  { %v3877_v58 = vperm.slane %v7956_v2, 1 }
 0xbef   :  { %v3617_v1 = vmul.f32 %v7900_v38, %v3610_v45  ;;  %v3864_v38 = vperm.slane %v7956_v2, 0 }
 0xbf1   :  { %v7949_v62 = vadd.f32 %v7909_v20, %v3617_v1 }
 0xbf3   :  { %v3630_v13 = vpack.c.bf16 %v7949_v62, %v7946_v51 }
 0xbf5   :  { %3810 = vmatmul.bf16.gmra.mxu1 %v3630_v13  ;;  %3834 = vmatmul.bf16.gmra.mxu3 %v3630_v13 }
 0xbf6   :  { %3858 = vmatmul.bf16.gmra.mxu0 %v3630_v13 }
 0xc12   :  { %v3801_v56 = vpop.f32.mrf.mxu1 }
 0xc13   :  { %v3865_v20 = vadd.f32 %v3864_v38, %v3801_v56 }
 0xc15   :  { %v3871_v9 = vmul.f32 0.17677669, %v3865_v20 }
 0xc18   :  { %v3825_v61 = vpop.f32.mrf.mxu3 }
 0xc19   :  { %v3878_v31 = vadd.f32 %v3877_v58, %v3825_v61 }
 0xc1a   :  { %v3803_v37 = vpop.f32.mrf.mxu1 }
 0xc1b   :  { %v3866_v49 = vadd.f32 %v3864_v38, %v3803_v37  ;;  %v3891_v11 = vmul.f32 %v3878_v31, %v3871_v9  ;;  %v6685_v37 = vld [vmem:[#allocation8 + $0xb8] sm:$0xff] }
 0xc1c   :  { %4251 = vmatpush.bf16.msra.mxu2 %v6685_v37 }
 0xc1d   :  { %v3872_v54 = vmul.f32 0.17677669, %v3866_v49 }
 0xc20   :  { %v3827_v22 = vpop.f32.mrf.mxu3 }
 0xc21   :  { %v3879_v33 = vadd.f32 %v3877_v58, %v3827_v22 }
 0xc23   :  { %v3892_v15 = vmul.f32 %v3879_v33, %v3872_v54 }
 0xc25   :  { %v3909_v17 = vpack.c.bf16 %v3892_v15, %v3891_v11  ;;  %v6683_v11 = vld [vmem:[#allocation8 + $0xa8] sm:$0xff] }
 0xc27   :  { %3926 = vmatmul.bf16.vlgmr.msra.gmra.mxu1 %v3909_v17 }
 0xc42   :  { %v3806_v53 = vpop.f32.mrf.mxu1 }
 0xc43   :  { %v3867_v12 = vadd.f32 %v3864_v38, %v3806_v53 }
 0xc45   :  { %v3873_v44 = vmul.f32 0.17677669, %v3867_v12 }
 0xc47   :  { %v3897_v32 = vmul.f32 %v3878_v31, %v3873_v44 }
 0xc48   :  { %v3830_v59 = vpop.f32.mrf.mxu3 }
 0xc49   :  { %v3880_v60 = vadd.f32 %v3877_v58, %v3830_v59 }
 0xc4a   :  { %v3808_v28 = vpop.f32.mrf.mxu1 }
 0xc4b   :  { %v3868_v24 = vadd.f32 %v3864_v38, %v3808_v28  ;;  %v3893_v29 = vmul.f32 %v3880_v60, %v3871_v9  ;;  %v3899_v18 = vmul.f32 %v3880_v60, %v3873_v44 }
 0xc4d   :  { %v3874_v30 = vmul.f32 0.17677669, %v3868_v24 }
 0xc4f   :  { %v3898_v0 = vmul.f32 %v3879_v33, %v3874_v30 }
 0xc50   :  { %v3832_v7 = vpop.f32.mrf.mxu3 }
 0xc51   :  { %v3881_v55 = vadd.f32 %v3877_v58, %v3832_v7  ;;  %v3912_v45 = vpack.c.bf16 %v3898_v0, %v3897_v32  ;;  %v6681_v7 = vld [vmem:[#allocation8 + $0x98] sm:$0xff] }
 0xc53   :  { %v3894_v19 = vmul.f32 %v3881_v55, %v3872_v54  ;;  %v3900_v23 = vmul.f32 %v3881_v55, %v3874_v30 }
 0xc55   :  { %v3910_v36 = vpack.c.bf16 %v3894_v19, %v3893_v29  ;;  %v3913_v14 = vpack.c.bf16 %v3900_v23, %v3899_v18  ;;  %v6680_v18 = vld [vmem:[#allocation8 + $0x90] sm:$0xff] }
 0xc57   :  { %3931 = vmatmul.bf16.gmra.mxu1 %v3910_v36 }
 0xc72   :  { %v3811_v43 = vpop.f32.mrf.mxu1 }
 0xc73   :  { %v3869_v27 = vadd.f32 %v3864_v38, %v3811_v43 }
 0xc75   :  { %v3875_v34 = vmul.f32 0.17677669, %v3869_v27 }
 0xc77   :  { %v3905_v50 = vmul.f32 %v3880_v60, %v3875_v34  ;;  %v3903_v61 = vmul.f32 %v3878_v31, %v3875_v34  ;;  %v6682_v31 = vld [vmem:[#allocation8 + $0xa0] sm:$0xff] }
 0xc78   :  { %v3835_v6 = vpop.f32.mrf.mxu3 }
 0xc79   :  { %v3882_v16 = vadd.f32 %v3877_v58, %v3835_v6 }
 0xc7a   :  { %v3813_v25 = vpop.f32.mrf.mxu1 }
 0xc7b   :  { %v3870_v40 = vadd.f32 %v3864_v38, %v3813_v25  ;;  %v3895_v8 = vmul.f32 %v3882_v16, %v3871_v9  ;;  %v3907_v52 = vmul.f32 %v3882_v16, %v3875_v34  ;;  %v3901_v1 = vmul.f32 %v3882_v16, %v3873_v44  ;;  %v6679_v34 = vld [vmem:[#allocation8 + $0x88] sm:$0xff] }
 0xc7d   :  { %v3876_v5 = vmul.f32 0.17677669, %v3870_v40 }
 0xc7f   :  { %v3906_v46 = vmul.f32 %v3881_v55, %v3876_v5  ;;  %v3904_v56 = vmul.f32 %v3879_v33, %v3876_v5 }
 0xc80   :  { %v3837_v10 = vpop.f32.mrf.mxu3 }
 0xc81   :  { %v3883_v47 = vadd.f32 %v3877_v58, %v3837_v10  ;;  %v3916_v41 = vpack.c.bf16 %v3906_v46, %v3905_v50  ;;  %v3915_v38 = vpack.c.bf16 %v3904_v56, %v3903_v61  ;;  %v6684_v58 = vld [vmem:[#allocation8 + $0xb0] sm:$0xff]  ;;  %v6678_v10 = vld [vmem:[#allocation8 + $0x80] sm:$0xff] }
 0xc82   :  { %4252 = vmatpush.bf16.msra.mxu2 %v6684_v58 }
 0xc83   :  { %v3896_v39 = vmul.f32 %v3883_v47, %v3872_v54  ;;  %v3908_v4 = vmul.f32 %v3883_v47, %v3876_v5  ;;  %v3902_v35 = vmul.f32 %v3883_v47, %v3874_v30  ;;  %v7960_v54 = vpop.f32.mrf.mxu0 }
 0xc85   :  { %v3911_v42 = vpack.c.bf16 %v3896_v39, %v3895_v8  ;;  %v3917_v26 = vpack.c.bf16 %v3908_v4, %v3907_v52  ;;  %v3914_v13 = vpack.c.bf16 %v3902_v35, %v3901_v1 }
 0xc86   :  { %4253 = vmatpush.bf16.msra.mxu2 %v6683_v11 }
 0xc87   :  { %3936 = vmatmul.bf16.gmra.mxu1 %v3911_v42 }
 0xc8a   :  { %4254 = vmatpush.bf16.msra.mxu2 %v6682_v31 }
 0xc8b   :  { %v7962_v44 = vpop.f32.mrf.mxu0 }
 0xc8e   :  { %4255 = vmatpush.bf16.msra.mxu2 %v6681_v7 }
 0xc92   :  { %4256 = vmatpush.bf16.msra.mxu2 %v6680_v18 }
 0xc93   :  { %v3854_v40 = vpop.f32.mrf.mxu0 }
 0xc96   :  { %4257 = vmatpush.bf16.msra.mxu2 %v6679_v34 }
 0xc97   :  { %3941 = vmatmul.bf16.gmra.mxu1 %v3912_v45 }
 0xc9a   :  { %4258 = vmatpush.bf16.msra.mxu2 %v6678_v10 }
 0xc9b   :  { %v3856_v42 = vpop.f32.mrf.mxu0 }
 0xca4   :  { %v3927_v20 = vpop.f32.mrf.mxu1 }
 0xca7   :  { %3946 = vmatmul.bf16.gmra.mxu1 %v3913_v14 }
 0xcac   :  { %v3929_v49 = vpop.f32.mrf.mxu1 }
 0xcb7   :  { %3951 = vmatmul.bf16.gmra.mxu1 %v3914_v13 }
 0xcc7   :  { %3956 = vmatmul.bf16.gmra.mxu1 %v3915_v38  ;;  %v3859_v38 = vpop.f32.mrf.mxu0 }
 0xcd4   :  { %v3932_v22 = vpop.f32.mrf.mxu1 }
 0xcd5   :  { %v3972_v15 = vmax.f32 %v3927_v20, %v3932_v22 }
 0xcd7   :  { %3961 = vmatmul.bf16.gmra.mxu1 %v3916_v41 }
 0xcdc   :  { %v3934_v9 = vpop.f32.mrf.mxu1 }
 0xcdd   :  { %v3973_v30 = vmax.f32 %v3929_v49, %v3934_v9 }
 0xce7   :  { %3966 = vmatmul.bf16.gmra.mxu1 %v3917_v26 }
 0xd04   :  { %v3937_v17 = vpop.f32.mrf.mxu1 }
 0xd05   :  { %v3974_v33 = vmax.f32 %v3972_v15, %v3937_v17 }
 0xd07   :  { %v3976_v53 = vsub.f32 %v3927_v20, %v3974_v33  ;;  %v3982_v59 = vsub.f32 %v3932_v22, %v3974_v33  ;;  %v3988_v28 = vsub.f32 %v3937_v17, %v3974_v33  ;;  %v3884_v22 = vperm.slane %v7956_v2, 2 }
 0xd09   :  { %v3978_v12 = vmul.f32 1.442695, %v3976_v53  ;;  %v3984_v24 = vmul.f32 1.442695, %v3982_v59  ;;  %v3990_v60 = vmul.f32 1.442695, %v3988_v28  ;;  %v7970_v53 = vadd.f32 %v3884_v22, %v7960_v54  ;;  %v3861_v54 = vpop.f32.mrf.mxu0 }
 0xd0a   :  { %v7972_v59 = vadd.f32 %v3884_v22, %v3854_v40 }
 0xd0b   :  { %6908 = vpow2.f32 %v3978_v12 }
 0xd0c   :  { %6910 = vpow2.f32 %v3984_v24  ;;  %v3939_v55 = vpop.f32.mrf.mxu1 }
 0xd0d   :  { %v3975_v29 = vmax.f32 %v3973_v30, %v3939_v55  ;;  %6912 = vpow2.f32 %v3990_v60 }
 0xd0f   :  { %v3977_v19 = vsub.f32 %v3929_v49, %v3975_v29  ;;  %v3983_v23 = vsub.f32 %v3934_v9, %v3975_v29  ;;  %v3989_v36 = vsub.f32 %v3939_v55, %v3975_v29  ;;  %v7977_v55 = vadd.f32 %v3884_v22, %v7962_v44 }
 0xd10   :  { %v7979_v29 = vadd.f32 %v3884_v22, %v3856_v42 }
 0xd11   :  { %v6909_v14 = vpop.eup %6908  ;;  %v3980_v43 = vmul.f32 1.442695, %v3977_v19  ;;  %v3986_v27 = vmul.f32 1.442695, %v3983_v23  ;;  %v3992_v25 = vmul.f32 1.442695, %v3989_v36 }
 0xd12   :  { %v6911_v6 = vpop.eup %6910 }
 0xd13   :  { %v3994_v5 = vadd.f32 %v6911_v6, %v6909_v14  ;;  %6914 = vpow2.f32 %v3980_v43  ;;  %v6913_v50 = vpop.eup %6912  ;;  %v7981_v43 = vadd.f32 %v3884_v22, %v3859_v38 }
 0xd14   :  { %6916 = vpow2.f32 %v3986_v27  ;;  %v7964_v16 = vpop.f32.mrf.mxu1  ;;  %v7983_v27 = vadd.f32 %v3884_v22, %v3861_v54 }
 0xd15   :  { %v3996_v46 = vadd.f32 %v6913_v50, %v3994_v5  ;;  %6918 = vpow2.f32 %v3992_v25 }
 0xd17   :  { %6920 = vrcp.f32 %v3996_v46  ;;  %v4009_v45 = vand.u32 2147483648, %v3996_v46  ;;  %v4007_v1 = vand.u32 2147483647, %v3996_v46  ;;  %vm4003_vm10 = vweird.f32 %v3996_v46 }
 0xd19   :  { %v6915_v47 = vpop.eup %6914  ;;  %v4010_v37 = vor.u32 1.1754944e-38, %v4009_v45  ;;  %vm4008_vm12 = vcmp.eq.f32.partialorder %v4007_v1, 8.507059e+37 }
 0xd1a   :  { %v6917_v41 = vpop.eup %6916 }
 0xd1b   :  { %v3995_v8 = vadd.f32 %v6917_v41, %v6915_v47  ;;  %v6919_v52 = vpop.eup %6918 }
 0xd1c   :  { %v7966_v39 = vpop.f32.mrf.mxu1 }
 0xd1d   :  { %v6921_v4 = vpop.eup %6920  ;;  %v3997_v26 = vadd.f32 %v6919_v52, %v3995_v8 }
 0xd1e   :  { %v3999_v0 = vmul.f32 %v6921_v4, %v3996_v46  ;;  %vm4004_vm9 = vweird.f32 %v6921_v4 }
 0xd1f   :  { %6922 = vrcp.f32 %v3997_v26  ;;  %vm4005_vm11 = vmor %vm4003_vm10, %vm4004_vm9  ;;  %v4021_v11 = vand.u32 2147483647, %v3997_v26  ;;  %v4023_v15 = vand.u32 2147483648, %v3997_v26  ;;  %vm4017_vm14 = vweird.f32 %v3997_v26 }
 0xd20   :  { %v4000_v32 = vsub.f32 1.0, %v3999_v0 }
 0xd21   :  { %v4024_v24 = vor.u32 1.1754944e-38, %v4023_v15  ;;  %vm4022_vm0 = vcmp.eq.f32.partialorder %v4021_v11, 8.507059e+37 }
 0xd22   :  { %v4001_v35 = vmul.f32 %v6921_v4, %v4000_v32 }
 0xd24   :  { %v4002_v13 = vadd.f32 %v6921_v4, %v4001_v35  ;;  %v3947_v56 = vpop.f32.mrf.mxu1 }
 0xd25   :  { %v6923_v61 = vpop.eup %6922  ;;  %v4042_v44 = vmax.f32 %v7964_v16, %v3947_v56 }
 0xd26   :  { %v4006_v58 = vsel %vm4005_vm11, %v6921_v4, %v4002_v13  ;;  %v4013_v20 = vmul.f32 %v6923_v61, %v3997_v26  ;;  %vm4018_vm13 = vweird.f32 %v6923_v61 }
 0xd27   :  { %v4011_v49 = vsel %vm4008_vm12, %v4010_v37, %v4006_v58  ;;  %vm4019_vm15 = vmor %vm4017_vm14, %vm4018_vm13 }
 0xd28   :  { %v4014_v9 = vsub.f32 1.0, %v4013_v20  ;;  %v4026_v17 = vmul.f32 %v6909_v14, %v4011_v49  ;;  %v4030_v33 = vmul.f32 %v6911_v6, %v4011_v49  ;;  %v4036_v19 = vmul.f32 %v6913_v50, %v4011_v49 }
 0xd2a   :  { %v4015_v31 = vmul.f32 %v6923_v61, %v4014_v9  ;;  %v4028_v60 = vmul.f32 %v4026_v17, %v7970_v53  ;;  %v4032_v7 = vmul.f32 %v4030_v33, %v7972_v59  ;;  %v4038_v40 = vmul.f32 %v4036_v19, %v7981_v43 }
 0xd2c   :  { %v4016_v28 = vadd.f32 %v6923_v61, %v4015_v31  ;;  %v3949_v12 = vpop.f32.mrf.mxu1  ;;  %v4034_v6 = vadd.f32 %v4032_v7, %v4028_v60 }
 0xd2d   :  { %v4043_v45 = vmax.f32 %v7966_v39, %v3949_v12 }
 0xd2e   :  { %v4020_v30 = vsel %vm4019_vm15, %v6923_v61, %v4016_v28 }
 0xd2f   :  { %v4025_v18 = vsel %vm4022_vm0, %v4024_v24, %v4020_v30 }
 0xd30   :  { %v4027_v23 = vmul.f32 %v6915_v47, %v4025_v18  ;;  %v4031_v36 = vmul.f32 %v6917_v41, %v4025_v18  ;;  %v4037_v14 = vmul.f32 %v6919_v52, %v4025_v18  ;;  %v4040_v47 = vadd.f32 %v4038_v40, %v4034_v6 }
 0xd32   :  { %v4029_v25 = vmul.f32 %v4027_v23, %v7977_v55  ;;  %v4033_v34 = vmul.f32 %v4031_v36, %v7979_v29  ;;  %v4039_v46 = vmul.f32 %v4037_v14, %v7983_v27 }
 0xd34   :  { %v4035_v5 = vadd.f32 %v4033_v34, %v4029_v25  ;;  %v3952_v50 = vpop.f32.mrf.mxu1 }
 0xd35   :  { %v4044_v10 = vmax.f32 %v4042_v44, %v3952_v50 }
 0xd36   :  { %v4041_v41 = vadd.f32 %v4039_v46, %v4035_v5 }
 0xd37   :  { %v4046_v8 = vsub.f32 %v7964_v16, %v4044_v10  ;;  %v4052_v52 = vsub.f32 %v3947_v56, %v4044_v10  ;;  %v4058_v4 = vsub.f32 %v3952_v50, %v4044_v10 }
 0xd38   :  { %v4182_v42 = vpack.c.bf16 %v4041_v41, %v4040_v47 }
 0xd39   :  { %v4048_v26 = vmul.f32 1.442695, %v4046_v8  ;;  %v4054_v0 = vmul.f32 1.442695, %v4052_v52  ;;  %v4060_v32 = vmul.f32 1.442695, %v4058_v4 }
 0xd3a   :  { %4259 = vmatmul.bf16.vlgmr.msra.gmra.mxu2 %v4182_v42 }
 0xd3b   :  { %6924 = vpow2.f32 %v4048_v26 }
 0xd3c   :  { %6926 = vpow2.f32 %v4054_v0  ;;  %v3954_v35 = vpop.f32.mrf.mxu1 }
 0xd3d   :  { %v4045_v1 = vmax.f32 %v4043_v45, %v3954_v35  ;;  %6928 = vpow2.f32 %v4060_v32 }
 0xd3f   :  { %v4047_v13 = vsub.f32 %v7966_v39, %v4045_v1  ;;  %v4053_v61 = vsub.f32 %v3949_v12, %v4045_v1  ;;  %v4059_v38 = vsub.f32 %v3954_v35, %v4045_v1 }
 0xd41   :  { %v6925_v37 = vpop.eup %6924  ;;  %v4050_v16 = vmul.f32 1.442695, %v4047_v13  ;;  %v4056_v56 = vmul.f32 1.442695, %v4053_v61  ;;  %v4062_v20 = vmul.f32 1.442695, %v4059_v38 }
 0xd42   :  { %v6927_v58 = vpop.eup %6926 }
 0xd43   :  { %v4064_v49 = vadd.f32 %v6927_v58, %v6925_v37  ;;  %6930 = vpow2.f32 %v4050_v16  ;;  %v6929_v22 = vpop.eup %6928 }
 0xd44   :  { %6932 = vpow2.f32 %v4056_v56  ;;  %v7993_v9 = vpop.f32.mrf.mxu1 }
 0xd45   :  { %v4066_v11 = vadd.f32 %v6929_v22, %v4064_v49  ;;  %6934 = vpow2.f32 %v4062_v20 }
 0xd47   :  { %6936 = vrcp.f32 %v4066_v11  ;;  %v4079_v7 = vand.u32 2147483648, %v4066_v11  ;;  %v4077_v54 = vand.u32 2147483647, %v4066_v11  ;;  %vm4073_vm2 = vweird.f32 %v4066_v11 }
 0xd49   :  { %v6931_v15 = vpop.eup %6930  ;;  %v4080_v36 = vor.u32 1.1754944e-38, %v4079_v7  ;;  %vm4078_vm4 = vcmp.eq.f32.partialorder %v4077_v54, 8.507059e+37 }
 0xd4a   :  { %v6933_v17 = vpop.eup %6932 }
 0xd4b   :  { %v4065_v33 = vadd.f32 %v6933_v17, %v6931_v15  ;;  %v6935_v39 = vpop.eup %6934 }
 0xd4c   :  { %v7995_v31 = vpop.f32.mrf.mxu1 }
 0xd4d   :  { %v6937_v28 = vpop.eup %6936  ;;  %v4067_v12 = vadd.f32 %v6935_v39, %v4065_v33 }
 0xd4e   :  { %v4069_v24 = vmul.f32 %v6937_v28, %v4066_v11  ;;  %vm4074_vm1 = vweird.f32 %v6937_v28 }
 0xd4f   :  { %6938 = vrcp.f32 %v4067_v12  ;;  %vm4075_vm3 = vmor %vm4073_vm2, %vm4074_vm1  ;;  %v4091_v44 = vand.u32 2147483647, %v4067_v12  ;;  %v4093_v40 = vand.u32 2147483648, %v4067_v12  ;;  %vm4087_vm6 = vweird.f32 %v4067_v12 }
 0xd50   :  { %v4070_v60 = vsub.f32 1.0, %v4069_v24 }
 0xd51   :  { %v4094_v41 = vor.u32 1.1754944e-38, %v4093_v40  ;;  %vm4092_vm8 = vcmp.eq.f32.partialorder %v4091_v44, 8.507059e+37 }
 0xd52   :  { %v4071_v30 = vmul.f32 %v6937_v28, %v4070_v60 }
 0xd54   :  { %v4072_v18 = vadd.f32 %v6937_v28, %v4071_v30  ;;  %v3962_v19 = vpop.f32.mrf.mxu1 }
 0xd55   :  { %v6939_v23 = vpop.eup %6938  ;;  %v4112_v61 = vmax.f32 %v7993_v9, %v3962_v19 }
 0xd56   :  { %v4076_v14 = vsel %vm4075_vm3, %v6937_v28, %v4072_v18  ;;  %v4083_v6 = vmul.f32 %v6939_v23, %v4067_v12  ;;  %vm4088_vm5 = vweird.f32 %v6939_v23 }
 0xd57   :  { %v4081_v25 = vsel %vm4078_vm4, %v4080_v36, %v4076_v14  ;;  %vm4089_vm7 = vmor %vm4087_vm6, %vm4088_vm5 }
 0xd58   :  { %v4084_v34 = vsub.f32 1.0, %v4083_v6  ;;  %v4096_v46 = vmul.f32 %v6925_v37, %v4081_v25  ;;  %v4100_v50 = vmul.f32 %v6927_v58, %v4081_v25  ;;  %v4106_v26 = vmul.f32 %v6929_v22, %v4081_v25 }
 0xd5a   :  { %v4085_v5 = vmul.f32 %v6939_v23, %v4084_v34  ;;  %v4098_v52 = vmul.f32 %v4096_v46, %v7970_v53  ;;  %v4102_v4 = vmul.f32 %v4100_v50, %v7972_v59  ;;  %v4108_v16 = vmul.f32 %v4106_v26, %v7981_v43 }
 0xd5c   :  { %v4086_v10 = vadd.f32 %v6939_v23, %v4085_v5  ;;  %v3964_v47 = vpop.f32.mrf.mxu1  ;;  %v4104_v13 = vadd.f32 %v4102_v4, %v4098_v52 }
 0xd5d   :  { %v4113_v12 = vmax.f32 %v7995_v31, %v3964_v47 }
 0xd5e   :  { %v4090_v8 = vsel %vm4089_vm7, %v6939_v23, %v4086_v10  ;;  %v4110_v20 = vadd.f32 %v4108_v16, %v4104_v13 }
 0xd5f   :  { %v4095_v42 = vsel %vm4092_vm8, %v4094_v41, %v4090_v8 }
 0xd60   :  { %v4107_v0 = vmul.f32 %v6935_v39, %v4095_v42  ;;  %v4097_v32 = vmul.f32 %v6931_v15, %v4095_v42  ;;  %v4101_v45 = vmul.f32 %v6933_v17, %v4095_v42 }
 0xd62   :  { %v4099_v35 = vmul.f32 %v4097_v32, %v7977_v55  ;;  %v4103_v1 = vmul.f32 %v4101_v45, %v7979_v29  ;;  %v4109_v56 = vmul.f32 %v4107_v0, %v7983_v27 }
 0xd64   :  { %v3967_v38 = vpop.f32.mrf.mxu1  ;;  %v4105_v37 = vadd.f32 %v4103_v1, %v4099_v35 }
 0xd65   :  { %v4114_v58 = vmax.f32 %v4112_v61, %v3967_v38 }
 0xd66   :  { %v4111_v49 = vadd.f32 %v4109_v56, %v4105_v37 }
 0xd67   :  { %v4116_v22 = vsub.f32 %v7993_v9, %v4114_v58  ;;  %v4122_v11 = vsub.f32 %v3962_v19, %v4114_v58  ;;  %v4128_v15 = vsub.f32 %v3967_v38, %v4114_v58 }
 0xd68   :  { %v4183_v17 = vpack.c.bf16 %v4111_v49, %v4110_v20 }
 0xd69   :  { %v4118_v33 = vmul.f32 1.442695, %v4116_v22  ;;  %v4124_v39 = vmul.f32 1.442695, %v4122_v11  ;;  %v4130_v28 = vmul.f32 1.442695, %v4128_v15 }
 0xd6a   :  { %4264 = vmatmul.bf16.gmra.mxu2 %v4183_v17 }
 0xd6b   :  { %6940 = vpow2.f32 %v4118_v33 }
 0xd6c   :  { %6942 = vpow2.f32 %v4124_v39  ;;  %v3969_v24 = vpop.f32.mrf.mxu1 }
 0xd6d   :  { %v4115_v60 = vmax.f32 %v4113_v12, %v3969_v24  ;;  %6944 = vpow2.f32 %v4130_v28 }
 0xd6f   :  { %v4117_v7 = vsub.f32 %v7995_v31, %v4115_v60  ;;  %v4123_v30 = vsub.f32 %v3964_v47, %v4115_v60  ;;  %v4129_v54 = vsub.f32 %v3969_v24, %v4115_v60 }
 0xd71   :  { %v6941_v18 = vpop.eup %6940  ;;  %v4120_v9 = vmul.f32 1.442695, %v4117_v7  ;;  %v4126_v19 = vmul.f32 1.442695, %v4123_v30  ;;  %v4132_v36 = vmul.f32 1.442695, %v4129_v54 }
 0xd72   :  { %v6943_v23 = vpop.eup %6942 }
 0xd73   :  { %v4134_v14 = vadd.f32 %v6943_v23, %v6941_v18  ;;  %6946 = vpow2.f32 %v4120_v9  ;;  %v6945_v6 = vpop.eup %6944 }
 0xd74   :  { %6948 = vpow2.f32 %v4126_v19 }
 0xd75   :  { %v4136_v25 = vadd.f32 %v6945_v6, %v4134_v14  ;;  %6950 = vpow2.f32 %v4132_v36 }
 0xd77   :  { %6952 = vrcp.f32 %v4136_v25  ;;  %v4149_v47 = vand.u32 2147483648, %v4136_v25  ;;  %v4147_v8 = vand.u32 2147483647, %v4136_v25  ;;  %vm4143_vm10 = vweird.f32 %v4136_v25 }
 0xd79   :  { %v6947_v34 = vpop.eup %6946  ;;  %v4150_v42 = vor.u32 1.1754944e-38, %v4149_v47  ;;  %vm4148_vm12 = vcmp.eq.f32.partialorder %v4147_v8, 8.507059e+37 }
 0xd7a   :  { %v6949_v44 = vpop.eup %6948 }
 0xd7b   :  { %v4135_v40 = vadd.f32 %v6949_v44, %v6947_v34  ;;  %v6951_v5 = vpop.eup %6950 }
 0xd7d   :  { %v6953_v46 = vpop.eup %6952  ;;  %v4137_v31 = vadd.f32 %v6951_v5, %v4135_v40 }
 0xd7e   :  { %v4139_v50 = vmul.f32 %v6953_v46, %v4136_v25  ;;  %vm4144_vm9 = vweird.f32 %v6953_v46 }
 0xd7f   :  { %6954 = vrcp.f32 %v4137_v31  ;;  %vm4145_vm11 = vmor %vm4143_vm10, %vm4144_vm9  ;;  %v4161_v35 = vand.u32 2147483647, %v4137_v31  ;;  %v4163_v1 = vand.u32 2147483648, %v4137_v31  ;;  %vm4157_vm14 = vweird.f32 %v4137_v31 }
 0xd80   :  { %v4140_v10 = vsub.f32 1.0, %v4139_v50 }
 0xd81   :  { %v4164_v16 = vor.u32 1.1754944e-38, %v4163_v1  ;;  %vm4162_vm0 = vcmp.eq.f32.partialorder %v4161_v35, 8.507059e+37  ;;  %v6700_v35 = vld [vmem:[#allocation10 + $0x174] sm:$0xf] }
 0xd82   :  { %v4141_v41 = vmul.f32 %v6953_v46, %v4140_v10 }
 0xd84   :  { %v4142_v52 = vadd.f32 %v6953_v46, %v4141_v41 }
 0xd85   :  { %v6955_v4 = vpop.eup %6954 }
 0xd86   :  { %v4146_v26 = vsel %vm4145_vm11, %v6953_v46, %v4142_v52  ;;  %v4153_v0 = vmul.f32 %v6955_v4, %v4137_v31  ;;  %vm4158_vm13 = vweird.f32 %v6955_v4 }
 0xd87   :  { %v4151_v32 = vsel %vm4148_vm12, %v4150_v42, %v4146_v26  ;;  %vm4159_vm15 = vmor %vm4157_vm14, %vm4158_vm13 }
 0xd88   :  { %v4154_v45 = vsub.f32 1.0, %v4153_v0  ;;  %v4166_v61 = vmul.f32 %v6941_v18, %v4151_v32  ;;  %v4170_v38 = vmul.f32 %v6943_v23, %v4151_v32  ;;  %v4176_v22 = vmul.f32 %v6945_v6, %v4151_v32  ;;  %v6264_v32 = vld [vmem:[#allocation10 + $0x170] sm:$0xf] }
 0xd8a   :  { %v4155_v13 = vmul.f32 %v6955_v4, %v4154_v45  ;;  %v4168_v58 = vmul.f32 %v4166_v61, %v7970_v53  ;;  %v4172_v20 = vmul.f32 %v4170_v38, %v7972_v59  ;;  %v4178_v24 = vmul.f32 %v4176_v22, %v7981_v43  ;;  %v6701_v45 = vld [vmem:[#allocation10 + $0x174] sm:$0xf0]  ;;  %v6266_v61 = vld [vmem:[#allocation10 + $0x178] sm:$0xf0]  ;;  %v6258_v22 = vld [vmem:[#allocation10 + $0x168] sm:$0xf0] }
 0xd8b   :  { %v4202_v59 = vperm.slane %v7956_v2, 3  ;;  %v6269_v38 = vor.u32 %v6700_v35, %v6266_v61 }
 0xd8c   :  { %v4156_v37 = vadd.f32 %v6955_v4, %v4155_v13  ;;  %v4174_v28 = vadd.f32 %v4172_v20, %v4168_v58  ;;  %v6265_v13 = vor.u32 %v6701_v45, %v6264_v32  ;;  %v6698_v58 = vld [vmem:[#allocation10 + $0x164] sm:$0xf] }
 0xd8d   :  { %4546 = vmatpush.bf16.msrb.mxu0 %v6269_v38 }
 0xd8e   :  { %v4160_v56 = vsel %vm4159_vm15, %v6955_v4, %v4156_v37  ;;  %v4180_v7 = vadd.f32 %v4178_v24, %v4174_v28  ;;  %4522 = vmatpush.bf16.msra.mxu3 %v6265_v13  ;;  %v6250_v24 = vld [vmem:[#allocation10 + $0x158] sm:$0xf0] }
 0xd8f   :  { %v4165_v49 = vsel %vm4162_vm0, %v4164_v16, %v4160_v56  ;;  %v6256_v16 = vld [vmem:[#allocation10 + $0x160] sm:$0xf]  ;;  %v6699_v56 = vld [vmem:[#allocation10 + $0x164] sm:$0xf0] }
 0xd90   :  { %v4177_v11 = vmul.f32 %v6951_v5, %v4165_v49  ;;  %v4167_v15 = vmul.f32 %v6947_v34, %v4165_v49  ;;  %v4171_v17 = vmul.f32 %v6949_v44, %v4165_v49  ;;  %v6257_v49 = vor.u32 %v6699_v56, %v6256_v16 }
 0xd92   :  { %v4169_v33 = vmul.f32 %v4167_v15, %v7977_v55  ;;  %v4173_v39 = vmul.f32 %v4171_v17, %v7979_v29  ;;  %v4179_v60 = vmul.f32 %v4177_v11, %v7983_v27  ;;  %v6261_v11 = vor.u32 %v6698_v58, %v6258_v22  ;;  %4523 = vmatpush.bf16.msra.mxu3 %v6257_v49  ;;  %v6248_v17 = vld [vmem:[#allocation10 + $0x150] sm:$0xf] }
 0xd94   :  { %v4175_v12 = vadd.f32 %v4173_v39, %v4169_v33  ;;  %4547 = vmatpush.bf16.msrb.mxu0 %v6261_v11  ;;  %v6697_v33 = vld [vmem:[#allocation10 + $0x154] sm:$0xf0]  ;;  %v6696_v39 = vld [vmem:[#allocation10 + $0x154] sm:$0xf] }
 0xd96   :  { %v4181_v30 = vadd.f32 %v4179_v60, %v4175_v12  ;;  %v6249_v12 = vor.u32 %v6697_v33, %v6248_v17  ;;  %v6253_v60 = vor.u32 %v6696_v39, %v6250_v24  ;;  %v8053_v17 = vperm.slane %v7956_v2, 5 }
 0xd98   :  { %v4184_v53 = vpack.c.bf16 %v4181_v30, %v4180_v7  ;;  %4524 = vmatpush.bf16.msra.mxu3 %v6249_v12  ;;  %4548 = vmatpush.bf16.msrb.mxu0 %v6253_v60  ;;  %v6240_v30 = vld [vmem:[#allocation10 + $0x140] sm:$0xf]  ;;  %v8057_v12 = vperm.slane %v7956_v2, 6 }
 0xd9a   :  { %4269 = vmatmul.bf16.gmra.mxu2 %v4184_v53  ;;  %v6695_v53 = vld [vmem:[#allocation10 + $0x144] sm:$0xf0] }
 0xdbd   :  { %v4260_v54 = vpop.f32.mrf.mxu2 }
 0xdbe   :  { %v4261_v18 = vadd.f32 %v4260_v54, %v4202_v59 }
 0xdc0   :  { %v4275_v9 = vadd.f32 %v4261_v18, %v7918_v63  ;;  %v6241_v18 = vor.u32 %v6695_v53, %v6240_v30 }
 0xdc2   :  { %4281 = vadd.xlane.f32.xlu0 %v4275_v9  ;;  %4525 = vmatpush.bf16.msra.mxu3 %v6241_v18 }
 0xdc5   :  { %v4262_v55 = vpop.f32.mrf.mxu2 }
 0xdc6   :  { %v4263_v19 = vadd.f32 %v4262_v55, %v4202_v59 }
 0xdc8   :  { %v4276_v29 = vadd.f32 %v4263_v19, %v7921_v21  ;;  %v6232_v19 = vld [vmem:[#allocation10 + $0x130] sm:$0xf] }
 0xdca   :  { %4283 = vadd.xlane.f32.xlu1 %v4276_v29 }
 0xded   :  { %v4265_v23 = vpop.f32.mrf.mxu2 }
 0xdee   :  { %v4266_v43 = vadd.f32 %v4265_v23, %v4202_v59  ;;  %v6692_v23 = vld [vmem:[#allocation10 + $0x134] sm:$0xf] }
 0xdf0   :  { %v4277_v27 = vadd.f32 %v4266_v43, %v7932_v57 }
 0xdf2   :  { %4285 = vadd.xlane.f32.xlu2 %v4277_v27 }
 0xdf5   :  { %v4267_v36 = vpop.f32.mrf.mxu2 }
 0xdf6   :  { %v4268_v14 = vadd.f32 %v4267_v36, %v4202_v59 }
 0xdf8   :  { %v4278_v6 = vadd.f32 %v4268_v14, %v7935_v3  ;;  %v6224_v14 = vld [vmem:[#allocation10 + $0x120] sm:$0xf] }
 0xdfa   :  { %4287 = vadd.xlane.f32.xlu0 %v4278_v6 }
 0xe1d   :  { %v4270_v25 = vpop.f32.mrf.mxu2 }
 0xe1e   :  { %v4271_v34 = vadd.f32 %v4270_v25, %v4202_v59  ;;  %v6690_v25 = vld [vmem:[#allocation10 + $0x124] sm:$0xf] }
 0xe20   :  { %v4279_v63 = vadd.f32 %v4271_v34, %v7946_v51 }
 0xe22   :  { %4289 = vadd.xlane.f32.xlu1 %v4279_v63 }
 0xe25   :  { %v4272_v44 = vpop.f32.mrf.mxu2 }
 0xe26   :  { %v4273_v40 = vadd.f32 %v4272_v44, %v4202_v59  ;;  %v6694_v59 = vld [vmem:[#allocation10 + $0x144] sm:$0xf] }
 0xe28   :  { %v4280_v21 = vadd.f32 %v4273_v40, %v7949_v62  ;;  %v6216_v40 = vld [vmem:[#allocation10 + $0x110] sm:$0xf] }
 0xe2a   :  { %4291 = vadd.xlane.f32.xlu2 %v4280_v21 }
 0xe35   :  { %v4282_v5 = vpop.xlane.xlu0 %4281 }
 0xe36   :  { %v4293_v46 = vmul.f32 %v4282_v5, %v7490_v48  ;;  %v6688_v5 = vld [vmem:[#allocation10 + $0x114] sm:$0xf] }
 0xe38   :  { %v8021_v57 = vsub.f32 %v4275_v9, %v4293_v46  ;;  %v6242_v9 = vld [vmem:[#allocation10 + $0x148] sm:$0xf0] }
 0xe39   :  { %v6245_v55 = vor.u32 %v6694_v59, %v6242_v9 }
 0xe3a   :  { %v4305_v31 = vmul.f32 %v8021_v57, %v8021_v57 }
 0xe3b   :  { %4549 = vmatpush.bf16.msrb.mxu0 %v6245_v55 }
 0xe3c   :  { %4311 = vadd.xlane.f32.xlu0 %v4305_v31  ;;  %v6218_v31 = vld [vmem:[#allocation10 + $0x118] sm:$0xf0] }
 0xe3d   :  { %v4284_v3 = vpop.xlane.xlu1 %4283 }
 0xe3e   :  { %v4294_v50 = vmul.f32 %v4284_v3, %v7490_v48 }
 0xe40   :  { %v8026_v10 = vsub.f32 %v4276_v29, %v4294_v50  ;;  %v6693_v29 = vld [vmem:[#allocation10 + $0x134] sm:$0xf0]  ;;  %v6221_v50 = vor.u32 %v6688_v5, %v6218_v31 }
 0xe41   :  { %v6233_v43 = vor.u32 %v6693_v29, %v6232_v19 }
 0xe42   :  { %v4306_v51 = vmul.f32 %v8026_v10, %v8026_v10 }
 0xe43   :  { %4526 = vmatpush.bf16.msra.mxu3 %v6233_v43 }
 0xe44   :  { %4313 = vadd.xlane.f32.xlu1 %v4306_v51 }
 0xe65   :  { %v4286_v62 = vpop.xlane.xlu2 %4285 }
 0xe66   :  { %v4295_v47 = vmul.f32 %v4286_v62, %v7490_v48  ;;  %v6208_v62 = vld [vmem:[#allocation10 + $0x100] sm:$0xf] }
 0xe68   :  { %v8031_v41 = vsub.f32 %v4277_v27, %v4295_v47  ;;  %v6234_v27 = vld [vmem:[#allocation10 + $0x138] sm:$0xf0]  ;;  %v6687_v47 = vld [vmem:[#allocation10 + $0x104] sm:$0xf0] }
 0xe69   :  { %v6237_v36 = vor.u32 %v6692_v23, %v6234_v27 }
 0xe6a   :  { %v4307_v8 = vmul.f32 %v8031_v41, %v8031_v41 }
 0xe6b   :  { %4550 = vmatpush.bf16.msrb.mxu0 %v6237_v36 }
 0xe6c   :  { %4315 = vadd.xlane.f32.xlu2 %v4307_v8  ;;  %v6686_v8 = vld [vmem:[#allocation10 + $0x104] sm:$0xf] }
 0xe6d   :  { %v4288_v52 = vpop.xlane.xlu0 %4287 }
 0xe6e   :  { %v4296_v4 = vmul.f32 %v4288_v52, %v7490_v48 }
 0xe70   :  { %v8036_v42 = vsub.f32 %v4278_v6, %v4296_v4  ;;  %v6691_v6 = vld [vmem:[#allocation10 + $0x124] sm:$0xf0]  ;;  %v6209_v4 = vor.u32 %v6687_v47, %v6208_v62 }
 0xe71   :  { %v6225_v34 = vor.u32 %v6691_v6, %v6224_v14 }
 0xe72   :  { %v4308_v26 = vmul.f32 %v8036_v42, %v8036_v42 }
 0xe73   :  { %4527 = vmatpush.bf16.msra.mxu3 %v6225_v34 }
 0xe74   :  { %4317 = vadd.xlane.f32.xlu0 %v4308_v26  ;;  %v6210_v26 = vld [vmem:[#allocation10 + $0x108] sm:$0xf0] }
 0xe95   :  { %v4290_v0 = vpop.xlane.xlu1 %4289 }
 0xe96   :  { %v4297_v1 = vmul.f32 %v4290_v0, %v7490_v48  ;;  %v6213_v0 = vor.u32 %v6686_v8, %v6210_v26 }
 0xe98   :  { %v8041_v37 = vsub.f32 %v4279_v63, %v4297_v1  ;;  %v6226_v63 = vld [vmem:[#allocation10 + $0x128] sm:$0xf0] }
 0xe99   :  { %v6229_v44 = vor.u32 %v6690_v25, %v6226_v63 }
 0xe9a   :  { %v4309_v20 = vmul.f32 %v8041_v37, %v8041_v37 }
 0xe9b   :  { %4551 = vmatpush.bf16.msrb.mxu0 %v6229_v44 }
 0xe9c   :  { %4319 = vadd.xlane.f32.xlu1 %v4309_v20 }
 0xe9d   :  { %v4292_v15 = vpop.xlane.xlu2 %4291 }
 0xe9e   :  { %v4298_v28 = vmul.f32 %v4292_v15, %v7490_v48 }
 0xe9f   :  { %4552 = vmatpush.bf16.msrb.mxu0 %v6221_v50 }
 0xea0   :  { %v8046_v7 = vsub.f32 %v4280_v21, %v4298_v28  ;;  %v6689_v21 = vld [vmem:[#allocation10 + $0x114] sm:$0xf0] }
 0xea1   :  { %v6217_v46 = vor.u32 %v6689_v21, %v6216_v40 }
 0xea2   :  { %v4310_v54 = vmul.f32 %v8046_v7, %v8046_v7 }
 0xea3   :  { %4528 = vmatpush.bf16.msra.mxu3 %v6217_v46  ;;  %4553 = vmatpush.bf16.msrb.mxu0 %v6213_v0  ;;  %v6716_v0 = vld [vmem:[#allocation11 + $0x170] sm:$0xff] }
 0xea4   :  { %4321 = vadd.xlane.f32.xlu2 %v4310_v54 }
 0xea7   :  { %4529 = vmatpush.bf16.msra.mxu3 %v6209_v4 }
 0xeaf   :  { %v4312_v3 = vpop.xlane.xlu0 %4311 }
 0xeb0   :  { %v4323_v51 = vmul.f32 %v4312_v3, %v7490_v48 }
 0xeb2   :  { %v4329_v52 = vadd.f32 1e-05, %v4323_v51 }
 0xeb4   :  { %6956 = vrsqrt.f32 %v4329_v52  ;;  %vm4341_vm2 = vweird.f32 %v4329_v52 }
 0xeb7   :  { %v4314_v32 = vpop.xlane.xlu1 %4313 }
 0xeb8   :  { %v4324_v45 = vmul.f32 %v4314_v32, %v7490_v48  ;;  %v6708_v32 = vld [vmem:[#allocation11 + $0x130] sm:$0xff] }
 0xeba   :  { %v6957_v35 = vpop.eup %6956  ;;  %v4330_v1 = vadd.f32 1e-05, %v4324_v45 }
 0xebb   :  { %v4336_v13 = vmul.f32 %v6957_v35, %v4329_v52  ;;  %vm4342_vm1 = vweird.f32 %v6957_v35  ;;  %v6709_v52 = vld [vmem:[#allocation11 + $0x138] sm:$0xff] }
 0xebc   :  { %6958 = vrsqrt.f32 %v4330_v1  ;;  %vm4343_vm3 = vmor %vm4341_vm2, %vm4342_vm1  ;;  %vm4351_vm5 = vweird.f32 %v4330_v1  ;;  %4718 = vmatpush.bf16.msrb.mxu2 %v6709_v52 }
 0xebd   :  { %v4337_v61 = vmul.f32 %v6957_v35, %v4336_v13  ;;  %v6715_v13 = vld [vmem:[#allocation11 + $0x168] sm:$0xff] }
 0xebf   :  { %v4338_v38 = vmul.f32 0.5, %v4337_v61  ;;  %v6707_v61 = vld [vmem:[#allocation11 + $0x128] sm:$0xff] }
 0xec0   :  { %4719 = vmatpush.bf16.msrb.mxu2 %v6708_v32 }
 0xec1   :  { %v4339_v16 = vsub.f32 1.5, %v4338_v38 }
 0xec2   :  { %v6959_v56 = vpop.eup %6958 }
 0xec3   :  { %v4340_v58 = vmul.f32 %v6957_v35, %v4339_v16  ;;  %v4346_v20 = vmul.f32 %v6959_v56, %v4330_v1  ;;  %vm4352_vm4 = vweird.f32 %v6959_v56 }
 0xec4   :  { %vm4353_vm6 = vmor %vm4351_vm5, %vm4352_vm4  ;;  %4720 = vmatpush.bf16.msrb.mxu2 %v6707_v61 }
 0xec5   :  { %v4347_v49 = vmul.f32 %v6959_v56, %v4346_v20  ;;  %v4344_v22 = vsel %vm4343_vm3, %v6957_v35, %v4340_v58 }
 0xec6   :  { %v4395_v33 = vmul.f32 %v4344_v22, %v8021_v57 }
 0xec7   :  { %v4348_v11 = vmul.f32 0.5, %v4347_v49 }
 0xec8   :  { %v4402_v24 = vmul.f32 %v8053_v17, %v4395_v33 }
 0xec9   :  { %v4349_v15 = vsub.f32 1.5, %v4348_v11 }
 0xeca   :  { %v8063_v53 = vadd.f32 %v8057_v12, %v4402_v24 }
 0xecb   :  { %v4350_v39 = vmul.f32 %v6959_v56, %v4349_v15 }
 0xecd   :  { %v4354_v28 = vsel %vm4353_vm6, %v6959_v56, %v4350_v39  ;;  %v6714_v56 = vld [vmem:[#allocation11 + $0x160] sm:$0xff] }
 0xece   :  { %v4396_v60 = vmul.f32 %v4354_v28, %v8026_v10 }
 0xed0   :  { %v4403_v30 = vmul.f32 %v8053_v17, %v4396_v60 }
 0xed2   :  { %v8066_v59 = vadd.f32 %v8057_v12, %v4403_v30 }
 0xed4   :  { %v4415_v57 = vpack.c.bf16 %v8066_v59, %v8063_v53 }
 0xed6   :  { %4530 = vmatmul.bf16.vlgmr.msra.gmra.mxu3 %v4415_v57  ;;  %4554 = vmatmul.bf16.vlgmr.msrb.gmra.mxu0 %v4415_v57 }
 0xedf   :  { %v4316_v54 = vpop.xlane.xlu2 %4315 }
 0xee0   :  { %v4325_v2 = vmul.f32 %v4316_v54, %v7490_v48 }
 0xee2   :  { %v4331_v18 = vadd.f32 1e-05, %v4325_v2 }
 0xee4   :  { %6960 = vrsqrt.f32 %v4331_v18  ;;  %vm4361_vm8 = vweird.f32 %v4331_v18 }
 0xee7   :  { %v4318_v9 = vpop.xlane.xlu0 %4317 }
 0xee8   :  { %v4326_v10 = vmul.f32 %v4318_v9, %v7490_v48  ;;  %v6713_v9 = vld [vmem:[#allocation11 + $0x158] sm:$0xff] }
 0xeea   :  { %v6961_v55 = vpop.eup %6960  ;;  %v4332_v19 = vadd.f32 1e-05, %v4326_v10  ;;  %v6706_v10 = vld [vmem:[#allocation11 + $0x120] sm:$0xff] }
 0xeeb   :  { %v4356_v29 = vmul.f32 %v6961_v55, %v4331_v18  ;;  %vm4362_vm7 = vweird.f32 %v6961_v55  ;;  %4721 = vmatpush.bf16.msrb.mxu2 %v6706_v10 }
 0xeec   :  { %6962 = vrsqrt.f32 %v4332_v19  ;;  %vm4363_vm9 = vmor %vm4361_vm8, %vm4362_vm7  ;;  %vm4371_vm11 = vweird.f32 %v4332_v19 }
 0xeed   :  { %v4357_v23 = vmul.f32 %v6961_v55, %v4356_v29  ;;  %v6710_v29 = vld [vmem:[#allocation11 + $0x140] sm:$0xff] }
 0xeef   :  { %v4358_v43 = vmul.f32 0.5, %v4357_v23  ;;  %v6702_v23 = vld [vmem:[#allocation11 + $0x100] sm:$0xff] }
 0xef1   :  { %v4359_v27 = vsub.f32 1.5, %v4358_v43  ;;  %v6205_v43 = vld [vmem:[%s8193_s9 + $0x4] sm:$0x3] }
 0xef2   :  { %v6963_v36 = vpop.eup %6962 }
 0xef3   :  { %v4360_v14 = vmul.f32 %v6961_v55, %v4359_v27  ;;  %v4366_v6 = vmul.f32 %v6963_v36, %v4332_v19  ;;  %vm4372_vm10 = vweird.f32 %v6963_v36  ;;  %v6711_v19 = vld [vmem:[#allocation11 + $0x148] sm:$0xff] }
 0xef4   :  { %vm4373_vm12 = vmor %vm4371_vm11, %vm4372_vm10 }
 0xef5   :  { %v4367_v25 = vmul.f32 %v6963_v36, %v4366_v6  ;;  %v4364_v34 = vsel %vm4363_vm9, %v6961_v55, %v4360_v14  ;;  %v6712_v55 = vld [vmem:[#allocation11 + $0x150] sm:$0xff] }
 0xef6   :  { %v4397_v40 = vmul.f32 %v4364_v34, %v8031_v41  ;;  %v4438_v34 = vperm.slane %v6205_v43, 0 }
 0xef7   :  { %v4368_v63 = vmul.f32 0.5, %v4367_v25 }
 0xef8   :  { %v4404_v31 = vmul.f32 %v8053_v17, %v4397_v40 }
 0xef9   :  { %v4369_v44 = vsub.f32 1.5, %v4368_v63 }
 0xefa   :  { %v8077_v50 = vadd.f32 %v8057_v12, %v4404_v31 }
 0xefb   :  { %v4370_v21 = vmul.f32 %v6963_v36, %v4369_v44 }
 0xefd   :  { %v4374_v5 = vsel %vm4373_vm12, %v6963_v36, %v4370_v21  ;;  %v4439_v36 = vperm.slane %v6205_v43, 1 }
 0xefe   :  { %v4398_v46 = vmul.f32 %v4374_v5, %v8036_v42  ;;  %v6717_v42 = vld [vmem:[#allocation11 + $0x178] sm:$0xff] }
 0xeff   :  { %4742 = vmatpush.bf16.msrb.mxu3 %v6717_v42 }
 0xf00   :  { %v4405_v3 = vmul.f32 %v8053_v17, %v4398_v46 }
 0xf02   :  { %v8080_v51 = vadd.f32 %v8057_v12, %v4405_v3 }
 0xf03   :  { %4743 = vmatpush.bf16.msrb.mxu3 %v6716_v0 }
 0xf04   :  { %v4416_v62 = vpack.c.bf16 %v8080_v51, %v8077_v50 }
 0xf06   :  { %4535 = vmatmul.bf16.gmra.mxu3 %v4416_v62  ;;  %4559 = vmatmul.bf16.gmra.mxu0 %v4416_v62 }
 0xf07   :  { %4744 = vmatpush.bf16.msrb.mxu3 %v6715_v13 }
 0xf0b   :  { %4745 = vmatpush.bf16.msrb.mxu3 %v6714_v56 }
 0xf0f   :  { %v4320_v41 = vpop.xlane.xlu1 %4319  ;;  %4746 = vmatpush.bf16.msrb.mxu3 %v6713_v9  ;;  %v8104_v9 = vld [vmem:[%s8192_s8 + $0x20] sm:$0xff] }
 0xf10   :  { %v4327_v47 = vmul.f32 %v4320_v41, %v7490_v48 }
 0xf12   :  { %v4333_v8 = vadd.f32 1e-05, %v4327_v47 }
 0xf13   :  { %4747 = vmatpush.bf16.msrb.mxu3 %v6712_v55 }
 0xf14   :  { %6964 = vrsqrt.f32 %v4333_v8  ;;  %vm4381_vm14 = vweird.f32 %v4333_v8 }
 0xf17   :  { %v4322_v4 = vpop.xlane.xlu2 %4321  ;;  %4748 = vmatpush.bf16.msrb.mxu3 %v6711_v19 }
 0xf18   :  { %v4328_v26 = vmul.f32 %v4322_v4, %v7490_v48 }
 0xf1a   :  { %v6965_v45 = vpop.eup %6964  ;;  %v4334_v35 = vadd.f32 1e-05, %v4328_v26 }
 0xf1b   :  { %v4376_v1 = vmul.f32 %v6965_v45, %v4333_v8  ;;  %vm4382_vm13 = vweird.f32 %v6965_v45  ;;  %4749 = vmatpush.bf16.msrb.mxu3 %v6710_v29 }
 0xf1c   :  { %6966 = vrsqrt.f32 %v4334_v35  ;;  %vm4383_vm15 = vmor %vm4381_vm14, %vm4382_vm13  ;;  %vm4391_vm1 = vweird.f32 %v4334_v35 }
 0xf1d   :  { %v4377_v38 = vmul.f32 %v6965_v45, %v4376_v1 }
 0xf1f   :  { %v4378_v16 = vmul.f32 0.5, %v4377_v38 }
 0xf21   :  { %v4379_v58 = vsub.f32 1.5, %v4378_v16 }
 0xf22   :  { %v6967_v20 = vpop.eup %6966 }
 0xf23   :  { %v4380_v49 = vmul.f32 %v6965_v45, %v4379_v58  ;;  %v4386_v22 = vmul.f32 %v6967_v20, %v4334_v35  ;;  %vm4392_vm0 = vweird.f32 %v6967_v20 }
 0xf24   :  { %vm4393_vm2 = vmor %vm4391_vm1, %vm4392_vm0 }
 0xf25   :  { %v4387_v11 = vmul.f32 %v6967_v20, %v4386_v22  ;;  %v4384_v15 = vsel %vm4383_vm15, %v6965_v45, %v4380_v49 }
 0xf26   :  { %v4399_v28 = vmul.f32 %v4384_v15, %v8041_v37 }
 0xf27   :  { %v4388_v33 = vmul.f32 0.5, %v4387_v11 }
 0xf28   :  { %v4406_v57 = vmul.f32 %v8053_v17, %v4399_v28 }
 0xf29   :  { %v4389_v39 = vsub.f32 1.5, %v4388_v33 }
 0xf2a   :  { %v8091_v2 = vadd.f32 %v8057_v12, %v4406_v57 }
 0xf2b   :  { %v4390_v24 = vmul.f32 %v6967_v20, %v4389_v39 }
 0xf2d   :  { %v4394_v60 = vsel %vm4393_vm2, %v6967_v20, %v4390_v24 }
 0xf2e   :  { %v4400_v30 = vmul.f32 %v4394_v60, %v8046_v7  ;;  %v6705_v7 = vld [vmem:[#allocation11 + $0x118] sm:$0xff] }
 0xf2f   :  { %4722 = vmatpush.bf16.msrb.mxu2 %v6705_v7 }
 0xf30   :  { %v4407_v54 = vmul.f32 %v8053_v17, %v4400_v30  ;;  %v6704_v17 = vld [vmem:[#allocation11 + $0x110] sm:$0xff] }
 0xf32   :  { %v8094_v18 = vadd.f32 %v8057_v12, %v4407_v54  ;;  %v6703_v12 = vld [vmem:[#allocation11 + $0x108] sm:$0xff] }
 0xf33   :  { %4723 = vmatpush.bf16.msrb.mxu2 %v6704_v17 }
 0xf34   :  { %v4417_v37 = vpack.c.bf16 %v8094_v18, %v8091_v2 }
 0xf36   :  { %4540 = vmatmul.bf16.gmra.mxu3 %v4417_v37  ;;  %4564 = vmatmul.bf16.gmra.mxu0 %v4417_v37  ;;  %v4621_v37 = vperm.slane %v8104_v9, 4 }
 0xf37   :  { %4724 = vmatpush.bf16.msrb.mxu2 %v6703_v12 }
 0xf3b   :  { %4725 = vmatpush.bf16.msrb.mxu2 %v6702_v23 }
 0xf53   :  { %v4555_v27 = vpop.f32.mrf.mxu0 }
 0xf54   :  { %v4556_v6 = vadd.f32 %v4555_v27, %v4439_v36 }
 0xf56   :  { %v4571_v44 = vmax.f32 %v4556_v6, 0.0 }
 0xf59   :  { %v4531_v14 = vpop.f32.mrf.mxu3 }
 0xf5a   :  { %v4532_v21 = vadd.f32 %v4531_v14, %v4438_v34 }
 0xf5b   :  { %v4557_v25 = vpop.f32.mrf.mxu0 }
 0xf5c   :  { %v4558_v63 = vadd.f32 %v4557_v25, %v4439_v36  ;;  %v4570_v3 = vmax.f32 %v4532_v21, 0.0 }
 0xf5e   :  { %v4573_v40 = vmax.f32 %v4558_v63, 0.0 }
 0xf60   :  { %v4583_v5 = vpack.c.bf16 %v4573_v40, %v4571_v44 }
 0xf61   :  { %v4533_v46 = vpop.f32.mrf.mxu3 }
 0xf62   :  { %v4534_v31 = vadd.f32 %v4533_v46, %v4438_v34  ;;  %4750 = vmatmul.bf16.vlgmr.msrb.gmra.mxu3 %v4583_v5 }
 0xf64   :  { %v4572_v62 = vmax.f32 %v4534_v31, 0.0 }
 0xf66   :  { %v4582_v41 = vpack.c.bf16 %v4572_v62, %v4570_v3 }
 0xf68   :  { %4726 = vmatmul.bf16.vlgmr.msrb.gmra.mxu2 %v4582_v41 }
 0xf83   :  { %v4560_v47 = vpop.f32.mrf.mxu0 }
 0xf84   :  { %v4561_v42 = vadd.f32 %v4560_v47, %v4439_v36 }
 0xf86   :  { %v4575_v26 = vmax.f32 %v4561_v42, 0.0 }
 0xf89   :  { %v4536_v8 = vpop.f32.mrf.mxu3 }
 0xf8a   :  { %v4537_v32 = vadd.f32 %v4536_v8, %v4438_v34 }
 0xf8b   :  { %v4562_v52 = vpop.f32.mrf.mxu0 }
 0xf8c   :  { %v4563_v4 = vadd.f32 %v4562_v52, %v4439_v36  ;;  %v4574_v13 = vmax.f32 %v4537_v32, 0.0 }
 0xf8e   :  { %v4577_v0 = vmax.f32 %v4563_v4, 0.0 }
 0xf90   :  { %v4585_v45 = vpack.c.bf16 %v4577_v0, %v4575_v26 }
 0xf91   :  { %v4538_v35 = vpop.f32.mrf.mxu3 }
 0xf92   :  { %v4539_v1 = vadd.f32 %v4538_v35, %v4438_v34  ;;  %4755 = vmatmul.bf16.gmra.mxu3 %v4585_v45 }
 0xf94   :  { %v4576_v61 = vmax.f32 %v4539_v1, 0.0 }
 0xf96   :  { %v4584_v38 = vpack.c.bf16 %v4576_v61, %v4574_v13 }
 0xf98   :  { %4731 = vmatmul.bf16.gmra.mxu2 %v4584_v38 }
 0xfb3   :  { %v4565_v16 = vpop.f32.mrf.mxu0 }
 0xfb4   :  { %v4566_v58 = vadd.f32 %v4565_v16, %v4439_v36 }
 0xfb6   :  { %v4579_v22 = vmax.f32 %v4566_v58, 0.0 }
 0xfb9   :  { %v4541_v56 = vpop.f32.mrf.mxu3 }
 0xfba   :  { %v4542_v15 = vadd.f32 %v4541_v56, %v4438_v34 }
 0xfbb   :  { %v4567_v20 = vpop.f32.mrf.mxu0 }
 0xfbc   :  { %v4568_v49 = vadd.f32 %v4567_v20, %v4439_v36  ;;  %v4578_v24 = vmax.f32 %v4542_v15, 0.0  ;;  %v6733_v15 = vld [vmem:[#allocation13 + $0x78] sm:$0xff] }
 0xfbd   :  { %5054 = vmatpush.bf16.msra.mxu2 %v6733_v15  ;;  %v6718_v15 = vld [vmem:[#allocation13] sm:$0xff] }
 0xfbe   :  { %v4581_v11 = vmax.f32 %v4568_v49, 0.0 }
 0xfc0   :  { %v4587_v33 = vpack.c.bf16 %v4581_v11, %v4579_v22 }
 0xfc1   :  { %v4543_v39 = vpop.f32.mrf.mxu3 }
 0xfc2   :  { %v4544_v28 = vadd.f32 %v4543_v39, %v4438_v34  ;;  %4760 = vmatmul.bf16.gmra.mxu3 %v4587_v33  ;;  %v6732_v33 = vld [vmem:[#allocation13 + $0x70] sm:$0xff]  ;;  %v6731_v39 = vld [vmem:[#allocation13 + $0x68] sm:$0xff] }
 0xfc3   :  { %5055 = vmatpush.bf16.msra.mxu2 %v6732_v33 }
 0xfc4   :  { %v4580_v60 = vmax.f32 %v4544_v28, 0.0  ;;  %v6730_v28 = vld [vmem:[#allocation13 + $0x60] sm:$0xff] }
 0xfc6   :  { %v4586_v30 = vpack.c.bf16 %v4580_v60, %v4578_v24  ;;  %v6729_v24 = vld [vmem:[#allocation13 + $0x58] sm:$0xff]  ;;  %v6728_v60 = vld [vmem:[#allocation13 + $0x50] sm:$0xff] }
 0xfc7   :  { %5056 = vmatpush.bf16.msra.mxu2 %v6731_v39 }
 0xfc8   :  { %4736 = vmatmul.bf16.gmra.mxu2 %v4586_v30  ;;  %v6727_v30 = vld [vmem:[#allocation13 + $0x48] sm:$0xff] }
 0xfcb   :  { %5057 = vmatpush.bf16.msra.mxu2 %v6730_v28 }
 0xfcf   :  { %5058 = vmatpush.bf16.msra.mxu2 %v6729_v24 }
 0xfd3   :  { %5059 = vmatpush.bf16.msra.mxu2 %v6728_v60 }
 0xfd7   :  { %5060 = vmatpush.bf16.msra.mxu2 %v6727_v30 }
 0xfe5   :  { %v4751_v57 = vpop.f32.mrf.mxu3 }
 0xfeb   :  { %v4727_v54 = vpop.f32.mrf.mxu2 }
 0xfec   :  { %v4728_v25 = vadd.f32 %v4727_v54, %v4621_v37 }
 0xfed   :  { %v4753_v7 = vpop.f32.mrf.mxu3 }
 0xfee   :  { %v4752_v63 = vadd.f32 %v4751_v57, %v4728_v25 }
 0xff0   :  { %v4766_v44 = vadd.f32 %v4752_v63, %v8063_v53 }
 0xff3   :  { %v4729_v10 = vpop.f32.mrf.mxu2 }
 0xff4   :  { %v4730_v55 = vadd.f32 %v4729_v10, %v4621_v37  ;;  %v6726_v10 = vld [vmem:[#allocation13 + $0x40] sm:$0xff] }
 0xff5   :  { %5061 = vmatpush.bf16.msra.mxu2 %v6726_v10 }
 0xff6   :  { %v4754_v19 = vadd.f32 %v4753_v7, %v4730_v55 }
0x1015   :  { %v4756_v17 = vpop.f32.mrf.mxu3 }
0x101b   :  { %v4732_v29 = vpop.f32.mrf.mxu2 }
0x101c   :  { %v4733_v12 = vadd.f32 %v4732_v29, %v4621_v37  ;;  %v6741_v29 = vld [vmem:[#allocation13 + $0xb8] sm:$0xff] }
0x101d   :  { %v4758_v14 = vpop.f32.mrf.mxu3  ;;  %5136 = vmatpush.bf16.msra.mxu3 %v6741_v29 }
0x101e   :  { %v4757_v23 = vadd.f32 %v4756_v17, %v4733_v12  ;;  %v6725_v12 = vld [vmem:[#allocation13 + $0x38] sm:$0xff] }
0x101f   :  { %4971 = vmatpush.bf16.msra.mxu0 %v6725_v12 }
0x1020   :  { %v4768_v43 = vadd.f32 %v4757_v23, %v8077_v50 }
0x1022   :  { %4776 = vadd.xlane.f32.xlu0 %v4768_v43 }
0x1023   :  { %v4734_v27 = vpop.f32.mrf.mxu2 }
0x1024   :  { %v4735_v36 = vadd.f32 %v4734_v27, %v4621_v37  ;;  %v6724_v27 = vld [vmem:[#allocation13 + $0x30] sm:$0xff] }
0x1025   :  { %4972 = vmatpush.bf16.msra.mxu0 %v6724_v27 }
0x1026   :  { %v4759_v6 = vadd.f32 %v4758_v14, %v4735_v36 }
0x1028   :  { %v4769_v34 = vadd.f32 %v4759_v6, %v8080_v51  ;;  %v4767_v51 = vadd.f32 %v4754_v19, %v8066_v59 }
0x102a   :  { %4778 = vadd.xlane.f32.xlu1 %v4769_v34 }
0x1032   :  { %4772 = vadd.xlane.f32.xlu1 %v4766_v44 }
0x1045   :  { %v4761_v40 = vpop.f32.mrf.mxu3 }
0x104b   :  { %v4737_v21 = vpop.f32.mrf.mxu2 }
0x104c   :  { %v4738_v5 = vadd.f32 %v4737_v21, %v4621_v37 }
0x104d   :  { %v4763_v62 = vpop.f32.mrf.mxu3 }
0x104e   :  { %v4762_v46 = vadd.f32 %v4761_v40, %v4738_v5 }
0x1050   :  { %v4770_v31 = vadd.f32 %v4762_v46, %v8091_v2  ;;  %v8146_v46 = vperm.slane %v8104_v9, 7 }
0x1052   :  { %4780 = vadd.xlane.f32.xlu2 %v4770_v31 }
0x1053   :  { %v4739_v50 = vpop.f32.mrf.mxu2 }
0x1054   :  { %v4740_v3 = vadd.f32 %v4739_v50, %v4621_v37 }
0x1056   :  { %v4764_v41 = vadd.f32 %v4763_v62, %v4740_v3  ;;  %v8152_v62 = vld [vmem:[%s8192_s8 + $0x28] ss:$0 sm:$0xff] }
0x1058   :  { %v4771_v47 = vadd.f32 %v4764_v41, %v8094_v18 }
0x105a   :  { %4782 = vadd.xlane.f32.xlu0 %v4771_v47  ;;  %4774 = vadd.xlane.f32.xlu2 %v4767_v51 }
0x1095   :  { %v4777_v8 = vpop.xlane.xlu0 %4776 }
0x1096   :  { %v4786_v53 = vmul.f32 %v4777_v8, %v7490_v48  ;;  %v6723_v8 = vld [vmem:[#allocation13 + $0x28] sm:$0xff] }
0x1097   :  { %4973 = vmatpush.bf16.msra.mxu0 %v6723_v8 }
0x1098   :  { %v8114_v42 = vsub.f32 %v4768_v43, %v4786_v53  ;;  %v6740_v43 = vld [vmem:[#allocation13 + $0xb0] sm:$0xff] }
0x1099   :  { %5137 = vmatpush.bf16.msra.mxu3 %v6740_v43 }
0x109a   :  { %v4798_v52 = vmul.f32 %v8114_v42, %v8114_v42 }
0x109c   :  { %4806 = vadd.xlane.f32.xlu0 %v4798_v52 }
0x109d   :  { %v4779_v2 = vpop.xlane.xlu1 %4778 }
0x109e   :  { %v4787_v4 = vmul.f32 %v4779_v2, %v7490_v48  ;;  %v6738_v2 = vld [vmem:[#allocation13 + $0xa0] sm:$0xff] }
0x10a0   :  { %v8119_v26 = vsub.f32 %v4769_v34, %v4787_v4  ;;  %v6722_v4 = vld [vmem:[#allocation13 + $0x20] sm:$0xff] }
0x10a1   :  { %4974 = vmatpush.bf16.msra.mxu0 %v6722_v4 }
0x10a2   :  { %v4799_v18 = vmul.f32 %v8119_v26, %v8119_v26 }
0x10a4   :  { %4808 = vadd.xlane.f32.xlu1 %v4799_v18 }
0x10a5   :  { %v4773_v59 = vpop.xlane.xlu1 %4772 }
0x10a6   :  { %v4784_v0 = vmul.f32 %v4773_v59, %v7490_v48 }
0x10a8   :  { %v8124_v32 = vsub.f32 %v4766_v44, %v4784_v0  ;;  %v6721_v0 = vld [vmem:[#allocation13 + $0x18] sm:$0xff] }
0x10a9   :  { %4975 = vmatpush.bf16.msra.mxu0 %v6721_v0 }
0x10aa   :  { %v4796_v45 = vmul.f32 %v8124_v32, %v8124_v32 }
0x10ac   :  { %4802 = vadd.xlane.f32.xlu1 %v4796_v45 }
0x10c5   :  { %v4781_v35 = vpop.xlane.xlu2 %4780 }
0x10c6   :  { %v4788_v1 = vmul.f32 %v4781_v35, %v7490_v48  ;;  %v6736_v35 = vld [vmem:[#allocation13 + $0x90] sm:$0xff] }
0x10c8   :  { %v8129_v13 = vsub.f32 %v4770_v31, %v4788_v1  ;;  %v6720_v1 = vld [vmem:[#allocation13 + $0x10] sm:$0xff] }
0x10c9   :  { %4976 = vmatpush.bf16.msra.mxu0 %v6720_v1 }
0x10ca   :  { %v4800_v61 = vmul.f32 %v8129_v13, %v8129_v13 }
0x10cc   :  { %4810 = vadd.xlane.f32.xlu2 %v4800_v61  ;;  %v6735_v61 = vld [vmem:[#allocation13 + $0x88] sm:$0xff] }
0x10cd   :  { %v4783_v38 = vpop.xlane.xlu0 %4782  ;;  %v4775_v16 = vpop.xlane.xlu2 %4774 }
0x10ce   :  { %v4789_v56 = vmul.f32 %v4783_v38, %v7490_v48  ;;  %v4785_v58 = vmul.f32 %v4775_v16, %v7490_v48  ;;  %v6719_v38 = vld [vmem:[#allocation13 + $0x8] sm:$0xff] }
0x10cf   :  { %4977 = vmatpush.bf16.msra.mxu0 %v6719_v38 }
0x10d0   :  { %v8135_v20 = vsub.f32 %v4771_v47, %v4789_v56  ;;  %v8137_v49 = vsub.f32 %v4767_v51, %v4785_v58  ;;  %v6739_v51 = vld [vmem:[#allocation13 + $0xa8] sm:$0xff] }
0x10d1   :  { %5138 = vmatpush.bf16.msra.mxu3 %v6739_v51 }
0x10d2   :  { %v4801_v22 = vmul.f32 %v8135_v20, %v8135_v20  ;;  %v4797_v11 = vmul.f32 %v8137_v49, %v8137_v49 }
0x10d3   :  { %4978 = vmatpush.bf16.msra.mxu0 %v6718_v15 }
0x10d4   :  { %4812 = vadd.xlane.f32.xlu0 %v4801_v22  ;;  %4804 = vadd.xlane.f32.xlu2 %v4797_v11  ;;  %v6734_v11 = vld [vmem:[#allocation13 + $0x80] sm:$0xff] }
0x10d5   :  { %5139 = vmatpush.bf16.msra.mxu3 %v6738_v2 }
0x110f   :  { %v4807_v57 = vpop.xlane.xlu0 %4806 }
0x1110   :  { %v4816_v54 = vmul.f32 %v4807_v57, %v7490_v48 }
0x1112   :  { %v4822_v37 = vadd.f32 1e-05, %v4816_v54 }
0x1114   :  { %6968 = vrsqrt.f32 %v4822_v37  ;;  %vm4852_vm4 = vweird.f32 %v4822_v37 }
0x1117   :  { %v4809_v55 = vpop.xlane.xlu1 %4808 }
0x1118   :  { %v4817_v7 = vmul.f32 %v4809_v55, %v7490_v48 }
0x111a   :  { %v6969_v19 = vpop.eup %6968  ;;  %v4823_v17 = vadd.f32 1e-05, %v4817_v7 }
0x111b   :  { %v4847_v23 = vmul.f32 %v6969_v19, %v4822_v37  ;;  %vm4853_vm3 = vweird.f32 %v6969_v19 }
0x111c   :  { %6970 = vrsqrt.f32 %v4823_v17  ;;  %vm4854_vm5 = vmor %vm4852_vm4, %vm4853_vm3  ;;  %vm4862_vm7 = vweird.f32 %v4823_v17 }
0x111d   :  { %v4848_v36 = vmul.f32 %v6969_v19, %v4847_v23 }
0x111f   :  { %v4849_v14 = vmul.f32 0.5, %v4848_v36  ;;  %v4803_v53 = vpop.xlane.xlu1 %4802 }
0x1120   :  { %v4814_v18 = vmul.f32 %v4803_v53, %v7490_v48 }
0x1121   :  { %v4850_v6 = vsub.f32 1.5, %v4849_v14 }
0x1122   :  { %v6971_v25 = vpop.eup %6970  ;;  %v4820_v45 = vadd.f32 1e-05, %v4814_v18 }
0x1123   :  { %v4851_v34 = vmul.f32 %v6969_v19, %v4850_v6  ;;  %v4857_v63 = vmul.f32 %v6971_v25, %v4823_v17  ;;  %vm4863_vm6 = vweird.f32 %v6971_v25 }
0x1124   :  { %vm4864_vm8 = vmor %vm4862_vm7, %vm4863_vm6  ;;  %6972 = vrsqrt.f32 %v4820_v45  ;;  %vm4832_vm12 = vweird.f32 %v4820_v45 }
0x1125   :  { %v4858_v44 = vmul.f32 %v6971_v25, %v4857_v63  ;;  %v4855_v40 = vsel %vm4854_vm5, %v6969_v19, %v4851_v34 }
0x1126   :  { %v4888_v31 = vmul.f32 %v4855_v40, %v8114_v42 }
0x1127   :  { %v4859_v21 = vmul.f32 0.5, %v4858_v44 }
0x1128   :  { %v4895_v41 = vmul.f32 %v8146_v46, %v4888_v31 }
0x1129   :  { %v4860_v5 = vsub.f32 1.5, %v4859_v21 }
0x112a   :  { %v4902_v42 = vadd.f32 %v8152_v62, %v4895_v41  ;;  %v6973_v58 = vpop.eup %6972 }
0x112b   :  { %v4861_v50 = vmul.f32 %v6971_v25, %v4860_v5  ;;  %v4827_v33 = vmul.f32 %v6973_v58, %v4820_v45  ;;  %vm4833_vm10 = vweird.f32 %v6973_v58 }
0x112c   :  { %vm4834_vm14 = vmor %vm4832_vm12, %vm4833_vm10 }
0x112d   :  { %v4865_v3 = vsel %vm4864_vm8, %v6971_v25, %v4861_v50  ;;  %v4828_v24 = vmul.f32 %v6973_v58, %v4827_v33 }
0x112e   :  { %v4889_v47 = vmul.f32 %v4865_v3, %v8119_v26  ;;  %v6737_v26 = vld [vmem:[#allocation13 + $0x98] sm:$0xff] }
0x112f   :  { %5140 = vmatpush.bf16.msra.mxu3 %v6737_v26  ;;  %v4829_v55 = vmul.f32 0.5, %v4828_v24 }
0x1130   :  { %v4896_v9 = vmul.f32 %v8146_v46, %v4889_v47 }
0x1131   :  { %v4830_v17 = vsub.f32 1.5, %v4829_v55 }
0x1132   :  { %v4903_v52 = vadd.f32 %v8152_v62, %v4896_v9 }
0x1133   :  { %5141 = vmatpush.bf16.msra.mxu3 %v6736_v35  ;;  %v4831_v36 = vmul.f32 %v6973_v58, %v4830_v17 }
0x1134   :  { %v4988_v59 = vpack.c.bf16 %v4903_v52, %v4902_v42 }
0x1135   :  { %v4835_v63 = vsel %vm4834_vm14, %v6973_v58, %v4831_v36 }
0x1136   :  { %5062 = vmatmul.bf16.vlgmr.msra.gmra.mxu2 %v4988_v59  ;;  %v4886_v31 = vmul.f32 %v4835_v63, %v8124_v32 }
0x1137   :  { %5142 = vmatpush.bf16.msra.mxu3 %v6735_v61 }
0x1138   :  { %v4893_v9 = vmul.f32 %v8146_v46, %v4886_v31 }
0x113a   :  { %v4900_v2 = vadd.f32 %v8152_v62, %v4893_v9 }
0x113b   :  { %5143 = vmatpush.bf16.msra.mxu3 %v6734_v11 }
0x113f   :  { %v4811_v16 = vpop.xlane.xlu2 %4810 }
0x1140   :  { %v4818_v56 = vmul.f32 %v4811_v16, %v7490_v48 }
0x1142   :  { %v4824_v22 = vadd.f32 1e-05, %v4818_v56 }
0x1144   :  { %6974 = vrsqrt.f32 %v4824_v22  ;;  %vm4872_vm11 = vweird.f32 %v4824_v22 }
0x1147   :  { %v4813_v39 = vpop.xlane.xlu0 %4812  ;;  %v4805_v28 = vpop.xlane.xlu2 %4804 }
0x1148   :  { %v4819_v60 = vmul.f32 %v4813_v39, %v7490_v48  ;;  %v4815_v30 = vmul.f32 %v4805_v28, %v7490_v48 }
0x114a   :  { %v6975_v57 = vpop.eup %6974  ;;  %v4825_v54 = vadd.f32 1e-05, %v4819_v60  ;;  %v4821_v37 = vadd.f32 1e-05, %v4815_v30 }
0x114b   :  { %v4867_v10 = vmul.f32 %v6975_v57, %v4824_v22  ;;  %vm4873_vm9 = vweird.f32 %v6975_v57 }
0x114c   :  { %6976 = vrsqrt.f32 %v4825_v54  ;;  %vm4874_vm13 = vmor %vm4872_vm11, %vm4873_vm9  ;;  %vm4882_vm1 = vweird.f32 %v4825_v54  ;;  %vm4842_vm3 = vweird.f32 %v4821_v37 }
0x114d   :  { %v4868_v7 = vmul.f32 %v6975_v57, %v4867_v10  ;;  %6978 = vrsqrt.f32 %v4821_v37 }
0x114f   :  { %v4869_v19 = vmul.f32 0.5, %v4868_v7 }
0x1151   :  { %v4870_v29 = vsub.f32 1.5, %v4869_v19 }
0x1152   :  { %v6977_v12 = vpop.eup %6976 }
0x1153   :  { %v6979_v23 = vpop.eup %6978  ;;  %v4871_v43 = vmul.f32 %v6975_v57, %v4870_v29  ;;  %v4877_v27 = vmul.f32 %v6977_v12, %v4825_v54  ;;  %vm4883_vm15 = vweird.f32 %v6977_v12 }
0x1154   :  { %v4837_v14 = vmul.f32 %v6979_v23, %v4821_v37  ;;  %vm4843_vm0 = vweird.f32 %v6979_v23  ;;  %vm4884_vm2 = vmor %vm4882_vm1, %vm4883_vm15 }
0x1155   :  { %v4878_v48 = vmul.f32 %v6977_v12, %v4877_v27  ;;  %v4875_v25 = vsel %vm4874_vm13, %v6975_v57, %v4871_v43  ;;  %vm4844_vm4 = vmor %vm4842_vm3, %vm4843_vm0 }
0x1156   :  { %v4838_v6 = vmul.f32 %v6979_v23, %v4837_v14  ;;  %v4890_v21 = vmul.f32 %v4875_v25, %v8129_v13 }
0x1157   :  { %v4879_v34 = vmul.f32 0.5, %v4878_v48 }
0x1158   :  { %v4839_v44 = vmul.f32 0.5, %v4838_v6  ;;  %v4897_v47 = vmul.f32 %v8146_v46, %v4890_v21 }
0x1159   :  { %v4880_v40 = vsub.f32 1.5, %v4879_v34 }
0x115a   :  { %v4840_v5 = vsub.f32 1.5, %v4839_v44  ;;  %v4904_v42 = vadd.f32 %v8152_v62, %v4897_v47 }
0x115b   :  { %v4881_v50 = vmul.f32 %v6977_v12, %v4880_v40 }
0x115c   :  { %v4841_v3 = vmul.f32 %v6979_v23, %v4840_v5 }
0x115d   :  { %v4885_v41 = vsel %vm4884_vm2, %v6977_v12, %v4881_v50 }
0x115e   :  { %v4891_v51 = vmul.f32 %v4885_v41, %v8135_v20  ;;  %v4845_v8 = vsel %vm4844_vm4, %v6979_v23, %v4841_v3  ;;  %v6999_v20 = vld [vmem:[%s8194_s10] sm:$0x3] }
0x115f   :  { %v4887_v13 = vmul.f32 %v4845_v8, %v8137_v49  ;;  %v4985_v49 = vperm.slane %v6999_v20, 1 }
0x1160   :  { %v4898_v53 = vmul.f32 %v8146_v46, %v4891_v51 }
0x1161   :  { %v4894_v32 = vmul.f32 %v8146_v46, %v4887_v13 }
0x1162   :  { %v4905_v52 = vadd.f32 %v8152_v62, %v4898_v53 }
0x1163   :  { %v4901_v4 = vadd.f32 %v8152_v62, %v4894_v32 }
0x1164   :  { %v5070_v18 = vpack.c.bf16 %v4905_v52, %v4904_v42 }
0x1165   :  { %v4906_v59 = vpack.c.bf16 %v4901_v4, %v4900_v2 }
0x1166   :  { %5144 = vmatmul.bf16.vlgmr.msra.gmra.mxu3 %v5070_v18 }
0x1167   :  { %4979 = vmatmul.bf16.vlgmr.msra.gmra.mxu0 %v4906_v59 }
0x11b9   :  { %v5063_v0 = vpop.f32.mrf.mxu2 }
0x11c1   :  { %v5065_v16 = vpop.f32.mrf.mxu2 }
0x11e4   :  { %v4980_v26 = vpop.f32.mrf.mxu0 }
0x11e5   :  { %v4986_v46 = vadd.f32 %v4985_v49, %v4980_v26 }
0x11e7   :  { %v5068_v45 = vadd.f32 %v5063_v0, %v4986_v46 }
0x11e9   :  { %v5145_v35 = vpop.f32.mrf.mxu3 }
0x11ea   :  { %v5150_v1 = vadd.f32 %v5145_v35, %v5068_v45 }
0x11ec   :  { %5152 = vst [vmem:[#allocation14] sm:$0xff] %v5150_v1  ;;  %v4982_v61 = vpop.f32.mrf.mxu0 }
0x11ed   :  { %v4987_v38 = vadd.f32 %v4985_v49, %v4982_v61 }
0x11ef   :  { %v5069_v62 = vadd.f32 %v5065_v16, %v4987_v38 }
0x11f1   :  { %v5147_v56 = vpop.f32.mrf.mxu3 }
0x11f2   :  { %v5151_v58 = vadd.f32 %v5147_v56, %v5069_v62 }
0x11f4   :  { %5153 = vst [vmem:[#allocation14 + $0x8] sm:$0xff] %v5151_v58 }
0x11f5   :  { %5166 = dma.vmem_to_hbm [thread:$0]  %s5159_s26, 256, %s5161_s17, [#allocation4], %s7214_s3, %s7214_s3, %s7215_s12  }
0x11f6   :  { %7200 = dma.done.wait [#allocation4], 256  }
0x11f7   :  { %7201 = vsyncadd [#allocation4], 4294967040 }
0x11f8   :  { %5171 = vsyncpa [#allocation3], 1 }
0x11f9   :  { %5172 = vsyncpa [#allocation6], 1 }
0x11fa   :  { %5173 = vsyncpa [#allocation9], 1 }
0x11fb   :  { %5174 = vsyncpa [#allocation12], 1 }
0x11fc   :  { %5175 = vsyncpa [#allocation4], 1 }

</bundles_post_ra>
